<compile_context>
chip_gen: v5e
topology: v5e:2x2
jax: 0.10.0
libtpu: 0.0.40
codegen_flags: <defaults>
</compile_context>

<pallas_src>
import jax
import jax.numpy as jnp
from jax import lax
from jax.experimental import pallas as pl
from jax.experimental.pallas import tpu as pltpu


def _encoder_kernel(pts_ref,
                    w1_ref, b1_ref, s1_ref, t1_ref,
                    w2_ref, b2_ref,
                    w3a_ref, w3b_ref, b3_ref, s2_ref, t2_ref,
                    w4_ref, b4_ref,
                    out_ref):
    """One grid step: Mt groups of N points.

    pts_ref: [Mt, N, 3]          out_ref: [Mt, C]
    w1 [3,128]  b1/s1/t1 [1,128] w2 [128,256] b2 [1,256]
    w3a [256,512] (global half)  w3b [256,512] (per-point half)  b3/s2/t2 [1,512]
    w4 [512,C]  b4 [1,C]
    """
    Mt, N, _ = pts_ref.shape
    C = out_ref.shape[1]

    x = pts_ref[...].astype(jnp.float32).reshape(Mt * N, 3)      # [Mt*N, 3]

    # ---- first_conv[0]: Conv1d(3,128,1) -> 3 broadcast FMAs on the VPU
    w1 = w1_ref[...]                                             # [3, 128]
    h = (x[:, 0:1] * w1[0:1, :]
         + x[:, 1:2] * w1[1:2, :]
         + x[:, 2:3] * w1[2:3, :]) + b1_ref[...]                 # [Mt*N, 128]

    # ---- BatchNorm1d(128) (eval, folded) + ReLU
    h = jnp.maximum(h * s1_ref[...] + t1_ref[...], 0.0)

    # ---- first_conv[3]: Conv1d(128,256,1)  (MXU)
    h2 = jnp.dot(h, w2_ref[...], preferred_element_type=jnp.float32) + b2_ref[...]

    # ---- per-group max over N -> global feature
    g = jnp.max(h2.reshape(Mt, N, 256), axis=1)                  # [Mt, 256]

    # ---- second_conv[0]: Conv1d(512,512,1) on concat([global, local]),
    #      computed as  g @ W3[:256]  (once per group)  +  h2 @ W3[256:]  (per point)
    g3 = jnp.dot(g, w3a_ref[...], preferred_element_type=jnp.float32)    # [Mt, 512]
    h3 = jnp.dot(h2, w3b_ref[...], preferred_element_type=jnp.float32)   # [Mt*N, 512]
    h3 = (h3.reshape(Mt, N, 512)
          + g3[:, None, :]
          + b3_ref[...].reshape(1, 1, 512))                      # [Mt, N, 512]

    # ---- BatchNorm1d(512) (eval, folded) + ReLU
    h3 = jnp.maximum(h3 * s2_ref[...].reshape(1, 1, 512)
                     + t2_ref[...].reshape(1, 1, 512), 0.0)

    # ---- second_conv[3]: Conv1d(512,C,1)  (MXU)
    h4 = jnp.dot(h3.reshape(Mt * N, 512), w4_ref[...],
                 preferred_element_type=jnp.float32) + b4_ref[...]       # [Mt*N, C]

    # ---- final per-group max over N
    out_ref[...] = jnp.max(h4.reshape(Mt, N, C), axis=1).astype(out_ref.dtype)


def encoder_forward(point_groups, params, *, group_block=None):
    """point_groups: [B, G, N, 3] float -> [B, G, C] float32."""
    B, G, N, _ = point_groups.shape
    M = B * G
    C = params["w4"].shape[1]

    pts = point_groups.reshape(M, N, 3).astype(jnp.float32)

    # Groups per grid step: keep Mt*N rows comfortably inside VMEM while giving the
    # MXU enough rows; Mt == M or a multiple of 8 keeps output blocks tiling-friendly.
    if group_block is None:
        max_rows = 2048
        Mt = M
        for d in range(M, 0, -1):
            if M % d == 0 and (d == M or d % 8 == 0) and d * N <= max_rows:
                Mt = d
                break
    else:
        Mt = group_block
    assert M % Mt == 0, (M, Mt)

    w3a = params["w3"][:256]      # rows hitting the broadcast global feature
    w3b = params["w3"][256:]      # rows hitting the per-point feature

    def full(shape):
        return pl.BlockSpec(shape, lambda m: (0,) * len(shape))

    out = pl.pallas_call(
        _encoder_kernel,
        out_shape=jax.ShapeDtypeStruct((M, C), jnp.float32),
        grid=(M // Mt,),
        in_specs=[
            pl.BlockSpec((Mt, N, 3), lambda m: (m, 0, 0)),
            full((3, 128)), full((1, 128)), full((1, 128)), full((1, 128)),
            full((128, 256)), full((1, 256)),
            full((256, 512)), full((256, 512)), full((1, 512)),
            full((1, 512)), full((1, 512)),
            full((512, C)), full((1, C)),
        ],
        out_specs=pl.BlockSpec((Mt, C), lambda m: (m, 0)),
        compiler_params=pltpu.CompilerParams(
            dimension_semantics=("parallel",)),
    )(pts,
      params["w1"], params["b1"], params["s1"], params["t1"],
      params["w2"], params["b2"],
      w3a, w3b, params["b3"], params["s2"], params["t2"],
      params["w4"], params["b4"])

    return out.reshape(B, G, C)


def encoder_reference(point_groups, params):
    """Pure-JAX reference mirroring the PyTorch forward (eval-mode BN)."""
    B, G, N, _ = point_groups.shape
    x = point_groups.reshape(B * G, N, 3).astype(jnp.float32)
    h = x @ params["w1"] + params["b1"]
    h = jnp.maximum(h * params["s1"] + params["t1"], 0.0)
    h2 = h @ params["w2"] + params["b2"]
    g = jnp.max(h2, axis=1, keepdims=True)                       # [M,1,256]
    feat = jnp.concatenate([jnp.broadcast_to(g, h2.shape), h2], axis=-1)
    h3 = feat @ params["w3"] + params["b3"]
    h3 = jnp.maximum(h3 * params["s2"] + params["t2"], 0.0)
    h4 = h3 @ params["w4"] + params["b4"]
    out = jnp.max(h4, axis=1)
    return out.reshape(B, G, -1)


def init_params(key, encoder_channel):
    """Conv weights as [in, out]; biases / folded-BN params as [1, C]."""
    ks = jax.random.split(key, 4)

    def conv(k, fan_in, fan_out):
        lim = 1.0 / (fan_in ** 0.5)
        kw, kb = jax.random.split(k)
        w = jax.random.uniform(kw, (fan_in, fan_out), jnp.float32, -lim, lim)
        b = jax.random.uniform(kb, (1, fan_out), jnp.float32, -lim, lim)
        return w, b

    w1, b1 = conv(ks[0], 3, 128)
    w2, b2 = conv(ks[1], 128, 256)
    w3, b3 = conv(ks[2], 512, 512)
    w4, b4 = conv(ks[3], 512, encoder_channel)

    eps = 1e-5

    def bn_fold(c):
        gamma = jnp.ones((1, c), jnp.float32)
        beta = jnp.zeros((1, c), jnp.float32)
        mean = jnp.zeros((1, c), jnp.float32)
        var = jnp.ones((1, c), jnp.float32)
        s = gamma * lax.rsqrt(var + eps)
        t = beta - mean * s
        return s, t

    s1, t1 = bn_fold(128)
    s2, t2 = bn_fold(512)
    return dict(w1=w1, b1=b1, s1=s1, t1=t1, w2=w2, b2=b2,
                w3=w3, b3=b3, s2=s2, t2=t2, w4=w4, b4=b4)


if __name__ == "__main__":
    B, G, N = 2, 4, 32          # small demo shapes; N = points per group
    encoder_channel = 256       # lane-dense output channels

    key = jax.random.PRNGKey(0)
    kp, kx = jax.random.split(key)
    params = init_params(kp, encoder_channel)
    point_groups = jax.random.normal(kx, (B, G, N, 3), dtype=jnp.float32)

    out = encoder_forward(point_groups, params)
    out = jax.block_until_ready(out)

    assert out.shape == (B, G, encoder_channel), out.shape
    assert out.dtype == jnp.float32

    ref = encoder_reference(point_groups, params)
    err = float(jnp.max(jnp.abs(out - ref)))
    assert err < 2e-2, f"max abs error vs reference: {err}"

    print("KERNEL_OK")
</pallas_src>

<mosaic_0001>
module attributes {stable_mosaic.version = 11 : i64} {
  func.func @_encoder_kernel(%arg0: i32, %arg1: memref<8x32x3xf32, #tpu.memory_space<vmem>>, %arg2: memref<3x128xf32, #tpu.memory_space<vmem>>, %arg3: memref<1x128xf32, #tpu.memory_space<vmem>>, %arg4: memref<1x128xf32, #tpu.memory_space<vmem>>, %arg5: memref<1x128xf32, #tpu.memory_space<vmem>>, %arg6: memref<128x256xf32, #tpu.memory_space<vmem>>, %arg7: memref<1x256xf32, #tpu.memory_space<vmem>>, %arg8: memref<256x512xf32, #tpu.memory_space<vmem>>, %arg9: memref<256x512xf32, #tpu.memory_space<vmem>>, %arg10: memref<1x512xf32, #tpu.memory_space<vmem>>, %arg11: memref<1x512xf32, #tpu.memory_space<vmem>>, %arg12: memref<1x512xf32, #tpu.memory_space<vmem>>, %arg13: memref<512x256xf32, #tpu.memory_space<vmem>>, %arg14: memref<1x256xf32, #tpu.memory_space<vmem>>, %arg15: memref<8x256xf32, #tpu.memory_space<vmem>>) attributes {dimension_semantics = [#tpu.dimension_semantics<parallel>], iteration_bounds = array<i64: 1>, scalar_prefetch = 0 : i64, scratch_operands = 0 : i64, tpu.core_type = #tpu.core_type<tc>, window_params = [{transform_indices = @transform_0, window_bounds = array<i64: 8, 32, 3>}, {pipeline_mode = #tpu.pipeline_mode<synchronous>, transform_indices = @transform_1, window_bounds = array<i64: 3, 128>}, {pipeline_mode = #tpu.pipeline_mode<synchronous>, transform_indices = @transform_2, window_bounds = array<i64: 1, 128>}, {pipeline_mode = #tpu.pipeline_mode<synchronous>, transform_indices = @transform_3, window_bounds = array<i64: 1, 128>}, {pipeline_mode = #tpu.pipeline_mode<synchronous>, transform_indices = @transform_4, window_bounds = array<i64: 1, 128>}, {pipeline_mode = #tpu.pipeline_mode<synchronous>, transform_indices = @transform_5, window_bounds = array<i64: 128, 256>}, {pipeline_mode = #tpu.pipeline_mode<synchronous>, transform_indices = @transform_6, window_bounds = array<i64: 1, 256>}, {pipeline_mode = #tpu.pipeline_mode<synchronous>, transform_indices = @transform_7, window_bounds = array<i64: 256, 512>}, {pipeline_mode = #tpu.pipeline_mode<synchronous>, transform_indices = @transform_8, window_bounds = array<i64: 256, 512>}, {pipeline_mode = #tpu.pipeline_mode<synchronous>, transform_indices = @transform_9, window_bounds = array<i64: 1, 512>}, {pipeline_mode = #tpu.pipeline_mode<synchronous>, transform_indices = @transform_10, window_bounds = array<i64: 1, 512>}, {pipeline_mode = #tpu.pipeline_mode<synchronous>, transform_indices = @transform_11, window_bounds = array<i64: 1, 512>}, {pipeline_mode = #tpu.pipeline_mode<synchronous>, transform_indices = @transform_12, window_bounds = array<i64: 512, 256>}, {pipeline_mode = #tpu.pipeline_mode<synchronous>, transform_indices = @transform_13, window_bounds = array<i64: 1, 256>}, {transform_indices = @transform_14, window_bounds = array<i64: 8, 256>}]} {
    %c0 = arith.constant 0 : index
    %c0_0 = arith.constant 0 : index
    %c0_1 = arith.constant 0 : index
    %0 = vector.load %arg1[%c0, %c0_0, %c0_1] : memref<8x32x3xf32, #tpu.memory_space<vmem>>, vector<8x32x3xf32>
    %1 = vector.shape_cast %0 : vector<8x32x3xf32> to vector<256x3xf32>
    %c0_2 = arith.constant 0 : index
    %c0_3 = arith.constant 0 : index
    %2 = vector.load %arg2[%c0_2, %c0_3] : memref<3x128xf32, #tpu.memory_space<vmem>>, vector<3x128xf32>
    %3 = vector.extract_strided_slice %1 {offsets = [0, 0], sizes = [256, 1], strides = [1, 1]} : vector<256x3xf32> to vector<256x1xf32>
    %4 = vector.extract_strided_slice %2 {offsets = [0, 0], sizes = [1, 128], strides = [1, 1]} : vector<3x128xf32> to vector<1x128xf32>
    %5 = vector.broadcast %3 : vector<256x1xf32> to vector<256x128xf32>
    %6 = vector.broadcast %4 : vector<1x128xf32> to vector<256x128xf32>
    %7 = arith.mulf %5, %6 : vector<256x128xf32>
    %8 = vector.extract_strided_slice %1 {offsets = [0, 1], sizes = [256, 1], strides = [1, 1]} : vector<256x3xf32> to vector<256x1xf32>
    %9 = vector.extract_strided_slice %2 {offsets = [1, 0], sizes = [1, 128], strides = [1, 1]} : vector<3x128xf32> to vector<1x128xf32>
    %10 = vector.broadcast %8 : vector<256x1xf32> to vector<256x128xf32>
    %11 = vector.broadcast %9 : vector<1x128xf32> to vector<256x128xf32>
    %12 = arith.mulf %10, %11 : vector<256x128xf32>
    %13 = arith.addf %7, %12 : vector<256x128xf32>
    %14 = vector.extract_strided_slice %1 {offsets = [0, 2], sizes = [256, 1], strides = [1, 1]} : vector<256x3xf32> to vector<256x1xf32>
    %15 = vector.extract_strided_slice %2 {offsets = [2, 0], sizes = [1, 128], strides = [1, 1]} : vector<3x128xf32> to vector<1x128xf32>
    %16 = vector.broadcast %14 : vector<256x1xf32> to vector<256x128xf32>
    %17 = vector.broadcast %15 : vector<1x128xf32> to vector<256x128xf32>
    %18 = arith.mulf %16, %17 : vector<256x128xf32>
    %19 = arith.addf %13, %18 : vector<256x128xf32>
    %c0_4 = arith.constant 0 : index
    %c0_5 = arith.constant 0 : index
    %20 = vector.load %arg3[%c0_4, %c0_5] : memref<1x128xf32, #tpu.memory_space<vmem>>, vector<1x128xf32>
    %21 = vector.broadcast %20 : vector<1x128xf32> to vector<256x128xf32>
    %22 = arith.addf %19, %21 : vector<256x128xf32>
    %c0_6 = arith.constant 0 : index
    %c0_7 = arith.constant 0 : index
    %23 = vector.load %arg4[%c0_6, %c0_7] : memref<1x128xf32, #tpu.memory_space<vmem>>, vector<1x128xf32>
    %24 = vector.broadcast %23 : vector<1x128xf32> to vector<256x128xf32>
    %25 = arith.mulf %22, %24 : vector<256x128xf32>
    %c0_8 = arith.constant 0 : index
    %c0_9 = arith.constant 0 : index
    %26 = vector.load %arg5[%c0_8, %c0_9] : memref<1x128xf32, #tpu.memory_space<vmem>>, vector<1x128xf32>
    %27 = vector.broadcast %26 : vector<1x128xf32> to vector<256x128xf32>
    %28 = arith.addf %25, %27 : vector<256x128xf32>
    %cst = arith.constant 0.000000e+00 : f32
    %29 = vector.broadcast %cst : f32 to vector<256x128xf32>
    %30 = arith.maximumf %28, %29 : vector<256x128xf32>
    %c0_10 = arith.constant 0 : index
    %c0_11 = arith.constant 0 : index
    %31 = vector.load %arg6[%c0_10, %c0_11] : memref<128x256xf32, #tpu.memory_space<vmem>>, vector<128x256xf32>
    %cst_12 = arith.constant dense<0.000000e+00> : vector<256x256xf32>
    %32 = tpu.matmul %30, %31, %cst_12 {dimension_numbers = #tpu.dot_dimension_numbers<[1], [0], [0], [1], [0, 0, 1, 1], [], []>} : vector<256x128xf32>, vector<128x256xf32>, vector<256x256xf32> -> vector<256x256xf32>
    %c0_13 = arith.constant 0 : index
    %c0_14 = arith.constant 0 : index
    %33 = vector.load %arg7[%c0_13, %c0_14] : memref<1x256xf32, #tpu.memory_space<vmem>>, vector<1x256xf32>
    %34 = vector.broadcast %33 : vector<1x256xf32> to vector<256x256xf32>
    %35 = arith.addf %32, %34 : vector<256x256xf32>
    %36 = vector.shape_cast %35 : vector<256x256xf32> to vector<8x32x256xf32>
    %cst_15 = arith.constant dense<0xFF800000> : vector<8x256xf32>
    %37 = vector.multi_reduction <maximumf>, %36, %cst_15 [1] : vector<8x32x256xf32> to vector<8x256xf32>
    %c0_16 = arith.constant 0 : index
    %c0_17 = arith.constant 0 : index
    %38 = vector.load %arg8[%c0_16, %c0_17] : memref<256x512xf32, #tpu.memory_space<vmem>>, vector<256x512xf32>
    %cst_18 = arith.constant dense<0.000000e+00> : vector<8x512xf32>
    %39 = tpu.matmul %37, %38, %cst_18 {dimension_numbers = #tpu.dot_dimension_numbers<[1], [0], [0], [1], [0, 0, 1, 1], [], []>} : vector<8x256xf32>, vector<256x512xf32>, vector<8x512xf32> -> vector<8x512xf32>
    %c0_19 = arith.constant 0 : index
    %c0_20 = arith.constant 0 : index
    %40 = vector.load %arg9[%c0_19, %c0_20] : memref<256x512xf32, #tpu.memory_space<vmem>>, vector<256x512xf32>
    %cst_21 = arith.constant dense<0.000000e+00> : vector<256x512xf32>
    %41 = tpu.matmul %35, %40, %cst_21 {dimension_numbers = #tpu.dot_dimension_numbers<[1], [0], [0], [1], [0, 0, 1, 1], [], []>} : vector<256x256xf32>, vector<256x512xf32>, vector<256x512xf32> -> vector<256x512xf32>
    %42 = vector.shape_cast %41 : vector<256x512xf32> to vector<8x32x512xf32>
    %43 = vector.shape_cast %39 : vector<8x512xf32> to vector<8x1x512xf32>
    %44 = vector.broadcast %43 : vector<8x1x512xf32> to vector<8x32x512xf32>
    %45 = arith.addf %42, %44 : vector<8x32x512xf32>
    %c0_22 = arith.constant 0 : index
    %c0_23 = arith.constant 0 : index
    %46 = vector.load %arg10[%c0_22, %c0_23] : memref<1x512xf32, #tpu.memory_space<vmem>>, vector<1x512xf32>
    %47 = vector.shape_cast %46 : vector<1x512xf32> to vector<1x1x512xf32>
    %48 = vector.broadcast %47 : vector<1x1x512xf32> to vector<8x32x512xf32>
    %49 = arith.addf %45, %48 : vector<8x32x512xf32>
    %c0_24 = arith.constant 0 : index
    %c0_25 = arith.constant 0 : index
    %50 = vector.load %arg11[%c0_24, %c0_25] : memref<1x512xf32, #tpu.memory_space<vmem>>, vector<1x512xf32>
    %51 = vector.shape_cast %50 : vector<1x512xf32> to vector<1x1x512xf32>
    %52 = vector.broadcast %51 : vector<1x1x512xf32> to vector<8x32x512xf32>
    %53 = arith.mulf %49, %52 : vector<8x32x512xf32>
    %c0_26 = arith.constant 0 : index
    %c0_27 = arith.constant 0 : index
    %54 = vector.load %arg12[%c0_26, %c0_27] : memref<1x512xf32, #tpu.memory_space<vmem>>, vector<1x512xf32>
    %55 = vector.shape_cast %54 : vector<1x512xf32> to vector<1x1x512xf32>
    %56 = vector.broadcast %55 : vector<1x1x512xf32> to vector<8x32x512xf32>
    %57 = arith.addf %53, %56 : vector<8x32x512xf32>
    %cst_28 = arith.constant 0.000000e+00 : f32
    %58 = vector.broadcast %cst_28 : f32 to vector<8x32x512xf32>
    %59 = arith.maximumf %57, %58 : vector<8x32x512xf32>
    %60 = vector.shape_cast %59 : vector<8x32x512xf32> to vector<256x512xf32>
    %c0_29 = arith.constant 0 : index
    %c0_30 = arith.constant 0 : index
    %61 = vector.load %arg13[%c0_29, %c0_30] : memref<512x256xf32, #tpu.memory_space<vmem>>, vector<512x256xf32>
    %cst_31 = arith.constant dense<0.000000e+00> : vector<256x256xf32>
    %62 = tpu.matmul %60, %61, %cst_31 {dimension_numbers = #tpu.dot_dimension_numbers<[1], [0], [0], [1], [0, 0, 1, 1], [], []>} : vector<256x512xf32>, vector<512x256xf32>, vector<256x256xf32> -> vector<256x256xf32>
    %c0_32 = arith.constant 0 : index
    %c0_33 = arith.constant 0 : index
    %63 = vector.load %arg14[%c0_32, %c0_33] : memref<1x256xf32, #tpu.memory_space<vmem>>, vector<1x256xf32>
    %64 = vector.broadcast %63 : vector<1x256xf32> to vector<256x256xf32>
    %65 = arith.addf %62, %64 : vector<256x256xf32>
    %66 = vector.shape_cast %65 : vector<256x256xf32> to vector<8x32x256xf32>
    %cst_34 = arith.constant dense<0xFF800000> : vector<8x256xf32>
    %67 = vector.multi_reduction <maximumf>, %66, %cst_34 [1] : vector<8x32x256xf32> to vector<8x256xf32>
    %c0_35 = arith.constant 0 : index
    %c0_36 = arith.constant 0 : index
    %68 = vector.load %arg15[%c0_35, %c0_36] : memref<8x256xf32, #tpu.memory_space<vmem>>, vector<8x256xf32>
    tpu.vector_store %arg15[%c0_35, %c0_36], %67 {strides = array<i32>} : memref<8x256xf32, #tpu.memory_space<vmem>>, vector<8x256xf32>,
    return
  }
  func.func @transform_0(%arg0: i32) -> (i32, i32, i32) {
    %c0_i32 = arith.constant 0 : i32
    %c0_i32_0 = arith.constant 0 : i32
    %c0_i32_1 = arith.constant 0 : i32
    return %arg0, %c0_i32, %c0_i32_0 : i32, i32, i32
  }
  func.func @transform_1(%arg0: i32) -> (i32, i32) {
    %c0_i32 = arith.constant 0 : i32
    %c0_i32_0 = arith.constant 0 : i32
    %c0_i32_1 = arith.constant 0 : i32
    return %c0_i32, %c0_i32_0 : i32, i32
  }
  func.func @transform_2(%arg0: i32) -> (i32, i32) {
    %c0_i32 = arith.constant 0 : i32
    %c0_i32_0 = arith.constant 0 : i32
    %c0_i32_1 = arith.constant 0 : i32
    return %c0_i32, %c0_i32_0 : i32, i32
  }
  func.func @transform_3(%arg0: i32) -> (i32, i32) {
    %c0_i32 = arith.constant 0 : i32
    %c0_i32_0 = arith.constant 0 : i32
    %c0_i32_1 = arith.constant 0 : i32
    return %c0_i32, %c0_i32_0 : i32, i32
  }
  func.func @transform_4(%arg0: i32) -> (i32, i32) {
    %c0_i32 = arith.constant 0 : i32
    %c0_i32_0 = arith.constant 0 : i32
    %c0_i32_1 = arith.constant 0 : i32
    return %c0_i32, %c0_i32_0 : i32, i32
  }
  func.func @transform_5(%arg0: i32) -> (i32, i32) {
    %c0_i32 = arith.constant 0 : i32
    %c0_i32_0 = arith.constant 0 : i32
    %c0_i32_1 = arith.constant 0 : i32
    return %c0_i32, %c0_i32_0 : i32, i32
  }
  func.func @transform_6(%arg0: i32) -> (i32, i32) {
    %c0_i32 = arith.constant 0 : i32
    %c0_i32_0 = arith.constant 0 : i32
    %c0_i32_1 = arith.constant 0 : i32
    return %c0_i32, %c0_i32_0 : i32, i32
  }
  func.func @transform_7(%arg0: i32) -> (i32, i32) {
    %c0_i32 = arith.constant 0 : i32
    %c0_i32_0 = arith.constant 0 : i32
    %c0_i32_1 = arith.constant 0 : i32
    return %c0_i32, %c0_i32_0 : i32, i32
  }
  func.func @transform_8(%arg0: i32) -> (i32, i32) {
    %c0_i32 = arith.constant 0 : i32
    %c0_i32_0 = arith.constant 0 : i32
    %c0_i32_1 = arith.constant 0 : i32
    return %c0_i32, %c0_i32_0 : i32, i32
  }
  func.func @transform_9(%arg0: i32) -> (i32, i32) {
    %c0_i32 = arith.constant 0 : i32
    %c0_i32_0 = arith.constant 0 : i32
    %c0_i32_1 = arith.constant 0 : i32
    return %c0_i32, %c0_i32_0 : i32, i32
  }
  func.func @transform_10(%arg0: i32) -> (i32, i32) {
    %c0_i32 = arith.constant 0 : i32
    %c0_i32_0 = arith.constant 0 : i32
    %c0_i32_1 = arith.constant 0 : i32
    return %c0_i32, %c0_i32_0 : i32, i32
  }
  func.func @transform_11(%arg0: i32) -> (i32, i32) {
    %c0_i32 = arith.constant 0 : i32
    %c0_i32_0 = arith.constant 0 : i32
    %c0_i32_1 = arith.constant 0 : i32
    return %c0_i32, %c0_i32_0 : i32, i32
  }
  func.func @transform_12(%arg0: i32) -> (i32, i32) {
    %c0_i32 = arith.constant 0 : i32
    %c0_i32_0 = arith.constant 0 : i32
    %c0_i32_1 = arith.constant 0 : i32
    return %c0_i32, %c0_i32_0 : i32, i32
  }
  func.func @transform_13(%arg0: i32) -> (i32, i32) {
    %c0_i32 = arith.constant 0 : i32
    %c0_i32_0 = arith.constant 0 : i32
    %c0_i32_1 = arith.constant 0 : i32
    return %c0_i32, %c0_i32_0 : i32, i32
  }
  func.func @transform_14(%arg0: i32) -> (i32, i32) {
    %c0_i32 = arith.constant 0 : i32
    %c0_i32_0 = arith.constant 0 : i32
    return %arg0, %c0_i32 : i32, i32
  }
}

</mosaic_0001>

<bundles_post_ra>
// kernel: tpu_custom_call.1
= control target key start
LH: loop header
LB: loop body
LE: loop exit
PB: predicated region body
PF: predicated region fallthrough
CT: control target
= control target key end

     0   :  { %19 = vsyncpa [#allocation3], 0  ;;  %s8650_s0 = inlined_call_operand.vmem [shape: f32[8,32,3], index: 0, kind: input, shape index: {}]   ;;  %s8651_s1 = inlined_call_operand.vmem [shape: f32[3,128], index: 1, kind: input, shape index: {}]   ;;  %s8652_s2 = inlined_call_operand.vmem [shape: f32[1,128], index: 2, kind: input, shape index: {}]   ;;  %s8653_s3 = inlined_call_operand.vmem [shape: f32[1,128], index: 3, kind: input, shape index: {}]   ;;  %s8654_s4 = inlined_call_operand.vmem [shape: f32[1,128], index: 4, kind: input, shape index: {}]   ;;  %s8655_s5 = inlined_call_operand.vmem [shape: f32[128,256], index: 5, kind: input, shape index: {}]   ;;  %s8656_s6 = inlined_call_operand.vmem [shape: f32[1,256], index: 6, kind: input, shape index: {}]   ;;  %s8657_s7 = inlined_call_operand.hbm [shape: f32[256,512], index: 7, kind: input, shape index: {}]   ;;  %s8658_s8 = inlined_call_operand.hbm [shape: f32[256,512], index: 8, kind: input, shape index: {}]   ;;  %s8659_s9 = inlined_call_operand.vmem [shape: f32[1,512], index: 9, kind: input, shape index: {}]   ;;  %s8660_s10 = inlined_call_operand.vmem [shape: f32[1,512], index: 10, kind: input, shape index: {}]   ;;  %s8661_s11 = inlined_call_operand.vmem [shape: f32[1,512], index: 11, kind: input, shape index: {}]   ;;  %s8662_s12 = inlined_call_operand.hbm [shape: f32[512,256], index: 12, kind: input, shape index: {}]   ;;  %s8663_s13 = inlined_call_operand.vmem [shape: f32[1,256], index: 13, kind: input, shape index: {}]   ;;  %s8664_s14 = inlined_call_operand.hbm [shape: f32[8,256], index: 14, kind: output, shape index: {}]  }
   0x1   :  { %20 = vsyncpa [#allocation6], 0 }
   0x2   :  { %21 = vsyncpa [#allocation4], 0  ;;  %s53_s15 = sshll.u32 %s8658_s8, 4  ;;  %s4835_s16 = smov [#allocation5]   ;;  %s54_s15 = int_to_ptr.hbm [resolvable:$true] %s53_s15 }
   0x3   :  { %s55_s17 = sshll.u32 %s4835_s16, 4  ;;  %s40_s20 = sshll.u32 %s8657_s7, 4  ;;  %s56_s17 = int_to_ptr.vmem [resolvable:$true] %s55_s17  ;;  %s41_s20 = int_to_ptr.hbm [resolvable:$true] %s40_s20 }
   0x4   :  { %s4836_s21 = smov 512   ;;  %s4837_s22 = smov 32  }
   0x5   :  { %61 = dma.hbm_to_vmem [thread:$0]  %s54_s15, 16384, %s56_s17, [#allocation6], %s4836_s21, %s4836_s21, %s4837_s22  }
   0x6   :  { %s4838_s23 = smov [#allocation2]   ;;  %s72_s27 = sshll.u32 %s8662_s12, 4  ;;  %s73_s27 = int_to_ptr.hbm [resolvable:$true] %s72_s27 }
   0x7   :  { %s42_s24 = sshll.u32 %s4838_s23, 4  ;;  %s4839_s8 = smov [#allocation7]   ;;  %s43_s24 = int_to_ptr.vmem [resolvable:$true] %s42_s24 }
   0x8   :  { %48 = dma.hbm_to_vmem [thread:$0]  %s41_s20, 16384, %s43_s24, [#allocation3], %s4836_s21, %s4836_s21, %s4837_s22  }
   0x9   :  { %s74_s28 = sshll.u32 %s4839_s8, 4  ;;  %s4840_s29 = smov 256   ;;  %s75_s28 = int_to_ptr.vmem [resolvable:$true] %s74_s28 }
   0xa   :  { %s4841_s30 = smov 16  }
   0xb   :  { %80 = dma.hbm_to_vmem [thread:$0]  %s73_s27, 16384, %s75_s28, [#allocation6], %s4840_s29, %s4840_s29, %s4841_s30  }
   0xc   :  { %4829 = dma.done.wait [#allocation3], 16384  }
   0xd   :  { %4830 = vsyncadd [#allocation3], 4294950912 }
   0xe   :  { %4831 = dma.done.wait [#allocation6], 32768  }
   0xf   :  { %4832 = vsyncadd [#allocation6], 4294934528  ;;  %v4842_v0 = vmov 2   ;;  %v4843_v1 = vmov 1   ;;  %v4844_v2 = vmov 0   ;;  %v96_v3 = vld [vmem:[%s8650_s0 + $0x8] sm:$0xff] }
  0x10   :  { %4674 = vset.pattern.permute.xlu1 %v4842_v0  ;;  %4676 = vset.pattern.permute.xlu2 %v4843_v1  ;;  %v95_v4 = vld [vmem:[%s8650_s0] sm:$0xff]  ;;  %v97_v5 = vld [vmem:[%s8650_s0 + $0x10] sm:$0xff]  ;;  %v98_v6 = vld [vmem:[%s8650_s0 + $0x18] sm:$0xff]  ;;  %vm1399_vm0 = vcmask 1041409   ;;  %vm1401_vm1 = vcmask 1042434   ;;  %vm1403_vm2 = vcmask 1043459  }
  0x11   :  { %4673 = vset.pattern.permute.xlu0 %v4844_v2  ;;  %326 = vperm.xlu2 %4676, %v96_v3   ;;  %v99_v7 = vld [vmem:[%s8650_s0 + $0x20] sm:$0xff]  ;;  %v101_v8 = vld [vmem:[%s8650_s0 + $0x30] sm:$0xff]  ;;  %v100_v9 = vld [vmem:[%s8650_s0 + $0x28] sm:$0xff]  ;;  %vm1405_vm3 = vcmask 1044484   ;;  %vm1407_vm4 = vcmask 1045509   ;;  %vm1409_vm5 = vcmask 1046534  }
  0x12   :  { %515 = vperm.xlu1 %4674, %v95_v4   ;;  %130 = vperm.xlu0 %4673, %v95_v4   ;;  %v4965_v10 = vld [vmem:[%s8650_s0 + $0x58] sm:$0xff]  ;;  %v4977_v12 = vld [vmem:[%s8650_s0 + $0x60] sm:$0xff]  ;;  %v104_v15 = vld [vmem:[%s8650_s0 + $0x48] sm:$0xff]  ;;  %vm1411_vm6 = vcmask 1047559   ;;  %vm2647_vm7 = vcmask 1046528   ;;  %vm2654_vm8 = vcmask 1045504  }
  0x13   :  { %v102_v11 = vld [vmem:[%s8650_s0 + $0x38] sm:$0xff]  ;;  %v4983_v13 = vld [vmem:[%s8650_s0 + $0x80] sm:$0xff]  ;;  %v877_v16 = vld [vmem:[%s8655_s5 + $0xf0] sm:$0xff]  ;;  %vm2659_vm9 = vcmask 1046529   ;;  %vm2621_vm10 = vcmask 1040384   ;;  %vm2638_vm11 = vcmask 1044483  }
  0x14   :  { %v103_v14 = vld [vmem:[%s8650_s0 + $0x40] sm:$0xff]  ;;  %v878_v17 = vld [vmem:[%s8655_s5 + $0xf8] sm:$0xff]  ;;  %885 = vmatpush.msra.mxu0 %v877_v16  ;;  %v876_v19 = vld [vmem:[%s8655_s5 + $0xe8] sm:$0xff]  ;;  %4630 = vmatpush.msra.mxu2 %v877_v16  ;;  %vm2643_vm12 = vcmask 1045508   ;;  %vm2649_vm13 = vcmask 1046533   ;;  %vm2633_vm14 = vcmask 1043458  }
  0x15   :  { %998 = vmatpush.msra.mxu1 %v878_v17  ;;  %v875_v18 = vld [vmem:[%s8655_s5 + $0xe0] sm:$0xff]  ;;  %v873_v20 = vld [vmem:[%s8655_s5 + $0xd0] sm:$0xff]  ;;  %v874_v21 = vld [vmem:[%s8655_s5 + $0xd8] sm:$0xff]  ;;  %4646 = vmatpush.msra.mxu3 %v878_v17  ;;  %vm2624_vm15 = vcmask 1041408   ;;  %s4619_s28 = sshll.u32 %s8664_s14, 4  ;;  %s4620_s28 = int_to_ptr.hbm [resolvable:$true] %s4619_s28 }
  0x16   :  { %886 = vmatpush.msra.mxu0 %v875_v18  ;;  %v871_v22 = vld [vmem:[%s8655_s5 + $0xc0] sm:$0xff]  ;;  %v872_v23 = vld [vmem:[%s8655_s5 + $0xc8] sm:$0xff]  ;;  %4631 = vmatpush.msra.mxu2 %v875_v18  ;;  %v105_v25 = vld [vmem:[%s8650_s0 + $0x50] sm:$0xff] }
  0x17   :  { %999 = vmatpush.msra.mxu1 %v876_v19  ;;  %4647 = vmatpush.msra.mxu3 %v876_v19  ;;  %v869_v26 = vld [vmem:[%s8655_s5 + $0xb0] sm:$0xff]  ;;  %v870_v27 = vld [vmem:[%s8655_s5 + $0xb8] sm:$0xff]  ;;  %v867_v28 = vld [vmem:[%s8655_s5 + $0xa0] sm:$0xff] }
  0x18   :  { %887 = vmatpush.msra.mxu0 %v873_v20  ;;  %4632 = vmatpush.msra.mxu2 %v873_v20  ;;  %v868_v29 = vld [vmem:[%s8655_s5 + $0xa8] sm:$0xff]  ;;  %v865_v30 = vld [vmem:[%s8655_s5 + $0x90] sm:$0xff]  ;;  %v866_v31 = vld [vmem:[%s8655_s5 + $0x98] sm:$0xff] }
  0x19   :  { %4677 = vset.pattern.permute.xlu2 %v4842_v0  ;;  %1000 = vmatpush.msra.mxu1 %v874_v21  ;;  %v863_v32 = vld [vmem:[%s8655_s5 + $0x80] sm:$0xff]  ;;  %v864_v33 = vld [vmem:[%s8655_s5 + $0x88] sm:$0xff]  ;;  %v861_v35 = vld [vmem:[%s8655_s5 + $0x70] sm:$0xff] }
  0x1a   :  { %4675 = vset.pattern.permute.xlu1 %v4844_v2  ;;  %4679 = vset.pattern.permute.xlu0 %v4842_v0  ;;  %v862_v36 = vld [vmem:[%s8655_s5 + $0x78] sm:$0xff]  ;;  %v859_v37 = vld [vmem:[%s8655_s5 + $0x60] sm:$0xff]  ;;  %v860_v38 = vld [vmem:[%s8655_s5 + $0x68] sm:$0xff] }
  0x1b   :  { %519 = vperm.xlu2 %4677, %v96_v3   ;;  %135 = vperm.xlu1 %4675, %v96_v3   ;;  %v857_v39 = vld [vmem:[%s8655_s5 + $0x50] sm:$0xff]  ;;  %v858_v40 = vld [vmem:[%s8655_s5 + $0x58] sm:$0xff]  ;;  %v855_v42 = vld [vmem:[%s8655_s5 + $0x40] sm:$0xff] }
  0x1c   :  { %523 = vperm.xlu0 %4679, %v97_v5   ;;  %888 = vmatpush.msra.mxu0 %v871_v22  ;;  %v5075_v41 = vld [vmem:[%s8650_s0 + $0x70] sm:$0xff]  ;;  %v856_v43 = vld [vmem:[%s8655_s5 + $0x48] sm:$0xff]  ;;  %v854_v45 = vld [vmem:[%s8655_s5 + $0x38] sm:$0xff] }
  0x1d   :  { %1001 = vmatpush.msra.mxu1 %v872_v23  ;;  %4648 = vmatpush.msra.mxu3 %v874_v21  ;;  %v853_v44 = vld [vmem:[%s8655_s5 + $0x30] sm:$0xff]  ;;  %v851_v47 = vld [vmem:[%s8655_s5 + $0x20] sm:$0xff]  ;;  %v852_v48 = vld [vmem:[%s8655_s5 + $0x28] sm:$0xff] }
  0x1e   :  { %889 = vmatpush.msra.mxu0 %v869_v26  ;;  %4633 = vmatpush.msra.mxu2 %v871_v22  ;;  %v849_v49 = vld [vmem:[%s8655_s5 + $0x10] sm:$0xff]  ;;  %v850_v50 = vld [vmem:[%s8655_s5 + $0x18] sm:$0xff]  ;;  %v5109_v51 = vld [vmem:[%s8650_s0 + $0x88] sm:$0xff] }
  0x1f   :  { %1002 = vmatpush.msra.mxu1 %v870_v27  ;;  %4649 = vmatpush.msra.mxu3 %v872_v23  ;;  %v847_v53 = vld [vmem:[%s8655_s5] sm:$0xff]  ;;  %v848_v54 = vld [vmem:[%s8655_s5 + $0x8] sm:$0xff] }
  0x20   :  { %890 = vmatpush.msra.mxu0 %v867_v28  ;;  %4634 = vmatpush.msra.mxu2 %v869_v26  ;;  %v5126_v57 = vld [vmem:[%s8650_s0 + $0xe0] sm:$0xff]  ;;  %v108_v61 = vld [vmem:[%s8650_s0 + $0x68] sm:$0xff] }
  0x21   :  { %1003 = vmatpush.msra.mxu1 %v868_v29  ;;  %4650 = vmatpush.msra.mxu3 %v870_v27  ;;  %v127_v60 = vld [vmem:[%s8651_s1] sm:$0x7] }
  0x22   :  { %891 = vmatpush.msra.mxu0 %v865_v30  ;;  %4635 = vmatpush.msra.mxu2 %v867_v28  ;;  %v5136_v62 = vperm.slane %v127_v60, 0  ;;  %v5140_v3 = vperm.slane %v127_v60, 1  ;;  %v5170_v22 = vld [vmem:[%s8652_s2] ss:$0 sm:$0xff] }
  0x23   :  { %4678 = vset.pattern.permute.xlu2 %v4843_v1  ;;  %140 = vperm.xlu1 %4675, %v97_v5  }
  0x24   :  { %4680 = vset.pattern.permute.xlu0 %v4843_v1  ;;  %330 = vperm.xlu2 %4678, %v97_v5  }
  0x25   :  { %322 = vperm.xlu0 %4680, %v95_v4   ;;  %1004 = vmatpush.msra.mxu1 %v866_v31  ;;  %v5146_v4 = vld [vmem:[%s8650_s0 + $0xc0] sm:$0xff] }
  0x26   :  { %892 = vmatpush.msra.mxu0 %v863_v32  ;;  %4651 = vmatpush.msra.mxu3 %v868_v29  ;;  %v5183_v29 = vld [vmem:[%s8654_s4] ss:$0 sm:$0xff] }
  0x27   :  { %1005 = vmatpush.msra.mxu1 %v864_v33  ;;  %4636 = vmatpush.msra.mxu2 %v865_v30 }
  0x28   :  { %893 = vmatpush.msra.mxu0 %v861_v35  ;;  %4652 = vmatpush.msra.mxu3 %v866_v31  ;;  %v110_v31 = vld [vmem:[%s8650_s0 + $0x78] sm:$0xff] }
  0x29   :  { %1006 = vmatpush.msra.mxu1 %v862_v36  ;;  %4637 = vmatpush.msra.mxu2 %v863_v32 }
  0x2a   :  { %894 = vmatpush.msra.mxu0 %v859_v37  ;;  %4653 = vmatpush.msra.mxu3 %v864_v33 }
  0x2b   :  { %145 = vperm.xlu1 %4675, %v98_v6   ;;  %1007 = vmatpush.msra.mxu1 %v860_v38 }
  0x2c   :  { %334 = vperm.xlu2 %4678, %v98_v6   ;;  %895 = vmatpush.msra.mxu0 %v857_v39 }
  0x2d   :  { %338 = vperm.xlu0 %4680, %v99_v7   ;;  %1008 = vmatpush.msra.mxu1 %v858_v40 }
  0x2e   :  { %896 = vmatpush.msra.mxu0 %v855_v42  ;;  %4638 = vmatpush.msra.mxu2 %v861_v35 }
  0x2f   :  { %1009 = vmatpush.msra.mxu1 %v856_v43  ;;  %4654 = vmatpush.msra.mxu3 %v862_v36 }
  0x30   :  { %897 = vmatpush.msra.mxu0 %v853_v44  ;;  %4639 = vmatpush.msra.mxu2 %v859_v37 }
  0x31   :  { %1010 = vmatpush.msra.mxu1 %v854_v45  ;;  %4655 = vmatpush.msra.mxu3 %v860_v38 }
  0x32   :  { %898 = vmatpush.msra.mxu0 %v851_v47  ;;  %4640 = vmatpush.msra.mxu2 %v857_v39 }
  0x33   :  { %4681 = vset.pattern.permute.xlu1 %v4842_v0  ;;  %1011 = vmatpush.msra.mxu1 %v852_v48 }
  0x34   :  { %4682 = vset.pattern.permute.xlu2 %v4844_v2  ;;  %527 = vperm.xlu1 %4681, %v98_v6  }
  0x35   :  { %150 = vperm.xlu2 %4682, %v99_v7   ;;  %4685 = vset.pattern.permute.xlu0 %v4844_v2 }
  0x36   :  { %160 = vperm.xlu0 %4685, %v101_v8   ;;  %899 = vmatpush.msra.mxu0 %v849_v49 }
  0x37   :  { %1012 = vmatpush.msra.mxu1 %v850_v50  ;;  %4656 = vmatpush.msra.mxu3 %v858_v40 }
  0x38   :  { %900 = vmatpush.msra.mxu0 %v847_v53  ;;  %4641 = vmatpush.msra.mxu2 %v855_v42 }
  0x39   :  { %1013 = vmatpush.msra.mxu1 %v848_v54  ;;  %4657 = vmatpush.msra.mxu3 %v856_v43 }
  0x3a   :  { %4642 = vmatpush.msra.mxu2 %v853_v44 }
  0x3b   :  { %4658 = vmatpush.msra.mxu3 %v854_v45 }
  0x3c   :  { %531 = vperm.xlu1 %4681, %v99_v7   ;;  %4643 = vmatpush.msra.mxu2 %v851_v47  ;;  %v5152_v7 = vperm.slane %v127_v60, 2 }
  0x3d   :  { %155 = vperm.xlu2 %4682, %v100_v9   ;;  %4659 = vmatpush.msra.mxu3 %v852_v48 }
  0x3e   :  { %185 = vperm.xlu0 %4685, %v4965_v10   ;;  %4644 = vmatpush.msra.mxu2 %v849_v49 }
  0x3f   :  { %4660 = vmatpush.msra.mxu3 %v850_v50 }
  0x40   :  { %4645 = vmatpush.msra.mxu2 %v847_v53 }
  0x41   :  { %4661 = vmatpush.msra.mxu3 %v848_v54 }
  0x44   :  { %4683 = vset.pattern.permute.xlu1 %v4843_v1 }
  0x45   :  { %4684 = vset.pattern.permute.xlu2 %v4842_v0  ;;  %342 = vperm.xlu1 %4683, %v100_v9  }
  0x46   :  { %535 = vperm.xlu2 %4684, %v100_v9   ;;  %4692 = vset.pattern.permute.xlu0 %v4842_v0 }
  0x47   :  { %543 = vperm.xlu0 %4692, %v102_v11  }
  0x4d   :  { %346 = vperm.xlu1 %4683, %v101_v8  }
  0x4e   :  { %539 = vperm.xlu2 %4684, %v101_v8  }
  0x4f   :  { %563 = vperm.xlu0 %4692, %v4977_v12  }
  0x55   :  { %4686 = vset.pattern.permute.xlu1 %v4844_v2 }
  0x56   :  { %4687 = vset.pattern.permute.xlu2 %v4843_v1  ;;  %165 = vperm.xlu1 %4686, %v102_v11  }
  0x57   :  { %350 = vperm.xlu2 %4687, %v102_v11   ;;  %579 = vperm.xlu0 %4692, %v4983_v13  }
  0x5e   :  { %170 = vperm.xlu1 %4686, %v103_v14  }
  0x5f   :  { %354 = vperm.xlu2 %4687, %v103_v14   ;;  %4701 = vset.pattern.permute.xlu0 %v4843_v1 }
  0x60   :  { %358 = vperm.xlu0 %4701, %v104_v15  }
  0x66   :  { %4688 = vset.pattern.permute.xlu1 %v4842_v0 }
  0x67   :  { %4689 = vset.pattern.permute.xlu2 %v4844_v2  ;;  %547 = vperm.xlu1 %4688, %v103_v14  }
  0x68   :  { %175 = vperm.xlu2 %4689, %v104_v15   ;;  %378 = vperm.xlu0 %4701, %v5075_v41  }
  0x6b   :  { %v5021_v24 = vpop.permute.xlu2 %326 }
  0x6c   :  { %v451_v6 = vmul.f32 %v5140_v3, %v5021_v24 }
  0x6f   :  { %551 = vperm.xlu1 %4688, %v104_v15  }
  0x70   :  { %180 = vperm.xlu2 %4689, %v105_v25   ;;  %390 = vperm.xlu0 %4701, %v5109_v51  }
  0x75   :  { %v5050_v34 = vpop.permute.xlu2 %519 }
  0x76   :  { %v644_v11 = vmul.f32 %v5152_v7, %v5050_v34 }
  0x77   :  { %4690 = vset.pattern.permute.xlu1 %v4843_v1 }
  0x78   :  { %4691 = vset.pattern.permute.xlu2 %v4842_v0  ;;  %362 = vperm.xlu1 %4690, %v105_v25  }
  0x79   :  { %555 = vperm.xlu2 %4691, %v105_v25   ;;  %434 = vperm.xlu0 %4701, %v5126_v57   ;;  %v5176_v25 = vld [vmem:[%s8653_s3] ss:$0 sm:$0xff] }
  0x7e   :  { %v5090_v46 = vpop.permute.xlu2 %330 }
  0x7f   :  { %v452_v18 = vmul.f32 %v5140_v3, %v5090_v46 }
  0x80   :  { %366 = vperm.xlu1 %4690, %v4965_v10  }
  0x81   :  { %559 = vperm.xlu2 %4691, %v4965_v10   ;;  %4710 = vset.pattern.permute.xlu0 %v4844_v2 }
  0x82   :  { %250 = vperm.xlu0 %4710, %v5146_v4  }
  0x84   :  { %v516_v52 = vpop.permute.xlu1 %515  ;;  %v131_v55 = vpop.permute.xlu0 %130 }
  0x85   :  { %v289_v8 = vmul.f32 %v5136_v62, %v131_v55  ;;  %v643_v16 = vmul.f32 %v5152_v7, %v516_v52 }
  0x86   :  { %v5118_v56 = vpop.permute.xlu2 %334 }
  0x87   :  { %v453_v40 = vmul.f32 %v5140_v3, %v5118_v56 }
  0x88   :  { %4693 = vset.pattern.permute.xlu1 %v4844_v2 }
  0x89   :  { %4694 = vset.pattern.permute.xlu2 %v4843_v1  ;;  %190 = vperm.xlu1 %4693, %v4977_v12  }
  0x8a   :  { %370 = vperm.xlu2 %4694, %v4977_v12  }
  0x8d   :  { %v136_v58 = vpop.permute.xlu1 %135 }
  0x8e   :  { %v524_v59 = vpop.permute.xlu0 %523  ;;  %v290_v5 = vmul.f32 %v5136_v62, %v136_v58 }
  0x8f   :  { %v5138_v63 = vpop.permute.xlu2 %150  ;;  %v645_v26 = vmul.f32 %v5152_v7, %v524_v59 }
  0x90   :  { %v483_v12 = vadd.f32 %v451_v6, %v290_v5  ;;  %v293_v50 = vmul.f32 %v5136_v62, %v5138_v63 }
  0x91   :  { %195 = vperm.xlu1 %4693, %v108_v61  }
  0x92   :  { %374 = vperm.xlu2 %4694, %v108_v61   ;;  %v676_v19 = vadd.f32 %v644_v11, %v483_v12 }
  0x94   :  { %v712_v30 = vadd.f32 %v5170_v22, %v676_v19 }
  0x95   :  { %v141_v9 = vpop.permute.xlu1 %140 }
  0x96   :  { %v291_v20 = vmul.f32 %v5136_v62, %v141_v9  ;;  %v748_v37 = vmul.f32 %v5176_v25, %v712_v30 }
  0x97   :  { %v323_v10 = vpop.permute.xlu0 %322  ;;  %v5158_v15 = vpop.permute.xlu2 %155 }
  0x98   :  { %v450_v14 = vmul.f32 %v5140_v3, %v323_v10  ;;  %v484_v27 = vadd.f32 %v452_v18, %v291_v20  ;;  %v784_v43 = vadd.f32 %v5183_v29, %v748_v37  ;;  %v294_v10 = vmul.f32 %v5136_v62, %v5158_v15 }
  0x99   :  { %4695 = vset.pattern.permute.xlu1 %v4842_v0 }
  0x9a   :  { %v482_v17 = vadd.f32 %v450_v14, %v289_v8  ;;  %4696 = vset.pattern.permute.xlu2 %v4844_v2  ;;  %567 = vperm.xlu1 %4695, %v108_v61   ;;  %v677_v35 = vadd.f32 %v645_v26, %v484_v27  ;;  %v816_v48 = vmax.f32 %v784_v43, 0.0  ;;  %v5232_v26 = vld [vmem:[%s8650_s0 + $0x90] sm:$0xff] }
  0x9b   :  { %200 = vperm.xlu2 %4696, %v5075_v41   ;;  %220 = vperm.xlu0 %4710, %v5232_v26  }
  0x9c   :  { %v675_v21 = vadd.f32 %v643_v16, %v482_v17  ;;  %v713_v44 = vadd.f32 %v5170_v22, %v677_v35 }
  0x9d   :  { %v146_v23 = vpop.permute.xlu1 %145 }
  0x9e   :  { %v711_v24 = vadd.f32 %v5170_v22, %v675_v21  ;;  %v292_v38 = vmul.f32 %v5136_v62, %v146_v23  ;;  %v749_v49 = vmul.f32 %v5176_v25, %v713_v44 }
  0x9f   :  { %v339_v34 = vpop.permute.xlu0 %338 }
  0xa0   :  { %v747_v28 = vmul.f32 %v5176_v25, %v711_v24  ;;  %v536_v32 = vpop.permute.xlu2 %535  ;;  %v485_v45 = vadd.f32 %v453_v40, %v292_v38  ;;  %v454_v52 = vmul.f32 %v5140_v3, %v339_v34  ;;  %v785_v56 = vadd.f32 %v5183_v29, %v749_v49 }
  0xa1   :  { %v648_v11 = vmul.f32 %v5152_v7, %v536_v32 }
  0xa2   :  { %v783_v33 = vadd.f32 %v5183_v29, %v747_v28  ;;  %571 = vperm.xlu1 %4695, %v5075_v41   ;;  %v486_v58 = vadd.f32 %v454_v52, %v293_v50  ;;  %v817_v61 = vmax.f32 %v785_v56, 0.0  ;;  %v122_v52 = vld [vmem:[%s8650_s0 + $0xd8] sm:$0xff] }
  0xa3   :  { %205 = vperm.xlu2 %4696, %v110_v31  }
  0xa4   :  { %v815_v36 = vmax.f32 %v783_v33, 0.0 }
  0xa6   :  { %901 = vmatmul.f32.vlgmr.msra.gmra.mxu0 %v815_v36  ;;  %1014 = vmatmul.f32.vlgmr.msra.gmra.mxu1 %v815_v36  ;;  %v528_v39 = vpop.permute.xlu1 %527 }
  0xa7   :  { %v646_v42 = vmul.f32 %v5152_v7, %v528_v39  ;;  %v5248_v39 = vld [vmem:[%s8650_s0 + $0xe8] sm:$0xff] }
  0xa8   :  { %v540_v41 = vpop.permute.xlu2 %539  ;;  %v161_v46 = vpop.permute.xlu0 %160  ;;  %275 = vperm.xlu0 %4710, %v5248_v39  }
  0xa9   :  { %v678_v47 = vadd.f32 %v646_v42, %v485_v45  ;;  %v295_v19 = vmul.f32 %v5136_v62, %v161_v46  ;;  %v649_v27 = vmul.f32 %v5152_v7, %v540_v41 }
  0xaa   :  { %4697 = vset.pattern.permute.xlu1 %v4843_v1 }
  0xab   :  { %4698 = vset.pattern.permute.xlu2 %v4842_v0  ;;  %382 = vperm.xlu1 %4697, %v110_v31   ;;  %v714_v54 = vadd.f32 %v5170_v22, %v678_v47 }
  0xac   :  { %575 = vperm.xlu2 %4698, %v110_v31  }
  0xad   :  { %v750_v63 = vmul.f32 %v5176_v25, %v714_v54 }
  0xae   :  { %904 = vmatmul.f32.gmra.mxu0 %v816_v48  ;;  %1017 = vmatmul.f32.gmra.mxu1 %v816_v48  ;;  %v532_v53 = vpop.permute.xlu1 %531 }
  0xaf   :  { %v647_v55 = vmul.f32 %v5152_v7, %v532_v53  ;;  %v786_v9 = vadd.f32 %v5183_v29, %v750_v63 }
  0xb0   :  { %v5208_v5 = vpop.permute.xlu0 %185  ;;  %4713 = vset.pattern.permute.xlu0 %v4842_v0 }
  0xb1   :  { %v351_v59 = vpop.permute.xlu2 %350  ;;  %v679_v60 = vadd.f32 %v647_v55, %v486_v58  ;;  %623 = vperm.xlu0 %4713, %v122_v52   ;;  %v121_v55 = vld [vmem:[%s8650_s0 + $0xd0] sm:$0xff] }
  0xb2   :  { %v457_v34 = vmul.f32 %v5140_v3, %v351_v59 }
  0xb3   :  { %418 = vperm.xlu1 %4697, %v5146_v4   ;;  %v715_v6 = vadd.f32 %v5170_v22, %v679_v60 }
  0xb4   :  { %611 = vperm.xlu2 %4698, %v5146_v4   ;;  %v818_v4 = vmax.f32 %v786_v9, 0.0 }
  0xb5   :  { %v751_v17 = vmul.f32 %v5176_v25, %v715_v6 }
  0xb6   :  { %907 = vmatmul.f32.gmra.mxu0 %v817_v61  ;;  %1020 = vmatmul.f32.gmra.mxu1 %v817_v61 }
  0xb7   :  { %v343_v8 = vpop.permute.xlu1 %342  ;;  %v787_v21 = vadd.f32 %v5183_v29, %v751_v17 }
  0xb8   :  { %v455_v12 = vmul.f32 %v5140_v3, %v343_v8 }
  0xb9   :  { %v5218_v14 = vpop.permute.xlu2 %354  ;;  %v544_v15 = vpop.permute.xlu0 %543  ;;  %v819_v31 = vmax.f32 %v787_v21, 0.0 }
  0xba   :  { %v487_v16 = vadd.f32 %v455_v12, %v294_v10  ;;  %v650_v40 = vmul.f32 %v5152_v7, %v544_v15  ;;  %v458_v59 = vmul.f32 %v5140_v3, %v5218_v14 }
  0xbb   :  { %4699 = vset.pattern.permute.xlu1 %v4844_v2 }
  0xbc   :  { %v680_v18 = vadd.f32 %v648_v11, %v487_v16  ;;  %4700 = vset.pattern.permute.xlu2 %v4843_v1  ;;  %210 = vperm.xlu1 %4699, %v4983_v13  }
  0xbd   :  { %386 = vperm.xlu2 %4700, %v4983_v13   ;;  %v120_v13 = vld [vmem:[%s8650_s0 + $0xc8] sm:$0xff] }
  0xbe   :  { %910 = vmatmul.f32.gmra.mxu0 %v818_v4  ;;  %1023 = vmatmul.f32.gmra.mxu1 %v818_v4  ;;  %v716_v24 = vadd.f32 %v5170_v22, %v680_v18 }
  0xbf   :  { %v347_v20 = vpop.permute.xlu1 %346 }
  0xc0   :  { %v456_v23 = vmul.f32 %v5140_v3, %v347_v20  ;;  %v752_v33 = vmul.f32 %v5176_v25, %v716_v24 }
  0xc1   :  { %v5241_v35 = vpop.permute.xlu0 %563 }
  0xc2   :  { %v488_v28 = vadd.f32 %v456_v23, %v295_v19  ;;  %v176_v30 = vpop.permute.xlu2 %175  ;;  %v788_v37 = vadd.f32 %v5183_v29, %v752_v33 }
  0xc4   :  { %v681_v32 = vadd.f32 %v649_v27, %v488_v28  ;;  %255 = vperm.xlu1 %4699, %v120_v13   ;;  %v820_v41 = vmax.f32 %v788_v37, 0.0 }
  0xc5   :  { %422 = vperm.xlu2 %4700, %v120_v13  }
  0xc6   :  { %913 = vmatmul.f32.gmra.mxu0 %v819_v31  ;;  %1026 = vmatmul.f32.gmra.mxu1 %v819_v31  ;;  %v717_v38 = vadd.f32 %v5170_v22, %v681_v32 }
  0xc8   :  { %v166_v36 = vpop.permute.xlu1 %165  ;;  %v753_v45 = vmul.f32 %v5176_v25, %v717_v38 }
  0xc9   :  { %v296_v42 = vmul.f32 %v5136_v62, %v166_v36  ;;  %v5259_v50 = vpop.permute.xlu0 %579 }
  0xca   :  { %v181_v43 = vpop.permute.xlu2 %180  ;;  %v789_v48 = vadd.f32 %v5183_v29, %v753_v45 }
  0xcb   :  { %v489_v44 = vadd.f32 %v457_v34, %v296_v42  ;;  %v299_v28 = vmul.f32 %v5136_v62, %v181_v43 }
  0xcc   :  { %4702 = vset.pattern.permute.xlu1 %v4842_v0  ;;  %v821_v54 = vmax.f32 %v789_v48, 0.0 }
  0xcd   :  { %v682_v46 = vadd.f32 %v650_v40, %v489_v44  ;;  %4703 = vset.pattern.permute.xlu2 %v4844_v2  ;;  %615 = vperm.xlu1 %4702, %v120_v13  }
  0xce   :  { %916 = vmatmul.f32.gmra.mxu0 %v820_v41  ;;  %1029 = vmatmul.f32.gmra.mxu1 %v820_v41  ;;  %v114_v41 = vld [vmem:[%s8650_s0 + $0x98] sm:$0xff] }
  0xcf   :  { %215 = vperm.xlu2 %4703, %v5109_v51   ;;  %v718_v49 = vadd.f32 %v5170_v22, %v682_v46 }
  0xd0   :  { %v171_v47 = vpop.permute.xlu1 %170 }
  0xd1   :  { %v754_v56 = vmul.f32 %v5176_v25, %v718_v49  ;;  %v297_v58 = vmul.f32 %v5136_v62, %v171_v47 }
  0xd2   :  { %v359_v8 = vpop.permute.xlu0 %358 }
  0xd3   :  { %v556_v53 = vpop.permute.xlu2 %555  ;;  %v790_v60 = vadd.f32 %v5183_v29, %v754_v56  ;;  %v490_v63 = vadd.f32 %v458_v59, %v297_v58  ;;  %v459_v16 = vmul.f32 %v5140_v3, %v359_v8 }
  0xd5   :  { %583 = vperm.xlu1 %4702, %v5109_v51   ;;  %v822_v11 = vmax.f32 %v790_v60, 0.0  ;;  %v298_v51 = vmul.f32 %v5136_v62, %v176_v30  ;;  %v653_v30 = vmul.f32 %v5152_v7, %v556_v53 }
  0xd6   :  { %919 = vmatmul.f32.gmra.mxu0 %v821_v54  ;;  %1032 = vmatmul.f32.gmra.mxu1 %v821_v54  ;;  %v655_v54 = vmul.f32 %v5152_v7, %v5241_v35  ;;  %v5317_v35 = vld [vmem:[%s8650_s0 + $0xa8] sm:$0xff] }
  0xd7   :  { %260 = vperm.xlu2 %4703, %v121_v55   ;;  %v491_v17 = vadd.f32 %v459_v16, %v298_v51  ;;  %599 = vperm.xlu0 %4713, %v5317_v35   ;;  %v115_v16 = vld [vmem:[%s8650_s0 + $0xa0] sm:$0xff] }
  0xd9   :  { %v548_v61 = vpop.permute.xlu1 %547 }
  0xda   :  { %v651_v6 = vmul.f32 %v5152_v7, %v548_v61  ;;  %v379_v8 = vpop.permute.xlu0 %378 }
  0xdb   :  { %v560_v9 = vpop.permute.xlu2 %559 }
  0xdc   :  { %v683_v10 = vadd.f32 %v651_v6, %v490_v63  ;;  %v654_v43 = vmul.f32 %v5152_v7, %v560_v9 }
  0xdd   :  { %4704 = vset.pattern.permute.xlu1 %v4843_v1 }
  0xde   :  { %v719_v12 = vadd.f32 %v5170_v22, %v683_v10  ;;  %922 = vmatmul.f32.gmra.mxu0 %v822_v11  ;;  %1035 = vmatmul.f32.gmra.mxu1 %v822_v11 }
  0xdf   :  { %4705 = vset.pattern.permute.xlu2 %v4842_v0  ;;  %426 = vperm.xlu1 %4704, %v121_v55  }
  0xe0   :  { %619 = vperm.xlu2 %4705, %v121_v55   ;;  %v755_v14 = vmul.f32 %v5176_v25, %v719_v12  ;;  %4718 = vset.pattern.permute.xlu0 %v4843_v1 }
  0xe1   :  { %v552_v4 = vpop.permute.xlu1 %551 }
  0xe2   :  { %v652_v18 = vmul.f32 %v5152_v7, %v552_v4  ;;  %v791_v15 = vadd.f32 %v5183_v29, %v755_v14 }
  0xe4   :  { %v684_v19 = vadd.f32 %v652_v18, %v491_v17  ;;  %v823_v20 = vmax.f32 %v791_v15, 0.0  ;;  %v371_v21 = vpop.permute.xlu2 %370  ;;  %v5330_v15 = vpop.permute.xlu0 %390 }
  0xe5   :  { %v462_v49 = vmul.f32 %v5140_v3, %v371_v21 }
  0xe6   :  { %v720_v23 = vadd.f32 %v5170_v22, %v684_v19  ;;  %925 = vmatmul.f32.gmra.mxu0 %v823_v20  ;;  %1038 = vmatmul.f32.gmra.mxu1 %v823_v20 }
  0xe7   :  { %394 = vperm.xlu1 %4704, %v5232_v26  }
  0xe8   :  { %587 = vperm.xlu2 %4705, %v5232_v26   ;;  %v756_v24 = vmul.f32 %v5176_v25, %v720_v23  ;;  %v300_v26 = vmul.f32 %v5136_v62, %v5208_v5  ;;  %v464_v23 = vmul.f32 %v5140_v3, %v379_v8 }
  0xea   :  { %v363_v13 = vpop.permute.xlu1 %362  ;;  %v792_v27 = vadd.f32 %v5183_v29, %v756_v24 }
  0xeb   :  { %v460_v31 = vmul.f32 %v5140_v3, %v363_v13 }
  0xec   :  { %v824_v32 = vmax.f32 %v792_v27, 0.0  ;;  %v375_v33 = vpop.permute.xlu2 %374 }
  0xed   :  { %v492_v34 = vadd.f32 %v460_v31, %v299_v28  ;;  %v463_v14 = vmul.f32 %v5140_v3, %v375_v33  ;;  %v5343_v31 = vld [vmem:[%s8650_s0 + $0xb0] sm:$0xff] }
  0xee   :  { %928 = vmatmul.f32.gmra.mxu0 %v824_v32  ;;  %1041 = vmatmul.f32.gmra.mxu1 %v824_v32 }
  0xef   :  { %v685_v36 = vadd.f32 %v653_v30, %v492_v34  ;;  %4706 = vset.pattern.permute.xlu1 %v4844_v2  ;;  %410 = vperm.xlu0 %4718, %v5343_v31  }
  0xf0   :  { %4707 = vset.pattern.permute.xlu2 %v4843_v1  ;;  %265 = vperm.xlu1 %4706, %v122_v52  }
  0xf1   :  { %430 = vperm.xlu2 %4707, %v122_v52   ;;  %v721_v37 = vadd.f32 %v5170_v22, %v685_v36  ;;  %v5346_v36 = vpop.permute.xlu0 %434 }
  0xf2   :  { %v367_v38 = vpop.permute.xlu1 %366 }
  0xf3   :  { %v461_v40 = vmul.f32 %v5140_v3, %v367_v38  ;;  %v757_v42 = vmul.f32 %v5176_v25, %v721_v37 }
  0xf5   :  { %v493_v44 = vadd.f32 %v461_v40, %v300_v26  ;;  %v793_v45 = vadd.f32 %v5183_v29, %v757_v42  ;;  %v201_v46 = vpop.permute.xlu2 %200 }
  0xf7   :  { %v686_v47 = vadd.f32 %v654_v43, %v493_v44  ;;  %v825_v5 = vmax.f32 %v793_v45, 0.0  ;;  %4721 = vset.pattern.permute.xlu0 %v4844_v2 }
  0xf8   :  { %225 = vperm.xlu1 %4706, %v114_v41  }
  0xf9   :  { %398 = vperm.xlu2 %4707, %v114_v41   ;;  %931 = vmatmul.f32.gmra.mxu0 %v825_v5  ;;  %v722_v48 = vadd.f32 %v5170_v22, %v686_v47  ;;  %v251_v47 = vpop.permute.xlu0 %250 }
  0xfa   :  { %1044 = vmatmul.f32.gmra.mxu1 %v825_v5 }
  0xfb   :  { %v191_v52 = vpop.permute.xlu1 %190  ;;  %v758_v53 = vmul.f32 %v5176_v25, %v722_v48 }
  0xfc   :  { %v301_v55 = vmul.f32 %v5136_v62, %v191_v52 }
  0xfd   :  { %v794_v56 = vadd.f32 %v5183_v29, %v758_v53  ;;  %v206_v58 = vpop.permute.xlu2 %205 }
  0xfe   :  { %v494_v59 = vadd.f32 %v462_v49, %v301_v55  ;;  %v304_v42 = vmul.f32 %v5136_v62, %v206_v58 }
  0xff   :  { %v826_v60 = vmax.f32 %v794_v56, 0.0  ;;  %v125_v56 = vld [vmem:[%s8650_s0 + $0xf0] sm:$0xff] }
 0x100   :  { %v687_v61 = vadd.f32 %v655_v54, %v494_v59  ;;  %4708 = vset.pattern.permute.xlu1 %v4842_v0 }
 0x101   :  { %4709 = vset.pattern.permute.xlu2 %v4844_v2  ;;  %591 = vperm.xlu1 %4708, %v114_v41  }
 0x102   :  { %270 = vperm.xlu2 %4709, %v5126_v57   ;;  %934 = vmatmul.f32.gmra.mxu0 %v826_v60  ;;  %v723_v63 = vadd.f32 %v5170_v22, %v687_v61 }
 0x103   :  { %1047 = vmatmul.f32.gmra.mxu1 %v826_v60  ;;  %v196_v6 = vpop.permute.xlu1 %195 }
 0x104   :  { %v759_v9 = vmul.f32 %v5176_v25, %v723_v63  ;;  %v302_v12 = vmul.f32 %v5136_v62, %v196_v6  ;;  %v118_v6 = vld [vmem:[%s8650_s0 + $0xb8] sm:$0xff] }
 0x105   :  { %245 = vperm.xlu0 %4721, %v118_v6  }
 0x106   :  { %v795_v10 = vadd.f32 %v5183_v29, %v759_v9  ;;  %v576_v11 = vpop.permute.xlu2 %575  ;;  %v495_v17 = vadd.f32 %v463_v14, %v302_v12 }
 0x107   :  { %v658_v43 = vmul.f32 %v5152_v7, %v576_v11 }
 0x108   :  { %v827_v51 = vmax.f32 %v795_v10, 0.0  ;;  %v659_v10 = vmul.f32 %v5152_v7, %v5259_v50 }
 0x109   :  { %627 = vperm.xlu1 %4708, %v5126_v57   ;;  %v303_v57 = vmul.f32 %v5136_v62, %v201_v46 }
 0x10a   :  { %937 = vmatmul.f32.gmra.mxu0 %v827_v51  ;;  %230 = vperm.xlu2 %4709, %v115_v16  }
 0x10b   :  { %1050 = vmatmul.f32.gmra.mxu1 %v827_v51  ;;  %v496_v27 = vadd.f32 %v464_v23, %v303_v57 }
 0x10c   :  { %v568_v4 = vpop.permute.xlu1 %567 }
 0x10d   :  { %v656_v18 = vmul.f32 %v5152_v7, %v568_v4  ;;  %4722 = vset.pattern.permute.xlu0 %v4842_v0 }
 0x10e   :  { %v612_v19 = vpop.permute.xlu2 %611 }
 0x10f   :  { %v688_v20 = vadd.f32 %v656_v18, %v495_v17  ;;  %v667_v54 = vmul.f32 %v5152_v7, %v612_v19 }
 0x111   :  { %v724_v21 = vadd.f32 %v5170_v22, %v688_v20  ;;  %4711 = vset.pattern.permute.xlu1 %v4843_v1 }
 0x112   :  { %402 = vperm.xlu1 %4711, %v115_v16   ;;  %4712 = vset.pattern.permute.xlu2 %v4842_v0 }
 0x113   :  { %v760_v24 = vmul.f32 %v5176_v25, %v724_v21  ;;  %595 = vperm.xlu2 %4712, %v115_v16  }
 0x114   :  { %v572_v13 = vpop.permute.xlu1 %571 }
 0x115   :  { %v657_v28 = vmul.f32 %v5152_v7, %v572_v13  ;;  %v796_v30 = vadd.f32 %v5183_v29, %v760_v24 }
 0x117   :  { %v689_v32 = vadd.f32 %v657_v28, %v496_v27  ;;  %v828_v33 = vmax.f32 %v796_v30, 0.0  ;;  %v387_v34 = vpop.permute.xlu2 %386  ;;  %v467_v30 = vmul.f32 %v5140_v3, %v5330_v15 }
 0x119   :  { %v725_v26 = vadd.f32 %v5170_v22, %v689_v32  ;;  %940 = vmatmul.f32.gmra.mxu0 %v828_v33  ;;  %1053 = vmatmul.f32.gmra.mxu1 %v828_v33 }
 0x11a   :  { %438 = vperm.xlu1 %4711, %v5248_v39  }
 0x11b   :  { %v761_v37 = vmul.f32 %v5176_v25, %v725_v26  ;;  %631 = vperm.xlu2 %4712, %v5248_v39   ;;  %v313_v39 = vmul.f32 %v5136_v62, %v251_v47 }
 0x11d   :  { %v383_v38 = vpop.permute.xlu1 %382  ;;  %v797_v40 = vadd.f32 %v5183_v29, %v761_v37 }
 0x11e   :  { %v465_v44 = vmul.f32 %v5140_v3, %v383_v38 }
 0x11f   :  { %v829_v41 = vmax.f32 %v797_v40, 0.0  ;;  %v423_v46 = vpop.permute.xlu2 %422 }
 0x120   :  { %v497_v45 = vadd.f32 %v465_v44, %v304_v42  ;;  %v475_v21 = vmul.f32 %v5140_v3, %v423_v46 }
 0x121   :  { %943 = vmatmul.f32.gmra.mxu0 %v829_v41  ;;  %1056 = vmatmul.f32.gmra.mxu1 %v829_v41 }
 0x122   :  { %v690_v5 = vadd.f32 %v658_v43, %v497_v45  ;;  %4714 = vset.pattern.permute.xlu1 %v4844_v2 }
 0x123   :  { %235 = vperm.xlu1 %4714, %v5317_v35   ;;  %4715 = vset.pattern.permute.xlu2 %v4843_v1 }
 0x124   :  { %v726_v48 = vadd.f32 %v5170_v22, %v690_v5  ;;  %406 = vperm.xlu2 %4715, %v5317_v35   ;;  %v466_v35 = vmul.f32 %v5140_v3, %v387_v34 }
 0x125   :  { %v419_v49 = vpop.permute.xlu1 %418 }
 0x126   :  { %v474_v52 = vmul.f32 %v5140_v3, %v419_v49  ;;  %v762_v53 = vmul.f32 %v5176_v25, %v726_v48 }
 0x128   :  { %v506_v55 = vadd.f32 %v474_v52, %v313_v39  ;;  %v798_v58 = vadd.f32 %v5183_v29, %v762_v53 }
 0x129   :  { %v216_v61 = vpop.permute.xlu2 %215 }
 0x12a   :  { %v699_v59 = vadd.f32 %v667_v54, %v506_v55  ;;  %v830_v60 = vmax.f32 %v798_v58, 0.0 }
 0x12b   :  { %280 = vperm.xlu1 %4714, %v125_v56  }
 0x12c   :  { %946 = vmatmul.f32.gmra.mxu0 %v830_v60  ;;  %1059 = vmatmul.f32.gmra.mxu1 %v830_v60  ;;  %v735_v63 = vadd.f32 %v5170_v22, %v699_v59 }
 0x12d   :  { %442 = vperm.xlu2 %4715, %v125_v56  }
 0x12e   :  { %v211_v8 = vpop.permute.xlu1 %210  ;;  %v771_v9 = vmul.f32 %v5176_v25, %v735_v63 }
 0x12f   :  { %v305_v11 = vmul.f32 %v5136_v62, %v211_v8 }
 0x130   :  { %v807_v51 = vadd.f32 %v5183_v29, %v771_v9 }
 0x131   :  { %v498_v12 = vadd.f32 %v466_v35, %v305_v11  ;;  %v261_v4 = vpop.permute.xlu2 %260 }
 0x132   :  { %v839_v16 = vmax.f32 %v807_v51, 0.0  ;;  %v315_v45 = vmul.f32 %v5136_v62, %v261_v4 }
 0x133   :  { %v691_v14 = vadd.f32 %v659_v10, %v498_v12  ;;  %4716 = vset.pattern.permute.xlu1 %v4842_v0 }
 0x134   :  { %635 = vperm.xlu1 %4716, %v125_v56   ;;  %973 = vmatmul.f32.vlgmr.msra.gmra.mxu2 %v839_v16 }
 0x135   :  { %1086 = vmatmul.f32.vlgmr.msra.gmra.mxu3 %v839_v16  ;;  %v727_v17 = vadd.f32 %v5170_v22, %v691_v14  ;;  %4717 = vset.pattern.permute.xlu2 %v4844_v2  ;;  %v126_v2 = vld [vmem:[%s8650_s0 + $0xf8] sm:$0xff] }
 0x136   :  { %v256_v18 = vpop.permute.xlu1 %255  ;;  %240 = vperm.xlu2 %4717, %v5343_v31  }
 0x137   :  { %v763_v50 = vmul.f32 %v5176_v25, %v727_v17  ;;  %v314_v57 = vmul.f32 %v5136_v62, %v256_v18 }
 0x139   :  { %v799_v19 = vadd.f32 %v5183_v29, %v763_v50  ;;  %v507_v13 = vadd.f32 %v475_v21, %v314_v57 }
 0x13a   :  { %v620_v23 = vpop.permute.xlu2 %619 }
 0x13b   :  { %v831_v20 = vmax.f32 %v799_v19, 0.0  ;;  %v669_v46 = vmul.f32 %v5152_v7, %v620_v23 }
 0x13c   :  { %603 = vperm.xlu1 %4716, %v5343_v31   ;;  %v306_v31 = vmul.f32 %v5136_v62, %v216_v61 }
 0x13d   :  { %949 = vmatmul.f32.gmra.mxu0 %v831_v20  ;;  %1062 = vmatmul.f32.gmra.mxu1 %v831_v20 }
 0x13e   :  { %285 = vperm.xlu2 %4717, %v126_v2   ;;  %v499_v26 = vadd.f32 %v467_v30, %v306_v31 }
 0x13f   :  { %v616_v24 = vpop.permute.xlu1 %615 }
 0x140   :  { %v668_v27 = vmul.f32 %v5152_v7, %v616_v24 }
 0x142   :  { %v700_v28 = vadd.f32 %v668_v27, %v507_v13  ;;  %v588_v40 = vpop.permute.xlu2 %587 }
 0x143   :  { %v661_v59 = vmul.f32 %v5152_v7, %v588_v40  ;;  %v5436_v40 = vpop.f32.mrf.mxu1 }
 0x144   :  { %v736_v32 = vadd.f32 %v5170_v22, %v700_v28  ;;  %4719 = vset.pattern.permute.xlu1 %v4843_v1  ;;  %v221_v1 = vpop.permute.xlu0 %220 }
 0x145   :  { %446 = vperm.xlu1 %4719, %v126_v2   ;;  %v307_v53 = vmul.f32 %v5136_v62, %v221_v1 }
 0x146   :  { %v772_v33 = vmul.f32 %v5176_v25, %v736_v32  ;;  %4720 = vset.pattern.permute.xlu2 %v4842_v0 }
 0x147   :  { %v584_v34 = vpop.permute.xlu1 %583  ;;  %639 = vperm.xlu2 %4720, %v126_v2  }
 0x148   :  { %v660_v37 = vmul.f32 %v5152_v7, %v584_v34  ;;  %v808_v38 = vadd.f32 %v5183_v29, %v772_v33 }
 0x14a   :  { %v692_v15 = vadd.f32 %v660_v37, %v499_v26  ;;  %v840_v42 = vmax.f32 %v808_v38, 0.0  ;;  %v478_v26 = vmul.f32 %v5140_v3, %v5346_v36  ;;  %v5433_v37 = vpop.f32.mrf.mxu0 }
 0x14b   :  { %v431_v39 = vpop.permute.xlu2 %430 }
 0x14c   :  { %v728_v43 = vadd.f32 %v5170_v22, %v692_v15  ;;  %976 = vmatmul.f32.gmra.mxu2 %v840_v42  ;;  %1089 = vmatmul.f32.gmra.mxu3 %v840_v42  ;;  %v5409_v52 = vpop.permute.xlu0 %275  ;;  %v477_v10 = vmul.f32 %v5140_v3, %v431_v39  ;;  %v5445_v39 = vpop.f32.mrf.mxu1 }
 0x14d   :  { %414 = vperm.xlu1 %4719, %v118_v6  }
 0x14e   :  { %v764_v44 = vmul.f32 %v5176_v25, %v728_v43 }
 0x14f   :  { %607 = vperm.xlu2 %4720, %v118_v6  }
 0x150   :  { %v800_v0 = vadd.f32 %v5183_v29, %v764_v44 }
 0x151   :  { %v427_v41 = vpop.permute.xlu1 %426 }
 0x152   :  { %v476_v47 = vmul.f32 %v5140_v3, %v427_v41  ;;  %v832_v5 = vmax.f32 %v800_v0, 0.0 }
 0x153   :  { %v399_v63 = vpop.permute.xlu2 %398 }
 0x154   :  { %v508_v48 = vadd.f32 %v476_v47, %v315_v45  ;;  %952 = vmatmul.f32.gmra.mxu0 %v832_v5  ;;  %1065 = vmatmul.f32.gmra.mxu1 %v832_v5  ;;  %v624_v8 = vpop.permute.xlu0 %623  ;;  %v469_v13 = vmul.f32 %v5140_v3, %v399_v63 }
 0x155   :  { %v670_v16 = vmul.f32 %v5152_v7, %v624_v8  ;;  %v5457_v8 = vpop.f32.mrf.mxu1 }
 0x156   :  { %v701_v49 = vadd.f32 %v669_v46, %v508_v48  ;;  %v5442_v46 = vpop.f32.mrf.mxu0 }
 0x158   :  { %v737_v54 = vadd.f32 %v5170_v22, %v701_v49 }
 0x159   :  { %v395_v55 = vpop.permute.xlu1 %394 }
 0x15a   :  { %v468_v56 = vmul.f32 %v5140_v3, %v395_v55  ;;  %v773_v58 = vmul.f32 %v5176_v25, %v737_v54 }
 0x15c   :  { %v500_v60 = vadd.f32 %v468_v56, %v307_v53  ;;  %v809_v61 = vadd.f32 %v5183_v29, %v773_v58  ;;  %v271_v17 = vpop.permute.xlu2 %270 }
 0x15d   :  { %v317_v32 = vmul.f32 %v5136_v62, %v271_v17  ;;  %v1707_v17 = vld [vmem:[#allocation5 + $0x3e8] sm:$0xff] }
 0x15e   :  { %v693_v35 = vadd.f32 %v661_v59, %v500_v60  ;;  %v841_v6 = vmax.f32 %v809_v61, 0.0  ;;  %v318_v60 = vmul.f32 %v5136_v62, %v5409_v52  ;;  %2049 = vmatpush.msrb.mxu1 %v1707_v17 }
 0x15f   :  { %v510_v42 = vadd.f32 %v478_v26, %v317_v32  ;;  %v1699_v32 = vld [vmem:[#allocation5 + $0x3a8] sm:$0xff] }
 0x160   :  { %979 = vmatmul.f32.gmra.mxu2 %v841_v6  ;;  %1092 = vmatmul.f32.gmra.mxu3 %v841_v6  ;;  %v729_v9 = vadd.f32 %v5170_v22, %v693_v35  ;;  %v5455_v6 = vpop.f32.mrf.mxu0  ;;  %v1695_v26 = vld [vmem:[#allocation5 + $0x388] sm:$0xff] }
 0x162   :  { %v266_v11 = vpop.permute.xlu1 %265  ;;  %v765_v51 = vmul.f32 %v5176_v25, %v729_v9 }
 0x163   :  { %v316_v12 = vmul.f32 %v5136_v62, %v266_v11 }
 0x164   :  { %v801_v4 = vadd.f32 %v5183_v29, %v765_v51  ;;  %v231_v23 = vpop.permute.xlu2 %230 }
 0x165   :  { %v509_v14 = vadd.f32 %v477_v10, %v316_v12  ;;  %v309_v48 = vmul.f32 %v5136_v62, %v231_v23 }
 0x166   :  { %v833_v50 = vmax.f32 %v801_v4, 0.0  ;;  %v1643_v4 = vld [vmem:[#allocation5 + $0x1e8] sm:$0xff] }
 0x167   :  { %v702_v18 = vadd.f32 %v670_v16, %v509_v14  ;;  %v600_v16 = vpop.permute.xlu0 %599  ;;  %1936 = vmatpush.msrb.mxu0 %v1643_v4  ;;  %v1663_v4 = vld [vmem:[#allocation5 + $0x288] sm:$0xff] }
 0x168   :  { %955 = vmatmul.f32.gmra.mxu0 %v833_v50  ;;  %1068 = vmatmul.f32.gmra.mxu1 %v833_v50 }
 0x169   :  { %v738_v19 = vadd.f32 %v5170_v22, %v702_v18 }
 0x16a   :  { %v226_v20 = vpop.permute.xlu1 %225 }
 0x16b   :  { %v774_v57 = vmul.f32 %v5176_v25, %v738_v19  ;;  %v308_v24 = vmul.f32 %v5136_v62, %v226_v20  ;;  %v664_v20 = vmul.f32 %v5152_v7, %v600_v16 }
 0x16d   :  { %v810_v2 = vadd.f32 %v5183_v29, %v774_v57  ;;  %v501_v28 = vadd.f32 %v469_v13, %v308_v24  ;;  %v596_v34 = vpop.permute.xlu2 %595  ;;  %v5469_v24 = vpop.f32.mrf.mxu1 }
 0x16e   :  { %v663_v49 = vmul.f32 %v5152_v7, %v596_v34  ;;  %v1631_v34 = vld [vmem:[#allocation5 + $0x188] sm:$0xff] }
 0x16f   :  { %v842_v21 = vmax.f32 %v810_v2, 0.0 }
 0x171   :  { %982 = vmatmul.f32.gmra.mxu2 %v842_v21  ;;  %1095 = vmatmul.f32.gmra.mxu3 %v842_v21  ;;  %v5467_v21 = vpop.f32.mrf.mxu0 }
 0x173   :  { %v592_v27 = vpop.permute.xlu1 %591 }
 0x174   :  { %v662_v30 = vmul.f32 %v5152_v7, %v592_v27  ;;  %v1639_v27 = vld [vmem:[#allocation5 + $0x1c8] sm:$0xff] }
 0x175   :  { %v632_v45 = vpop.permute.xlu2 %631  ;;  %1937 = vmatpush.msrb.mxu0 %v1639_v27 }
 0x176   :  { %v694_v31 = vadd.f32 %v662_v30, %v501_v28  ;;  %v672_v9 = vmul.f32 %v5152_v7, %v632_v45  ;;  %v1703_v28 = vld [vmem:[#allocation5 + $0x3c8] sm:$0xff]  ;;  %v5476_v45 = vpop.f32.mrf.mxu1 }
 0x177   :  { %2050 = vmatpush.msrb.mxu1 %v1703_v28 }
 0x178   :  { %v730_v33 = vadd.f32 %v5170_v22, %v694_v31  ;;  %v1635_v31 = vld [vmem:[#allocation5 + $0x1a8] sm:$0xff] }
 0x179   :  { %1938 = vmatpush.msrb.mxu0 %v1635_v31  ;;  %2051 = vmatpush.msrb.mxu1 %v1699_v32  ;;  %v1591_v31 = vld [vmem:[#allocation5 + $0x48] sm:$0xff] }
 0x17a   :  { %v766_v38 = vmul.f32 %v5176_v25, %v730_v33  ;;  %v1655_v32 = vld [vmem:[#allocation5 + $0x248] sm:$0xff] }
 0x17b   :  { %v628_v15 = vpop.permute.xlu1 %627  ;;  %1939 = vmatpush.msrb.mxu0 %v1631_v34  ;;  %2052 = vmatpush.msrb.mxu1 %v1695_v26  ;;  %v1587_v34 = vld [vmem:[#allocation5 + $0x28] sm:$0xff] }
 0x17c   :  { %v671_v43 = vmul.f32 %v5152_v7, %v628_v15  ;;  %v802_v1 = vadd.f32 %v5183_v29, %v766_v38  ;;  %v1627_v15 = vld [vmem:[#allocation5 + $0x168] sm:$0xff] }
 0x17d   :  { %1940 = vmatpush.msrb.mxu0 %v1627_v15  ;;  %v1651_v26 = vld [vmem:[#allocation5 + $0x228] sm:$0xff] }
 0x17e   :  { %v703_v44 = vadd.f32 %v671_v43, %v510_v42  ;;  %v834_v0 = vmax.f32 %v802_v1, 0.0  ;;  %v407_v63 = vpop.permute.xlu2 %406  ;;  %v1691_v42 = vld [vmem:[#allocation5 + $0x368] sm:$0xff]  ;;  %v5491_v17 = vpop.f32.mrf.mxu1 }
 0x17f   :  { %v471_v14 = vmul.f32 %v5140_v3, %v407_v63  ;;  %2053 = vmatpush.msrb.mxu1 %v1691_v42  ;;  %v1583_v42 = vld [vmem:[#allocation5 + $0x8] sm:$0xff] }
 0x180   :  { %v739_v41 = vadd.f32 %v5170_v22, %v703_v44  ;;  %958 = vmatmul.f32.gmra.mxu0 %v834_v0  ;;  %1071 = vmatmul.f32.gmra.mxu1 %v834_v0  ;;  %v1623_v0 = vld [vmem:[#allocation5 + $0x148] sm:$0xff] }
 0x181   :  { %1941 = vmatpush.msrb.mxu0 %v1623_v0 }
 0x182   :  { %v775_v36 = vmul.f32 %v5176_v25, %v739_v41  ;;  %v1687_v41 = vld [vmem:[#allocation5 + $0x348] sm:$0xff] }
 0x183   :  { %2054 = vmatpush.msrb.mxu1 %v1687_v41 }
 0x184   :  { %v403_v47 = vpop.permute.xlu1 %402  ;;  %v811_v5 = vadd.f32 %v5183_v29, %v775_v36  ;;  %v5474_v36 = vpop.f32.mrf.mxu0 }
 0x185   :  { %v470_v53 = vmul.f32 %v5140_v3, %v403_v47 }
 0x186   :  { %v843_v54 = vmax.f32 %v811_v5, 0.0  ;;  %v1619_v5 = vld [vmem:[#allocation5 + $0x128] sm:$0xff] }
 0x187   :  { %v502_v55 = vadd.f32 %v470_v53, %v309_v48  ;;  %v443_v57 = vpop.permute.xlu2 %442  ;;  %v1615_v48 = vld [vmem:[#allocation5 + $0x108] sm:$0xff]  ;;  %1942 = vmatpush.msrb.mxu0 %v1619_v5 }
 0x188   :  { %985 = vmatmul.f32.gmra.mxu2 %v843_v54  ;;  %1098 = vmatmul.f32.gmra.mxu3 %v843_v54  ;;  %v1611_v54 = vld [vmem:[#allocation5 + $0xe8] sm:$0xff] }
 0x189   :  { %v695_v56 = vadd.f32 %v663_v49, %v502_v55  ;;  %v480_v49 = vmul.f32 %v5140_v3, %v443_v57  ;;  %v1675_v55 = vld [vmem:[#allocation5 + $0x2e8] sm:$0xff]  ;;  %1943 = vmatpush.msrb.mxu0 %v1615_v48 }
 0x18a   :  { %v1659_v57 = vld [vmem:[#allocation5 + $0x268] sm:$0xff] }
 0x18b   :  { %v731_v58 = vadd.f32 %v5170_v22, %v695_v56  ;;  %1944 = vmatpush.msrb.mxu0 %v1611_v54 }
 0x18c   :  { %v439_v59 = vpop.permute.xlu1 %438 }
 0x18d   :  { %v479_v61 = vmul.f32 %v5140_v3, %v439_v59  ;;  %v767_v35 = vmul.f32 %v5176_v25, %v731_v58  ;;  %v411_v59 = vpop.permute.xlu0 %410 }
 0x18e   :  { %v472_v16 = vmul.f32 %v5140_v3, %v411_v59 }
 0x18f   :  { %v511_v10 = vadd.f32 %v479_v61, %v318_v60  ;;  %v803_v11 = vadd.f32 %v5183_v29, %v767_v35  ;;  %v1607_v60 = vld [vmem:[#allocation5 + $0xc8] sm:$0xff] }
 0x190   :  { %v241_v44 = vpop.permute.xlu2 %240  ;;  %v1671_v61 = vld [vmem:[#allocation5 + $0x2c8] sm:$0xff]  ;;  %1945 = vmatpush.msrb.mxu0 %v1607_v60 }
 0x191   :  { %v704_v51 = vadd.f32 %v672_v9, %v511_v10  ;;  %v835_v12 = vmax.f32 %v803_v11, 0.0  ;;  %v1603_v35 = vld [vmem:[#allocation5 + $0xa8] sm:$0xff]  ;;  %v311_v10 = vmul.f32 %v5136_v62, %v241_v44  ;;  %v5485_v11 = vld [vmem:[%s8652_s2] ss:$0 sm:$0xff]  ;;  %v5507_v44 = vpop.f32.mrf.mxu1 }
 0x192   :  { %v1667_v9 = vld [vmem:[#allocation5 + $0x2a8] sm:$0xff]  ;;  %1946 = vmatpush.msrb.mxu0 %v1603_v35 }
 0x193   :  { %961 = vmatmul.f32.gmra.mxu0 %v835_v12  ;;  %1074 = vmatmul.f32.gmra.mxu1 %v835_v12  ;;  %v740_v52 = vadd.f32 %v5170_v22, %v704_v51 }
 0x195   :  { %v236_v18 = vpop.permute.xlu1 %235  ;;  %v776_v50 = vmul.f32 %v5176_v25, %v740_v52  ;;  %v5489_v52 = vpop.f32.mrf.mxu0 }
 0x196   :  { %v310_v19 = vmul.f32 %v5136_v62, %v236_v18  ;;  %v5496_v18 = vld [vmem:[%s8653_s3] ss:$0 sm:$0xff] }
 0x197   :  { %v812_v2 = vadd.f32 %v5183_v29, %v776_v50 }
 0x198   :  { %v503_v23 = vadd.f32 %v471_v14, %v310_v19  ;;  %v286_v12 = vpop.permute.xlu2 %285  ;;  %v1599_v14 = vld [vmem:[#allocation5 + $0x88] sm:$0xff] }
 0x199   :  { %v844_v13 = vmax.f32 %v812_v2, 0.0  ;;  %v504_v2 = vadd.f32 %v472_v16, %v311_v10  ;;  %1947 = vmatpush.msrb.mxu0 %v1599_v14 }
 0x19a   :  { %v696_v30 = vadd.f32 %v664_v20, %v503_v23  ;;  %v1595_v20 = vld [vmem:[#allocation5 + $0x68] sm:$0xff] }
 0x19b   :  { %988 = vmatmul.f32.gmra.mxu2 %v844_v13  ;;  %1101 = vmatmul.f32.gmra.mxu3 %v844_v13  ;;  %v4728_v13 = vld [vmem:[%s8654_s4] ss:$0 sm:$0xff] }
 0x19c   :  { %v732_v33 = vadd.f32 %v5170_v22, %v696_v30  ;;  %1948 = vmatpush.msrb.mxu0 %v1595_v20 }
 0x19d   :  { %v281_v38 = vpop.permute.xlu1 %280 }
 0x19e   :  { %v768_v43 = vmul.f32 %v5176_v25, %v732_v33  ;;  %v319_v47 = vmul.f32 %v5136_v62, %v281_v38  ;;  %v1683_v25 = vld [vmem:[#allocation5 + $0x328] sm:$0xff]  ;;  %1949 = vmatpush.msrb.mxu0 %v1591_v31 }
 0x19f   :  { %2055 = vmatpush.msrb.mxu1 %v1683_v25 }
 0x1a0   :  { %v804_v1 = vadd.f32 %v5183_v29, %v768_v43  ;;  %v1679_v29 = vld [vmem:[#allocation5 + $0x308] sm:$0xff]  ;;  %v512_v56 = vadd.f32 %v480_v49, %v319_v47  ;;  %1950 = vmatpush.msrb.mxu0 %v1587_v34  ;;  %v1379_v34 = vld [vmem:[#allocation2 + $0x3e0] sm:$0xff] }
 0x1a1   :  { %2056 = vmatpush.msrb.mxu1 %v1679_v29  ;;  %v640_v38 = vpop.permute.xlu2 %639  ;;  %v1647_v43 = vld [vmem:[#allocation5 + $0x208] sm:$0xff]  ;;  %v246_v29 = vpop.permute.xlu0 %245  ;;  %1442 = vmatpush.msrb.mxu3 %v1379_v34  ;;  %v1331_v34 = vld [vmem:[#allocation2 + $0x260] sm:$0xff] }
 0x1a2   :  { %v836_v22 = vmax.f32 %v804_v1, 0.0  ;;  %v5505_v1 = vpop.f32.mrf.mxu0  ;;  %v674_v47 = vmul.f32 %v5152_v7, %v640_v38  ;;  %1951 = vmatpush.msrb.mxu0 %v1583_v42  ;;  %v1375_v42 = vld [vmem:[#allocation2 + $0x3c0] sm:$0xff] }
 0x1a3   :  { %2057 = vmatpush.msrb.mxu1 %v1675_v55  ;;  %1443 = vmatpush.msrb.mxu3 %v1375_v42 }
 0x1a4   :  { %964 = vmatmul.f32.gmra.mxu0 %v836_v22  ;;  %1077 = vmatmul.f32.gmra.mxu1 %v836_v22  ;;  %v320_v22 = vmul.f32 %v5136_v62, %v286_v12 }
 0x1a5   :  { %2058 = vmatpush.msrb.mxu1 %v1671_v61  ;;  %v5518_v61 = vpop.f32.mrf.mxu1 }
 0x1a6   :  { %v636_v53 = vpop.permute.xlu1 %635 }
 0x1a7   :  { %v673_v58 = vmul.f32 %v5152_v7, %v636_v53  ;;  %2059 = vmatpush.msrb.mxu1 %v1667_v9  ;;  %v312_v53 = vmul.f32 %v5136_v62, %v246_v29 }
 0x1a9   :  { %v705_v63 = vadd.f32 %v673_v58, %v512_v56  ;;  %2060 = vmatpush.msrb.mxu1 %v1663_v4  ;;  %v608_v55 = vpop.permute.xlu2 %607 }
 0x1aa   :  { %v5516_v60 = vpop.f32.mrf.mxu0 }
 0x1ab   :  { %v741_v51 = vadd.f32 %v5485_v11, %v705_v63  ;;  %2061 = vmatpush.msrb.mxu1 %v1659_v57  ;;  %v666_v63 = vmul.f32 %v5152_v7, %v608_v55  ;;  %v1287_v55 = vld [vmem:[#allocation2 + $0x100] sm:$0xff] }
 0x1ad   :  { %v777_v50 = vmul.f32 %v5496_v18, %v741_v51  ;;  %2062 = vmatpush.msrb.mxu1 %v1655_v32  ;;  %v5525_v14 = vpop.f32.mrf.mxu1 }
 0x1ae   :  { %v604_v19 = vpop.permute.xlu1 %603 }
 0x1af   :  { %v665_v23 = vmul.f32 %v5152_v7, %v604_v19  ;;  %v813_v27 = vadd.f32 %v4728_v13, %v777_v50  ;;  %2063 = vmatpush.msrb.mxu1 %v1651_v26  ;;  %v879_v7 = vld [vmem:[%s8656_s6] sm:$0x3] }
 0x1b0   :  { %v5530_v50 = vperm.slane %v879_v7, 0  ;;  %v5532_v19 = vperm.slane %v879_v7, 1  ;;  %v1335_v7 = vld [vmem:[#allocation2 + $0x280] sm:$0xff] }
 0x1b1   :  { %v697_v28 = vadd.f32 %v665_v23, %v504_v2  ;;  %v845_v30 = vmax.f32 %v813_v27, 0.0  ;;  %2064 = vmatpush.msrb.mxu1 %v1647_v43  ;;  %v1307_v43 = vld [vmem:[#allocation2 + $0x1a0] sm:$0xff] }
 0x1b2   :  { %v5550_v2 = vadd.f32 %v5442_v46, %v5530_v50  ;;  %v5568_v46 = vadd.f32 %v5457_v8, %v5532_v19  ;;  %v5592_v31 = vadd.f32 %v5474_v36, %v5530_v50  ;;  %v5610_v36 = vadd.f32 %v5491_v17, %v5532_v19 }
 0x1b3   :  { %v733_v33 = vadd.f32 %v5485_v11, %v697_v28  ;;  %991 = vmatmul.f32.gmra.mxu2 %v845_v30  ;;  %1104 = vmatmul.f32.gmra.mxu3 %v845_v30  ;;  %v5578_v28 = vadd.f32 %v5467_v21, %v5530_v50  ;;  %v5596_v21 = vadd.f32 %v5476_v45, %v5532_v19  ;;  %v1315_v45 = vld [vmem:[#allocation2 + $0x1e0] sm:$0xff] }
 0x1b4   :  { %9093 = vst [vmem:[#allocation14_spill] sm:$0xff] %v5550_v2  ;;  %1422 = vmatpush.msrb.mxu2 %v1315_v45  ;;  %v5624_v17 = vadd.f32 %v5507_v44, %v5532_v19  ;;  %v5634_v29 = vadd.f32 %v5516_v60, %v5530_v50 }
 0x1b5   :  { %v769_v15 = vmul.f32 %v5496_v18, %v733_v33  ;;  %v5544_v57 = vpop.f32.mrf.mxu1  ;;  %9096 = vst [vmem:[#allocation17_spill] sm:$0xff] %v5568_v46  ;;  %v5606_v33 = vadd.f32 %v5489_v52, %v5530_v50  ;;  %v5620_v52 = vadd.f32 %v5505_v1, %v5530_v50  ;;  %v1295_v1 = vld [vmem:[#allocation2 + $0x140] sm:$0xff] }
 0x1b6   :  { %9097 = vst [vmem:[#allocation18_spill] sm:$0xff] %v5578_v28 }
 0x1b7   :  { %v447_v0 = vpop.permute.xlu1 %446  ;;  %v805_v41 = vadd.f32 %v4728_v13, %v769_v15  ;;  %9099 = vst [vmem:[#allocation20_spill] sm:$0xff] %v5592_v31  ;;  %v1311_v15 = vld [vmem:[#allocation2 + $0x1c0] sm:$0xff]  ;;  %v5642_v60 = vpop.f32.mrf.mxu2 }
 0x1b8   :  { %v481_v5 = vmul.f32 %v5140_v3, %v447_v0  ;;  %9100 = vst [vmem:[#allocation21_spill] sm:$0xff] %v5596_v21  ;;  %1423 = vmatpush.msrb.mxu2 %v1311_v15  ;;  %v1371_v0 = vld [vmem:[#allocation2 + $0x3a0] sm:$0xff] }
 0x1b9   :  { %v837_v25 = vmax.f32 %v805_v41, 0.0  ;;  %9101 = vst [vmem:[#allocation22_spill] sm:$0xff] %v5606_v33  ;;  %v1303_v41 = vld [vmem:[#allocation2 + $0x180] sm:$0xff]  ;;  %1444 = vmatpush.msrb.mxu3 %v1371_v0 }
 0x1ba   :  { %v513_v48 = vadd.f32 %v481_v5, %v320_v22  ;;  %9102 = vst [vmem:[#allocation23_spill] sm:$0xff] %v5610_v36  ;;  %v1367_v22 = vld [vmem:[#allocation2 + $0x380] sm:$0xff]  ;;  %1424 = vmatpush.msrb.mxu2 %v1307_v43 }
 0x1bb   :  { %967 = vmatmul.f32.gmra.mxu0 %v837_v25  ;;  %1080 = vmatmul.f32.gmra.mxu1 %v837_v25  ;;  %9103 = vst [vmem:[#allocation24_spill] sm:$0xff] %v5620_v52  ;;  %v1363_v5 = vld [vmem:[#allocation2 + $0x360] sm:$0xff] }
 0x1bc   :  { %v706_v49 = vadd.f32 %v674_v47, %v513_v48  ;;  %9104 = vst [vmem:[#allocation25_spill] sm:$0xff] %v5624_v17  ;;  %v1299_v47 = vld [vmem:[#allocation2 + $0x160] sm:$0xff]  ;;  %1425 = vmatpush.msrb.mxu2 %v1303_v41  ;;  %1445 = vmatpush.msrb.mxu3 %v1367_v22  ;;  %v5674_v22 = vadd.f32 %v5544_v57, %v5532_v19 }
 0x1bd   :  { %v1359_v25 = vld [vmem:[#allocation2 + $0x340] sm:$0xff]  ;;  %9105 = vst [vmem:[#allocation26_spill] sm:$0xff] %v5634_v29 }
 0x1be   :  { %v742_v54 = vadd.f32 %v5485_v11, %v706_v49  ;;  %1426 = vmatpush.msrb.mxu2 %v1299_v47  ;;  %1446 = vmatpush.msrb.mxu3 %v1363_v5  ;;  %v5638_v49 = vadd.f32 %v5518_v61, %v5532_v19  ;;  %v1279_v61 = vld [vmem:[#allocation2 + $0xc0] sm:$0xff]  ;;  %9110 = vst [vmem:[#allocation31_spill] sm:$0xff] %v5674_v22 }
 0x1bf   :  { %v415_v56 = vpop.permute.xlu1 %414  ;;  %v1263_v43 = vld [vmem:[#allocation2 + $0x40] sm:$0xff] }
 0x1c0   :  { %v473_v58 = vmul.f32 %v5140_v3, %v415_v56  ;;  %v778_v59 = vmul.f32 %v5496_v18, %v742_v54  ;;  %v5523_v3 = vpop.f32.mrf.mxu0  ;;  %9106 = vst [vmem:[#allocation27_spill] sm:$0xff] %v5638_v49  ;;  %v1355_v54 = vld [vmem:[#allocation2 + $0x320] sm:$0xff]  ;;  %1427 = vmatpush.msrb.mxu2 %v1295_v1  ;;  %1447 = vmatpush.msrb.mxu3 %v1359_v25 }
 0x1c1   :  { %v1351_v56 = vld [vmem:[#allocation2 + $0x300] sm:$0xff] }
 0x1c2   :  { %v505_v35 = vadd.f32 %v473_v58, %v312_v53  ;;  %v814_v9 = vadd.f32 %v4728_v13, %v778_v59  ;;  %v1291_v53 = vld [vmem:[#allocation2 + $0x120] sm:$0xff]  ;;  %1448 = vmatpush.msrb.mxu3 %v1355_v54  ;;  %v1138_v54 = vmax.f32 %v5596_v21, %v5610_v36 }
 0x1c3   :  { %1428 = vmatpush.msrb.mxu2 %v1291_v53  ;;  %v1283_v58 = vld [vmem:[#allocation2 + $0xe0] sm:$0xff]  ;;  %v1129_v53 = vmax.f32 %v5592_v31, %v5606_v33 }
 0x1c4   :  { %v698_v10 = vadd.f32 %v666_v63, %v505_v35  ;;  %v846_v51 = vmax.f32 %v814_v9, 0.0  ;;  %v1347_v59 = vld [vmem:[#allocation2 + $0x2e0] sm:$0xff]  ;;  %v5644_v63 = vpop.f32.mrf.mxu3  ;;  %1449 = vmatpush.msrb.mxu3 %v1351_v56  ;;  %v1380_v56 = vld [vmem:[#allocation2 + $0x3e8] sm:$0xff] }
 0x1c5   :  { %1429 = vmatpush.msrb.mxu2 %v1287_v55  ;;  %v1343_v35 = vld [vmem:[#allocation2 + $0x2c0] sm:$0xff]  ;;  %v1316_v55 = vld [vmem:[#allocation2 + $0x1e8] sm:$0xff] }
 0x1c6   :  { %994 = vmatmul.f32.gmra.mxu2 %v846_v51  ;;  %1107 = vmatmul.f32.gmra.mxu3 %v846_v51  ;;  %v734_v62 = vadd.f32 %v5485_v11, %v698_v10  ;;  %v5536_v11 = vadd.f32 %v5433_v37, %v5530_v50  ;;  %v5554_v37 = vadd.f32 %v5445_v39, %v5532_v19  ;;  %v1327_v0 = vld [vmem:[#allocation2 + $0x240] sm:$0xff] }
 0x1c7   :  { %1430 = vmatpush.msrb.mxu2 %v1283_v58  ;;  %1450 = vmatpush.msrb.mxu3 %v1347_v59  ;;  %v5652_v51 = vadd.f32 %v5523_v3, %v5530_v50  ;;  %v1259_v47 = vld [vmem:[#allocation2 + $0x20] sm:$0xff] }
 0x1c8   :  { %v770_v12 = vmul.f32 %v5496_v18, %v734_v62  ;;  %9091 = vst [vmem:[#allocation12_spill] sm:$0xff] %v5536_v11  ;;  %v5540_v18 = vadd.f32 %v5436_v40, %v5532_v19  ;;  %v5542_v20 = vpop.f32.mrf.mxu0  ;;  %v5558_v40 = vpop.f32.mrf.mxu1  ;;  %v5656_v62 = vadd.f32 %v5525_v14, %v5532_v19  ;;  %v1267_v14 = vld [vmem:[#allocation2 + $0x60] sm:$0xff]  ;;  %v1111_v1 = vmax.f32 %v5536_v11, %v5550_v2 }
 0x1c9   :  { %9094 = vst [vmem:[#allocation15_spill] sm:$0xff] %v5554_v37  ;;  %1431 = vmatpush.msrb.mxu2 %v1279_v61  ;;  %1451 = vmatpush.msrb.mxu3 %v1343_v35  ;;  %v5670_v41 = vadd.f32 %v5542_v20, %v5530_v50  ;;  %v1323_v5 = vld [vmem:[#allocation2 + $0x220] sm:$0xff]  ;;  %v1130_v61 = vmax.f32 %v1129_v53, %v5620_v52  ;;  %v1308_v53 = vld [vmem:[#allocation2 + $0x1a8] sm:$0xff] }
 0x1ca   :  { %v806_v16 = vadd.f32 %v4728_v13, %v770_v12  ;;  %9092 = vst [vmem:[#allocation13_spill] sm:$0xff] %v5540_v18  ;;  %v5564_v13 = vadd.f32 %v5455_v6, %v5530_v50  ;;  %v5582_v6 = vadd.f32 %v5469_v24, %v5532_v19  ;;  %v1275_v12 = vld [vmem:[#allocation2 + $0xa0] sm:$0xff]  ;;  %v1120_v25 = vmax.f32 %v5540_v18, %v5554_v37 }
 0x1cb   :  { %9107 = vst [vmem:[#allocation28_spill] sm:$0xff] %v5652_v51  ;;  %1432 = vmatpush.msrb.mxu2 %v1275_v12  ;;  %v1255_v20 = vld [vmem:[#allocation2] sm:$0xff]  ;;  %v1139_v35 = vmax.f32 %v1138_v54, %v5624_v17 }
 0x1cc   :  { %v838_v4 = vmax.f32 %v806_v16, 0.0  ;;  %9095 = vst [vmem:[#allocation16_spill] sm:$0xff] %v5564_v13  ;;  %v1339_v16 = vld [vmem:[#allocation2 + $0x2a0] sm:$0xff]  ;;  %v1112_v58 = vmax.f32 %v1111_v1, %v5564_v13  ;;  %v1121_v59 = vmax.f32 %v1120_v25, %v5568_v46  ;;  %v5708_v25 = vadd.f32 %v5558_v40, %v5532_v19 }
 0x1cd   :  { %9098 = vst [vmem:[#allocation19_spill] sm:$0xff] %v5582_v6  ;;  %1452 = vmatpush.msrb.mxu3 %v1339_v16  ;;  %v1319_v57 = vld [vmem:[#allocation2 + $0x200] sm:$0xff] }
 0x1ce   :  { %970 = vmatmul.f32.gmra.mxu0 %v838_v4  ;;  %1083 = vmatmul.f32.gmra.mxu1 %v838_v4  ;;  %9108 = vst [vmem:[#allocation29_spill] sm:$0xff] %v5656_v62  ;;  %v1271_v4 = vld [vmem:[#allocation2 + $0x80] sm:$0xff] }
 0x1cf   :  { %v5660_v45 = vpop.f32.mrf.mxu2  ;;  %v5662_v3 = vpop.f32.mrf.mxu3  ;;  %1433 = vmatpush.msrb.mxu2 %v1271_v4  ;;  %1453 = vmatpush.msrb.mxu3 %v1335_v7  ;;  %9109 = vst [vmem:[#allocation30_spill] sm:$0xff] %v5670_v41  ;;  %v1312_v4 = vld [vmem:[#allocation2 + $0x1c8] sm:$0xff] }
 0x1d0   :  { %v5556_v23 = vpop.f32.mrf.mxu0  ;;  %v5574_v27 = vpop.f32.mrf.mxu1  ;;  %v1376_v7 = vld [vmem:[#allocation2 + $0x3c8] sm:$0xff]  ;;  %9112 = vst [vmem:[#allocation33_spill] sm:$0xff] %v5708_v25 }
 0x1d1   :  { %1434 = vmatpush.msrb.mxu2 %v1267_v14  ;;  %1454 = vmatpush.msrb.mxu3 %v1331_v34  ;;  %v1113_v14 = vmax.f32 %v1112_v58, %v5578_v28  ;;  %v1122_v34 = vmax.f32 %v1121_v59, %v5582_v6  ;;  %v5704_v1 = vadd.f32 %v5556_v23, %v5530_v50  ;;  %v1368_v58 = vld [vmem:[#allocation2 + $0x388] sm:$0xff] }
 0x1d2   :  { %v1147_v23 = vmax.f32 %v5652_v51, %v5670_v41 }
 0x1d3   :  { %1435 = vmatpush.msrb.mxu2 %v1263_v43  ;;  %1455 = vmatpush.msrb.mxu3 %v1327_v0  ;;  %v1131_v43 = vmax.f32 %v1130_v61, %v5634_v29  ;;  %v1140_v0 = vmax.f32 %v1139_v35, %v5638_v49  ;;  %9111 = vst [vmem:[#allocation32_spill] sm:$0xff] %v5704_v1  ;;  %v1123_v54 = vrot.slane %v1122_v34, 4 }
 0x1d4   :  { %v1156_v61 = vmax.f32 %v5656_v62, %v5674_v22  ;;  %v5722_v35 = vadd.f32 %v5574_v27, %v5532_v19 }
 0x1d5   :  { %1436 = vmatpush.msrb.mxu2 %v1259_v47  ;;  %1456 = vmatpush.msrb.mxu3 %v1323_v5  ;;  %v1141_v59 = vrot.slane %v1140_v0, 4 }
 0x1d6   :  { %1952 = vmatmul.f32.vlgmr.msrb.gmra.mxu0 %v5536_v11  ;;  %2065 = vmatmul.f32.vlgmr.msrb.gmra.mxu1 %v5540_v18  ;;  %9114 = vst [vmem:[#allocation35_spill] sm:$0xff] %v5722_v35 }
 0x1d7   :  { %1437 = vmatpush.msrb.mxu2 %v1255_v20  ;;  %1457 = vmatpush.msrb.mxu3 %v1319_v57  ;;  %v1372_v20 = vld [vmem:[#allocation2 + $0x3a8] sm:$0xff]  ;;  %v1114_v57 = vrot.slane %v1113_v14, 4 }
 0x1d8   :  { %v5572_v39 = vpop.f32.mrf.mxu0  ;;  %v5588_v30 = vpop.f32.mrf.mxu1 }
 0x1d9   :  { %1462 = vmatpush.msra.mxu2 %v1316_v55  ;;  %1482 = vmatpush.msra.mxu3 %v1380_v56  ;;  %v1132_v55 = vrot.slane %v1131_v43, 4  ;;  %v1304_v56 = vld [vmem:[#allocation2 + $0x188] sm:$0xff]  ;;  %v5716_v40 = vadd.f32 %v5572_v39, %v5530_v50  ;;  %v1115_v39 = vmax.f32 %v1113_v14, %v1114_v57 }
 0x1db   :  { %1463 = vmatpush.msra.mxu2 %v1312_v4  ;;  %1483 = vmatpush.msra.mxu3 %v1376_v7  ;;  %9113 = vst [vmem:[#allocation34_spill] sm:$0xff] %v5716_v40  ;;  %v1300_v4 = vld [vmem:[#allocation2 + $0x168] sm:$0xff]  ;;  %v1116_v14 = vrot.slane %v1115_v39, 2 }
 0x1dc   :  { %v1364_v7 = vld [vmem:[#allocation2 + $0x368] sm:$0xff] }
 0x1dd   :  { %1464 = vmatpush.msra.mxu2 %v1308_v53  ;;  %1484 = vmatpush.msra.mxu3 %v1372_v20  ;;  %v1124_v53 = vmax.f32 %v1122_v34, %v1123_v54  ;;  %v1133_v20 = vmax.f32 %v1131_v43, %v1132_v55 }
 0x1de   :  { %1955 = vmatmul.f32.gmra.mxu0 %v5550_v2  ;;  %2068 = vmatmul.f32.gmra.mxu1 %v5554_v37 }
 0x1df   :  { %1465 = vmatpush.msra.mxu2 %v1304_v56  ;;  %1485 = vmatpush.msra.mxu3 %v1368_v58  ;;  %v1292_v56 = vld [vmem:[#allocation2 + $0x128] sm:$0xff]  ;;  %v1125_v34 = vrot.slane %v1124_v53, 2  ;;  %v1134_v43 = vrot.slane %v1133_v20, 2 }
 0x1e0   :  { %v5586_v8 = vpop.f32.mrf.mxu0  ;;  %v5602_v32 = vpop.f32.mrf.mxu1  ;;  %v1356_v58 = vld [vmem:[#allocation2 + $0x328] sm:$0xff] }
 0x1e1   :  { %1466 = vmatpush.msra.mxu2 %v1300_v4  ;;  %1486 = vmatpush.msra.mxu3 %v1364_v7 }
 0x1e3   :  { %v5690_v12 = vpop.f32.mrf.mxu2  ;;  %v5692_v16 = vpop.f32.mrf.mxu3 }
 0x1e6   :  { %1958 = vmatmul.f32.gmra.mxu0 %v5564_v13  ;;  %2071 = vmatmul.f32.gmra.mxu1 %v5568_v46 }
 0x1e8   :  { %v5600_v24 = vpop.f32.mrf.mxu0  ;;  %v5616_v38 = vpop.f32.mrf.mxu1 }
 0x1e9   :  { %v5740_v55 = vadd.f32 %v5600_v24, %v5530_v50 }
 0x1eb   :  { %9115 = vst [vmem:[#allocation36_spill] sm:$0xff] %v5740_v55 }
 0x1ee   :  { %1961 = vmatmul.f32.gmra.mxu0 %v5578_v28  ;;  %2074 = vmatmul.f32.gmra.mxu1 %v5582_v6 }
 0x1f0   :  { %v5614_v26 = vpop.f32.mrf.mxu0  ;;  %v5630_v48 = vpop.f32.mrf.mxu1 }
 0x1f1   :  { %v5752_v4 = vadd.f32 %v5614_v26, %v5530_v50 }
 0x1f3   :  { %9118 = vst [vmem:[#allocation39_spill] sm:$0xff] %v5752_v4 }
 0x1f6   :  { %1964 = vmatmul.f32.gmra.mxu0 %v5592_v31  ;;  %2077 = vmatmul.f32.gmra.mxu1 %v5596_v21 }
 0x1f8   :  { %v5628_v44 = vpop.f32.mrf.mxu0  ;;  %v5648_v10 = vpop.f32.mrf.mxu1 }
 0x1fe   :  { %1967 = vmatmul.f32.gmra.mxu0 %v5606_v33  ;;  %2080 = vmatmul.f32.gmra.mxu1 %v5610_v36  ;;  %v1260_v33 = vld [vmem:[#allocation2 + $0x28] sm:$0xff] }
 0x200   :  { %v5646_v9 = vpop.f32.mrf.mxu0  ;;  %v5666_v42 = vpop.f32.mrf.mxu1 }
 0x206   :  { %1970 = vmatmul.f32.gmra.mxu0 %v5620_v52  ;;  %2083 = vmatmul.f32.gmra.mxu1 %v5624_v17  ;;  %v1142_v17 = vmax.f32 %v1140_v0, %v1141_v59  ;;  %v1352_v0 = vld [vmem:[#allocation2 + $0x308] sm:$0xff] }
 0x207   :  { %v1348_v59 = vld [vmem:[#allocation2 + $0x2e8] sm:$0xff] }
 0x208   :  { %v5664_v15 = vpop.f32.mrf.mxu0  ;;  %v5700_v5 = vpop.f32.mrf.mxu1  ;;  %v1143_v57 = vrot.slane %v1142_v17, 2 }
 0x20a   :  { %v5768_v26 = vmax.f32 %v1142_v17, %v1143_v57  ;;  %v5784_v17 = vadd.f32 %v5616_v38, %v5532_v19  ;;  %v5801_v38 = vadd.f32 %v5630_v48, %v5532_v19  ;;  %v5820_v48 = vadd.f32 %v5660_v45, %v5530_v50 }
 0x20c   :  { %9120 = vst [vmem:[#allocation41_spill] sm:$0xff] %v5784_v17  ;;  %v1145_v6 = vrot.slane %v5768_v26, 1 }
 0x20d   :  { %9122 = vst [vmem:[#allocation43_spill] sm:$0xff] %v5801_v38 }
 0x20e   :  { %1973 = vmatmul.f32.gmra.mxu0 %v5634_v29  ;;  %2086 = vmatmul.f32.gmra.mxu1 %v5638_v49  ;;  %v1148_v49 = vmax.f32 %v1147_v23, %v5704_v1  ;;  %v5725_v29 = vpop.f32.mrf.mxu2  ;;  %9123 = vst [vmem:[#allocation44_spill] sm:$0xff] %v5820_v48  ;;  %v5898_v18 = vmax.f32 %v5768_v26, %v1145_v6 }
 0x210   :  { %v5698_v47 = vpop.f32.mrf.mxu0  ;;  %v1149_v27 = vmax.f32 %v1148_v49, %v5716_v40  ;;  %v5733_v36 = vpop.f32.mrf.mxu1  ;;  %v1288_v49 = vld [vmem:[#allocation2 + $0x108] sm:$0xff] }
 0x211   :  { %v5809_v57 = vadd.f32 %v5698_v47, %v5530_v50  ;;  %v1336_v47 = vld [vmem:[#allocation2 + $0x288] sm:$0xff] }
 0x212   :  { %v1150_v54 = vrot.slane %v1149_v27, 4 }
 0x216   :  { %1976 = vmatmul.f32.gmra.mxu0 %v5652_v51  ;;  %2089 = vmatmul.f32.gmra.mxu1 %v5656_v62  ;;  %v1157_v51 = vmax.f32 %v1156_v61, %v5708_v25  ;;  %v1360_v62 = vld [vmem:[#allocation2 + $0x348] sm:$0xff]  ;;  %v5748_v61 = vadd.f32 %v5586_v8, %v5530_v50  ;;  %v5754_v7 = vpop.f32.mrf.mxu2  ;;  %v5766_v8 = vadd.f32 %v5588_v30, %v5532_v19 }
 0x217   :  { %1487 = vmatpush.msra.mxu3 %v1360_v62  ;;  %v5744_v62 = vadd.f32 %v5602_v32, %v5532_v19  ;;  %v5760_v32 = vmax.f32 %v1124_v53, %v1125_v34  ;;  %v5917_v26 = vadd.f32 %v5754_v7, %v5530_v50 }
 0x218   :  { %v5731_v52 = vpop.f32.mrf.mxu0  ;;  %v1158_v23 = vmax.f32 %v1157_v51, %v5722_v35  ;;  %9117 = vst [vmem:[#allocation38_spill] sm:$0xff] %v5748_v61 }
 0x219   :  { %1488 = vmatpush.msra.mxu3 %v1356_v58  ;;  %9116 = vst [vmem:[#allocation37_spill] sm:$0xff] %v5744_v62  ;;  %v5762_v58 = vmax.f32 %v1133_v20, %v1134_v43  ;;  %v1174_v30 = vmax.f32 %v5766_v8, %v5744_v62  ;;  %v5788_v20 = vadd.f32 %v5664_v15, %v5530_v50 }
 0x21a   :  { %v1159_v51 = vrot.slane %v1158_v23, 4  ;;  %9119 = vst [vmem:[#allocation40_spill] sm:$0xff] %v5766_v8  ;;  %v5793_v43 = vadd.f32 %v5628_v44, %v5530_v50  ;;  %v5805_v15 = vadd.f32 %v5646_v9, %v5530_v50  ;;  %v1272_v44 = vld [vmem:[#allocation2 + $0x88] sm:$0xff]  ;;  %v5824_v9 = vadd.f32 %v5700_v5, %v5532_v19 }
 0x21b   :  { %1489 = vmatpush.msra.mxu3 %v1352_v0  ;;  %v5835_v45 = vadd.f32 %v5731_v52, %v5530_v50  ;;  %v5839_v5 = vadd.f32 %v5642_v60, %v5530_v50  ;;  %9135 = vst [vmem:[#allocation56_spill] sm:$0xff] %v5917_v26 }
 0x21c   :  { %v5778_v53 = vmax.f32 %v1158_v23, %v1159_v51  ;;  %9121 = vst [vmem:[#allocation42_spill] sm:$0xff] %v5793_v43  ;;  %v5797_v23 = vadd.f32 %v5666_v42, %v5532_v19  ;;  %v1136_v42 = vrot.slane %v5762_v58, 1  ;;  %v1268_v51 = vld [vmem:[#allocation2 + $0x68] sm:$0xff] }
 0x21d   :  { %1490 = vmatpush.msra.mxu3 %v1348_v59  ;;  %9125 = vst [vmem:[#allocation46_spill] sm:$0xff] %v5835_v45  ;;  %v5845_v59 = vadd.f32 %v5690_v12, %v5530_v50  ;;  %v5862_v12 = vadd.f32 %v5692_v16, %v5532_v19 }
 0x21e   :  { %1979 = vmatmul.f32.gmra.mxu0 %v5670_v41  ;;  %2092 = vmatmul.f32.gmra.mxu1 %v5674_v22  ;;  %v5727_v41 = vpop.f32.mrf.mxu3  ;;  %v1296_v22 = vld [vmem:[#allocation2 + $0x148] sm:$0xff]  ;;  %9126 = vst [vmem:[#allocation47_spill] sm:$0xff] %v5839_v5  ;;  %v1137_v31 = vmax.f32 %v5762_v58, %v1136_v42 }
 0x21f   :  { %1467 = vmatpush.msra.mxu2 %v1296_v22  ;;  %v1284_v22 = vld [vmem:[#allocation2 + $0xe8] sm:$0xff]  ;;  %9127 = vst [vmem:[#allocation48_spill] sm:$0xff] %v5845_v59 }
 0x220   :  { %v5774_v0 = vpop.f32.mrf.mxu0  ;;  %9130 = vst [vmem:[#allocation51_spill] sm:$0xff] %v5862_v12 }
 0x221   :  { %1468 = vmatpush.msra.mxu2 %v1292_v56  ;;  %v5758_v56 = vmax.f32 %v1115_v39, %v1116_v14  ;;  %v5776_v39 = vpop.f32.mrf.mxu1  ;;  %v1340_v14 = vld [vmem:[#allocation2 + $0x2a8] sm:$0xff]  ;;  %v5939_v7 = vadd.f32 %v5774_v0, %v5530_v50 }
 0x223   :  { %1469 = vmatpush.msra.mxu2 %v1288_v49  ;;  %v1165_v49 = vmax.f32 %v5748_v61, %v5740_v55  ;;  %v1118_v16 = vrot.slane %v5758_v56, 1  ;;  %9141 = vst [vmem:[#allocation62_spill] sm:$0xff] %v5939_v7 }
 0x225   :  { %1470 = vmatpush.msra.mxu2 %v1284_v22  ;;  %v1166_v34 = vmax.f32 %v1165_v49, %v5752_v4  ;;  %v5851_v49 = vpop.f32.mrf.mxu2  ;;  %v1119_v58 = vmax.f32 %v5758_v56, %v1118_v16 }
 0x226   :  { %1982 = vmatmul.f32.gmra.mxu0 %v5704_v1  ;;  %2095 = vmatmul.f32.gmra.mxu1 %v5708_v25  ;;  %v5756_v24 = vpop.f32.mrf.mxu3  ;;  %v5770_v25 = vmax.f32 %v1149_v27, %v1150_v54  ;;  %v1276_v27 = vld [vmem:[#allocation2 + $0xa8] sm:$0xff]  ;;  %v5829_v54 = vadd.f32 %v5662_v3, %v5532_v19  ;;  %v5849_v3 = vadd.f32 %v5733_v36, %v5532_v19 }
 0x227   :  { %v1167_v60 = vmax.f32 %v1166_v34, %v5793_v43  ;;  %v1264_v36 = vld [vmem:[#allocation2 + $0x48] sm:$0xff]  ;;  %v5871_v34 = vadd.f32 %v5725_v29, %v5530_v50  ;;  %v1127_v29 = vrot.slane %v5760_v32, 1 }
 0x228   :  { %9124 = vst [vmem:[#allocation45_spill] sm:$0xff] %v5829_v54 }
 0x229   :  { %9128 = vst [vmem:[#allocation49_spill] sm:$0xff] %v5849_v3  ;;  %v1078_v1 = vpop.f32.mrf.mxu1  ;;  %v1168_v46 = vrot.slane %v1167_v60, 4 }
 0x22a   :  { %9131 = vst [vmem:[#allocation52_spill] sm:$0xff] %v5871_v34 }
 0x22b   :  { %v1169_v56 = vmax.f32 %v1167_v60, %v1168_v46 }
 0x22e   :  { %1985 = vmatmul.f32.gmra.mxu0 %v5716_v40  ;;  %2098 = vmatmul.f32.gmra.mxu1 %v5722_v35  ;;  %v1280_v35 = vld [vmem:[#allocation2 + $0xc8] sm:$0xff]  ;;  %v5853_v52 = vpop.f32.mrf.mxu3 }
 0x22f   :  { %v1344_v40 = vld [vmem:[#allocation2 + $0x2c8] sm:$0xff]  ;;  %1471 = vmatpush.msra.mxu2 %v1280_v35  ;;  %v1175_v35 = vmax.f32 %v1174_v30, %v5784_v17  ;;  %v5913_v6 = vadd.f32 %v5853_v52, %v5532_v19 }
 0x230   :  { %1491 = vmatpush.msra.mxu3 %v1344_v40  ;;  %v5816_v40 = vadd.f32 %v5648_v10, %v5532_v19  ;;  %v1183_v10 = vmax.f32 %v5805_v15, %v5788_v20  ;;  %v1332_v30 = vld [vmem:[#allocation2 + $0x268] sm:$0xff] }
 0x231   :  { %1472 = vmatpush.msra.mxu2 %v1276_v27  ;;  %v5858_v27 = vadd.f32 %v5644_v63, %v5532_v19  ;;  %v965_v63 = vpop.f32.mrf.mxu0  ;;  %9134 = vst [vmem:[#allocation55_spill] sm:$0xff] %v5913_v6 }
 0x232   :  { %1492 = vmatpush.msra.mxu3 %v1340_v14  ;;  %v1192_v22 = vmax.f32 %v5816_v40, %v5797_v23  ;;  %v1184_v14 = vmax.f32 %v1183_v10, %v5809_v57  ;;  %v5920_v46 = vadd.f32 %v965_v63, %v5530_v50 }
 0x233   :  { %1473 = vmatpush.msra.mxu2 %v1272_v44  ;;  %9129 = vst [vmem:[#allocation50_spill] sm:$0xff] %v5858_v27  ;;  %v1219_v44 = vmax.f32 %v5839_v5, %v5820_v48 }
 0x234   :  { %1493 = vmatpush.msra.mxu3 %v1336_v47  ;;  %v1228_v47 = vmax.f32 %v5858_v27, %v5829_v54  ;;  %v1185_v10 = vmax.f32 %v1184_v14, %v5835_v45  ;;  %v1256_v14 = vld [vmem:[#allocation2 + $0x8] sm:$0xff]  ;;  %9136 = vst [vmem:[#allocation57_spill] sm:$0xff] %v5920_v46  ;;  %v1201_v0 = vmax.f32 %v5939_v7, %v5920_v46 }
 0x235   :  { %1474 = vmatpush.msra.mxu2 %v1268_v51  ;;  %v1220_v21 = vmax.f32 %v1219_v44, %v5845_v59  ;;  %v1161_v44 = vrot.slane %v5778_v53, 2 }
 0x236   :  { %1988 = vmatmul.f32.gmra.mxu0 %v5748_v61  ;;  %2101 = vmatmul.f32.gmra.mxu1 %v5766_v8  ;;  %v1176_v8 = vmax.f32 %v1175_v35, %v5801_v38  ;;  %v1193_v61 = vmax.f32 %v1192_v22, %v5824_v9  ;;  %v5878_v35 = vadd.f32 %v5727_v41, %v5532_v19  ;;  %v1328_v22 = vld [vmem:[#allocation2 + $0x248] sm:$0xff]  ;;  %v1152_v41 = vrot.slane %v5770_v25, 2  ;;  %v1105_v2 = vpop.f32.mrf.mxu3 }
 0x237   :  { %1494 = vmatpush.msra.mxu3 %v1332_v30  ;;  %1475 = vmatpush.msra.mxu2 %v1264_v36  ;;  %v1229_v28 = vmax.f32 %v1228_v47, %v5862_v12  ;;  %v1324_v30 = vld [vmem:[#allocation2 + $0x228] sm:$0xff]  ;;  %v1221_v36 = vmax.f32 %v1220_v21, %v5871_v34  ;;  %v1186_v13 = vrot.slane %v1185_v10, 4 }
 0x238   :  { %9132 = vst [vmem:[#allocation53_spill] sm:$0xff] %v5878_v35  ;;  %v1194_v51 = vmax.f32 %v1193_v61, %v5849_v3  ;;  %v1177_v61 = vrot.slane %v1176_v8, 4  ;;  %v1320_v47 = vld [vmem:[#allocation2 + $0x208] sm:$0xff]  ;;  %v1153_v21 = vmax.f32 %v5770_v25, %v1152_v41  ;;  %v1081_v11 = vpop.f32.mrf.mxu1 }
 0x239   :  { %1495 = vmatpush.msra.mxu3 %v1328_v22  ;;  %1476 = vmatpush.msra.mxu2 %v1260_v33  ;;  %v1230_v42 = vmax.f32 %v1229_v28, %v5878_v35  ;;  %v5902_v33 = vsel %vm1399_vm0, %v1137_v31, %v1119_v58  ;;  %v5905_v28 = vmax.f32 %v5778_v53, %v1161_v44  ;;  %v968_v22 = vpop.f32.mrf.mxu0 }
 0x23a   :  { %v1195_v37 = vrot.slane %v1194_v51, 4  ;;  %v1178_v16 = vmax.f32 %v1176_v8, %v1177_v61  ;;  %v5923_v8 = vadd.f32 %v1078_v1, %v5532_v19  ;;  %v5927_v53 = vadd.f32 %v5756_v24, %v5532_v19 }
 0x23b   :  { %1496 = vmatpush.msra.mxu3 %v1324_v30  ;;  %1477 = vmatpush.msra.mxu2 %v1256_v14  ;;  %v1222_v30 = vrot.slane %v1221_v36, 4  ;;  %v1187_v14 = vmax.f32 %v1185_v10, %v1186_v13  ;;  %v1231_v31 = vrot.slane %v1230_v42, 4  ;;  %v1154_v13 = vrot.slane %v1153_v21, 1 }
 0x23c   :  { %v1196_v25 = vmax.f32 %v1194_v51, %v1195_v37  ;;  %9137 = vst [vmem:[#allocation58_spill] sm:$0xff] %v5923_v8  ;;  %v5933_v37 = vadd.f32 %v1105_v2, %v5532_v19  ;;  %v5943_v1 = vadd.f32 %v5776_v39, %v5532_v19  ;;  %v5946_v24 = vadd.f32 %v968_v22, %v5530_v50 }
 0x23d   :  { %1497 = vmatpush.msra.mxu3 %v1320_v47  ;;  %9138 = vst [vmem:[#allocation59_spill] sm:$0xff] %v5927_v53  ;;  %v1170_v2 = vrot.slane %v1169_v56, 2  ;;  %v1179_v52 = vrot.slane %v1178_v16, 2  ;;  %v1246_v63 = vmax.f32 %v5927_v53, %v5913_v6  ;;  %v1223_v51 = vmax.f32 %v1221_v36, %v1222_v30 }
 0x23e   :  { %1991 = vmatmul.f32.gmra.mxu0 %v5740_v55  ;;  %2104 = vmatmul.f32.gmra.mxu1 %v5744_v62  ;;  %v992_v55 = vpop.f32.mrf.mxu2  ;;  %v5895_v62 = vmax.f32 %v5760_v32, %v1127_v29  ;;  %v5909_v32 = vadd.f32 %v5851_v49, %v5530_v50  ;;  %9140 = vst [vmem:[#allocation61_spill] sm:$0xff] %v5933_v37  ;;  %v1188_v47 = vrot.slane %v1187_v14, 2  ;;  %v1197_v22 = vrot.slane %v1196_v25, 2 }
 0x23f   :  { %v5930_v49 = vadd.f32 %v992_v55, %v5530_v50  ;;  %9142 = vst [vmem:[#allocation63_spill] sm:$0xff] %v5943_v1  ;;  %v5949_v55 = vadd.f32 %v1081_v11, %v5532_v19  ;;  %v1210_v39 = vmax.f32 %v5943_v1, %v5923_v8  ;;  %v1232_v11 = vmax.f32 %v1230_v42, %v1231_v31 }
 0x240   :  { %9133 = vst [vmem:[#allocation54_spill] sm:$0xff] %v5909_v32  ;;  %v1237_v60 = vmax.f32 %v5917_v26, %v5909_v32  ;;  %v1247_v44 = vmax.f32 %v1246_v63, %v5933_v37  ;;  %v1163_v63 = vrot.slane %v5905_v28, 1  ;;  %v1224_v37 = vrot.slane %v1223_v51, 2 }
 0x241   :  { %9139 = vst [vmem:[#allocation60_spill] sm:$0xff] %v5930_v49 }
 0x242   :  { %9143 = vst [vmem:[#allocation64_spill] sm:$0xff] %v5946_v24  ;;  %v1238_v41 = vmax.f32 %v1237_v60, %v5930_v49 }
 0x243   :  { %9144 = vst [vmem:[#allocation65_spill] sm:$0xff] %v5949_v55 }
 0x246   :  { %1994 = vmatmul.f32.gmra.mxu0 %v5752_v4  ;;  %2107 = vmatmul.f32.gmra.mxu1 %v5784_v17  ;;  %v1202_v17 = vmax.f32 %v1201_v0, %v5946_v24  ;;  %v1211_v4 = vmax.f32 %v1210_v39, %v5949_v55 }
 0x249   :  { %v995_v10 = vpop.f32.mrf.mxu2  ;;  %v1108_v29 = vpop.f32.mrf.mxu3 }
 0x24a   :  { %v5962_v61 = vadd.f32 %v995_v10, %v5530_v50  ;;  %v5965_v58 = vadd.f32 %v1108_v29, %v5532_v19  ;;  %v1171_v10 = vmax.f32 %v1169_v56, %v1170_v2  ;;  %v1180_v29 = vmax.f32 %v1178_v16, %v1179_v52 }
 0x24b   :  { %v971_v6 = vpop.f32.mrf.mxu0  ;;  %v1084_v36 = vpop.f32.mrf.mxu1  ;;  %v1225_v2 = vmax.f32 %v1223_v51, %v1224_v37 }
 0x24c   :  { %9145 = vst [vmem:[#allocation66_spill] sm:$0xff] %v5962_v61  ;;  %v5970_v42 = vadd.f32 %v971_v6, %v5530_v50  ;;  %v5973_v30 = vadd.f32 %v1084_v36, %v5532_v19  ;;  %v1239_v31 = vmax.f32 %v1238_v41, %v5962_v61  ;;  %v1248_v60 = vmax.f32 %v1247_v44, %v5965_v58 }
 0x24d   :  { %9146 = vst [vmem:[#allocation67_spill] sm:$0xff] %v5965_v58  ;;  %v1155_v6 = vmax.f32 %v1153_v21, %v1154_v13  ;;  %v1189_v36 = vmax.f32 %v1187_v14, %v1188_v47  ;;  %v1198_v41 = vmax.f32 %v1196_v25, %v1197_v22  ;;  %v1233_v61 = vrot.slane %v1232_v11, 2 }
 0x24e   :  { %9147 = vst [vmem:[#allocation68_spill] sm:$0xff] %v5970_v42  ;;  %v1203_v0 = vmax.f32 %v1202_v17, %v5970_v42  ;;  %v1212_v39 = vmax.f32 %v1211_v4, %v5973_v30  ;;  %1997 = vmatmul.f32.gmra.mxu0 %v5793_v43  ;;  %2110 = vmatmul.f32.gmra.mxu1 %v5801_v38  ;;  %v1240_v50 = vrot.slane %v1239_v31, 4  ;;  %v1249_v19 = vrot.slane %v1248_v60, 4 }
 0x24f   :  { %9148 = vst [vmem:[#allocation69_spill] sm:$0xff] %v5973_v30  ;;  %v1172_v16 = vrot.slane %v1171_v10, 1  ;;  %v1164_v17 = vmax.f32 %v5905_v28, %v1163_v63  ;;  %v1181_v52 = vrot.slane %v1180_v29, 1  ;;  %v1190_v21 = vrot.slane %v1189_v36, 1 }
 0x250   :  { %v1204_v44 = vrot.slane %v1203_v0, 4  ;;  %v1213_v58 = vrot.slane %v1212_v39, 4  ;;  %v1241_v49 = vmax.f32 %v1239_v31, %v1240_v50  ;;  %v1250_v56 = vmax.f32 %v1248_v60, %v1249_v19 }
 0x251   :  { %v1199_v14 = vrot.slane %v1198_v41, 1  ;;  %v1234_v25 = vmax.f32 %v1232_v11, %v1233_v61  ;;  %v1413_v13 = vsel %vm1399_vm0, %v5898_v18, %v5895_v62  ;;  %v1402_v28 = vsel %vm1401_vm1, %v1155_v6, %v5902_v33 }
 0x252   :  { %v1205_v4 = vmax.f32 %v1203_v0, %v1204_v44  ;;  %v1214_v32 = vmax.f32 %v1212_v39, %v1213_v58  ;;  %v1242_v43 = vrot.slane %v1241_v49, 2  ;;  %v1251_v53 = vrot.slane %v1250_v56, 2 }
 0x253   :  { %v5983_v38 = vpop.f32.mrf.mxu0  ;;  %v5985_v26 = vpop.f32.mrf.mxu1  ;;  %v1173_v58 = vmax.f32 %v1171_v10, %v1172_v16  ;;  %v1182_v22 = vmax.f32 %v1180_v29, %v1181_v52  ;;  %v1414_v60 = vsel %vm1401_vm1, %v1164_v17, %v1413_v13  ;;  %v1226_v61 = vrot.slane %v1225_v2, 1 }
 0x254   :  { %9149 = vst [vmem:[#allocation70_spill] sm:$0xff] %v5983_v38  ;;  %v1206_v47 = vrot.slane %v1205_v4, 2  ;;  %v1243_v37 = vmax.f32 %v1241_v49, %v1242_v43  ;;  %v1215_v51 = vrot.slane %v1214_v32, 2  ;;  %v1252_v31 = vmax.f32 %v1250_v56, %v1251_v53  ;;  %v1692_v38 = vld [vmem:[#allocation5 + $0x370] sm:$0xff] }
 0x255   :  { %9150 = vst [vmem:[#allocation71_spill] sm:$0xff] %v5985_v26  ;;  %v1191_v18 = vmax.f32 %v1189_v36, %v1190_v21  ;;  %v1200_v62 = vmax.f32 %v1198_v41, %v1199_v14  ;;  %v1235_v43 = vrot.slane %v1234_v25, 1  ;;  %v1404_v53 = vsel %vm1403_vm2, %v1173_v58, %v1402_v28  ;;  %v1317_v21 = vld [vmem:[#allocation2 + $0x1f0] sm:$0xff] }
 0x256   :  { %2000 = vmatmul.f32.gmra.mxu0 %v5805_v15  ;;  %2113 = vmatmul.f32.gmra.mxu1 %v5816_v40  ;;  %v1207_v11 = vmax.f32 %v1205_v4, %v1206_v47  ;;  %v1216_v63 = vmax.f32 %v1214_v32, %v1215_v51  ;;  %v1244_v33 = vrot.slane %v1243_v37, 1  ;;  %v1253_v10 = vrot.slane %v1252_v31, 1  ;;  %v1381_v14 = vld [vmem:[#allocation2 + $0x3f0] sm:$0xff] }
 0x257   :  { %v1415_v29 = vsel %vm1403_vm2, %v1182_v22, %v1414_v60  ;;  %v1227_v50 = vmax.f32 %v1225_v2, %v1226_v61  ;;  %v1406_v36 = vsel %vm1405_vm3, %v1191_v18, %v1404_v53  ;;  %v1236_v41 = vmax.f32 %v1234_v25, %v1235_v43  ;;  %v1313_v47 = vld [vmem:[#allocation2 + $0x1d0] sm:$0xff] }
 0x258   :  { %v1208_v49 = vrot.slane %v1207_v11, 1  ;;  %v1217_v0 = vrot.slane %v1216_v63, 1  ;;  %v1416_v44 = vsel %vm1405_vm3, %v1200_v62, %v1415_v29  ;;  %v1245_v56 = vmax.f32 %v1243_v37, %v1244_v33  ;;  %v1377_v37 = vld [vmem:[#allocation2 + $0x3d0] sm:$0xff] }
 0x259   :  { %v1254_v17 = vmax.f32 %v1252_v31, %v1253_v10  ;;  %v1309_v28 = vld [vmem:[#allocation2 + $0x1b0] sm:$0xff] }
 0x25a   :  { %v1209_v39 = vmax.f32 %v1207_v11, %v1208_v49  ;;  %v1218_v19 = vmax.f32 %v1216_v63, %v1217_v0  ;;  %v1373_v51 = vld [vmem:[#allocation2 + $0x3b0] sm:$0xff] }
 0x25b   :  { %v5997_v6 = vpop.f32.mrf.mxu0  ;;  %v5999_v32 = vpop.f32.mrf.mxu1  ;;  %v1305_v31 = vld [vmem:[#allocation2 + $0x190] sm:$0xff] }
 0x25c   :  { %9151 = vst [vmem:[#allocation72_spill] sm:$0xff] %v5997_v6  ;;  %v1408_v16 = vsel %vm1407_vm4, %v1209_v39, %v1406_v36  ;;  %v1417_v52 = vsel %vm1407_vm4, %v1218_v19, %v1416_v44  ;;  %v1369_v60 = vld [vmem:[#allocation2 + $0x390] sm:$0xff]  ;;  %v9182_v6 = vld [vmem:[#allocation21_spill] sm:$0xff] }
 0x25d   :  { %9152 = vst [vmem:[#allocation73_spill] sm:$0xff] %v5999_v32  ;;  %v1410_v2 = vsel %vm1409_vm5, %v1227_v50, %v1408_v16  ;;  %v1418_v4 = vsel %vm1409_vm5, %v1236_v41, %v1417_v52  ;;  %v1301_v11 = vld [vmem:[#allocation2 + $0x170] sm:$0xff] }
 0x25e   :  { %2003 = vmatmul.f32.gmra.mxu0 %v5788_v20  ;;  %2116 = vmatmul.f32.gmra.mxu1 %v5797_v23  ;;  %v6010_v25 = vsel %vm1411_vm6, %v1245_v56, %v1410_v2  ;;  %v6013_v13 = vsel %vm1411_vm6, %v1254_v17, %v1418_v4  ;;  %v1365_v61 = vld [vmem:[#allocation2 + $0x370] sm:$0xff] }
 0x25f   :  { %1438 = vmatmul.f32.vlgmr.msrb.gmra.mxu2 %v6010_v25  ;;  %1458 = vmatmul.f32.vlgmr.msrb.gmra.mxu3 %v6013_v13  ;;  %v1297_v63 = vld [vmem:[#allocation2 + $0x150] sm:$0xff] }
 0x260   :  { %1502 = vmatpush.msrb.mxu2 %v1317_v21  ;;  %1522 = vmatpush.msrb.mxu3 %v1381_v14  ;;  %v1361_v18 = vld [vmem:[#allocation2 + $0x350] sm:$0xff] }
 0x261   :  { %v1293_v62 = vld [vmem:[#allocation2 + $0x130] sm:$0xff] }
 0x262   :  { %1503 = vmatpush.msrb.mxu2 %v1313_v47  ;;  %1523 = vmatpush.msrb.mxu3 %v1377_v37  ;;  %v1357_v43 = vld [vmem:[#allocation2 + $0x330] sm:$0xff] }
 0x263   :  { %v6017_v58 = vpop.f32.mrf.mxu0  ;;  %v6019_v22 = vpop.f32.mrf.mxu1  ;;  %v1289_v0 = vld [vmem:[#allocation2 + $0x110] sm:$0xff] }
 0x264   :  { %9153 = vst [vmem:[#allocation74_spill] sm:$0xff] %v6017_v58  ;;  %1504 = vmatpush.msrb.mxu2 %v1309_v28  ;;  %1524 = vmatpush.msrb.mxu3 %v1373_v51  ;;  %v1353_v10 = vld [vmem:[#allocation2 + $0x310] sm:$0xff]  ;;  %v9180_v58 = vld [vmem:[#allocation19_spill] sm:$0xff] }
 0x265   :  { %9154 = vst [vmem:[#allocation75_spill] sm:$0xff] %v6019_v22  ;;  %v1285_v53 = vld [vmem:[#allocation2 + $0xf0] sm:$0xff]  ;;  %v9179_v22 = vld [vmem:[#allocation18_spill] sm:$0xff] }
 0x266   :  { %1505 = vmatpush.msrb.mxu2 %v1305_v31  ;;  %1525 = vmatpush.msrb.mxu3 %v1369_v60  ;;  %v1349_v29 = vld [vmem:[#allocation2 + $0x2f0] sm:$0xff]  ;;  %v1318_v31 = vld [vmem:[#allocation2 + $0x1f8] sm:$0xff] }
 0x267   :  { %2006 = vmatmul.f32.gmra.mxu0 %v5809_v57  ;;  %2119 = vmatmul.f32.gmra.mxu1 %v5824_v9  ;;  %v1281_v39 = vld [vmem:[#allocation2 + $0xd0] sm:$0xff]  ;;  %v1382_v60 = vld [vmem:[#allocation2 + $0x3f8] sm:$0xff] }
 0x268   :  { %1478 = vmatmul.f32.vlgmr.msra.gmra.mxu2 %v6010_v25  ;;  %1498 = vmatmul.f32.vlgmr.msra.gmra.mxu3 %v6013_v13  ;;  %v1345_v50 = vld [vmem:[#allocation2 + $0x2d0] sm:$0xff] }
 0x269   :  { %1506 = vmatpush.msrb.mxu2 %v1301_v11  ;;  %1526 = vmatpush.msrb.mxu3 %v1365_v61  ;;  %v1277_v19 = vld [vmem:[#allocation2 + $0xb0] sm:$0xff]  ;;  %v1314_v11 = vld [vmem:[#allocation2 + $0x1d8] sm:$0xff] }
 0x26a   :  { %v1341_v36 = vld [vmem:[#allocation2 + $0x2b0] sm:$0xff]  ;;  %v1378_v61 = vld [vmem:[#allocation2 + $0x3d8] sm:$0xff] }
 0x26b   :  { %1507 = vmatpush.msrb.mxu2 %v1297_v63  ;;  %1527 = vmatpush.msrb.mxu3 %v1361_v18  ;;  %v6025_v49 = vpop.f32.mrf.mxu0  ;;  %v6027_v33 = vpop.f32.mrf.mxu1  ;;  %v1273_v56 = vld [vmem:[#allocation2 + $0x90] sm:$0xff]  ;;  %v1310_v63 = vld [vmem:[#allocation2 + $0x1b8] sm:$0xff] }
 0x26c   :  { %9155 = vst [vmem:[#allocation76_spill] sm:$0xff] %v6025_v49  ;;  %v1337_v16 = vld [vmem:[#allocation2 + $0x290] sm:$0xff]  ;;  %v1374_v18 = vld [vmem:[#allocation2 + $0x3b8] sm:$0xff] }
 0x26d   :  { %9156 = vst [vmem:[#allocation77_spill] sm:$0xff] %v6027_v33  ;;  %1508 = vmatpush.msrb.mxu2 %v1293_v62  ;;  %1528 = vmatpush.msrb.mxu3 %v1357_v43  ;;  %v1269_v17 = vld [vmem:[#allocation2 + $0x70] sm:$0xff] }
 0x26e   :  { %v1333_v52 = vld [vmem:[#allocation2 + $0x270] sm:$0xff] }
 0x26f   :  { %1509 = vmatpush.msrb.mxu2 %v1289_v0  ;;  %1529 = vmatpush.msrb.mxu3 %v1353_v10  ;;  %v1265_v2 = vld [vmem:[#allocation2 + $0x50] sm:$0xff]  ;;  %v1306_v0 = vld [vmem:[#allocation2 + $0x198] sm:$0xff] }
 0x270   :  { %2009 = vmatmul.f32.gmra.mxu0 %v5835_v45  ;;  %2122 = vmatmul.f32.gmra.mxu1 %v5849_v3  ;;  %v1329_v4 = vld [vmem:[#allocation2 + $0x250] sm:$0xff]  ;;  %v1370_v10 = vld [vmem:[#allocation2 + $0x398] sm:$0xff] }
 0x271   :  { %1510 = vmatpush.msrb.mxu2 %v1285_v53  ;;  %1530 = vmatpush.msrb.mxu3 %v1349_v29  ;;  %v1261_v21 = vld [vmem:[#allocation2 + $0x30] sm:$0xff]  ;;  %v1302_v53 = vld [vmem:[#allocation2 + $0x178] sm:$0xff] }
 0x272   :  { %v1325_v14 = vld [vmem:[#allocation2 + $0x230] sm:$0xff]  ;;  %v1366_v29 = vld [vmem:[#allocation2 + $0x378] sm:$0xff] }
 0x273   :  { %1511 = vmatpush.msrb.mxu2 %v1281_v39  ;;  %1531 = vmatpush.msrb.mxu3 %v1345_v50  ;;  %v6031_v41 = vpop.f32.mrf.mxu0  ;;  %v6033_v44 = vpop.f32.mrf.mxu1  ;;  %v1257_v28 = vld [vmem:[#allocation2 + $0x10] sm:$0xff]  ;;  %v1298_v39 = vld [vmem:[#allocation2 + $0x158] sm:$0xff] }
 0x274   :  { %9157 = vst [vmem:[#allocation78_spill] sm:$0xff] %v6031_v41  ;;  %v1321_v51 = vld [vmem:[#allocation2 + $0x210] sm:$0xff]  ;;  %v1362_v50 = vld [vmem:[#allocation2 + $0x358] sm:$0xff]  ;;  %v9172_v41 = vld [vmem:[#allocation15_spill] sm:$0xff] }
 0x275   :  { %9158 = vst [vmem:[#allocation79_spill] sm:$0xff] %v6033_v44  ;;  %1512 = vmatpush.msrb.mxu2 %v1277_v19  ;;  %1532 = vmatpush.msrb.mxu3 %v1341_v36  ;;  %v1294_v19 = vld [vmem:[#allocation2 + $0x138] sm:$0xff]  ;;  %v9171_v44 = vld [vmem:[#allocation14_spill] sm:$0xff]  ;;  %v9173_v33 = vld [vmem:[#allocation60_spill] sm:$0xff] }
 0x276   :  { %v1358_v36 = vld [vmem:[#allocation2 + $0x338] sm:$0xff]  ;;  %v1628_v26 = vld [vmem:[#allocation5 + $0x170] sm:$0xff] }
 0x277   :  { %1513 = vmatpush.msrb.mxu2 %v1273_v56  ;;  %1533 = vmatpush.msrb.mxu3 %v1337_v16 }
 0x278   :  { %2012 = vmatmul.f32.gmra.mxu0 %v5939_v7  ;;  %2125 = vmatmul.f32.gmra.mxu1 %v5943_v1 }
 0x279   :  { %1514 = vmatpush.msrb.mxu2 %v1269_v17  ;;  %1534 = vmatpush.msrb.mxu3 %v1333_v52  ;;  %v1290_v17 = vld [vmem:[#allocation2 + $0x118] sm:$0xff] }
 0x27a   :  { %v1354_v52 = vld [vmem:[#allocation2 + $0x318] sm:$0xff] }
 0x27b   :  { %1515 = vmatpush.msrb.mxu2 %v1265_v2  ;;  %1535 = vmatpush.msrb.mxu3 %v1329_v4  ;;  %v6037_v47 = vpop.f32.mrf.mxu0  ;;  %v6039_v37 = vpop.f32.mrf.mxu1  ;;  %v1286_v2 = vld [vmem:[#allocation2 + $0xf8] sm:$0xff] }
 0x27c   :  { %9159 = vst [vmem:[#allocation80_spill] sm:$0xff] %v6037_v47  ;;  %v1350_v4 = vld [vmem:[#allocation2 + $0x2f8] sm:$0xff] }
 0x27d   :  { %9160 = vst [vmem:[#allocation81_spill] sm:$0xff] %v6039_v37  ;;  %1516 = vmatpush.msrb.mxu2 %v1261_v21  ;;  %1536 = vmatpush.msrb.mxu3 %v1325_v14  ;;  %v1282_v21 = vld [vmem:[#allocation2 + $0xd8] sm:$0xff] }
 0x27e   :  { %v1346_v14 = vld [vmem:[#allocation2 + $0x2d8] sm:$0xff] }
 0x27f   :  { %1517 = vmatpush.msrb.mxu2 %v1257_v28  ;;  %1537 = vmatpush.msrb.mxu3 %v1321_v51  ;;  %v1278_v28 = vld [vmem:[#allocation2 + $0xb8] sm:$0xff] }
 0x280   :  { %1518 = vmatmul.f32.vlgmr.msrb.gmra.mxu2 %v6010_v25  ;;  %1538 = vmatmul.f32.vlgmr.msrb.gmra.mxu3 %v6013_v13  ;;  %v1342_v51 = vld [vmem:[#allocation2 + $0x2b8] sm:$0xff] }
 0x281   :  { %1542 = vmatpush.msra.mxu2 %v1318_v31  ;;  %1562 = vmatpush.msra.mxu3 %v1382_v60  ;;  %v1593_v37 = vld [vmem:[#allocation5 + $0x58] sm:$0xff] }
 0x282   :  { %2015 = vmatmul.f32.gmra.mxu0 %v5920_v46  ;;  %2128 = vmatmul.f32.gmra.mxu1 %v5923_v8  ;;  %v1657_v47 = vld [vmem:[#allocation5 + $0x258] sm:$0xff]  ;;  %v9202_v8 = vld [vmem:[#allocation35_spill] sm:$0xff] }
 0x283   :  { %1543 = vmatpush.msra.mxu2 %v1314_v11  ;;  %1563 = vmatpush.msra.mxu3 %v1378_v61  ;;  %v6045_v62 = vpop.f32.mrf.mxu0  ;;  %v6047_v43 = vpop.f32.mrf.mxu1  ;;  %v1274_v11 = vld [vmem:[#allocation2 + $0x98] sm:$0xff] }
 0x284   :  { %9161 = vst [vmem:[#allocation82_spill] sm:$0xff] %v6045_v62  ;;  %v1338_v61 = vld [vmem:[#allocation2 + $0x298] sm:$0xff]  ;;  %v1704_v62 = vld [vmem:[#allocation5 + $0x3d0] sm:$0xff] }
 0x285   :  { %9162 = vst [vmem:[#allocation83_spill] sm:$0xff] %v6047_v43  ;;  %1544 = vmatpush.msra.mxu2 %v1310_v63  ;;  %1564 = vmatpush.msra.mxu3 %v1374_v18  ;;  %v1270_v63 = vld [vmem:[#allocation2 + $0x78] sm:$0xff]  ;;  %v1640_v43 = vld [vmem:[#allocation5 + $0x1d0] sm:$0xff] }
 0x286   :  { %v1334_v18 = vld [vmem:[#allocation2 + $0x278] sm:$0xff] }
 0x287   :  { %1545 = vmatpush.msra.mxu2 %v1306_v0  ;;  %1565 = vmatpush.msra.mxu3 %v1370_v10  ;;  %v1266_v0 = vld [vmem:[#allocation2 + $0x58] sm:$0xff] }
 0x288   :  { %v1330_v10 = vld [vmem:[#allocation2 + $0x258] sm:$0xff] }
 0x289   :  { %1546 = vmatpush.msra.mxu2 %v1302_v53  ;;  %1566 = vmatpush.msra.mxu3 %v1366_v29  ;;  %v1262_v53 = vld [vmem:[#allocation2 + $0x38] sm:$0xff] }
 0x28a   :  { %2018 = vmatmul.f32.gmra.mxu0 %v5946_v24  ;;  %2131 = vmatmul.f32.gmra.mxu1 %v5949_v55  ;;  %v1326_v29 = vld [vmem:[#allocation2 + $0x238] sm:$0xff]  ;;  %v1680_v55 = vld [vmem:[#allocation5 + $0x310] sm:$0xff] }
 0x28b   :  { %1547 = vmatpush.msra.mxu2 %v1298_v39  ;;  %1567 = vmatpush.msra.mxu3 %v1362_v50  ;;  %v6051_v56 = vpop.f32.mrf.mxu0  ;;  %v6053_v16 = vpop.f32.mrf.mxu1  ;;  %v1645_v39 = vld [vmem:[#allocation5 + $0x1f8] sm:$0xff] }
 0x28c   :  { %9163 = vst [vmem:[#allocation84_spill] sm:$0xff] %v6051_v56  ;;  %2388 = vmatpush.msra.mxu0 %v1645_v39  ;;  %v1629_v39 = vld [vmem:[#allocation5 + $0x178] sm:$0xff] }
 0x28d   :  { %9164 = vst [vmem:[#allocation85_spill] sm:$0xff] %v6053_v16  ;;  %1548 = vmatpush.msra.mxu2 %v1294_v19  ;;  %1568 = vmatpush.msra.mxu3 %v1358_v36  ;;  %v1258_v36 = vld [vmem:[#allocation2 + $0x18] sm:$0xff] }
 0x28e   :  { %v1601_v16 = vld [vmem:[#allocation5 + $0x98] sm:$0xff] }
 0x28f   :  { %1549 = vmatpush.msra.mxu2 %v1290_v17  ;;  %1569 = vmatpush.msra.mxu3 %v1354_v52  ;;  %v1709_v17 = vld [vmem:[#allocation5 + $0x3f8] sm:$0xff] }
 0x290   :  { %v1322_v52 = vld [vmem:[#allocation2 + $0x218] sm:$0xff]  ;;  %2501 = vmatpush.msra.mxu1 %v1709_v17  ;;  %v1626_v17 = vld [vmem:[#allocation5 + $0x160] sm:$0xff] }
 0x291   :  { %1550 = vmatpush.msra.mxu2 %v1286_v2  ;;  %1570 = vmatpush.msra.mxu3 %v1350_v4  ;;  %v1641_v2 = vld [vmem:[#allocation5 + $0x1d8] sm:$0xff] }
 0x292   :  { %2021 = vmatmul.f32.gmra.mxu0 %v5970_v42  ;;  %2134 = vmatmul.f32.gmra.mxu1 %v5973_v30  ;;  %v1705_v4 = vld [vmem:[#allocation5 + $0x3d8] sm:$0xff]  ;;  %v9194_v30 = vld [vmem:[#allocation31_spill] sm:$0xff] }
 0x293   :  { %1551 = vmatpush.msra.mxu2 %v1282_v21  ;;  %1571 = vmatpush.msra.mxu3 %v1346_v14  ;;  %v6057_v31 = vpop.f32.mrf.mxu0  ;;  %v6059_v60 = vpop.f32.mrf.mxu1  ;;  %v1642_v21 = vld [vmem:[#allocation5 + $0x1e0] sm:$0xff]  ;;  %v1665_v56 = vld [vmem:[#allocation5 + $0x298] sm:$0xff] }
 0x294   :  { %v1706_v14 = vld [vmem:[#allocation5 + $0x3e0] sm:$0xff]  ;;  %2389 = vmatpush.msra.mxu0 %v1641_v2  ;;  %2502 = vmatpush.msra.mxu1 %v1705_v4 }
 0x295   :  { %1552 = vmatpush.msra.mxu2 %v1278_v28  ;;  %1572 = vmatpush.msra.mxu3 %v1342_v51  ;;  %v1638_v28 = vld [vmem:[#allocation5 + $0x1c0] sm:$0xff] }
 0x296   :  { %v1702_v51 = vld [vmem:[#allocation5 + $0x3c0] sm:$0xff] }
 0x297   :  { %1553 = vmatpush.msra.mxu2 %v1274_v11  ;;  %1573 = vmatpush.msra.mxu3 %v1338_v61  ;;  %v1637_v11 = vld [vmem:[#allocation5 + $0x1b8] sm:$0xff]  ;;  %v1622_v2 = vld [vmem:[#allocation5 + $0x140] sm:$0xff] }
 0x298   :  { %v1701_v61 = vld [vmem:[#allocation5 + $0x3b8] sm:$0xff]  ;;  %2390 = vmatpush.msra.mxu0 %v1637_v11  ;;  %v1686_v4 = vld [vmem:[#allocation5 + $0x340] sm:$0xff] }
 0x299   :  { %1554 = vmatpush.msra.mxu2 %v1270_v63  ;;  %1574 = vmatpush.msra.mxu3 %v1334_v18  ;;  %v1634_v63 = vld [vmem:[#allocation5 + $0x1a0] sm:$0xff] }
 0x29a   :  { %2024 = vmatmul.f32.gmra.mxu0 %v5839_v5  ;;  %2137 = vmatmul.f32.gmra.mxu1 %v5858_v27  ;;  %v1698_v18 = vld [vmem:[#allocation5 + $0x3a0] sm:$0xff]  ;;  %v1684_v27 = vld [vmem:[#allocation5 + $0x330] sm:$0xff] }
 0x29b   :  { %1555 = vmatpush.msra.mxu2 %v1266_v0  ;;  %1575 = vmatpush.msra.mxu3 %v1330_v10  ;;  %v6063_v50 = vpop.f32.mrf.mxu0  ;;  %v6065_v19 = vpop.f32.mrf.mxu1 }
 0x29c   :  { %2503 = vmatpush.msra.mxu1 %v1701_v61 }
 0x29d   :  { %1556 = vmatpush.msra.mxu2 %v1262_v53  ;;  %1576 = vmatpush.msra.mxu3 %v1326_v29  ;;  %v1630_v53 = vld [vmem:[#allocation5 + $0x180] sm:$0xff] }
 0x29e   :  { %v1694_v29 = vld [vmem:[#allocation5 + $0x380] sm:$0xff] }
 0x29f   :  { %1557 = vmatpush.msra.mxu2 %v1258_v36  ;;  %1577 = vmatpush.msra.mxu3 %v1322_v52  ;;  %v1693_v36 = vld [vmem:[#allocation5 + $0x378] sm:$0xff]  ;;  %v1690_v52 = vld [vmem:[#allocation5 + $0x360] sm:$0xff] }
 0x2a0   :  { %1558 = vmatmul.f32.vlgmr.msra.gmra.mxu2 %v6010_v25  ;;  %1578 = vmatmul.f32.vlgmr.msra.gmra.mxu3 %v6013_v13  ;;  %v1633_v25 = vld [vmem:[#allocation5 + $0x198] sm:$0xff] }
 0x2a1   :  { %1710 = vmatpush.msrb.mxu2 %v1642_v21  ;;  %1823 = vmatpush.msrb.mxu3 %v1706_v14  ;;  %v1697_v13 = vld [vmem:[#allocation5 + $0x398] sm:$0xff] }
 0x2a2   :  { %2027 = vmatmul.f32.gmra.mxu0 %v5820_v48  ;;  %2140 = vmatmul.f32.gmra.mxu1 %v5829_v54  ;;  %v1625_v21 = vld [vmem:[#allocation5 + $0x158] sm:$0xff]  ;;  %v1620_v48 = vld [vmem:[#allocation5 + $0x130] sm:$0xff] }
 0x2a3   :  { %1711 = vmatpush.msrb.mxu2 %v1638_v28  ;;  %1824 = vmatpush.msrb.mxu3 %v1702_v51  ;;  %v6071_v0 = vpop.f32.mrf.mxu0  ;;  %v6073_v10 = vpop.f32.mrf.mxu1  ;;  %v1689_v14 = vld [vmem:[#allocation5 + $0x358] sm:$0xff]  ;;  %v1618_v28 = vld [vmem:[#allocation5 + $0x120] sm:$0xff] }
 0x2a4   :  { %2391 = vmatpush.msra.mxu0 %v1633_v25  ;;  %2504 = vmatpush.msra.mxu1 %v1697_v13  ;;  %v1682_v51 = vld [vmem:[#allocation5 + $0x320] sm:$0xff]  ;;  %v9190_v54 = vld [vmem:[#allocation29_spill] sm:$0xff] }
 0x2a5   :  { %1712 = vmatpush.msrb.mxu2 %v1634_v63  ;;  %1825 = vmatpush.msrb.mxu3 %v1698_v18  ;;  %v1621_v63 = vld [vmem:[#allocation5 + $0x138] sm:$0xff]  ;;  %v1614_v25 = vld [vmem:[#allocation5 + $0x100] sm:$0xff] }
 0x2a6   :  { %2392 = vmatpush.msra.mxu0 %v1629_v39  ;;  %2505 = vmatpush.msra.mxu1 %v1693_v36  ;;  %v1685_v18 = vld [vmem:[#allocation5 + $0x338] sm:$0xff]  ;;  %v1678_v13 = vld [vmem:[#allocation5 + $0x300] sm:$0xff] }
 0x2a7   :  { %1713 = vmatpush.msrb.mxu2 %v1630_v53  ;;  %1826 = vmatpush.msrb.mxu3 %v1694_v29  ;;  %v1617_v53 = vld [vmem:[#allocation5 + $0x118] sm:$0xff]  ;;  %v1610_v39 = vld [vmem:[#allocation5 + $0xe0] sm:$0xff] }
 0x2a8   :  { %2393 = vmatpush.msra.mxu0 %v1625_v21  ;;  %2506 = vmatpush.msra.mxu1 %v1689_v14  ;;  %v1681_v29 = vld [vmem:[#allocation5 + $0x318] sm:$0xff]  ;;  %v1674_v36 = vld [vmem:[#allocation5 + $0x2e0] sm:$0xff] }
 0x2a9   :  { %1714 = vmatpush.msrb.mxu2 %v1626_v17  ;;  %1827 = vmatpush.msrb.mxu3 %v1690_v52  ;;  %v1606_v17 = vld [vmem:[#allocation5 + $0xc0] sm:$0xff] }
 0x2aa   :  { %2030 = vmatmul.f32.gmra.mxu0 %v5845_v59  ;;  %2143 = vmatmul.f32.gmra.mxu1 %v5862_v12  ;;  %v1670_v52 = vld [vmem:[#allocation5 + $0x2c0] sm:$0xff]  ;;  %v9188_v12 = vld [vmem:[#allocation27_spill] sm:$0xff]  ;;  %v9189_v59 = vld [vmem:[#allocation28_spill] sm:$0xff] }
 0x2ab   :  { %1715 = vmatpush.msrb.mxu2 %v1622_v2  ;;  %1828 = vmatpush.msrb.mxu3 %v1686_v4  ;;  %v6077_v11 = vpop.f32.mrf.mxu0  ;;  %v6079_v61 = vpop.f32.mrf.mxu1  ;;  %v1613_v2 = vld [vmem:[#allocation5 + $0xf8] sm:$0xff]  ;;  %v1602_v21 = vld [vmem:[#allocation5 + $0xa0] sm:$0xff] }
 0x2ac   :  { %2394 = vmatpush.msra.mxu0 %v1621_v63  ;;  %2507 = vmatpush.msra.mxu1 %v1685_v18  ;;  %v1677_v4 = vld [vmem:[#allocation5 + $0x2f8] sm:$0xff]  ;;  %v1666_v14 = vld [vmem:[#allocation5 + $0x2a0] sm:$0xff] }
 0x2ad   :  { %1716 = vmatpush.msrb.mxu2 %v1618_v28  ;;  %1829 = vmatpush.msrb.mxu3 %v1682_v51  ;;  %v1609_v63 = vld [vmem:[#allocation5 + $0xd8] sm:$0xff] }
 0x2ae   :  { %2395 = vmatpush.msra.mxu0 %v1617_v53  ;;  %2508 = vmatpush.msra.mxu1 %v1681_v29  ;;  %v1673_v18 = vld [vmem:[#allocation5 + $0x2d8] sm:$0xff] }
 0x2af   :  { %1717 = vmatpush.msrb.mxu2 %v1614_v25  ;;  %1830 = vmatpush.msrb.mxu3 %v1678_v13  ;;  %v1598_v25 = vld [vmem:[#allocation5 + $0x80] sm:$0xff]  ;;  %v1605_v53 = vld [vmem:[#allocation5 + $0xb8] sm:$0xff] }
 0x2b0   :  { %v1662_v13 = vld [vmem:[#allocation5 + $0x280] sm:$0xff]  ;;  %2396 = vmatpush.msra.mxu0 %v1613_v2  ;;  %2509 = vmatpush.msra.mxu1 %v1677_v4  ;;  %v1669_v29 = vld [vmem:[#allocation5 + $0x2b8] sm:$0xff]  ;;  %v9165_v2 = vld [vmem:[#allocation56_spill] sm:$0xff] }
 0x2b1   :  { %1718 = vmatpush.msrb.mxu2 %v1610_v39  ;;  %1831 = vmatpush.msrb.mxu3 %v1674_v36  ;;  %v1594_v39 = vld [vmem:[#allocation5 + $0x60] sm:$0xff]  ;;  %v9166_v4 = vld [vmem:[#allocation59_spill] sm:$0xff] }
 0x2b2   :  { %2033 = vmatmul.f32.gmra.mxu0 %v5871_v34  ;;  %2146 = vmatmul.f32.gmra.mxu1 %v5878_v35  ;;  %v1658_v36 = vld [vmem:[#allocation5 + $0x260] sm:$0xff]  ;;  %v9186_v35 = vld [vmem:[#allocation25_spill] sm:$0xff]  ;;  %v1624_v34 = vld [vmem:[#allocation5 + $0x150] sm:$0xff] }
 0x2b3   :  { %1719 = vmatpush.msrb.mxu2 %v1606_v17  ;;  %1832 = vmatpush.msrb.mxu3 %v1670_v52  ;;  %v6083_v28 = vpop.f32.mrf.mxu0  ;;  %v6085_v51 = vpop.f32.mrf.mxu1  ;;  %v1590_v17 = vld [vmem:[#allocation5 + $0x40] sm:$0xff] }
 0x2b4   :  { %2397 = vmatpush.msra.mxu0 %v1609_v63  ;;  %2510 = vmatpush.msra.mxu1 %v1673_v18  ;;  %v1654_v52 = vld [vmem:[#allocation5 + $0x240] sm:$0xff] }
 0x2b5   :  { %1720 = vmatpush.msrb.mxu2 %v1602_v21  ;;  %1833 = vmatpush.msrb.mxu3 %v1666_v14  ;;  %v1586_v21 = vld [vmem:[#allocation5 + $0x20] sm:$0xff] }
 0x2b6   :  { %2398 = vmatpush.msra.mxu0 %v1605_v53  ;;  %2511 = vmatpush.msra.mxu1 %v1669_v29  ;;  %v1650_v14 = vld [vmem:[#allocation5 + $0x220] sm:$0xff] }
 0x2b7   :  { %1721 = vmatpush.msrb.mxu2 %v1598_v25  ;;  %1834 = vmatpush.msrb.mxu3 %v1662_v13  ;;  %v1597_v25 = vld [vmem:[#allocation5 + $0x78] sm:$0xff]  ;;  %v1582_v53 = vld [vmem:[#allocation5] sm:$0xff] }
 0x2b8   :  { %v1661_v13 = vld [vmem:[#allocation5 + $0x278] sm:$0xff]  ;;  %v1646_v29 = vld [vmem:[#allocation5 + $0x200] sm:$0xff]  ;;  %2399 = vmatpush.msra.mxu0 %v1601_v16  ;;  %2512 = vmatpush.msra.mxu1 %v1665_v56  ;;  %v9170_v56 = vld [vmem:[#allocation55_spill] sm:$0xff] }
 0x2b9   :  { %1722 = vmatpush.msrb.mxu2 %v1594_v39  ;;  %1835 = vmatpush.msrb.mxu3 %v1658_v36  ;;  %v1644_v39 = vld [vmem:[#allocation5 + $0x1f0] sm:$0xff]  ;;  %v9169_v16 = vld [vmem:[#allocation54_spill] sm:$0xff] }
 0x2ba   :  { %2036 = vmatmul.f32.gmra.mxu0 %v9165_v2  ;;  %2149 = vmatmul.f32.gmra.mxu1 %v9166_v4  ;;  %v1708_v36 = vld [vmem:[#allocation5 + $0x3f0] sm:$0xff] }
 0x2bb   :  { %1723 = vmatpush.msrb.mxu2 %v1590_v17  ;;  %1836 = vmatpush.msrb.mxu3 %v1654_v52  ;;  %v6089_v63 = vpop.f32.mrf.mxu0  ;;  %v6091_v18 = vpop.f32.mrf.mxu1  ;;  %v9167_v17 = vld [vmem:[#allocation12_spill] sm:$0xff]  ;;  %v9168_v52 = vld [vmem:[#allocation13_spill] sm:$0xff] }
 0x2bc   :  { %2400 = vmatpush.msra.mxu0 %v1597_v25  ;;  %2513 = vmatpush.msra.mxu1 %v1661_v13  ;;  %v9185_v2 = vld [vmem:[#allocation24_spill] sm:$0xff] }
 0x2bd   :  { %1724 = vmatpush.msrb.mxu2 %v1586_v21  ;;  %1837 = vmatpush.msrb.mxu3 %v1650_v14  ;;  %v1636_v21 = vld [vmem:[#allocation5 + $0x1b0] sm:$0xff] }
 0x2be   :  { %v1700_v14 = vld [vmem:[#allocation5 + $0x3b0] sm:$0xff]  ;;  %2401 = vmatpush.msra.mxu0 %v1593_v37  ;;  %2514 = vmatpush.msra.mxu1 %v1657_v47 }
 0x2bf   :  { %1725 = vmatpush.msrb.mxu2 %v1582_v53  ;;  %1838 = vmatpush.msrb.mxu3 %v1646_v29  ;;  %v1589_v53 = vld [vmem:[#allocation5 + $0x38] sm:$0xff]  ;;  %v9175_v47 = vld [vmem:[#allocation16_spill] sm:$0xff] }
 0x2c0   :  { %1726 = vmatmul.f32.vlgmr.msrb.gmra.mxu2 %v9167_v17  ;;  %1839 = vmatmul.f32.vlgmr.msrb.gmra.mxu3 %v9168_v52  ;;  %v1653_v29 = vld [vmem:[#allocation5 + $0x238] sm:$0xff] }
 0x2c1   :  { %2162 = vmatpush.msra.mxu2 %v1644_v39  ;;  %2275 = vmatpush.msra.mxu3 %v1708_v36  ;;  %v1585_v39 = vld [vmem:[#allocation5 + $0x18] sm:$0xff] }
 0x2c2   :  { %2039 = vmatmul.f32.gmra.mxu0 %v9169_v16  ;;  %2152 = vmatmul.f32.gmra.mxu1 %v9170_v56  ;;  %v1649_v36 = vld [vmem:[#allocation5 + $0x218] sm:$0xff] }
 0x2c3   :  { %v6097_v25 = vpop.f32.mrf.mxu0  ;;  %v6099_v13 = vpop.f32.mrf.mxu1  ;;  %2163 = vmatpush.msra.mxu2 %v1640_v43  ;;  %2276 = vmatpush.msra.mxu3 %v1704_v62  ;;  %v9174_v43 = vld [vmem:[#allocation61_spill] sm:$0xff] }
 0x2c4   :  { %2402 = vmatpush.msra.mxu0 %v1589_v53  ;;  %2515 = vmatpush.msra.mxu1 %v1653_v29  ;;  %v1696_v53 = vld [vmem:[#allocation5 + $0x390] sm:$0xff]  ;;  %v9177_v29 = vld [vmem:[#allocation66_spill] sm:$0xff] }
 0x2c5   :  { %2164 = vmatpush.msra.mxu2 %v1636_v21  ;;  %2277 = vmatpush.msra.mxu3 %v1700_v14  ;;  %v9176_v21 = vld [vmem:[#allocation17_spill] sm:$0xff]  ;;  %v1632_v14 = vld [vmem:[#allocation5 + $0x190] sm:$0xff] }
 0x2c6   :  { %2403 = vmatpush.msra.mxu0 %v1585_v39  ;;  %2516 = vmatpush.msra.mxu1 %v1649_v36  ;;  %v9178_v39 = vld [vmem:[#allocation67_spill] sm:$0xff] }
 0x2c7   :  { %2165 = vmatpush.msra.mxu2 %v1632_v14  ;;  %2278 = vmatpush.msra.mxu3 %v1696_v53  ;;  %v9181_v53 = vld [vmem:[#allocation20_spill] sm:$0xff] }
 0x2c8   :  { %1729 = vmatmul.f32.gmra.mxu2 %v9171_v44  ;;  %1842 = vmatmul.f32.gmra.mxu3 %v9172_v41 }
 0x2c9   :  { %2166 = vmatpush.msra.mxu2 %v1628_v26  ;;  %2279 = vmatpush.msra.mxu3 %v1692_v38 }
 0x2ca   :  { %2042 = vmatmul.f32.gmra.mxu0 %v9173_v33  ;;  %2155 = vmatmul.f32.gmra.mxu1 %v9174_v43  ;;  %v9183_v43 = vld [vmem:[#allocation22_spill] sm:$0xff]  ;;  %v9184_v33 = vld [vmem:[#allocation23_spill] sm:$0xff] }
 0x2cb   :  { %v6105_v62 = vpop.f32.mrf.mxu0  ;;  %v6107_v37 = vpop.f32.mrf.mxu1  ;;  %2167 = vmatpush.msra.mxu2 %v1624_v34 }
 0x2cd   :  { %2168 = vmatpush.msra.mxu2 %v1620_v48 }
 0x2d0   :  { %1732 = vmatmul.f32.gmra.mxu2 %v9175_v47  ;;  %1845 = vmatmul.f32.gmra.mxu3 %v9176_v21 }
 0x2d2   :  { %2045 = vmatmul.f32.gmra.mxu0 %v9177_v29  ;;  %2158 = vmatmul.f32.gmra.mxu1 %v9178_v39 }
 0x2d3   :  { %v6113_v36 = vpop.f32.mrf.mxu0  ;;  %v6115_v49 = vpop.f32.mrf.mxu1 }
 0x2d8   :  { %1735 = vmatmul.f32.gmra.mxu2 %v9179_v22  ;;  %1848 = vmatmul.f32.gmra.mxu3 %v9180_v58 }
 0x2da   :  { %2404 = vmatmul.f32.vlgmr.msra.gmra.mxu0 %v9167_v17  ;;  %2517 = vmatmul.f32.vlgmr.msra.gmra.mxu1 %v9168_v52 }
 0x2db   :  { %v6121_v32 = vpop.f32.mrf.mxu0  ;;  %v6123_v14 = vpop.f32.mrf.mxu1 }
 0x2e0   :  { %1738 = vmatmul.f32.gmra.mxu2 %v9181_v53  ;;  %1851 = vmatmul.f32.gmra.mxu3 %v9182_v6 }
 0x2e2   :  { %2407 = vmatmul.f32.gmra.mxu0 %v9171_v44  ;;  %2520 = vmatmul.f32.gmra.mxu1 %v9172_v41  ;;  %v1439_v39 = vpop.f32.mrf.mxu2  ;;  %v1459_v17 = vpop.f32.mrf.mxu3 }
 0x2e3   :  { %v6141_v16 = vadd.f32 %v1459_v17, %v1439_v39 }
 0x2e4   :  { %v6129_v29 = vpop.f32.mrf.mxu0  ;;  %v6131_v52 = vpop.f32.mrf.mxu1 }
 0x2e8   :  { %1741 = vmatmul.f32.gmra.mxu2 %v9183_v43  ;;  %1854 = vmatmul.f32.gmra.mxu3 %v9184_v33 }
 0x2ea   :  { %2410 = vmatmul.f32.gmra.mxu0 %v9175_v47  ;;  %2523 = vmatmul.f32.gmra.mxu1 %v9176_v21  ;;  %v1688_v47 = vld [vmem:[#allocation5 + $0x350] sm:$0xff] }
 0x2eb   :  { %v1479_v26 = vpop.f32.mrf.mxu2  ;;  %v1499_v38 = vpop.f32.mrf.mxu3  ;;  %2280 = vmatpush.msra.mxu3 %v1688_v47 }
 0x2ec   :  { %v1500_v56 = vadd.f32 %v1499_v38, %v1479_v26  ;;  %v9187_v38 = vld [vmem:[#allocation26_spill] sm:$0xff] }
 0x2ed   :  { %v6137_v44 = vpop.f32.mrf.mxu0  ;;  %v6139_v41 = vpop.f32.mrf.mxu1  ;;  %2281 = vmatpush.msra.mxu3 %v1684_v27  ;;  %v9197_v27 = vld [vmem:[#allocation32_spill] sm:$0xff] }
 0x2ee   :  { %v6143_v4 = vrot.slane %v1500_v56, 7 }
 0x2ef   :  { %2282 = vmatpush.msra.mxu3 %v1680_v55  ;;  %v9206_v55 = vld [vmem:[#allocation40_spill] sm:$0xff] }
 0x2f0   :  { %1744 = vmatmul.f32.gmra.mxu2 %v9185_v2  ;;  %1857 = vmatmul.f32.gmra.mxu3 %v9186_v35  ;;  %v6150_v21 = vsel %vm1409_vm5, %v6141_v16, %v6143_v4  ;;  %v6155_v26 = vsel %vm2647_vm7, %v6143_v4, %v6141_v16  ;;  %v6160_v17 = vsel %vm1403_vm2, %v6141_v16, %v6143_v4 }
 0x2f1   :  { %v6167_v56 = vsel %vm1405_vm3, %v6141_v16, %v6143_v4  ;;  %v6172_v39 = vsel %vm1407_vm4, %v6141_v16, %v6143_v4 }
 0x2f2   :  { %2413 = vmatmul.f32.gmra.mxu0 %v9179_v22  ;;  %2526 = vmatmul.f32.gmra.mxu1 %v9180_v58 }
 0x2f5   :  { %v6174_v34 = vpop.f32.mrf.mxu0  ;;  %v6176_v47 = vpop.f32.mrf.mxu1 }
 0x2f8   :  { %1747 = vmatmul.f32.gmra.mxu2 %v9187_v38  ;;  %1860 = vmatmul.f32.gmra.mxu3 %v9188_v12 }
 0x2fa   :  { %2416 = vmatmul.f32.gmra.mxu0 %v9181_v53  ;;  %2529 = vmatmul.f32.gmra.mxu1 %v9182_v6  ;;  %v9193_v6 = vld [vmem:[#allocation30_spill] sm:$0xff] }
 0x2ff   :  { %v6182_v58 = vpop.f32.mrf.mxu0  ;;  %v6184_v22 = vpop.f32.mrf.mxu1 }
 0x300   :  { %1750 = vmatmul.f32.gmra.mxu2 %v9189_v59  ;;  %1863 = vmatmul.f32.gmra.mxu3 %v9190_v54 }
 0x302   :  { %2419 = vmatmul.f32.gmra.mxu0 %v9183_v43  ;;  %2532 = vmatmul.f32.gmra.mxu1 %v9184_v33  ;;  %v9198_v43 = vld [vmem:[#allocation33_spill] sm:$0xff]  ;;  %v1616_v33 = vld [vmem:[#allocation5 + $0x110] sm:$0xff] }
 0x303   :  { %2169 = vmatpush.msra.mxu2 %v1616_v33  ;;  %v1519_v46 = vpop.f32.mrf.mxu2  ;;  %v9205_v33 = vld [vmem:[#allocation38_spill] sm:$0xff] }
 0x307   :  { %v6190_v5 = vpop.f32.mrf.mxu0  ;;  %v6192_v53 = vpop.f32.mrf.mxu1 }
 0x308   :  { %9191 = vst [vmem:[#allocation86_spill] sm:$0xff] %v6190_v5  ;;  %1753 = vmatmul.f32.gmra.mxu2 %v9193_v6  ;;  %1866 = vmatmul.f32.gmra.mxu3 %v9194_v30  ;;  %v9212_v5 = vld [vmem:[#allocation39_spill] sm:$0xff] }
 0x309   :  { %9192 = vst [vmem:[#allocation87_spill] sm:$0xff] %v6192_v53 }
 0x30a   :  { %2422 = vmatmul.f32.gmra.mxu0 %v9185_v2  ;;  %2535 = vmatmul.f32.gmra.mxu1 %v9186_v35  ;;  %v9201_v35 = vld [vmem:[#allocation34_spill] sm:$0xff] }
 0x30f   :  { %v6198_v42 = vpop.f32.mrf.mxu0  ;;  %v6200_v48 = vpop.f32.mrf.mxu1 }
 0x310   :  { %9195 = vst [vmem:[#allocation88_spill] sm:$0xff] %v6198_v42  ;;  %1756 = vmatmul.f32.gmra.mxu2 %v9197_v27  ;;  %1869 = vmatmul.f32.gmra.mxu3 %v9198_v43 }
 0x311   :  { %9196 = vst [vmem:[#allocation89_spill] sm:$0xff] %v6200_v48  ;;  %v1612_v48 = vld [vmem:[#allocation5 + $0xf0] sm:$0xff] }
 0x312   :  { %2425 = vmatmul.f32.gmra.mxu0 %v9187_v38  ;;  %2538 = vmatmul.f32.gmra.mxu1 %v9188_v12  ;;  %v1539_v38 = vpop.f32.mrf.mxu3 }
 0x313   :  { %v1540_v7 = vadd.f32 %v1539_v38, %v1519_v46  ;;  %2170 = vmatpush.msra.mxu2 %v1612_v48  ;;  %v9207_v38 = vld [vmem:[#allocation36_spill] sm:$0xff]  ;;  %v6243_v48 = vld [vmem:[%s8659_s9] sm:$0xf] }
 0x314   :  { %9210 = vst [vmem:[#allocation95_spill] sm:$0xff] %v6243_v48 }
 0x315   :  { %v6222_v42 = vrot.slane %v1540_v7, 6 }
 0x317   :  { %v6206_v24 = vpop.f32.mrf.mxu0  ;;  %v6208_v2 = vpop.f32.mrf.mxu1 }
 0x318   :  { %9199 = vst [vmem:[#allocation90_spill] sm:$0xff] %v6206_v24  ;;  %1759 = vmatmul.f32.gmra.mxu2 %v9201_v35  ;;  %1872 = vmatmul.f32.gmra.mxu3 %v9202_v8 }
 0x319   :  { %9200 = vst [vmem:[#allocation91_spill] sm:$0xff] %v6208_v2 }
 0x31a   :  { %2428 = vmatmul.f32.gmra.mxu0 %v9189_v59  ;;  %2541 = vmatmul.f32.gmra.mxu1 %v9190_v54  ;;  %v1676_v54 = vld [vmem:[#allocation5 + $0x2f0] sm:$0xff] }
 0x31b   :  { %2283 = vmatpush.msra.mxu3 %v1676_v54 }
 0x31f   :  { %v6214_v1 = vpop.f32.mrf.mxu0  ;;  %v6216_v12 = vpop.f32.mrf.mxu1 }
 0x320   :  { %9203 = vst [vmem:[#allocation92_spill] sm:$0xff] %v6214_v1  ;;  %1762 = vmatmul.f32.gmra.mxu2 %v9205_v33  ;;  %1875 = vmatmul.f32.gmra.mxu3 %v9206_v55 }
 0x321   :  { %9204 = vst [vmem:[#allocation93_spill] sm:$0xff] %v6216_v12 }
 0x322   :  { %2431 = vmatmul.f32.gmra.mxu0 %v9193_v6  ;;  %2544 = vmatmul.f32.gmra.mxu1 %v9194_v30 }
 0x323   :  { %v1559_v2 = vpop.f32.mrf.mxu2  ;;  %v1579_v24 = vpop.f32.mrf.mxu3 }
 0x324   :  { %v1580_v59 = vadd.f32 %v1579_v24, %v1559_v2  ;;  %v9208_v24 = vld [vmem:[#allocation37_spill] sm:$0xff] }
 0x326   :  { %v6224_v1 = vrot.slane %v1580_v59, 5 }
 0x327   :  { %v2031_v12 = vpop.f32.mrf.mxu0  ;;  %v2144_v3 = vpop.f32.mrf.mxu1 }
 0x328   :  { %v2653_v46 = vsel %vm2621_vm10, %v6222_v42, %v6224_v1  ;;  %1765 = vmatmul.f32.gmra.mxu2 %v9207_v38  ;;  %1878 = vmatmul.f32.gmra.mxu3 %v9208_v24  ;;  %v2658_v54 = vsel %vm1399_vm0, %v6222_v42, %v6224_v1  ;;  %v2145_v30 = vadd.f32 %v2144_v3, %v2031_v12  ;;  %v6259_v3 = vperm.slane %v6243_v48, 1 }
 0x329   :  { %v2655_v59 = vsel %vm2654_vm8, %v2653_v46, %v6150_v21  ;;  %v2660_v7 = vsel %vm2659_vm9, %v2658_v54, %v6155_v26  ;;  %v2637_v21 = vsel %vm1407_vm4, %v6222_v42, %v6224_v1  ;;  %v2642_v26 = vsel %vm1409_vm5, %v6222_v42, %v6224_v1 }
 0x32a   :  { %v6236_v2 = vrot.slane %v2655_v59, 6  ;;  %2434 = vmatmul.f32.gmra.mxu0 %v9197_v27  ;;  %2547 = vmatmul.f32.gmra.mxu1 %v9198_v43  ;;  %v2648_v46 = vsel %vm2647_vm7, %v6224_v1, %v6222_v42  ;;  %9211 = vst [vmem:[#allocation96_spill] sm:$0xff] %v6259_v3  ;;  %v2639_v43 = vsel %vm2638_vm11, %v6160_v17, %v2637_v21  ;;  %v1608_v21 = vld [vmem:[#allocation5 + $0xd0] sm:$0xff]  ;;  %vm2628_vm7 = vcmask 1042433  }
 0x32b   :  { %v6263_v27 = vsel %vm2643_vm12, %v6167_v56, %v2642_v26  ;;  %v2632_v17 = vsel %vm1405_vm3, %v6222_v42, %v6224_v1  ;;  %v1672_v26 = vld [vmem:[#allocation5 + $0x2d0] sm:$0xff]  ;;  %2171 = vmatpush.msra.mxu2 %v1608_v21 }
 0x32c   :  { %9209 = vst [vmem:[#allocation94_spill] sm:$0xff] %v6236_v2  ;;  %v6246_v6 = vperm.slane %v6236_v2, 1  ;;  %v6266_v2 = vsel %vm2649_vm13, %v6172_v39, %v2648_v46  ;;  %v6282_v39 = vrot.slane %v2660_v7, 7  ;;  %2284 = vmatpush.msra.mxu3 %v1672_v26  ;;  %v2091_v26 = vadd.f32 %v6059_v60, %v6057_v31 }
 0x32d   :  { %v6318_v31 = vrot.slane %v2639_v43, 3 }
 0x32e   :  { %v2831_v54 = vadd.f32 %v6246_v6, %v2145_v30  ;;  %v9213_v30 = vld [vmem:[#allocation41_spill] sm:$0xff] }
 0x32f   :  { %v2034_v12 = vpop.f32.mrf.mxu0  ;;  %v2147_v59 = vpop.f32.mrf.mxu1  ;;  %9215 = vst [vmem:[#allocation41_spill] sm:$0xff] %v6282_v39 }
 0x330   :  { %v6269_v45 = vadd.f32 %v6259_v3, %v2831_v54  ;;  %v2148_v53 = vadd.f32 %v2147_v59, %v2034_v12  ;;  %1768 = vmatmul.f32.gmra.mxu2 %v9212_v5  ;;  %1881 = vmatmul.f32.gmra.mxu3 %v9213_v30 }
 0x332   :  { %v2835_v48 = vadd.f32 %v6246_v6, %v2148_v53  ;;  %2437 = vmatmul.f32.gmra.mxu0 %v9201_v35  ;;  %2550 = vmatmul.f32.gmra.mxu1 %v9202_v8  ;;  %v2631_v53 = vsel %vm1401_vm1, %v6141_v16, %v6143_v4  ;;  %v6288_v8 = vperm.slane %v6282_v39, 1  ;;  %v9216_v35 = vld [vmem:[#allocation42_spill] sm:$0xff]  ;;  %v2097_v39 = vadd.f32 %v6073_v10, %v6071_v0 }
 0x333   :  { %v2634_v46 = vsel %vm2633_vm14, %v2631_v53, %v2632_v17  ;;  %v2623_v53 = vsel %vm1401_vm1, %v6222_v42, %v6224_v1 }
 0x334   :  { %v6280_v56 = vadd.f32 %v6259_v3, %v2835_v48  ;;  %v9217_v48 = vld [vmem:[#allocation43_spill] sm:$0xff]  ;;  %v6292_v7 = vrot.slane %v2634_v46, 2  ;;  %v2094_v46 = vadd.f32 %v6065_v19, %v6063_v50  ;;  %v2622_v50 = vsel %vm2621_vm10, %v6141_v16, %v6143_v4 }
 0x336   :  { %9214 = vst [vmem:[#allocation39_spill] sm:$0xff] %v6280_v56  ;;  %v2671_v21 = vperm.slane %v6292_v7, 1 }
 0x337   :  { %v2037_v54 = vpop.f32.mrf.mxu0  ;;  %v2150_v12 = vpop.f32.mrf.mxu1  ;;  %9218 = vst [vmem:[#allocation42_spill] sm:$0xff] %v6292_v7 }
 0x338   :  { %v2151_v59 = vadd.f32 %v2150_v12, %v2037_v54  ;;  %1771 = vmatmul.f32.gmra.mxu2 %v9216_v35  ;;  %1884 = vmatmul.f32.gmra.mxu3 %v9217_v48  ;;  %v2759_v19 = vadd.f32 %v2671_v21, %v2091_v26  ;;  %v2763_v43 = vadd.f32 %v2671_v21, %v2094_v46  ;;  %v2675_v46 = vperm.slane %v6318_v31, 1 }
 0x33a   :  { %v2839_v56 = vadd.f32 %v6288_v8, %v2151_v59  ;;  %2440 = vmatmul.f32.gmra.mxu0 %v9205_v33  ;;  %2553 = vmatmul.f32.gmra.mxu1 %v9206_v55  ;;  %v6316_v59 = vld [vmem:[%s8661_s11] sm:$0xf]  ;;  %v2100_v55 = vadd.f32 %v6079_v61, %v6077_v11  ;;  %v6329_v33 = vsel %vm2624_vm15, %v2622_v50, %v2623_v53 }
 0x33b   :  { %9220 = vst [vmem:[#allocation97_spill] sm:$0xff] %v6316_v59  ;;  %v6338_v26 = vperm.slane %v6316_v59, 1  ;;  %v2897_v0 = vadd.f32 %v6259_v3, %v2759_v19  ;;  %v2901_v11 = vadd.f32 %v6259_v3, %v2763_v43  ;;  %v2767_v61 = vadd.f32 %v2671_v21, %v2097_v39  ;;  %v1668_v59 = vld [vmem:[#allocation5 + $0x2b0] sm:$0xff] }
 0x33c   :  { %v6298_v17 = vadd.f32 %v6259_v3, %v2839_v56  ;;  %v6311_v56 = vld [vmem:[%s8660_s10] sm:$0xf]  ;;  %v2771_v53 = vadd.f32 %v2671_v21, %v2100_v55  ;;  %v2103_v19 = vadd.f32 %v6085_v51, %v6083_v28  ;;  %2285 = vmatpush.msra.mxu3 %v1668_v59  ;;  %v2106_v28 = vadd.f32 %v6091_v18, %v6089_v63 }
 0x33d   :  { %9219 = vst [vmem:[#allocation43_spill] sm:$0xff] %v6311_v56  ;;  %v2905_v39 = vadd.f32 %v6259_v3, %v2767_v61 }
 0x33e   :  { %9222 = vst [vmem:[#allocation99_spill] sm:$0xff] %v6338_v26  ;;  %v2779_v61 = vadd.f32 %v2675_v46, %v2106_v28 }
 0x33f   :  { %v2040_v54 = vpop.f32.mrf.mxu0  ;;  %v2153_v12 = vpop.f32.mrf.mxu1 }
 0x340   :  { %v2154_v60 = vadd.f32 %v2153_v12, %v2040_v54  ;;  %1774 = vmatmul.f32.gmra.mxu2 %v5805_v15  ;;  %1887 = vmatmul.f32.gmra.mxu3 %v5816_v40  ;;  %v6335_v12 = vperm.slane %v6311_v56, 1 }
 0x342   :  { %v2843_v54 = vadd.f32 %v6288_v8, %v2154_v60  ;;  %2443 = vmatmul.f32.gmra.mxu0 %v9207_v38  ;;  %2556 = vmatmul.f32.gmra.mxu1 %v9208_v24  ;;  %9221 = vst [vmem:[#allocation98_spill] sm:$0xff] %v6335_v12  ;;  %v6347_v24 = vperm.slane %v6329_v33, 0  ;;  %v1604_v38 = vld [vmem:[#allocation5 + $0xb0] sm:$0xff]  ;;  %v3035_v56 = vmul.f32 %v6335_v12, %v2897_v0 }
 0x343   :  { %v1727_v10 = vpop.f32.mrf.mxu2  ;;  %v1840_v7 = vpop.f32.mrf.mxu3  ;;  %2172 = vmatpush.msra.mxu2 %v1604_v38  ;;  %v3039_v55 = vmul.f32 %v6335_v12, %v2901_v11  ;;  %v3043_v0 = vmul.f32 %v6335_v12, %v2905_v39 }
 0x344   :  { %v6344_v60 = vadd.f32 %v6259_v3, %v2843_v54  ;;  %v1841_v50 = vadd.f32 %v1840_v7, %v1727_v10  ;;  %v6358_v7 = vrot.slane %v6263_v27, 4  ;;  %v6361_v43 = vadd.f32 %v6338_v26, %v3035_v56 }
 0x345   :  { %v2909_v54 = vadd.f32 %v6259_v3, %v2771_v53  ;;  %v6367_v59 = vadd.f32 %v6338_v26, %v3039_v55  ;;  %v2775_v10 = vadd.f32 %v2675_v46, %v2103_v19  ;;  %v2109_v56 = vadd.f32 %v6099_v13, %v6097_v25 }
 0x346   :  { %v6355_v21 = vadd.f32 %v6347_v24, %v1841_v50  ;;  %9224 = vst [vmem:[#allocation101_spill] sm:$0xff] %v6361_v43  ;;  %v6376_v63 = vadd.f32 %v6338_v26, %v3043_v0  ;;  %v2679_v19 = vperm.slane %v6358_v7, 1  ;;  %v2112_v25 = vadd.f32 %v6107_v37, %v6105_v62  ;;  %v1648_v43 = vld [vmem:[#allocation5 + $0x210] sm:$0xff] }
 0x347   :  { %v2043_v51 = vpop.f32.mrf.mxu0  ;;  %v2156_v38 = vpop.f32.mrf.mxu1  ;;  %9225 = vst [vmem:[#allocation102_spill] sm:$0xff] %v6367_v59  ;;  %v3047_v27 = vmul.f32 %v6335_v12, %v2909_v54  ;;  %v2913_v18 = vadd.f32 %v6259_v3, %v2775_v10  ;;  %v2917_v54 = vadd.f32 %v6259_v3, %v2779_v61  ;;  %v2783_v28 = vadd.f32 %v2675_v46, %v2109_v56  ;;  %v1584_v59 = vld [vmem:[#allocation5 + $0x10] sm:$0xff] }
 0x348   :  { %9223 = vst [vmem:[#allocation100_spill] sm:$0xff] %v6355_v21  ;;  %v2157_v11 = vadd.f32 %v2156_v38, %v2043_v51  ;;  %1777 = vmatmul.f32.gmra.mxu2 %v5788_v20  ;;  %1890 = vmatmul.f32.gmra.mxu3 %v5797_v23  ;;  %v2115_v51 = vadd.f32 %v6115_v49, %v6113_v36  ;;  %v6406_v49 = vrot.slane %v6266_v2, 5 }
 0x349   :  { %9226 = vst [vmem:[#allocation103_spill] sm:$0xff] %v6376_v63  ;;  %v6383_v50 = vadd.f32 %v6338_v26, %v3047_v27  ;;  %v3051_v39 = vmul.f32 %v6335_v12, %v2913_v18  ;;  %v2118_v38 = vadd.f32 %v6123_v14, %v6121_v32  ;;  %v3055_v62 = vmul.f32 %v6335_v12, %v2917_v54 }
 0x34a   :  { %v2847_v53 = vadd.f32 %v6288_v8, %v2157_v11  ;;  %2446 = vmatmul.f32.gmra.mxu0 %v9212_v5  ;;  %2559 = vmatmul.f32.gmra.mxu1 %v9213_v30  ;;  %v2921_v37 = vadd.f32 %v6259_v3, %v2783_v28  ;;  %v2787_v27 = vadd.f32 %v2675_v46, %v2112_v25 }
 0x34b   :  { %9227 = vst [vmem:[#allocation104_spill] sm:$0xff] %v6383_v50  ;;  %v1730_v13 = vpop.f32.mrf.mxu2  ;;  %v1843_v55 = vpop.f32.mrf.mxu3  ;;  %v6398_v11 = vadd.f32 %v6338_v26, %v3051_v39  ;;  %v2791_v36 = vadd.f32 %v2679_v19, %v2115_v51  ;;  %v2795_v32 = vadd.f32 %v2679_v19, %v2118_v38  ;;  %v6409_v61 = vadd.f32 %v6338_v26, %v3055_v62 }
 0x34c   :  { %v6395_v0 = vadd.f32 %v6259_v3, %v2847_v53  ;;  %v1844_v10 = vadd.f32 %v1843_v55, %v1730_v13  ;;  %v3059_v53 = vmul.f32 %v6335_v12, %v2921_v37  ;;  %v2925_v13 = vadd.f32 %v6259_v3, %v2787_v27 }
 0x34d   :  { %9228 = vst [vmem:[#allocation105_spill] sm:$0xff] %v6398_v11  ;;  %v2929_v46 = vadd.f32 %v6259_v3, %v2791_v36  ;;  %v2121_v2 = vadd.f32 %v6131_v52, %v6129_v29  ;;  %v2933_v54 = vadd.f32 %v6259_v3, %v2795_v32  ;;  %v2124_v28 = vadd.f32 %v6139_v41, %v6137_v44  ;;  %v1600_v32 = vld [vmem:[#allocation5 + $0x90] sm:$0xff] }
 0x34e   :  { %v6403_v56 = vadd.f32 %v6347_v24, %v1844_v10  ;;  %9230 = vst [vmem:[#allocation107_spill] sm:$0xff] %v6409_v61  ;;  %v6419_v25 = vadd.f32 %v6338_v26, %v3059_v53  ;;  %v3063_v39 = vmul.f32 %v6335_v12, %v2925_v13  ;;  %v2683_v52 = vperm.slane %v6406_v49, 1  ;;  %2173 = vmatpush.msra.mxu2 %v1600_v32  ;;  %v9242_v32 = vld [vmem:[#allocation89_spill] sm:$0xff] }
 0x34f   :  { %v2046_v14 = vpop.f32.mrf.mxu0  ;;  %v2159_v18 = vpop.f32.mrf.mxu1  ;;  %v3067_v38 = vmul.f32 %v6335_v12, %v2929_v46  ;;  %v2127_v29 = vadd.f32 %v6176_v47, %v6174_v34  ;;  %v3071_v41 = vmul.f32 %v6335_v12, %v2933_v54  ;;  %v2799_v44 = vadd.f32 %v2679_v19, %v2121_v2 }
 0x350   :  { %9229 = vst [vmem:[#allocation106_spill] sm:$0xff] %v6403_v56  ;;  %v2160_v55 = vadd.f32 %v2159_v18, %v2046_v14  ;;  %1780 = vmatmul.f32.gmra.mxu2 %v5809_v57  ;;  %1893 = vmatmul.f32.gmra.mxu3 %v5824_v9  ;;  %v6433_v37 = vadd.f32 %v6338_v26, %v3063_v39  ;;  %v1664_v14 = vld [vmem:[#allocation5 + $0x290] sm:$0xff] }
 0x351   :  { %9231 = vst [vmem:[#allocation108_spill] sm:$0xff] %v6419_v25  ;;  %v6442_v18 = vadd.f32 %v6338_v26, %v3067_v38  ;;  %2286 = vmatpush.msra.mxu3 %v1664_v14  ;;  %v6445_v34 = vadd.f32 %v6338_v26, %v3071_v41  ;;  %v2937_v47 = vadd.f32 %v6259_v3, %v2799_v44  ;;  %v9238_v38 = vld [vmem:[#allocation46_spill] sm:$0xff]  ;;  %v3458_v56 = vld [vmem:[#allocation7 + $0x1f0] sm:$0xff] }
 0x352   :  { %v2851_v51 = vadd.f32 %v6288_v8, %v2160_v55  ;;  %2449 = vmatmul.f32.gmra.mxu0 %v9216_v35  ;;  %2562 = vmatmul.f32.gmra.mxu1 %v9217_v48  ;;  %9232 = vst [vmem:[#allocation109_spill] sm:$0xff] %v6433_v37  ;;  %v2130_v8 = vadd.f32 %v6184_v22, %v6182_v58  ;;  %v9236_v22 = vld [vmem:[#allocation86_spill] sm:$0xff]  ;;  %v9237_v55 = vld [vmem:[#allocation87_spill] sm:$0xff] }
 0x353   :  { %v1733_v10 = vpop.f32.mrf.mxu2  ;;  %v1846_v62 = vpop.f32.mrf.mxu3  ;;  %9233 = vst [vmem:[#allocation110_spill] sm:$0xff] %v6442_v18  ;;  %v2803_v53 = vadd.f32 %v2679_v19, %v2124_v28  ;;  %v2807_v58 = vadd.f32 %v2683_v52, %v2127_v29  ;;  %v2133_v46 = vadd.f32 %v9237_v55, %v9236_v22  ;;  %v3075_v39 = vmul.f32 %v6335_v12, %v2937_v47  ;;  %v9279_v18 = vld [vmem:[#allocation45_spill] sm:$0xff] }
 0x354   :  { %v6439_v27 = vadd.f32 %v6259_v3, %v2851_v51  ;;  %v1847_v36 = vadd.f32 %v1846_v62, %v1733_v10  ;;  %9234 = vst [vmem:[#allocation111_spill] sm:$0xff] %v6445_v34  ;;  %v2811_v51 = vadd.f32 %v2683_v52, %v2130_v8  ;;  %v9239_v10 = vld [vmem:[#allocation49_spill] sm:$0xff]  ;;  %v2627_v44 = vsel %vm1403_vm2, %v6222_v42, %v6224_v1  ;;  %v9278_v34 = vld [vmem:[#allocation44_spill] sm:$0xff] }
 0x355   :  { %v2941_v54 = vadd.f32 %v6259_v3, %v2803_v53  ;;  %v2945_v19 = vadd.f32 %v6259_v3, %v2807_v58  ;;  %v6461_v28 = vadd.f32 %v6338_v26, %v3075_v39  ;;  %v2815_v41 = vadd.f32 %v2683_v52, %v2133_v46  ;;  %v9244_v46 = vld [vmem:[#allocation90_spill] sm:$0xff]  ;;  %v9245_v39 = vld [vmem:[#allocation91_spill] sm:$0xff] }
 0x356   :  { %v6449_v13 = vadd.f32 %v6347_v24, %v1847_v36  ;;  %v2949_v62 = vadd.f32 %v6259_v3, %v2811_v51  ;;  %v9241_v36 = vld [vmem:[#allocation88_spill] sm:$0xff]  ;;  %v2626_v1 = vsel %vm1399_vm0, %v6141_v16, %v6143_v4 }
 0x357   :  { %v6453_v2 = vpop.f32.mrf.mxu1  ;;  %9240 = vst [vmem:[#allocation86_spill] sm:$0xff] %v6461_v28  ;;  %v3079_v29 = vmul.f32 %v6335_v12, %v2941_v54  ;;  %v3083_v8 = vmul.f32 %v6335_v12, %v2945_v19  ;;  %v2136_v14 = vadd.f32 %v9242_v32, %v9241_v36  ;;  %v2953_v55 = vadd.f32 %v6259_v3, %v2815_v41  ;;  %v9249_v32 = vld [vmem:[#allocation92_spill] sm:$0xff] }
 0x358   :  { %9235 = vst [vmem:[#allocation112_spill] sm:$0xff] %v6449_v13  ;;  %1783 = vmatmul.f32.gmra.mxu2 %v9238_v38  ;;  %1896 = vmatmul.f32.gmra.mxu3 %v9239_v10  ;;  %v3087_v22 = vmul.f32 %v6335_v12, %v2949_v62  ;;  %v2139_v54 = vadd.f32 %v9245_v39, %v9244_v46  ;;  %v9250_v46 = vld [vmem:[#allocation93_spill] sm:$0xff] }
 0x359   :  { %v6474_v58 = vadd.f32 %v6338_v26, %v3079_v29  ;;  %v6484_v42 = vadd.f32 %v6338_v26, %v3083_v8  ;;  %v2629_v19 = vsel %vm2628_vm7, %v2626_v1, %v2627_v44  ;;  %v3091_v29 = vmul.f32 %v6335_v12, %v2953_v55  ;;  %v9252_v8 = vld [vmem:[#allocation62_spill] sm:$0xff] }
 0x35a   :  { %2452 = vmatmul.f32.gmra.mxu0 %v5805_v15  ;;  %2565 = vmatmul.f32.gmra.mxu1 %v5816_v40  ;;  %v6487_v36 = vadd.f32 %v6338_v26, %v3087_v22  ;;  %v2819_v62 = vadd.f32 %v2683_v52, %v2136_v14  ;;  %v2823_v44 = vadd.f32 %v6246_v6, %v2139_v54  ;;  %v9253_v22 = vld [vmem:[#allocation63_spill] sm:$0xff]  ;;  %v6504_v52 = vrot.slane %v2629_v19, 1 }
 0x35b   :  { %v1736_v47 = vpop.f32.mrf.mxu2  ;;  %v1849_v53 = vpop.f32.mrf.mxu3  ;;  %9243 = vst [vmem:[#allocation87_spill] sm:$0xff] %v6474_v58  ;;  %v6498_v4 = vadd.f32 %v6338_v26, %v3091_v29  ;;  %v3107_v39 = vmul.f32 %v6335_v12, %v6269_v45  ;;  %v9276_v58 = vld [vmem:[#allocation42_spill] sm:$0xff] }
 0x35c   :  { %v1850_v51 = vadd.f32 %v1849_v53, %v1736_v47  ;;  %9246 = vst [vmem:[#allocation46_spill] sm:$0xff] %v6484_v42  ;;  %v2142_v47 = vadd.f32 %v9250_v46, %v9249_v32  ;;  %v2957_v16 = vadd.f32 %v6259_v3, %v2819_v62  ;;  %v2961_v14 = vadd.f32 %v6259_v3, %v2823_v44  ;;  %v9255_v62 = vld [vmem:[#allocation39_spill] sm:$0xff] }
 0x35d   :  { %9247 = vst [vmem:[#allocation49_spill] sm:$0xff] %v6487_v36  ;;  %v3111_v32 = vmul.f32 %v6335_v12, %v9255_v62  ;;  %v2666_v46 = vperm.slane %v6504_v52, 0  ;;  %v6522_v44 = vadd.f32 %v6338_v26, %v3107_v39  ;;  %v3115_v39 = vmul.f32 %v6335_v12, %v6298_v17  ;;  %v9261_v62 = vld [vmem:[#allocation57_spill] sm:$0xff] }
 0x35e   :  { %v6491_v41 = vadd.f32 %v6347_v24, %v1850_v51  ;;  %9251 = vst [vmem:[#allocation89_spill] sm:$0xff] %v6498_v4  ;;  %v3095_v24 = vmul.f32 %v6335_v12, %v2957_v16  ;;  %v2827_v55 = vadd.f32 %v6246_v6, %v2142_v47  ;;  %v3099_v19 = vmul.f32 %v6335_v12, %v2961_v14  ;;  %v1596_v47 = vld [vmem:[#allocation5 + $0x70] sm:$0xff] }
 0x35f   :  { %v6495_v53 = vpop.f32.mrf.mxu1  ;;  %v1660_v16 = vld [vmem:[#allocation5 + $0x270] sm:$0xff]  ;;  %9256 = vst [vmem:[#allocation91_spill] sm:$0xff] %v6522_v44  ;;  %2174 = vmatpush.msra.mxu2 %v1596_v47  ;;  %v6529_v14 = vadd.f32 %v6338_v26, %v3111_v32  ;;  %v9262_v47 = vld [vmem:[#allocation58_spill] sm:$0xff]  ;;  %v3123_v32 = vmul.f32 %v6335_v12, %v6395_v0  ;;  %v3127_v17 = vmul.f32 %v6335_v12, %v6439_v27  ;;  %v2670_v28 = vperm.slane %v9276_v58, 0 }
 0x360   :  { %9248 = vst [vmem:[#allocation88_spill] sm:$0xff] %v6491_v41  ;;  %1786 = vmatmul.f32.gmra.mxu2 %v9252_v8  ;;  %1899 = vmatmul.f32.gmra.mxu3 %v9253_v22  ;;  %v6514_v1 = vadd.f32 %v6338_v26, %v3095_v24  ;;  %v2965_v29 = vadd.f32 %v6259_v3, %v2827_v55  ;;  %v9268_v44 = vld [vmem:[#allocation64_spill] sm:$0xff] }
 0x361   :  { %2287 = vmatpush.msra.mxu3 %v1660_v16  ;;  %v6525_v45 = vadd.f32 %v6338_v26, %v3099_v19  ;;  %9258 = vst [vmem:[#allocation93_spill] sm:$0xff] %v6529_v14  ;;  %v6543_v19 = vadd.f32 %v6338_v26, %v3115_v39  ;;  %v6557_v39 = vadd.f32 %v6338_v26, %v3123_v32 }
 0x362   :  { %2455 = vmatmul.f32.gmra.mxu0 %v5788_v20  ;;  %2568 = vmatmul.f32.gmra.mxu1 %v5797_v23  ;;  %9254 = vst [vmem:[#allocation90_spill] sm:$0xff] %v6514_v1  ;;  %v3103_v24 = vmul.f32 %v6335_v12, %v2965_v29  ;;  %v3119_v29 = vmul.f32 %v6335_v12, %v6344_v60  ;;  %v9290_v12 = vld [vmem:[#allocation54_spill] sm:$0xff] }
 0x363   :  { %v1739_v54 = vpop.f32.mrf.mxu2  ;;  %v1852_v51 = vpop.f32.mrf.mxu3  ;;  %9257 = vst [vmem:[#allocation92_spill] sm:$0xff] %v6525_v45  ;;  %v6560_v60 = vadd.f32 %v6338_v26, %v3127_v17 }
 0x364   :  { %v1853_v6 = vadd.f32 %v1852_v51, %v1739_v54  ;;  %v6536_v51 = vadd.f32 %v6338_v26, %v3103_v24  ;;  %9263 = vst [vmem:[#allocation39_spill] sm:$0xff] %v6543_v19  ;;  %v6554_v24 = vadd.f32 %v6338_v26, %v3119_v29 }
 0x365   :  { %9265 = vst [vmem:[#allocation58_spill] sm:$0xff] %v6557_v39  ;;  %v1592_v39 = vld [vmem:[#allocation5 + $0x50] sm:$0xff] }
 0x366   :  { %v6531_v55 = vadd.f32 %v2666_v46, %v1853_v6  ;;  %9260 = vst [vmem:[#allocation63_spill] sm:$0xff] %v6536_v51  ;;  %v9269_v51 = vld [vmem:[#allocation65_spill] sm:$0xff]  ;;  %2175 = vmatpush.msra.mxu2 %v1592_v39  ;;  %v9274_v39 = vld [vmem:[#allocation47_spill] sm:$0xff] }
 0x367   :  { %v6533_v54 = vpop.f32.mrf.mxu1  ;;  %9264 = vst [vmem:[#allocation57_spill] sm:$0xff] %v6554_v24 }
 0x368   :  { %9259 = vst [vmem:[#allocation62_spill] sm:$0xff] %v6531_v55  ;;  %1789 = vmatmul.f32.gmra.mxu2 %v9261_v62  ;;  %1902 = vmatmul.f32.gmra.mxu3 %v9262_v47  ;;  %v3520_v55 = vld [vmem:[#allocation7 + $0x3e0] sm:$0xff] }
 0x369   :  { %9266 = vst [vmem:[#allocation113_spill] sm:$0xff] %v6560_v60  ;;  %v9272_v60 = vld [vmem:[#allocation69_spill] sm:$0xff] }
 0x36a   :  { %2458 = vmatmul.f32.gmra.mxu0 %v5809_v57  ;;  %2571 = vmatmul.f32.gmra.mxu1 %v5824_v9 }
 0x36b   :  { %v1742_v6 = vpop.f32.mrf.mxu2  ;;  %v1855_v16 = vpop.f32.mrf.mxu3 }
 0x36c   :  { %v1856_v19 = vadd.f32 %v1855_v16, %v1742_v6  ;;  %v1656_v6 = vld [vmem:[#allocation5 + $0x250] sm:$0xff] }
 0x36d   :  { %2288 = vmatpush.msra.mxu3 %v1656_v6  ;;  %v9271_v16 = vld [vmem:[#allocation68_spill] sm:$0xff]  ;;  %v6584_v6 = vpop.f32.mrf.mxu0 }
 0x36e   :  { %v6562_v0 = vadd.f32 %v2666_v46, %v1856_v19 }
 0x36f   :  { %v6564_v14 = vpop.f32.mrf.mxu1 }
 0x370   :  { %9267 = vst [vmem:[#allocation114_spill] sm:$0xff] %v6562_v0  ;;  %1792 = vmatmul.f32.gmra.mxu2 %v9268_v44  ;;  %1905 = vmatmul.f32.gmra.mxu3 %v9269_v51  ;;  %v3522_v0 = vld [vmem:[#allocation7 + $0x3f0] sm:$0xff] }
 0x371   :  { %3869 = vmatpush.msrb.mxu1 %v3522_v0 }
 0x372   :  { %2461 = vmatmul.f32.gmra.mxu0 %v9238_v38  ;;  %2574 = vmatmul.f32.gmra.mxu1 %v9239_v10 }
 0x373   :  { %v1745_v27 = vpop.f32.mrf.mxu2  ;;  %v1858_v29 = vpop.f32.mrf.mxu3  ;;  %3870 = vmatpush.msrb.mxu1 %v3520_v55  ;;  %v9291_v55 = vld [vmem:[#allocation55_spill] sm:$0xff] }
 0x374   :  { %v1859_v32 = vadd.f32 %v1858_v29, %v1745_v27 }
 0x376   :  { %v6570_v17 = vadd.f32 %v2666_v46, %v1859_v32  ;;  %v9275_v32 = vld [vmem:[#allocation50_spill] sm:$0xff] }
 0x377   :  { %v6572_v19 = vpop.f32.mrf.mxu1 }
 0x378   :  { %9270 = vst [vmem:[#allocation115_spill] sm:$0xff] %v6570_v17  ;;  %1795 = vmatmul.f32.gmra.mxu2 %v9271_v16  ;;  %1908 = vmatmul.f32.gmra.mxu3 %v9272_v60 }
 0x37a   :  { %2464 = vmatmul.f32.gmra.mxu0 %v9252_v8  ;;  %2577 = vmatmul.f32.gmra.mxu1 %v9253_v22 }
 0x37b   :  { %v1748_v24 = vpop.f32.mrf.mxu2  ;;  %v1861_v45 = vpop.f32.mrf.mxu3 }
 0x37c   :  { %v1862_v1 = vadd.f32 %v1861_v45, %v1748_v24  ;;  %v1588_v45 = vld [vmem:[#allocation5 + $0x30] sm:$0xff] }
 0x37d   :  { %2176 = vmatpush.msra.mxu2 %v1588_v45 }
 0x37e   :  { %v6578_v27 = vadd.f32 %v2666_v46, %v1862_v1  ;;  %v1652_v1 = vld [vmem:[#allocation5 + $0x230] sm:$0xff] }
 0x37f   :  { %v6580_v29 = vpop.f32.mrf.mxu1  ;;  %2289 = vmatpush.msra.mxu3 %v1652_v1  ;;  %v9282_v1 = vld [vmem:[#allocation51_spill] sm:$0xff]  ;;  %2177 = vmatpush.msra.mxu2 %v1584_v59 }
 0x380   :  { %9273 = vst [vmem:[#allocation116_spill] sm:$0xff] %v6578_v27  ;;  %1798 = vmatmul.f32.gmra.mxu2 %v9274_v39  ;;  %1911 = vmatmul.f32.gmra.mxu3 %v9275_v32 }
 0x381   :  { %2290 = vmatpush.msra.mxu3 %v1648_v43 }
 0x382   :  { %2467 = vmatmul.f32.gmra.mxu0 %v9261_v62  ;;  %2580 = vmatmul.f32.gmra.mxu1 %v9262_v47 }
 0x383   :  { %v1751_v4 = vpop.f32.mrf.mxu2  ;;  %v1864_v36 = vpop.f32.mrf.mxu3  ;;  %3643 = vmatpush.msrb.mxu3 %v3458_v56 }
 0x384   :  { %v1865_v42 = vadd.f32 %v1864_v36, %v1751_v4  ;;  %v6597_v4 = vpop.f32.mrf.mxu0 }
 0x386   :  { %v6589_v46 = vadd.f32 %v2670_v28, %v1865_v42  ;;  %v9281_v42 = vld [vmem:[#allocation48_spill] sm:$0xff] }
 0x387   :  { %v6591_v24 = vpop.f32.mrf.mxu1 }
 0x388   :  { %9277 = vst [vmem:[#allocation42_spill] sm:$0xff] %v6589_v46  ;;  %1801 = vmatmul.f32.gmra.mxu2 %v9278_v34  ;;  %1914 = vmatmul.f32.gmra.mxu3 %v9279_v18  ;;  %v9285_v46 = vld [vmem:[#allocation53_spill] sm:$0xff] }
 0x38a   :  { %2470 = vmatmul.f32.gmra.mxu0 %v9268_v44  ;;  %2583 = vmatmul.f32.gmra.mxu1 %v9269_v51 }
 0x38b   :  { %v1754_v37 = vpop.f32.mrf.mxu2  ;;  %v1867_v36 = vpop.f32.mrf.mxu3 }
 0x38c   :  { %v1868_v25 = vadd.f32 %v1867_v36, %v1754_v37  ;;  %v6607_v37 = vpop.f32.mrf.mxu0 }
 0x38e   :  { %v6599_v61 = vadd.f32 %v2670_v28, %v1868_v25 }
 0x38f   :  { %v6601_v45 = vpop.f32.mrf.mxu1 }
 0x390   :  { %9280 = vst [vmem:[#allocation117_spill] sm:$0xff] %v6599_v61  ;;  %1804 = vmatmul.f32.gmra.mxu2 %v9281_v42  ;;  %1917 = vmatmul.f32.gmra.mxu3 %v9282_v1  ;;  %v9284_v61 = vld [vmem:[#allocation52_spill] sm:$0xff] }
 0x392   :  { %2473 = vmatmul.f32.gmra.mxu0 %v9271_v16  ;;  %2586 = vmatmul.f32.gmra.mxu1 %v9272_v60 }
 0x393   :  { %v1757_v11 = vpop.f32.mrf.mxu2  ;;  %v1870_v50 = vpop.f32.mrf.mxu3 }
 0x394   :  { %v1871_v63 = vadd.f32 %v1870_v50, %v1757_v11  ;;  %v6621_v59 = vpop.f32.mrf.mxu0 }
 0x396   :  { %v6609_v25 = vadd.f32 %v2670_v28, %v1871_v63  ;;  %v9287_v63 = vld [vmem:[#allocation56_spill] sm:$0xff] }
 0x397   :  { %v6611_v36 = vpop.f32.mrf.mxu1 }
 0x398   :  { %9283 = vst [vmem:[#allocation118_spill] sm:$0xff] %v6609_v25  ;;  %1807 = vmatmul.f32.gmra.mxu2 %v9284_v61  ;;  %1920 = vmatmul.f32.gmra.mxu3 %v9285_v46  ;;  %v9288_v25 = vld [vmem:[#allocation59_spill] sm:$0xff] }
 0x39a   :  { %2476 = vmatmul.f32.gmra.mxu0 %v9274_v39  ;;  %2589 = vmatmul.f32.gmra.mxu1 %v9275_v32  ;;  %v3496_v39 = vld [vmem:[#allocation7 + $0x320] sm:$0xff] }
 0x39b   :  { %v1760_v27 = vpop.f32.mrf.mxu2  ;;  %v1873_v50 = vpop.f32.mrf.mxu3 }
 0x39c   :  { %v1874_v11 = vadd.f32 %v1873_v50, %v1760_v27  ;;  %v6628_v27 = vperm.slane %v6318_v31, 0  ;;  %v3518_v50 = vld [vmem:[#allocation7 + $0x3d0] sm:$0xff]  ;;  %v6637_v21 = vpop.f32.mrf.mxu0 }
 0x39d   :  { %3871 = vmatpush.msrb.mxu1 %v3518_v50 }
 0x39e   :  { %v6617_v17 = vadd.f32 %v2670_v28, %v1874_v11  ;;  %v3426_v11 = vld [vmem:[#allocation7 + $0xf0] sm:$0xff] }
 0x39f   :  { %v6619_v43 = vpop.f32.mrf.mxu1  ;;  %3530 = vmatpush.msrb.mxu2 %v3426_v11  ;;  %v3510_v11 = vld [vmem:[#allocation7 + $0x390] sm:$0xff] }
 0x3a0   :  { %9286 = vst [vmem:[#allocation119_spill] sm:$0xff] %v6617_v17  ;;  %1810 = vmatmul.f32.gmra.mxu2 %v9287_v63  ;;  %1923 = vmatmul.f32.gmra.mxu3 %v9288_v25  ;;  %v3516_v17 = vld [vmem:[#allocation7 + $0x3c0] sm:$0xff] }
 0x3a1   :  { %3872 = vmatpush.msrb.mxu1 %v3516_v17  ;;  %v3490_v17 = vld [vmem:[#allocation7 + $0x2f0] sm:$0xff] }
 0x3a2   :  { %2479 = vmatmul.f32.gmra.mxu0 %v9278_v34  ;;  %2592 = vmatmul.f32.gmra.mxu1 %v9279_v18  ;;  %v3504_v34 = vld [vmem:[#allocation7 + $0x360] sm:$0xff] }
 0x3a3   :  { %v1763_v41 = vpop.f32.mrf.mxu2  ;;  %v1876_v13 = vpop.f32.mrf.mxu3  ;;  %3756 = vmatpush.msrb.mxu0 %v3490_v17  ;;  %v3424_v17 = vld [vmem:[#allocation7 + $0xe0] sm:$0xff] }
 0x3a4   :  { %v1877_v28 = vadd.f32 %v1876_v13, %v1763_v41  ;;  %v3514_v13 = vld [vmem:[#allocation7 + $0x3b0] sm:$0xff]  ;;  %v3512_v41 = vld [vmem:[#allocation7 + $0x3a0] sm:$0xff]  ;;  %3531 = vmatpush.msrb.mxu2 %v3424_v17 }
 0x3a5   :  { %3873 = vmatpush.msrb.mxu1 %v3514_v13  ;;  %v9293_v13 = vld [vmem:[#allocation60_spill] sm:$0xff]  ;;  %v3488_v17 = vld [vmem:[#allocation7 + $0x2e0] sm:$0xff] }
 0x3a6   :  { %v6631_v26 = vadd.f32 %v6628_v27, %v1877_v28  ;;  %3757 = vmatpush.msrb.mxu0 %v3488_v17  ;;  %v3454_v17 = vld [vmem:[#allocation7 + $0x1d0] sm:$0xff] }
 0x3a7   :  { %v6633_v0 = vpop.f32.mrf.mxu1  ;;  %3874 = vmatpush.msrb.mxu1 %v3512_v41 }
 0x3a8   :  { %9289 = vst [vmem:[#allocation120_spill] sm:$0xff] %v6631_v26  ;;  %1813 = vmatmul.f32.gmra.mxu2 %v9290_v12  ;;  %1926 = vmatmul.f32.gmra.mxu3 %v9291_v55  ;;  %v3508_v26 = vld [vmem:[#allocation7 + $0x380] sm:$0xff] }
 0x3a9   :  { %3875 = vmatpush.msrb.mxu1 %v3510_v11  ;;  %v3502_v11 = vld [vmem:[#allocation7 + $0x350] sm:$0xff] }
 0x3aa   :  { %2482 = vmatmul.f32.gmra.mxu0 %v9281_v42  ;;  %2595 = vmatmul.f32.gmra.mxu1 %v9282_v1  ;;  %v9294_v42 = vld [vmem:[#allocation61_spill] sm:$0xff]  ;;  %v3506_v1 = vld [vmem:[#allocation7 + $0x370] sm:$0xff] }
 0x3ab   :  { %v1766_v50 = vpop.f32.mrf.mxu2  ;;  %v1879_v28 = vpop.f32.mrf.mxu3  ;;  %3876 = vmatpush.msrb.mxu1 %v3508_v26  ;;  %v3500_v26 = vld [vmem:[#allocation7 + $0x340] sm:$0xff] }
 0x3ac   :  { %v1880_v56 = vadd.f32 %v1879_v28, %v1766_v50  ;;  %v6650_v28 = vpop.f32.mrf.mxu0 }
 0x3ad   :  { %3877 = vmatpush.msrb.mxu1 %v3506_v1 }
 0x3ae   :  { %v6642_v3 = vadd.f32 %v6628_v27, %v1880_v56 }
 0x3af   :  { %v6644_v18 = vpop.f32.mrf.mxu1  ;;  %3878 = vmatpush.msrb.mxu1 %v3504_v34  ;;  %v3498_v34 = vld [vmem:[#allocation7 + $0x330] sm:$0xff] }
 0x3b0   :  { %9292 = vst [vmem:[#allocation121_spill] sm:$0xff] %v6642_v3  ;;  %1816 = vmatmul.f32.gmra.mxu2 %v9293_v13  ;;  %1929 = vmatmul.f32.gmra.mxu3 %v9294_v42  ;;  %v3456_v3 = vld [vmem:[#allocation7 + $0x1e0] sm:$0xff] }
 0x3b1   :  { %3879 = vmatpush.msrb.mxu1 %v3502_v11  ;;  %3644 = vmatpush.msrb.mxu3 %v3456_v3  ;;  %v3494_v11 = vld [vmem:[#allocation7 + $0x310] sm:$0xff]  ;;  %v3492_v3 = vld [vmem:[#allocation7 + $0x300] sm:$0xff] }
 0x3b2   :  { %2485 = vmatmul.f32.gmra.mxu0 %v9284_v61  ;;  %2598 = vmatmul.f32.gmra.mxu1 %v9285_v46  ;;  %v9296_v46 = vld [vmem:[#allocation66_spill] sm:$0xff]  ;;  %v9297_v61 = vld [vmem:[#allocation67_spill] sm:$0xff] }
 0x3b3   :  { %v1769_v41 = vpop.f32.mrf.mxu2  ;;  %v1882_v50 = vpop.f32.mrf.mxu3  ;;  %3880 = vmatpush.msrb.mxu1 %v3500_v26  ;;  %3645 = vmatpush.msrb.mxu3 %v3454_v17 }
 0x3b4   :  { %v1883_v56 = vadd.f32 %v1882_v50, %v1769_v41  ;;  %v6661_v26 = vpop.f32.mrf.mxu0 }
 0x3b5   :  { %3881 = vmatpush.msrb.mxu1 %v3498_v34  ;;  %v9299_v34 = vld [vmem:[#allocation12_spill] sm:$0xff] }
 0x3b6   :  { %v6653_v32 = vadd.f32 %v6628_v27, %v1883_v56 }
 0x3b7   :  { %v6655_v1 = vpop.f32.mrf.mxu1  ;;  %3882 = vmatpush.msrb.mxu1 %v3496_v39 }
 0x3b8   :  { %9295 = vst [vmem:[#allocation122_spill] sm:$0xff] %v6653_v32  ;;  %1819 = vmatmul.f32.gmra.mxu2 %v9296_v46  ;;  %1932 = vmatmul.f32.gmra.mxu3 %v9297_v61 }
 0x3b9   :  { %3883 = vmatpush.msrb.mxu1 %v3494_v11 }
 0x3ba   :  { %2488 = vmatmul.f32.gmra.mxu0 %v9287_v63  ;;  %2601 = vmatmul.f32.gmra.mxu1 %v9288_v25  ;;  %v9300_v25 = vld [vmem:[#allocation13_spill] sm:$0xff] }
 0x3bb   :  { %v1772_v41 = vpop.f32.mrf.mxu2  ;;  %v1885_v50 = vpop.f32.mrf.mxu3  ;;  %3884 = vmatpush.msrb.mxu1 %v3492_v3  ;;  %v2665_v3 = vperm.slane %v6329_v33, 3 }
 0x3bc   :  { %v1886_v56 = vadd.f32 %v1885_v50, %v1772_v41  ;;  %v2519_v50 = vadd.f32 %v6453_v2, %v6584_v6  ;;  %v6683_v63 = vpop.f32.mrf.mxu0  ;;  %v9303_v2 = vld [vmem:[#allocation14_spill] sm:$0xff]  ;;  %v9304_v6 = vld [vmem:[#allocation15_spill] sm:$0xff] }
 0x3be   :  { %v6664_v32 = vadd.f32 %v6628_v27, %v1886_v56  ;;  %v2678_v27 = vperm.slane %v6358_v7, 0  ;;  %v3422_v56 = vld [vmem:[#allocation7 + $0xd0] sm:$0xff] }
 0x3bf   :  { %v6666_v60 = vpop.f32.mrf.mxu1  ;;  %3532 = vmatpush.msrb.mxu2 %v3422_v56  ;;  %v9305_v56 = vld [vmem:[#allocation43_spill] sm:$0xff] }
 0x3c0   :  { %9298 = vst [vmem:[#allocation66_spill] sm:$0xff] %v6664_v32  ;;  %2178 = vmatmul.f32.vlgmr.msra.gmra.mxu2 %v9299_v34  ;;  %2291 = vmatmul.f32.vlgmr.msra.gmra.mxu3 %v9300_v25  ;;  %v2729_v32 = vadd.f32 %v2665_v3, %v2519_v50  ;;  %v6691_v17 = vperm.slane %v9305_v56, 3  ;;  %v9309_v56 = vld [vmem:[#allocation17_spill] sm:$0xff] }
 0x3c2   :  { %2491 = vmatmul.f32.gmra.mxu0 %v9290_v12  ;;  %2604 = vmatmul.f32.gmra.mxu1 %v9291_v55  ;;  %v9302_v55 = vld [vmem:[#allocation95_spill] sm:$0xff] }
 0x3c3   :  { %v1775_v39 = vpop.f32.mrf.mxu2  ;;  %v1888_v41 = vpop.f32.mrf.mxu3  ;;  %v6681_v12 = vperm.slane %v9302_v55, 3  ;;  %v2522_v55 = vadd.f32 %v6495_v53, %v6597_v4 }
 0x3c4   :  { %v1889_v11 = vadd.f32 %v1888_v41, %v1775_v39  ;;  %v6705_v44 = vpop.f32.mrf.mxu0 }
 0x3c5   :  { %v2733_v51 = vadd.f32 %v2665_v3, %v2522_v55  ;;  %v3452_v55 = vld [vmem:[#allocation7 + $0x1c0] sm:$0xff] }
 0x3c6   :  { %v6676_v34 = vadd.f32 %v2678_v27, %v1889_v11  ;;  %v2867_v11 = vadd.f32 %v6681_v12, %v2729_v32  ;;  %v9308_v32 = vld [vmem:[#allocation16_spill] sm:$0xff]  ;;  %3646 = vmatpush.msrb.mxu3 %v3452_v55 }
 0x3c7   :  { %v6678_v25 = vpop.f32.mrf.mxu1 }
 0x3c8   :  { %9301 = vst [vmem:[#allocation12_spill] sm:$0xff] %v6676_v34  ;;  %2181 = vmatmul.f32.gmra.mxu2 %v9303_v2  ;;  %2294 = vmatmul.f32.gmra.mxu3 %v9304_v6  ;;  %v3486_v34 = vld [vmem:[#allocation7 + $0x2d0] sm:$0xff] }
 0x3c9   :  { %3758 = vmatpush.msrb.mxu0 %v3486_v34 }
 0x3ca   :  { %2494 = vmatmul.f32.gmra.mxu0 %v9293_v13  ;;  %2607 = vmatmul.f32.gmra.mxu1 %v9294_v42  ;;  %v3005_v13 = vmul.f32 %v6691_v17, %v2867_v11  ;;  %v9307_v42 = vld [vmem:[#allocation97_spill] sm:$0xff]  ;;  %v3420_v11 = vld [vmem:[#allocation7 + $0xc0] sm:$0xff] }
 0x3cb   :  { %v1778_v39 = vpop.f32.mrf.mxu2  ;;  %v1891_v41 = vpop.f32.mrf.mxu3  ;;  %v6701_v16 = vperm.slane %v9307_v42, 3  ;;  %v2525_v42 = vadd.f32 %v6533_v54, %v6607_v37  ;;  %3533 = vmatpush.msrb.mxu2 %v3420_v11 }
 0x3cc   :  { %v1892_v50 = vadd.f32 %v1891_v41, %v1778_v39  ;;  %v2871_v39 = vadd.f32 %v6681_v12, %v2733_v51 }
 0x3cd   :  { %v6710_v34 = vadd.f32 %v6701_v16, %v3005_v13  ;;  %v9312_v13 = vld [vmem:[#allocation19_spill] sm:$0xff] }
 0x3ce   :  { %v6695_v2 = vadd.f32 %v2678_v27, %v1892_v50  ;;  %v3009_v51 = vmul.f32 %v6691_v17, %v2871_v39 }
 0x3cf   :  { %v6697_v6 = vpop.f32.mrf.mxu1 }
 0x3d0   :  { %9306 = vst [vmem:[#allocation13_spill] sm:$0xff] %v6695_v2  ;;  %2184 = vmatmul.f32.gmra.mxu2 %v9308_v32  ;;  %2297 = vmatmul.f32.gmra.mxu3 %v9309_v56  ;;  %v8867_v56 = vmax.f32 %v6710_v34, 0.0  ;;  %v2737_v2 = vadd.f32 %v2665_v3, %v2525_v42  ;;  %v6731_v42 = vadd.f32 %v6701_v16, %v3009_v51 }
 0x3d2   :  { %2497 = vmatmul.f32.gmra.mxu0 %v9296_v46  ;;  %2610 = vmatmul.f32.gmra.mxu1 %v9297_v61  ;;  %v9311_v61 = vld [vmem:[#allocation18_spill] sm:$0xff]  ;;  %9313 = vst [vmem:[#allocation14_spill] sm:$0xff] %v6731_v42 }
 0x3d3   :  { %v1781_v53 = vpop.f32.mrf.mxu2  ;;  %v1894_v4 = vpop.f32.mrf.mxu3 }
 0x3d4   :  { %v1895_v41 = vadd.f32 %v1894_v4, %v1781_v53  ;;  %v2875_v53 = vadd.f32 %v6681_v12, %v2737_v2  ;;  %v2528_v4 = vadd.f32 %v6564_v14, %v6621_v59  ;;  %v8868_v2 = vmax.f32 %v6731_v42, 0.0  ;;  %v9344_v42 = vld [vmem:[#allocation35_spill] sm:$0xff] }
 0x3d6   :  { %v6715_v50 = vadd.f32 %v2678_v27, %v1895_v41  ;;  %v6728_v41 = vpop.f32.mrf.mxu0  ;;  %v3013_v14 = vmul.f32 %v6691_v17, %v2875_v53  ;;  %v2669_v53 = vperm.slane %v6504_v52, 3 }
 0x3d7   :  { %v6717_v32 = vpop.f32.mrf.mxu1 }
 0x3d8   :  { %9310 = vst [vmem:[#allocation95_spill] sm:$0xff] %v6715_v50  ;;  %2187 = vmatmul.f32.gmra.mxu2 %v9311_v61  ;;  %2300 = vmatmul.f32.gmra.mxu3 %v9312_v13  ;;  %v3484_v61 = vld [vmem:[#allocation7 + $0x2c0] sm:$0xff]  ;;  %v2741_v13 = vadd.f32 %v2665_v3, %v2528_v4  ;;  %v9316_v50 = vld [vmem:[#allocation21_spill] sm:$0xff]  ;;  %v2531_v3 = vadd.f32 %v6572_v19, %v6637_v21  ;;  %v3450_v4 = vld [vmem:[#allocation7 + $0x1b0] sm:$0xff] }
 0x3d9   :  { %3759 = vmatpush.msrb.mxu0 %v3484_v61  ;;  %3647 = vmatpush.msrb.mxu3 %v3450_v4  ;;  %v9320_v21 = vld [vmem:[#allocation23_spill] sm:$0xff] }
 0x3da   :  { %3885 = vmatmul.f32.vlgmr.msrb.gmra.mxu1 %v8867_v56  ;;  %v9315_v56 = vld [vmem:[#allocation20_spill] sm:$0xff] }
 0x3db   :  { %v1784_v54 = vpop.f32.mrf.mxu2  ;;  %v1897_v37 = vpop.f32.mrf.mxu3 }
 0x3dc   :  { %v1898_v11 = vadd.f32 %v1897_v37, %v1784_v54  ;;  %v6744_v54 = vperm.slane %v6406_v49, 0  ;;  %v3418_v37 = vld [vmem:[#allocation7 + $0xb0] sm:$0xff] }
 0x3dd   :  { %3534 = vmatpush.msrb.mxu2 %v3418_v37 }
 0x3de   :  { %v6733_v55 = vadd.f32 %v2678_v27, %v1898_v11  ;;  %v2879_v27 = vadd.f32 %v6681_v12, %v2741_v13  ;;  %v6753_v11 = vpop.f32.mrf.mxu0  ;;  %v2745_v13 = vadd.f32 %v2669_v53, %v2531_v3 }
 0x3df   :  { %v6735_v39 = vpop.f32.mrf.mxu1 }
 0x3e0   :  { %9314 = vst [vmem:[#allocation15_spill] sm:$0xff] %v6733_v55  ;;  %2190 = vmatmul.f32.gmra.mxu2 %v9315_v56  ;;  %2303 = vmatmul.f32.gmra.mxu3 %v9316_v50  ;;  %v6750_v50 = vadd.f32 %v6701_v16, %v3013_v14  ;;  %v9319_v55 = vld [vmem:[#allocation22_spill] sm:$0xff]  ;;  %v3017_v14 = vmul.f32 %v6691_v17, %v2879_v27 }
 0x3e1   :  { %v2883_v37 = vadd.f32 %v6681_v12, %v2745_v13  ;;  %v9324_v13 = vld [vmem:[#allocation25_spill] sm:$0xff] }
 0x3e2   :  { %3888 = vmatmul.f32.gmra.mxu1 %v8868_v2  ;;  %9317 = vst [vmem:[#allocation43_spill] sm:$0xff] %v6750_v50  ;;  %v8869_v19 = vmax.f32 %v6750_v50, 0.0  ;;  %v6770_v3 = vadd.f32 %v6701_v16, %v3017_v14  ;;  %v9323_v50 = vld [vmem:[#allocation24_spill] sm:$0xff] }
 0x3e3   :  { %v1787_v59 = vpop.f32.mrf.mxu2  ;;  %v1900_v51 = vpop.f32.mrf.mxu3 }
 0x3e4   :  { %v1901_v56 = vadd.f32 %v1900_v51, %v1787_v59  ;;  %9321 = vst [vmem:[#allocation16_spill] sm:$0xff] %v6770_v3 }
 0x3e6   :  { %v6756_v61 = vadd.f32 %v6744_v54, %v1901_v56  ;;  %v2534_v56 = vadd.f32 %v6580_v29, %v6650_v28  ;;  %v8871_v29 = vmax.f32 %v6770_v3, 0.0  ;;  %v3021_v28 = vmul.f32 %v6691_v17, %v2883_v37  ;;  %v9327_v3 = vld [vmem:[#allocation26_spill] sm:$0xff] }
 0x3e7   :  { %v6758_v2 = vpop.f32.mrf.mxu1 }
 0x3e8   :  { %9318 = vst [vmem:[#allocation97_spill] sm:$0xff] %v6756_v61  ;;  %2193 = vmatmul.f32.gmra.mxu2 %v9319_v55  ;;  %2306 = vmatmul.f32.gmra.mxu3 %v9320_v21  ;;  %v3482_v55 = vld [vmem:[#allocation7 + $0x2b0] sm:$0xff]  ;;  %v2749_v61 = vadd.f32 %v2669_v53, %v2534_v56  ;;  %v2537_v56 = vadd.f32 %v6591_v24, %v6661_v26 }
 0x3e9   :  { %3760 = vmatpush.msrb.mxu0 %v3482_v55  ;;  %v6789_v55 = vadd.f32 %v6701_v16, %v3021_v28 }
 0x3ea   :  { %3891 = vmatmul.f32.gmra.mxu1 %v8869_v19  ;;  %v6777_v19 = vpop.f32.mrf.mxu0 }
 0x3eb   :  { %v1790_v59 = vpop.f32.mrf.mxu2  ;;  %v1903_v51 = vpop.f32.mrf.mxu3  ;;  %9325 = vst [vmem:[#allocation18_spill] sm:$0xff] %v6789_v55  ;;  %v8873_v24 = vmax.f32 %v6789_v55, 0.0  ;;  %v9332_v55 = vld [vmem:[#allocation29_spill] sm:$0xff] }
 0x3ec   :  { %v1904_v4 = vadd.f32 %v1903_v51, %v1790_v59  ;;  %v2887_v51 = vadd.f32 %v6681_v12, %v2749_v61  ;;  %v9328_v61 = vld [vmem:[#allocation27_spill] sm:$0xff] }
 0x3ee   :  { %v6773_v21 = vadd.f32 %v6744_v54, %v1904_v4  ;;  %v3025_v26 = vmul.f32 %v6691_v17, %v2887_v51 }
 0x3ef   :  { %v6775_v27 = vpop.f32.mrf.mxu1 }
 0x3f0   :  { %9322 = vst [vmem:[#allocation17_spill] sm:$0xff] %v6773_v21  ;;  %2196 = vmatmul.f32.gmra.mxu2 %v9323_v50  ;;  %2309 = vmatmul.f32.gmra.mxu3 %v9324_v13  ;;  %v3416_v50 = vld [vmem:[#allocation7 + $0xa0] sm:$0xff] }
 0x3f1   :  { %v3448_v13 = vld [vmem:[#allocation7 + $0x1a0] sm:$0xff]  ;;  %3535 = vmatpush.msrb.mxu2 %v3416_v50 }
 0x3f2   :  { %3894 = vmatmul.f32.gmra.mxu1 %v8871_v29  ;;  %3648 = vmatpush.msrb.mxu3 %v3448_v13  ;;  %v2753_v29 = vadd.f32 %v2669_v53, %v2537_v56  ;;  %v6800_v28 = vpop.f32.mrf.mxu0  ;;  %v2540_v56 = vadd.f32 %v6601_v45, %v6683_v63  ;;  %v3480_v13 = vld [vmem:[#allocation7 + $0x2a0] sm:$0xff] }
 0x3f3   :  { %v1793_v14 = vpop.f32.mrf.mxu2  ;;  %v1906_v59 = vpop.f32.mrf.mxu3  ;;  %3761 = vmatpush.msrb.mxu0 %v3480_v13  ;;  %v2673_v13 = vperm.slane %v9276_v58, 3 }
 0x3f4   :  { %v1907_v4 = vadd.f32 %v1906_v59, %v1793_v14 }
 0x3f6   :  { %v6792_v37 = vadd.f32 %v6744_v54, %v1907_v4  ;;  %v2891_v4 = vadd.f32 %v6681_v12, %v2753_v29 }
 0x3f7   :  { %v6794_v21 = vpop.f32.mrf.mxu1 }
 0x3f8   :  { %9326 = vst [vmem:[#allocation19_spill] sm:$0xff] %v6792_v37  ;;  %2199 = vmatmul.f32.gmra.mxu2 %v9327_v3  ;;  %2312 = vmatmul.f32.gmra.mxu3 %v9328_v61  ;;  %v6808_v3 = vadd.f32 %v6701_v16, %v3025_v26  ;;  %v2757_v37 = vadd.f32 %v2669_v53, %v2540_v56 }
 0x3f9   :  { %v3029_v45 = vmul.f32 %v6691_v17, %v2891_v4  ;;  %v2543_v53 = vadd.f32 %v6611_v36, %v6705_v44  ;;  %v3414_v4 = vld [vmem:[#allocation7 + $0x90] sm:$0xff]  ;;  %v9337_v44 = vld [vmem:[#allocation31_spill] sm:$0xff] }
 0x3fa   :  { %3897 = vmatmul.f32.gmra.mxu1 %v8873_v24  ;;  %9329 = vst [vmem:[#allocation20_spill] sm:$0xff] %v6808_v3  ;;  %v9331_v24 = vld [vmem:[#allocation28_spill] sm:$0xff]  ;;  %v8875_v29 = vmax.f32 %v6808_v3, 0.0  ;;  %3536 = vmatpush.msrb.mxu2 %v3414_v4  ;;  %v9336_v3 = vld [vmem:[#allocation30_spill] sm:$0xff] }
 0x3fb   :  { %v1796_v14 = vpop.f32.mrf.mxu2  ;;  %v1909_v59 = vpop.f32.mrf.mxu3  ;;  %v6830_v56 = vadd.f32 %v6701_v16, %v3029_v45 }
 0x3fc   :  { %v1910_v50 = vadd.f32 %v1909_v59, %v1796_v14  ;;  %v9333_v14 = vld [vmem:[#allocation94_spill] sm:$0xff] }
 0x3fd   :  { %v6822_v59 = vperm.slane %v9333_v14, 0  ;;  %9334 = vst [vmem:[#allocation22_spill] sm:$0xff] %v6830_v56  ;;  %v8877_v36 = vmax.f32 %v6830_v56, 0.0  ;;  %v9340_v56 = vld [vmem:[#allocation32_spill] sm:$0xff] }
 0x3fe   :  { %v6811_v51 = vadd.f32 %v6744_v54, %v1910_v50  ;;  %v2895_v54 = vadd.f32 %v6681_v12, %v2757_v37  ;;  %v3446_v50 = vld [vmem:[#allocation7 + $0x190] sm:$0xff]  ;;  %v2761_v37 = vadd.f32 %v2673_v13, %v2543_v53 }
 0x3ff   :  { %v6813_v61 = vpop.f32.mrf.mxu1  ;;  %3649 = vmatpush.msrb.mxu3 %v3446_v50 }
 0x400   :  { %9330 = vst [vmem:[#allocation21_spill] sm:$0xff] %v6811_v51  ;;  %2202 = vmatmul.f32.gmra.mxu2 %v9331_v24  ;;  %2315 = vmatmul.f32.gmra.mxu3 %v9332_v55  ;;  %v6827_v24 = vpop.f32.mrf.mxu0  ;;  %v3033_v45 = vmul.f32 %v6691_v17, %v2895_v54  ;;  %v2899_v4 = vadd.f32 %v6681_v12, %v2761_v37  ;;  %v9341_v37 = vld [vmem:[#allocation33_spill] sm:$0xff] }
 0x402   :  { %3900 = vmatmul.f32.gmra.mxu1 %v8875_v29  ;;  %v6848_v53 = vadd.f32 %v6701_v16, %v3033_v45 }
 0x403   :  { %v1799_v63 = vpop.f32.mrf.mxu2  ;;  %v1912_v26 = vpop.f32.mrf.mxu3 }
 0x404   :  { %v1913_v55 = vadd.f32 %v1912_v26, %v1799_v63  ;;  %9338 = vst [vmem:[#allocation24_spill] sm:$0xff] %v6848_v53 }
 0x406   :  { %v6834_v29 = vadd.f32 %v6822_v59, %v1913_v55  ;;  %v2546_v55 = vadd.f32 %v6619_v43, %v6728_v41  ;;  %v8879_v43 = vmax.f32 %v6848_v53, 0.0  ;;  %v3037_v41 = vmul.f32 %v6691_v17, %v2899_v4 }
 0x407   :  { %v6836_v51 = vpop.f32.mrf.mxu1 }
 0x408   :  { %9335 = vst [vmem:[#allocation23_spill] sm:$0xff] %v6834_v29  ;;  %2205 = vmatmul.f32.gmra.mxu2 %v9336_v3  ;;  %2318 = vmatmul.f32.gmra.mxu3 %v9337_v44  ;;  %v3478_v3 = vld [vmem:[#allocation7 + $0x290] sm:$0xff]  ;;  %v6850_v44 = vpop.f32.mrf.mxu0 }
 0x409   :  { %3762 = vmatpush.msrb.mxu0 %v3478_v3 }
 0x40a   :  { %3903 = vmatmul.f32.gmra.mxu1 %v8877_v36  ;;  %v2765_v36 = vadd.f32 %v2673_v13, %v2546_v55  ;;  %v6867_v55 = vadd.f32 %v6701_v16, %v3037_v41 }
 0x40b   :  { %v1802_v63 = vpop.f32.mrf.mxu2  ;;  %v1915_v26 = vpop.f32.mrf.mxu3 }
 0x40c   :  { %v1916_v50 = vadd.f32 %v1915_v26, %v1802_v63  ;;  %v2903_v26 = vadd.f32 %v6681_v12, %v2765_v36  ;;  %v9343_v36 = vld [vmem:[#allocation34_spill] sm:$0xff] }
 0x40e   :  { %v6853_v54 = vadd.f32 %v6822_v59, %v1916_v50  ;;  %v2549_v50 = vadd.f32 %v6633_v0, %v6753_v11  ;;  %v8882_v0 = vmax.f32 %v6867_v55, 0.0  ;;  %v3041_v11 = vmul.f32 %v6691_v17, %v2903_v26 }
 0x40f   :  { %v6855_v29 = vpop.f32.mrf.mxu1 }
 0x410   :  { %9339 = vst [vmem:[#allocation25_spill] sm:$0xff] %v6853_v54  ;;  %2208 = vmatmul.f32.gmra.mxu2 %v9340_v56  ;;  %2321 = vmatmul.f32.gmra.mxu3 %v9341_v37  ;;  %v3412_v56 = vld [vmem:[#allocation7 + $0x80] sm:$0xff]  ;;  %v6874_v53 = vpop.f32.mrf.mxu0 }
 0x411   :  { %v3444_v37 = vld [vmem:[#allocation7 + $0x180] sm:$0xff]  ;;  %3537 = vmatpush.msrb.mxu2 %v3412_v56  ;;  %v6886_v56 = vadd.f32 %v6701_v16, %v3041_v11 }
 0x412   :  { %3906 = vmatmul.f32.gmra.mxu1 %v8879_v43  ;;  %3650 = vmatpush.msrb.mxu3 %v3444_v37  ;;  %v2769_v43 = vadd.f32 %v2673_v13, %v2549_v50  ;;  %v2552_v50 = vadd.f32 %v6644_v18, %v6777_v19  ;;  %v3476_v37 = vld [vmem:[#allocation7 + $0x280] sm:$0xff] }
 0x413   :  { %v1805_v45 = vpop.f32.mrf.mxu2  ;;  %v1918_v63 = vpop.f32.mrf.mxu3  ;;  %9345 = vst [vmem:[#allocation27_spill] sm:$0xff] %v6886_v56  ;;  %3763 = vmatpush.msrb.mxu0 %v3476_v37  ;;  %v3442_v37 = vld [vmem:[#allocation7 + $0x170] sm:$0xff] }
 0x414   :  { %v1919_v3 = vadd.f32 %v1918_v63, %v1805_v45  ;;  %v2907_v63 = vadd.f32 %v6681_v12, %v2769_v43  ;;  %v8883_v43 = vmax.f32 %v6886_v56, 0.0  ;;  %3651 = vmatpush.msrb.mxu3 %v3442_v37  ;;  %v3470_v37 = vld [vmem:[#allocation7 + $0x250] sm:$0xff] }
 0x416   :  { %v6870_v4 = vadd.f32 %v6822_v59, %v1919_v3  ;;  %v3045_v18 = vmul.f32 %v6691_v17, %v2907_v63  ;;  %v3410_v63 = vld [vmem:[#allocation7 + $0x70] sm:$0xff] }
 0x417   :  { %v6872_v54 = vpop.f32.mrf.mxu1  ;;  %3538 = vmatpush.msrb.mxu2 %v3410_v63  ;;  %v3472_v63 = vld [vmem:[#allocation7 + $0x260] sm:$0xff] }
 0x418   :  { %9342 = vst [vmem:[#allocation26_spill] sm:$0xff] %v6870_v4  ;;  %2211 = vmatmul.f32.gmra.mxu2 %v9343_v36  ;;  %2324 = vmatmul.f32.gmra.mxu3 %v9344_v42  ;;  %v2773_v36 = vadd.f32 %v2673_v13, %v2552_v50  ;;  %v9348_v4 = vld [vmem:[#allocation40_spill] sm:$0xff]  ;;  %v6897_v19 = vpop.f32.mrf.mxu0  ;;  %v6908_v50 = vadd.f32 %v6701_v16, %v3045_v18  ;;  %v9353_v18 = vld [vmem:[#allocation37_spill] sm:$0xff] }
 0x41a   :  { %3909 = vmatmul.f32.gmra.mxu1 %v8882_v0  ;;  %v9347_v0 = vld [vmem:[#allocation38_spill] sm:$0xff]  ;;  %v2911_v13 = vadd.f32 %v6681_v12, %v2773_v36  ;;  %9350 = vst [vmem:[#allocation29_spill] sm:$0xff] %v6908_v50 }
 0x41b   :  { %v1808_v41 = vpop.f32.mrf.mxu2  ;;  %v1921_v45 = vpop.f32.mrf.mxu3 }
 0x41c   :  { %v1922_v3 = vadd.f32 %v1921_v45, %v1808_v41 }
 0x41e   :  { %v6889_v42 = vadd.f32 %v6822_v59, %v1922_v3  ;;  %v9349_v59 = vld [vmem:[#allocation41_spill] sm:$0xff]  ;;  %v3474_v3 = vld [vmem:[#allocation7 + $0x270] sm:$0xff] }
 0x41f   :  { %v6891_v26 = vpop.f32.mrf.mxu1  ;;  %v6902_v45 = vperm.slane %v9349_v59, 0  ;;  %3764 = vmatpush.msrb.mxu0 %v3474_v3 }
 0x420   :  { %9346 = vst [vmem:[#allocation28_spill] sm:$0xff] %v6889_v42  ;;  %2214 = vmatmul.f32.gmra.mxu2 %v9347_v0  ;;  %2327 = vmatmul.f32.gmra.mxu3 %v9348_v4  ;;  %v2555_v0 = vadd.f32 %v6655_v1, %v6800_v28  ;;  %v9352_v28 = vld [vmem:[#allocation36_spill] sm:$0xff] }
 0x421   :  { %3765 = vmatpush.msrb.mxu0 %v3472_v63  ;;  %v3466_v63 = vld [vmem:[#allocation7 + $0x230] sm:$0xff] }
 0x422   :  { %3912 = vmatmul.f32.gmra.mxu1 %v8883_v43  ;;  %v6911_v43 = vperm.slane %v6318_v31, 3 }
 0x423   :  { %v1811_v11 = vpop.f32.mrf.mxu2  ;;  %v1924_v41 = vpop.f32.mrf.mxu3  ;;  %3766 = vmatpush.msrb.mxu0 %v3470_v37 }
 0x424   :  { %v1925_v4 = vadd.f32 %v1924_v41, %v1811_v11  ;;  %v2777_v1 = vadd.f32 %v6911_v43, %v2555_v0  ;;  %v8886_v11 = vmax.f32 %v6908_v50, 0.0  ;;  %v3049_v41 = vmul.f32 %v6691_v17, %v2911_v13  ;;  %v3468_v13 = vld [vmem:[#allocation7 + $0x240] sm:$0xff] }
 0x425   :  { %v2558_v0 = vadd.f32 %v6666_v60, %v6827_v24  ;;  %3767 = vmatpush.msrb.mxu0 %v3468_v13  ;;  %v3460_v13 = vld [vmem:[#allocation7 + $0x200] sm:$0xff] }
 0x426   :  { %v6914_v42 = vadd.f32 %v6902_v45, %v1925_v4  ;;  %v6931_v56 = vadd.f32 %v6701_v16, %v3049_v41  ;;  %v3464_v41 = vld [vmem:[#allocation7 + $0x220] sm:$0xff] }
 0x427   :  { %v6916_v36 = vpop.f32.mrf.mxu1  ;;  %3768 = vmatpush.msrb.mxu0 %v3466_v63 }
 0x428   :  { %9351 = vst [vmem:[#allocation94_spill] sm:$0xff] %v6914_v42  ;;  %2217 = vmatmul.f32.gmra.mxu2 %v9352_v28  ;;  %2330 = vmatmul.f32.gmra.mxu3 %v9353_v18  ;;  %v2915_v42 = vadd.f32 %v6681_v12, %v2777_v1  ;;  %v6928_v28 = vpop.f32.mrf.mxu0  ;;  %v2781_v1 = vadd.f32 %v6911_v43, %v2558_v0  ;;  %v8887_v60 = vmax.f32 %v6931_v56, 0.0 }
 0x429   :  { %3769 = vmatpush.msrb.mxu0 %v3464_v41 }
 0x42a   :  { %3915 = vmatmul.f32.gmra.mxu1 %v8886_v11  ;;  %v3053_v24 = vmul.f32 %v6691_v17, %v2915_v42  ;;  %v3408_v42 = vld [vmem:[#allocation7 + $0x60] sm:$0xff] }
 0x42b   :  { %v1814_v4 = vpop.f32.mrf.mxu2  ;;  %v1927_v3 = vpop.f32.mrf.mxu3  ;;  %3539 = vmatpush.msrb.mxu2 %v3408_v42  ;;  %v3438_v42 = vld [vmem:[#allocation7 + $0x150] sm:$0xff] }
 0x42c   :  { %v1928_v18 = vadd.f32 %v1927_v3, %v1814_v4  ;;  %v3462_v4 = vld [vmem:[#allocation7 + $0x210] sm:$0xff]  ;;  %v2561_v3 = vadd.f32 %v6678_v25, %v6850_v44 }
 0x42d   :  { %3770 = vmatpush.msrb.mxu0 %v3462_v4 }
 0x42e   :  { %v6934_v50 = vadd.f32 %v6902_v45, %v1928_v18  ;;  %v2785_v25 = vadd.f32 %v6911_v43, %v2561_v3  ;;  %v2564_v3 = vadd.f32 %v6697_v6, %v6874_v53  ;;  %v3406_v53 = vld [vmem:[#allocation7 + $0x50] sm:$0xff] }
 0x42f   :  { %v6936_v11 = vpop.f32.mrf.mxu1  ;;  %3771 = vmatpush.msrb.mxu0 %v3460_v13  ;;  %3540 = vmatpush.msrb.mxu2 %v3406_v53 }
 0x430   :  { %9354 = vst [vmem:[#allocation30_spill] sm:$0xff] %v6934_v50  ;;  %2220 = vmatmul.f32.gmra.mxu2 %v9212_v5  ;;  %2333 = vmatmul.f32.gmra.mxu3 %v9213_v30  ;;  %v2919_v5 = vadd.f32 %v6681_v12, %v2781_v1  ;;  %v6949_v30 = vadd.f32 %v6701_v16, %v3053_v24  ;;  %v3440_v50 = vld [vmem:[#allocation7 + $0x160] sm:$0xff]  ;;  %v6951_v63 = vpop.f32.mrf.mxu0 }
 0x431   :  { %3652 = vmatpush.msrb.mxu3 %v3440_v50  ;;  %v2923_v41 = vadd.f32 %v6681_v12, %v2785_v25 }
 0x432   :  { %3918 = vmatmul.f32.gmra.mxu1 %v8887_v60  ;;  %v8889_v1 = vmax.f32 %v6949_v30, 0.0  ;;  %v3057_v24 = vmul.f32 %v6691_v17, %v2919_v5 }
 0x433   :  { %v1817_v37 = vpop.f32.mrf.mxu2  ;;  %v1930_v18 = vpop.f32.mrf.mxu3  ;;  %v3061_v5 = vmul.f32 %v6691_v17, %v2923_v41  ;;  %3653 = vmatpush.msrb.mxu3 %v3438_v42 }
 0x434   :  { %v1931_v0 = vadd.f32 %v1930_v18, %v1817_v37  ;;  %v6969_v18 = vadd.f32 %v6701_v16, %v3057_v24  ;;  %v6986_v24 = vperm.slane %v6329_v33, 2 }
 0x436   :  { %v6954_v60 = vadd.f32 %v6902_v45, %v1931_v0  ;;  %9356 = vst [vmem:[#allocation32_spill] sm:$0xff] %v6969_v18  ;;  %v2789_v0 = vadd.f32 %v6911_v43, %v2564_v3  ;;  %v8888_v6 = vmax.f32 %v6969_v18, 0.0  ;;  %v6989_v43 = vadd.f32 %v6701_v16, %v3061_v5  ;;  %v7009_v5 = vld [vmem:[%s8660_s10] sm:$0xf] }
 0x437   :  { %v6957_v44 = vpop.f32.mrf.mxu1  ;;  %v7003_v3 = vperm.slane %v6358_v7, 3 }
 0x438   :  { %9355 = vst [vmem:[#allocation31_spill] sm:$0xff] %v6954_v60  ;;  %2223 = vmatmul.f32.gmra.mxu2 %v9216_v35  ;;  %2336 = vmatmul.f32.gmra.mxu3 %v9217_v48  ;;  %v6978_v13 = vpop.f32.mrf.mxu0 }
 0x439   :  { %9358 = vst [vmem:[#allocation34_spill] sm:$0xff] %v6989_v43 }
 0x43a   :  { %3921 = vmatmul.f32.gmra.mxu1 %v8889_v1 }
 0x43b   :  { %v1820_v4 = vpop.f32.mrf.mxu2  ;;  %v1933_v50 = vpop.f32.mrf.mxu3 }
 0x43c   :  { %v1934_v37 = vadd.f32 %v1933_v50, %v1820_v4  ;;  %v6997_v4 = vld [vmem:[%s8659_s9] sm:$0xf] }
 0x43d   :  { %v7000_v50 = vperm.slane %v6997_v4, 2 }
 0x43e   :  { %v6972_v35 = vadd.f32 %v6902_v45, %v1934_v37 }
 0x43f   :  { %v6974_v48 = vpop.f32.mrf.mxu1 }
 0x440   :  { %9357 = vst [vmem:[#allocation33_spill] sm:$0xff] %v6972_v35  ;;  %2226 = vmatmul.f32.gmra.mxu2 %v5805_v15  ;;  %2339 = vmatmul.f32.gmra.mxu3 %v5816_v40  ;;  %v2927_v15 = vadd.f32 %v6681_v12, %v2789_v0  ;;  %v2567_v40 = vadd.f32 %v6717_v32, %v6897_v19  ;;  %v7012_v32 = vperm.slane %v7009_v5, 2  ;;  %v8891_v0 = vmax.f32 %v6989_v43, 0.0 }
 0x442   :  { %3924 = vmatmul.f32.gmra.mxu1 %v8888_v6  ;;  %v2793_v53 = vadd.f32 %v7003_v3, %v2567_v40  ;;  %v7030_v6 = vpop.f32.mrf.mxu0 }
 0x443   :  { %v2179_v45 = vpop.f32.mrf.mxu2  ;;  %v2292_v25 = vpop.f32.mrf.mxu3 }
 0x444   :  { %v2293_v41 = vadd.f32 %v2292_v25, %v2179_v45  ;;  %v7022_v45 = vld [vmem:[%s8661_s11] sm:$0xf]  ;;  %v2931_v60 = vadd.f32 %v6681_v12, %v2793_v53 }
 0x445   :  { %v7025_v25 = vperm.slane %v7022_v45, 2  ;;  %v3436_v53 = vld [vmem:[#allocation7 + $0x140] sm:$0xff] }
 0x446   :  { %v2728_v37 = vadd.f32 %v6986_v24, %v2293_v41  ;;  %v3065_v41 = vmul.f32 %v6691_v17, %v2927_v15  ;;  %3654 = vmatpush.msrb.mxu3 %v3436_v53 }
 0x447   :  { %v7014_v19 = vpop.f32.mrf.mxu1 }
 0x448   :  { %v2866_v42 = vadd.f32 %v7000_v50, %v2728_v37  ;;  %2229 = vmatmul.f32.gmra.mxu2 %v5788_v20  ;;  %2342 = vmatmul.f32.gmra.mxu3 %v5797_v23  ;;  %v2570_v37 = vadd.f32 %v6735_v39, %v6928_v28  ;;  %v7042_v15 = vadd.f32 %v6701_v16, %v3065_v41 }
 0x44a   :  { %v3004_v40 = vmul.f32 %v7012_v32, %v2866_v42  ;;  %3927 = vmatmul.f32.gmra.mxu1 %v8891_v0  ;;  %v2797_v0 = vadd.f32 %v7003_v3, %v2570_v37  ;;  %v8893_v28 = vmax.f32 %v7042_v15, 0.0  ;;  %v2573_v37 = vadd.f32 %v6758_v2, %v6951_v63 }
 0x44b   :  { %v2182_v1 = vpop.f32.mrf.mxu2  ;;  %v2295_v35 = vpop.f32.mrf.mxu3 }
 0x44c   :  { %v7039_v20 = vadd.f32 %v7025_v25, %v3004_v40  ;;  %v2296_v23 = vadd.f32 %v2295_v35, %v2182_v1  ;;  %v3069_v1 = vmul.f32 %v6691_v17, %v2931_v60  ;;  %v3404_v35 = vld [vmem:[#allocation7 + $0x40] sm:$0xff]  ;;  %v7062_v60 = vpop.f32.mrf.mxu0 }
 0x44d   :  { %3541 = vmatpush.msrb.mxu2 %v3404_v35 }
 0x44e   :  { %v8894_v18 = vmax.f32 %v7039_v20, 0.0  ;;  %v2732_v42 = vadd.f32 %v6986_v24, %v2296_v23  ;;  %v7068_v35 = vadd.f32 %v6701_v16, %v3069_v1 }
 0x44f   :  { %v7047_v43 = vpop.f32.mrf.mxu1 }
 0x450   :  { %v2870_v39 = vadd.f32 %v7000_v50, %v2732_v42  ;;  %2232 = vmatmul.f32.gmra.mxu2 %v5809_v57  ;;  %2345 = vmatmul.f32.gmra.mxu3 %v5824_v9  ;;  %v2935_v57 = vadd.f32 %v6681_v12, %v2797_v0  ;;  %v8895_v63 = vmax.f32 %v7068_v35, 0.0 }
 0x451   :  { %3772 = vmatmul.f32.vlgmr.msrb.gmra.mxu0 %v8894_v18  ;;  %v2801_v18 = vadd.f32 %v7003_v3, %v2573_v37 }
 0x452   :  { %3930 = vmatmul.f32.gmra.mxu1 %v8893_v28  ;;  %v3008_v41 = vmul.f32 %v7012_v32, %v2870_v39  ;;  %v3073_v0 = vmul.f32 %v6691_v17, %v2935_v57 }
 0x453   :  { %v2185_v40 = vpop.f32.mrf.mxu2  ;;  %v2298_v9 = vpop.f32.mrf.mxu3 }
 0x454   :  { %v2299_v23 = vadd.f32 %v2298_v9, %v2185_v40  ;;  %v7065_v42 = vadd.f32 %v7025_v25, %v3008_v41  ;;  %v7086_v40 = vadd.f32 %v6701_v16, %v3073_v0  ;;  %v7094_v37 = vpop.f32.mrf.mxu0 }
 0x456   :  { %v2736_v28 = vadd.f32 %v6986_v24, %v2299_v23  ;;  %v8896_v39 = vmax.f32 %v7065_v42, 0.0 }
 0x457   :  { %v7072_v53 = vpop.f32.mrf.mxu1 }
 0x458   :  { %v2874_v2 = vadd.f32 %v7000_v50, %v2736_v28  ;;  %2235 = vmatmul.f32.gmra.mxu2 %v9238_v38  ;;  %2348 = vmatmul.f32.gmra.mxu3 %v9239_v10  ;;  %v2939_v28 = vadd.f32 %v6681_v12, %v2801_v18  ;;  %v2576_v38 = vadd.f32 %v6775_v27, %v6978_v13  ;;  %v8899_v27 = vmax.f32 %v7086_v40, 0.0  ;;  %v3402_v13 = vld [vmem:[#allocation7 + $0x30] sm:$0xff] }
 0x459   :  { %3775 = vmatmul.f32.gmra.mxu0 %v8896_v39  ;;  %3542 = vmatpush.msrb.mxu2 %v3402_v13 }
 0x45a   :  { %3933 = vmatmul.f32.gmra.mxu1 %v8895_v63  ;;  %v3012_v1 = vmul.f32 %v7012_v32, %v2874_v2  ;;  %v2805_v0 = vadd.f32 %v7003_v3, %v2576_v38  ;;  %v3077_v18 = vmul.f32 %v6691_v17, %v2939_v28 }
 0x45b   :  { %v2188_v41 = vpop.f32.mrf.mxu2  ;;  %v2301_v57 = vpop.f32.mrf.mxu3 }
 0x45c   :  { %v2302_v10 = vadd.f32 %v2301_v57, %v2188_v41  ;;  %v7092_v9 = vadd.f32 %v7025_v25, %v3012_v1  ;;  %v7114_v41 = vperm.slane %v6504_v52, 2  ;;  %v2943_v57 = vadd.f32 %v6681_v12, %v2805_v0 }
 0x45e   :  { %v2740_v23 = vadd.f32 %v6986_v24, %v2302_v10  ;;  %v8900_v2 = vmax.f32 %v7092_v9, 0.0  ;;  %v3434_v24 = vld [vmem:[#allocation7 + $0x130] sm:$0xff]  ;;  %v7121_v10 = vadd.f32 %v6701_v16, %v3077_v18 }
 0x45f   :  { %v7098_v63 = vpop.f32.mrf.mxu1  ;;  %3655 = vmatpush.msrb.mxu3 %v3434_v24  ;;  %v2474_v24 = vpop.f32.mrf.mxu0 }
 0x460   :  { %v2878_v39 = vadd.f32 %v7000_v50, %v2740_v23  ;;  %2238 = vmatmul.f32.gmra.mxu2 %v9252_v8  ;;  %2351 = vmatmul.f32.gmra.mxu3 %v9253_v22  ;;  %v2579_v8 = vadd.f32 %v6794_v21, %v7030_v6  ;;  %v8898_v18 = vmax.f32 %v7121_v10, 0.0 }
 0x461   :  { %3778 = vmatmul.f32.gmra.mxu0 %v8900_v2 }
 0x462   :  { %3936 = vmatmul.f32.gmra.mxu1 %v8899_v27  ;;  %v3016_v3 = vmul.f32 %v7012_v32, %v2878_v39  ;;  %v7124_v39 = vperm.slane %v6406_v49, 3 }
 0x463   :  { %v2191_v22 = vpop.f32.mrf.mxu2  ;;  %v2304_v1 = vpop.f32.mrf.mxu3 }
 0x464   :  { %v2305_v28 = vadd.f32 %v2304_v1, %v2191_v22  ;;  %v7118_v38 = vadd.f32 %v7025_v25, %v3016_v3  ;;  %v2809_v6 = vadd.f32 %v7124_v39, %v2579_v8  ;;  %v3081_v3 = vmul.f32 %v6691_v17, %v2943_v57 }
 0x466   :  { %v2744_v23 = vadd.f32 %v7114_v41, %v2305_v28  ;;  %v8897_v21 = vmax.f32 %v7118_v38, 0.0  ;;  %v2947_v22 = vadd.f32 %v6681_v12, %v2809_v6  ;;  %v7148_v57 = vadd.f32 %v6701_v16, %v3081_v3  ;;  %v3400_v3 = vld [vmem:[#allocation7 + $0x20] sm:$0xff] }
 0x467   :  { %v7129_v13 = vpop.f32.mrf.mxu1  ;;  %3543 = vmatpush.msrb.mxu2 %v3400_v3 }
 0x468   :  { %v2882_v0 = vadd.f32 %v7000_v50, %v2744_v23  ;;  %2241 = vmatmul.f32.gmra.mxu2 %v9261_v62  ;;  %2354 = vmatmul.f32.gmra.mxu3 %v9262_v47  ;;  %v2582_v62 = vadd.f32 %v6813_v61, %v7062_v60  ;;  %9360 = vst [vmem:[#allocation38_spill] sm:$0xff] %v7148_v57  ;;  %v9361_v61 = vld [vmem:[#allocation64_spill] sm:$0xff]  ;;  %v9362_v60 = vld [vmem:[#allocation65_spill] sm:$0xff] }
 0x469   :  { %3781 = vmatmul.f32.gmra.mxu0 %v8897_v21  ;;  %v3085_v6 = vmul.f32 %v6691_v17, %v2947_v22 }
 0x46a   :  { %3939 = vmatmul.f32.gmra.mxu1 %v8898_v18  ;;  %v3020_v8 = vmul.f32 %v7012_v32, %v2882_v0  ;;  %v2813_v0 = vadd.f32 %v7124_v39, %v2582_v62 }
 0x46b   :  { %v2194_v1 = vpop.f32.mrf.mxu2  ;;  %v2307_v28 = vpop.f32.mrf.mxu3 }
 0x46c   :  { %v2308_v47 = vadd.f32 %v2307_v28, %v2194_v1  ;;  %v7145_v23 = vadd.f32 %v7025_v25, %v3020_v8  ;;  %v8903_v8 = vmax.f32 %v7148_v57, 0.0  ;;  %v3432_v1 = vld [vmem:[#allocation7 + $0x120] sm:$0xff]  ;;  %v2477_v28 = vpop.f32.mrf.mxu0 }
 0x46d   :  { %3656 = vmatpush.msrb.mxu3 %v3432_v1 }
 0x46e   :  { %9359 = vst [vmem:[#allocation35_spill] sm:$0xff] %v7145_v23  ;;  %v2748_v21 = vadd.f32 %v7114_v41, %v2308_v47  ;;  %v8901_v18 = vmax.f32 %v7145_v23, 0.0  ;;  %v7166_v47 = vadd.f32 %v6701_v16, %v3085_v6  ;;  %v9364_v23 = vld [vmem:[#allocation68_spill] sm:$0xff] }
 0x46f   :  { %v7152_v27 = vpop.f32.mrf.mxu1 }
 0x470   :  { %v2886_v2 = vadd.f32 %v7000_v50, %v2748_v21  ;;  %2244 = vmatmul.f32.gmra.mxu2 %v9361_v61  ;;  %2357 = vmatmul.f32.gmra.mxu3 %v9362_v60  ;;  %9363 = vst [vmem:[#allocation40_spill] sm:$0xff] %v7166_v47  ;;  %v2951_v61 = vadd.f32 %v6681_v12, %v2813_v0  ;;  %v9365_v0 = vld [vmem:[#allocation69_spill] sm:$0xff] }
 0x471   :  { %3784 = vmatmul.f32.gmra.mxu0 %v8901_v18  ;;  %v2585_v60 = vadd.f32 %v6836_v51, %v7094_v37  ;;  %v8906_v51 = vmax.f32 %v7166_v47, 0.0 }
 0x472   :  { %3942 = vmatmul.f32.gmra.mxu1 %v8903_v8  ;;  %v3024_v22 = vmul.f32 %v7012_v32, %v2886_v2  ;;  %v3089_v37 = vmul.f32 %v6691_v17, %v2951_v61 }
 0x473   :  { %v2197_v21 = vpop.f32.mrf.mxu2  ;;  %v2310_v62 = vpop.f32.mrf.mxu3  ;;  %v2817_v1 = vadd.f32 %v7124_v39, %v2585_v60 }
 0x474   :  { %v2311_v18 = vadd.f32 %v2310_v62, %v2197_v21  ;;  %v7172_v3 = vadd.f32 %v7025_v25, %v3024_v22  ;;  %v2588_v22 = vadd.f32 %v6855_v29, %v2474_v24  ;;  %v2480_v62 = vpop.f32.mrf.mxu0  ;;  %v7195_v61 = vadd.f32 %v6701_v16, %v3089_v37  ;;  %v9368_v24 = vld [vmem:[#allocation47_spill] sm:$0xff]  ;;  %v3398_v37 = vld [vmem:[#allocation7 + $0x10] sm:$0xff] }
 0x475   :  { %3544 = vmatpush.msrb.mxu2 %v3398_v37 }
 0x476   :  { %v2752_v57 = vadd.f32 %v7114_v41, %v2311_v18  ;;  %v8905_v8 = vmax.f32 %v7172_v3, 0.0  ;;  %9367 = vst [vmem:[#allocation36_spill] sm:$0xff] %v7195_v61 }
 0x477   :  { %v7176_v2 = vpop.f32.mrf.mxu1 }
 0x478   :  { %v2890_v6 = vadd.f32 %v7000_v50, %v2752_v57  ;;  %2247 = vmatmul.f32.gmra.mxu2 %v9364_v23  ;;  %2360 = vmatmul.f32.gmra.mxu3 %v9365_v0  ;;  %v2955_v23 = vadd.f32 %v6681_v12, %v2817_v1  ;;  %v9369_v1 = vld [vmem:[#allocation50_spill] sm:$0xff] }
 0x479   :  { %3787 = vmatmul.f32.gmra.mxu0 %v8905_v8 }
 0x47a   :  { %3945 = vmatmul.f32.gmra.mxu1 %v8906_v51  ;;  %v3028_v18 = vmul.f32 %v7012_v32, %v2890_v6  ;;  %v2821_v6 = vadd.f32 %v7124_v39, %v2588_v22 }
 0x47b   :  { %v2200_v21 = vpop.f32.mrf.mxu2  ;;  %v2313_v57 = vpop.f32.mrf.mxu3 }
 0x47c   :  { %v2314_v60 = vadd.f32 %v2313_v57, %v2200_v21  ;;  %v7192_v0 = vadd.f32 %v7025_v25, %v3028_v18  ;;  %v8908_v18 = vmax.f32 %v7195_v61, 0.0  ;;  %v3093_v21 = vmul.f32 %v6691_v17, %v2955_v23 }
 0x47d   :  { %v2591_v23 = vadd.f32 %v6872_v54, %v2477_v28 }
 0x47e   :  { %9366 = vst [vmem:[#allocation41_spill] sm:$0xff] %v7192_v0  ;;  %v2756_v8 = vadd.f32 %v7114_v41, %v2314_v60  ;;  %v8909_v51 = vmax.f32 %v7192_v0, 0.0  ;;  %v3430_v41 = vld [vmem:[#allocation7 + $0x110] sm:$0xff]  ;;  %v7214_v60 = vperm.slane %v9276_v58, 2  ;;  %v7221_v37 = vadd.f32 %v6701_v16, %v3093_v21  ;;  %v9373_v21 = vld [vmem:[#allocation45_spill] sm:$0xff] }
 0x47f   :  { %v7200_v47 = vpop.f32.mrf.mxu1  ;;  %3657 = vmatpush.msrb.mxu3 %v3430_v41  ;;  %v9376_v0 = vld [vmem:[#allocation48_spill] sm:$0xff] }
 0x480   :  { %v2894_v29 = vadd.f32 %v7000_v50, %v2756_v8  ;;  %2250 = vmatmul.f32.gmra.mxu2 %v9368_v24  ;;  %2363 = vmatmul.f32.gmra.mxu3 %v9369_v1  ;;  %v2959_v8 = vadd.f32 %v6681_v12, %v2821_v6  ;;  %9371 = vst [vmem:[#allocation64_spill] sm:$0xff] %v7221_v37 }
 0x481   :  { %3790 = vmatmul.f32.gmra.mxu0 %v8909_v51 }
 0x482   :  { %3948 = vmatmul.f32.gmra.mxu1 %v8908_v18  ;;  %v3032_v39 = vmul.f32 %v7012_v32, %v2894_v29  ;;  %v7224_v18 = vperm.slane %v9333_v14, 3  ;;  %v2483_v29 = vpop.f32.mrf.mxu0  ;;  %v3097_v58 = vmul.f32 %v6691_v17, %v2959_v8 }
 0x483   :  { %v2203_v22 = vpop.f32.mrf.mxu2  ;;  %v2316_v57 = vpop.f32.mrf.mxu3 }
 0x484   :  { %v2317_v24 = vadd.f32 %v2316_v57, %v2203_v22  ;;  %v7218_v1 = vadd.f32 %v7025_v25, %v3032_v39  ;;  %v2825_v51 = vadd.f32 %v7224_v18, %v2591_v23  ;;  %v9372_v39 = vld [vmem:[#allocation44_spill] sm:$0xff]  ;;  %v8913_v22 = vmax.f32 %v7221_v37, 0.0 }
 0x486   :  { %9370 = vst [vmem:[#allocation37_spill] sm:$0xff] %v7218_v1  ;;  %v2760_v6 = vadd.f32 %v7214_v60, %v2317_v24  ;;  %v8911_v41 = vmax.f32 %v7218_v1, 0.0  ;;  %v7242_v24 = vadd.f32 %v6701_v16, %v3097_v58  ;;  %v9377_v58 = vld [vmem:[#allocation51_spill] sm:$0xff] }
 0x487   :  { %v7231_v28 = vpop.f32.mrf.mxu1 }
 0x488   :  { %v2898_v54 = vadd.f32 %v7000_v50, %v2760_v6  ;;  %2253 = vmatmul.f32.gmra.mxu2 %v9372_v39  ;;  %2366 = vmatmul.f32.gmra.mxu3 %v9373_v21  ;;  %9374 = vst [vmem:[#allocation65_spill] sm:$0xff] %v7242_v24  ;;  %v2963_v6 = vadd.f32 %v6681_v12, %v2825_v51  ;;  %v8917_v51 = vmax.f32 %v7242_v24, 0.0 }
 0x489   :  { %3793 = vmatmul.f32.gmra.mxu0 %v8911_v41  ;;  %v2594_v39 = vadd.f32 %v6891_v26, %v2480_v62  ;;  %v3396_v62 = vld [vmem:[#allocation7] sm:$0xff] }
 0x48a   :  { %3951 = vmatmul.f32.gmra.mxu1 %v8913_v22  ;;  %v3036_v8 = vmul.f32 %v7012_v32, %v2898_v54  ;;  %v2486_v54 = vpop.f32.mrf.mxu0  ;;  %v3101_v26 = vmul.f32 %v6691_v17, %v2963_v6  ;;  %3545 = vmatpush.msrb.mxu2 %v3396_v62 }
 0x48b   :  { %v2206_v57 = vpop.f32.mrf.mxu2  ;;  %v2319_v23 = vpop.f32.mrf.mxu3  ;;  %v2829_v22 = vadd.f32 %v7224_v18, %v2594_v39 }
 0x48c   :  { %v2320_v21 = vadd.f32 %v2319_v23, %v2206_v57  ;;  %v7247_v61 = vadd.f32 %v7025_v25, %v3036_v8  ;;  %v3428_v8 = vld [vmem:[#allocation7 + $0x100] sm:$0xff]  ;;  %v7270_v62 = vadd.f32 %v6701_v16, %v3101_v26 }
 0x48d   :  { %3658 = vmatpush.msrb.mxu3 %v3428_v8  ;;  %v2967_v6 = vadd.f32 %v6681_v12, %v2829_v22 }
 0x48e   :  { %9375 = vst [vmem:[#allocation68_spill] sm:$0xff] %v7247_v61  ;;  %v2764_v41 = vadd.f32 %v7214_v60, %v2320_v21  ;;  %v8916_v37 = vmax.f32 %v7247_v61, 0.0  ;;  %v8920_v22 = vmax.f32 %v7270_v62, 0.0 }
 0x48f   :  { %v7259_v57 = vpop.f32.mrf.mxu1  ;;  %9380 = vst [vmem:[#allocation50_spill] sm:$0xff] %v7270_v62 }
 0x490   :  { %v2902_v1 = vadd.f32 %v7000_v50, %v2764_v41  ;;  %2256 = vmatmul.f32.gmra.mxu2 %v9376_v0  ;;  %2369 = vmatmul.f32.gmra.mxu3 %v9377_v58  ;;  %9378 = vst [vmem:[#allocation69_spill] sm:$0xff] %v7259_v57  ;;  %v2597_v0 = vadd.f32 %v6916_v36, %v2483_v29  ;;  %v9381_v36 = vld [vmem:[#allocation52_spill] sm:$0xff]  ;;  %v9382_v29 = vld [vmem:[#allocation53_spill] sm:$0xff] }
 0x491   :  { %3796 = vmatmul.f32.gmra.mxu0 %v8916_v37 }
 0x492   :  { %3954 = vmatmul.f32.gmra.mxu1 %v8917_v51  ;;  %v3040_v41 = vmul.f32 %v7012_v32, %v2902_v1  ;;  %v2833_v1 = vadd.f32 %v7224_v18, %v2597_v0  ;;  %v2489_v26 = vpop.f32.mrf.mxu0 }
 0x493   :  { %v2209_v23 = vpop.f32.mrf.mxu2  ;;  %v2322_v39 = vpop.f32.mrf.mxu3 }
 0x494   :  { %v2323_v21 = vadd.f32 %v2322_v39, %v2209_v23  ;;  %v7267_v58 = vadd.f32 %v7025_v25, %v3040_v41  ;;  %v3105_v41 = vmul.f32 %v6691_v17, %v2967_v6  ;;  %v2971_v0 = vadd.f32 %v6681_v12, %v2833_v1 }
 0x496   :  { %9379 = vst [vmem:[#allocation47_spill] sm:$0xff] %v7267_v58  ;;  %v2768_v37 = vadd.f32 %v7214_v60, %v2323_v21  ;;  %v8918_v51 = vmax.f32 %v7267_v58, 0.0  ;;  %v2600_v21 = vadd.f32 %v6936_v11, %v2486_v54  ;;  %v9386_v11 = vld [vmem:[#allocation56_spill] sm:$0xff]  ;;  %v9387_v54 = vld [vmem:[#allocation59_spill] sm:$0xff] }
 0x498   :  { %v2906_v8 = vadd.f32 %v7000_v50, %v2768_v37  ;;  %2259 = vmatmul.f32.gmra.mxu2 %v9381_v36  ;;  %2372 = vmatmul.f32.gmra.mxu3 %v9382_v29  ;;  %v7287_v36 = vpop.f32.mrf.mxu1  ;;  %v2837_v1 = vadd.f32 %v7224_v18, %v2600_v21 }
 0x499   :  { %3799 = vmatmul.f32.gmra.mxu0 %v8918_v51  ;;  %9383 = vst [vmem:[#allocation44_spill] sm:$0xff] %v7287_v36  ;;  %v7293_v51 = vadd.f32 %v6701_v16, %v3105_v41  ;;  %v3519_v41 = vld [vmem:[#allocation7 + $0x3d8] sm:$0xff] }
 0x49a   :  { %3957 = vmatmul.f32.gmra.mxu1 %v8920_v22  ;;  %v3044_v23 = vmul.f32 %v7012_v32, %v2906_v8  ;;  %v3109_v8 = vmul.f32 %v6691_v17, %v2971_v0 }
 0x49b   :  { %v2212_v37 = vpop.f32.mrf.mxu2  ;;  %v2325_v39 = vpop.f32.mrf.mxu3  ;;  %9385 = vst [vmem:[#allocation48_spill] sm:$0xff] %v7293_v51 }
 0x49c   :  { %v2326_v29 = vadd.f32 %v2325_v39, %v2212_v37  ;;  %v7290_v6 = vadd.f32 %v7025_v25, %v3044_v23  ;;  %v8922_v23 = vmax.f32 %v7293_v51, 0.0  ;;  %v3523_v37 = vld [vmem:[#allocation7 + $0x3f8] sm:$0xff]  ;;  %v3521_v39 = vld [vmem:[#allocation7 + $0x3e8] sm:$0xff]  ;;  %v7320_v51 = vperm.slane %v9349_v59, 3 }
 0x49d   :  { %4321 = vmatpush.msra.mxu1 %v3523_v37  ;;  %v2603_v37 = vadd.f32 %v6957_v44, %v2489_v26  ;;  %v9391_v26 = vld [vmem:[#allocation54_spill] sm:$0xff] }
 0x49e   :  { %9384 = vst [vmem:[#allocation45_spill] sm:$0xff] %v7290_v6  ;;  %v2772_v62 = vadd.f32 %v7214_v60, %v2326_v29  ;;  %v8923_v22 = vmax.f32 %v7290_v6, 0.0  ;;  %v3427_v60 = vld [vmem:[#allocation7 + $0xf8] sm:$0xff]  ;;  %v7309_v29 = vperm.slane %v6318_v31, 2  ;;  %v7333_v6 = vperm.slane %v6329_v33, 1 }
 0x49f   :  { %3982 = vmatpush.msra.mxu2 %v3427_v60  ;;  %4322 = vmatpush.msra.mxu1 %v3521_v39  ;;  %v3517_v60 = vld [vmem:[#allocation7 + $0x3c8] sm:$0xff] }
 0x4a0   :  { %v2910_v58 = vadd.f32 %v7000_v50, %v2772_v62  ;;  %2262 = vmatmul.f32.gmra.mxu2 %v9386_v11  ;;  %2375 = vmatmul.f32.gmra.mxu3 %v9387_v54  ;;  %v3459_v62 = vld [vmem:[#allocation7 + $0x1f8] sm:$0xff]  ;;  %v7312_v11 = vadd.f32 %v6701_v16, %v3109_v8  ;;  %v2975_v54 = vadd.f32 %v6681_v12, %v2837_v1  ;;  %v7322_v31 = vpop.f32.mrf.mxu1 }
 0x4a1   :  { %3802 = vmatmul.f32.gmra.mxu0 %v8923_v22  ;;  %4095 = vmatpush.msra.mxu3 %v3459_v62  ;;  %v2492_v22 = vpop.f32.mrf.mxu0  ;;  %9390 = vst [vmem:[#allocation53_spill] sm:$0xff] %v7322_v31  ;;  %v2841_v1 = vadd.f32 %v7320_v51, %v2603_v37  ;;  %v3511_v37 = vld [vmem:[#allocation7 + $0x398] sm:$0xff] }
 0x4a2   :  { %3960 = vmatmul.f32.gmra.mxu1 %v8922_v23  ;;  %v3048_v18 = vmul.f32 %v7012_v32, %v2910_v58  ;;  %9388 = vst [vmem:[#allocation51_spill] sm:$0xff] %v7312_v11  ;;  %v3113_v62 = vmul.f32 %v6691_v17, %v2975_v54  ;;  %v2606_v54 = vadd.f32 %v6974_v48, %v2492_v22 }
 0x4a3   :  { %v2215_v0 = vpop.f32.mrf.mxu2  ;;  %v2328_v21 = vpop.f32.mrf.mxu3  ;;  %4323 = vmatpush.msra.mxu1 %v3519_v41  ;;  %v8928_v41 = vmax.f32 %v7312_v11, 0.0  ;;  %v2979_v33 = vadd.f32 %v6681_v12, %v2841_v1 }
 0x4a4   :  { %v2329_v23 = vadd.f32 %v2328_v21, %v2215_v0  ;;  %v7317_v58 = vadd.f32 %v7025_v25, %v3048_v18  ;;  %v9392_v18 = vld [vmem:[#allocation55_spill] sm:$0xff]  ;;  %v3515_v0 = vld [vmem:[#allocation7 + $0x3b8] sm:$0xff]  ;;  %v2845_v1 = vadd.f32 %v7320_v51, %v2606_v54 }
 0x4a5   :  { %4324 = vmatpush.msra.mxu1 %v3517_v60  ;;  %v3513_v21 = vld [vmem:[#allocation7 + $0x3a8] sm:$0xff]  ;;  %v3491_v60 = vld [vmem:[#allocation7 + $0x2f8] sm:$0xff] }
 0x4a6   :  { %9389 = vst [vmem:[#allocation52_spill] sm:$0xff] %v7317_v58  ;;  %v2776_v8 = vadd.f32 %v7309_v29, %v2329_v23  ;;  %v8927_v39 = vmax.f32 %v7317_v58, 0.0  ;;  %4208 = vmatpush.msra.mxu0 %v3491_v60  ;;  %v3507_v60 = vld [vmem:[#allocation7 + $0x378] sm:$0xff]  ;;  %v3425_v54 = vld [vmem:[#allocation7 + $0xe8] sm:$0xff] }
 0x4a7   :  { %4325 = vmatpush.msra.mxu1 %v3515_v0  ;;  %3983 = vmatpush.msra.mxu2 %v3425_v54  ;;  %v3457_v58 = vld [vmem:[#allocation7 + $0x1e8] sm:$0xff] }
 0x4a8   :  { %v2914_v44 = vadd.f32 %v7000_v50, %v2776_v8  ;;  %2265 = vmatmul.f32.gmra.mxu2 %v9391_v26  ;;  %2378 = vmatmul.f32.gmra.mxu3 %v9392_v18  ;;  %v9393_v8 = vld [vmem:[#allocation70_spill] sm:$0xff]  ;;  %v9394_v26 = vld [vmem:[#allocation71_spill] sm:$0xff] }
 0x4a9   :  { %3805 = vmatmul.f32.gmra.mxu0 %v8927_v39  ;;  %v2067_v18 = vadd.f32 %v9394_v26, %v9393_v8  ;;  %4326 = vmatpush.msra.mxu1 %v3513_v21  ;;  %v7352_v8 = vperm.slane %v6997_v4, 0  ;;  %v9398_v21 = vld [vmem:[#allocation60_spill] sm:$0xff]  ;;  %v3117_v4 = vmul.f32 %v6691_v17, %v2979_v33  ;;  %v3501_v54 = vld [vmem:[#allocation7 + $0x348] sm:$0xff] }
 0x4aa   :  { %3963 = vmatmul.f32.gmra.mxu1 %v8928_v41  ;;  %v3052_v23 = vmul.f32 %v7012_v32, %v2914_v44  ;;  %v7348_v41 = vadd.f32 %v6701_v16, %v3113_v62  ;;  %v3509_v44 = vld [vmem:[#allocation7 + $0x388] sm:$0xff]  ;;  %v9400_v26 = vld [vmem:[#allocation96_spill] sm:$0xff]  ;;  %4096 = vmatpush.msra.mxu3 %v3457_v58 }
 0x4ab   :  { %v2218_v24 = vpop.f32.mrf.mxu2  ;;  %v2331_v31 = vpop.f32.mrf.mxu3  ;;  %v2727_v11 = vadd.f32 %v7333_v6, %v2067_v18  ;;  %4327 = vmatpush.msra.mxu1 %v3511_v37 }
 0x4ac   :  { %v2332_v39 = vadd.f32 %v2331_v31, %v2218_v24  ;;  %v7345_v0 = vadd.f32 %v7025_v25, %v3052_v23  ;;  %9396 = vst [vmem:[#allocation59_spill] sm:$0xff] %v7348_v41  ;;  %v2495_v24 = vpop.f32.mrf.mxu0  ;;  %v7357_v31 = vpop.f32.mrf.mxu1  ;;  %v9399_v23 = vld [vmem:[#allocation61_spill] sm:$0xff]  ;;  %v8934_v37 = vmax.f32 %v7348_v41, 0.0 }
 0x4ad   :  { %4328 = vmatpush.msra.mxu1 %v3509_v44  ;;  %9397 = vst [vmem:[#allocation54_spill] sm:$0xff] %v7357_v31  ;;  %v2865_v18 = vadd.f32 %v9400_v26, %v2727_v11  ;;  %v9401_v44 = vld [vmem:[#allocation100_spill] sm:$0xff]  ;;  %v2983_v11 = vadd.f32 %v6681_v12, %v2845_v1  ;;  %v7389_v1 = vperm.slane %v7022_v45, 0  ;;  %v3497_v45 = vld [vmem:[#allocation7 + $0x328] sm:$0xff] }
 0x4ae   :  { %9395 = vst [vmem:[#allocation56_spill] sm:$0xff] %v7345_v0  ;;  %v2780_v48 = vadd.f32 %v7309_v29, %v2332_v39  ;;  %v8932_v22 = vmax.f32 %v7345_v0, 0.0  ;;  %v3505_v39 = vld [vmem:[#allocation7 + $0x368] sm:$0xff]  ;;  %v9402_v0 = vld [vmem:[#allocation72_spill] sm:$0xff] }
 0x4af   :  { %4329 = vmatpush.msra.mxu1 %v3507_v60  ;;  %v3121_v58 = vmul.f32 %v6691_v17, %v2983_v11 }
 0x4b0   :  { %v2918_v62 = vadd.f32 %v7000_v50, %v2780_v48  ;;  %2268 = vmatmul.f32.gmra.mxu2 %v9398_v21  ;;  %2381 = vmatmul.f32.gmra.mxu3 %v9399_v23  ;;  %v2864_v48 = vadd.f32 %v7352_v8, %v9401_v44  ;;  %v7370_v21 = vperm.slane %v7009_v5, 0  ;;  %v3503_v23 = vld [vmem:[#allocation7 + $0x358] sm:$0xff]  ;;  %v2609_v5 = vadd.f32 %v7014_v19, %v2495_v24 }
 0x4b1   :  { %3808 = vmatmul.f32.gmra.mxu0 %v8932_v22  ;;  %v9403_v22 = vld [vmem:[#allocation73_spill] sm:$0xff]  ;;  %4330 = vmatpush.msra.mxu1 %v3505_v39 }
 0x4b2   :  { %3966 = vmatmul.f32.gmra.mxu1 %v8934_v37  ;;  %v3056_v33 = vmul.f32 %v7012_v32, %v2918_v62  ;;  %v2070_v31 = vadd.f32 %v9403_v22, %v9402_v0  ;;  %v7383_v62 = vadd.f32 %v6701_v16, %v3117_v4  ;;  %v9406_v37 = vld [vmem:[#allocation98_spill] sm:$0xff]  ;;  %v3002_v22 = vmul.f32 %v7370_v21, %v2864_v48 }
 0x4b3   :  { %v2221_v60 = vpop.f32.mrf.mxu2  ;;  %v2334_v36 = vpop.f32.mrf.mxu3  ;;  %v3003_v61 = vmul.f32 %v9406_v37, %v2865_v18  ;;  %4331 = vmatpush.msra.mxu1 %v3503_v23  ;;  %v2849_v24 = vadd.f32 %v7320_v51, %v2609_v5  ;;  %v3499_v18 = vld [vmem:[#allocation7 + $0x338] sm:$0xff] }
 0x4b4   :  { %v2335_v44 = vadd.f32 %v2334_v36, %v2221_v60  ;;  %v7380_v41 = vadd.f32 %v7025_v25, %v3056_v33  ;;  %9405 = vst [vmem:[#allocation70_spill] sm:$0xff] %v7383_v62  ;;  %v2731_v0 = vadd.f32 %v7333_v6, %v2070_v31  ;;  %v9407_v31 = vld [vmem:[#allocation67_spill] sm:$0xff]  ;;  %v8938_v39 = vmax.f32 %v7383_v62, 0.0  ;;  %v2498_v48 = vpop.f32.mrf.mxu0 }
 0x4b5   :  { %4332 = vmatpush.msra.mxu1 %v3501_v54  ;;  %v9408_v33 = vld [vmem:[#allocation99_spill] sm:$0xff]  ;;  %v7406_v5 = vadd.f32 %v7389_v1, %v3002_v22  ;;  %v7410_v54 = vpop.f32.mrf.mxu1  ;;  %v7418_v22 = vadd.f32 %v6701_v16, %v3121_v58 }
 0x4b6   :  { %9404 = vst [vmem:[#allocation55_spill] sm:$0xff] %v7380_v41  ;;  %v2784_v19 = vadd.f32 %v7309_v29, %v2335_v44  ;;  %v8936_v36 = vmax.f32 %v7380_v41, 0.0  ;;  %v7402_v23 = vadd.f32 %v9408_v33, %v3003_v61  ;;  %v2869_v11 = vadd.f32 %v9400_v26, %v2731_v0  ;;  %v3489_v60 = vld [vmem:[#allocation7 + $0x2e8] sm:$0xff]  ;;  %v9411_v61 = vld [vmem:[#allocation74_spill] sm:$0xff] }
 0x4b7   :  { %4333 = vmatpush.msra.mxu1 %v3499_v18  ;;  %9410 = vst [vmem:[#allocation71_spill] sm:$0xff] %v7410_v54  ;;  %4209 = vmatpush.msra.mxu0 %v3489_v60  ;;  %v2612_v54 = vadd.f32 %v7047_v43, %v2498_v48  ;;  %v8950_v58 = vmax.f32 %v7406_v5, 0.0 }
 0x4b8   :  { %v2922_v4 = vadd.f32 %v7000_v50, %v2784_v19  ;;  %2271 = vmatmul.f32.gmra.mxu2 %v9296_v46  ;;  %2384 = vmatmul.f32.gmra.mxu3 %v9407_v31  ;;  %v9409_v46 = vld [vmem:[#allocation106_spill] sm:$0xff]  ;;  %v3495_v31 = vld [vmem:[#allocation7 + $0x318] sm:$0xff]  ;;  %v8946_v60 = vmax.f32 %v7402_v23, 0.0  ;;  %v3007_v62 = vmul.f32 %v9406_v37, %v2869_v11  ;;  %v8941_v11 = vmax.f32 %v7418_v22, 0.0 }
 0x4b9   :  { %3811 = vmatmul.f32.gmra.mxu0 %v8936_v36  ;;  %v2868_v44 = vadd.f32 %v7352_v8, %v9409_v46  ;;  %v9412_v36 = vld [vmem:[#allocation75_spill] sm:$0xff]  ;;  %4334 = vmatpush.msra.mxu1 %v3497_v45  ;;  %v2987_v46 = vadd.f32 %v6681_v12, %v2849_v24 }
 0x4ba   :  { %3969 = vmatmul.f32.gmra.mxu1 %v8938_v39  ;;  %v3060_v19 = vmul.f32 %v7012_v32, %v2922_v4  ;;  %v2073_v0 = vadd.f32 %v9412_v36, %v9411_v61  ;;  %v3493_v4 = vld [vmem:[#allocation7 + $0x308] sm:$0xff] }
 0x4bb   :  { %v2224_v18 = vpop.f32.mrf.mxu2  ;;  %v2337_v41 = vpop.f32.mrf.mxu3  ;;  %4335 = vmatpush.msra.mxu1 %v3495_v31  ;;  %v3006_v43 = vmul.f32 %v7370_v21, %v2868_v44  ;;  %v3455_v44 = vld [vmem:[#allocation7 + $0x1d8] sm:$0xff] }
 0x4bc   :  { %v2338_v57 = vadd.f32 %v2337_v41, %v2224_v18  ;;  %v7423_v39 = vadd.f32 %v7025_v25, %v3060_v19  ;;  %v2735_v36 = vadd.f32 %v7333_v6, %v2073_v0  ;;  %v2853_v41 = vadd.f32 %v7320_v51, %v2612_v54  ;;  %v9413_v54 = vld [vmem:[#allocation112_spill] sm:$0xff]  ;;  %4097 = vmatpush.msra.mxu3 %v3455_v44 }
 0x4bd   :  { %4336 = vmatpush.msra.mxu1 %v3493_v4  ;;  %v3125_v19 = vmul.f32 %v6691_v17, %v2987_v46  ;;  %v2872_v31 = vadd.f32 %v7352_v8, %v9413_v54  ;;  %v7451_v61 = vadd.f32 %v7389_v1, %v3006_v43  ;;  %v9414_v18 = vld [vmem:[#allocation76_spill] sm:$0xff]  ;;  %v9415_v46 = vld [vmem:[#allocation77_spill] sm:$0xff] }
 0x4be   :  { %v2788_v45 = vadd.f32 %v7309_v29, %v2338_v57  ;;  %v8940_v24 = vmax.f32 %v7423_v39, 0.0  ;;  %v7443_v57 = vadd.f32 %v9408_v33, %v3007_v62  ;;  %v2873_v51 = vadd.f32 %v9400_v26, %v2735_v36  ;;  %v3423_v29 = vld [vmem:[#allocation7 + $0xd8] sm:$0xff] }
 0x4bf   :  { %3984 = vmatpush.msra.mxu2 %v3423_v29  ;;  %v2076_v62 = vadd.f32 %v9415_v46, %v9414_v18  ;;  %v7457_v36 = vperm.slane %v6358_v7, 2  ;;  %v2991_v54 = vadd.f32 %v6681_v12, %v2853_v41  ;;  %v8944_v44 = vmax.f32 %v7451_v61, 0.0 }
 0x4c0   :  { %v2926_v48 = vadd.f32 %v7000_v50, %v2788_v45  ;;  %3546 = vmatmul.f32.vlgmr.msrb.gmra.mxu2 %v8950_v58  ;;  %3659 = vmatmul.f32.vlgmr.msrb.gmra.mxu3 %v8946_v60  ;;  %v8943_v29 = vmax.f32 %v7443_v57, 0.0  ;;  %v3011_v18 = vmul.f32 %v9406_v37, %v2873_v51  ;;  %v3010_v41 = vmul.f32 %v7370_v21, %v2872_v31  ;;  %v9429_v58 = vld [vmem:[#allocation81_spill] sm:$0xff] }
 0x4c1   :  { %3814 = vmatmul.f32.gmra.mxu0 %v8940_v24  ;;  %v7460_v24 = vpop.f32.mrf.mxu1  ;;  %v2739_v46 = vadd.f32 %v7333_v6, %v2076_v62  ;;  %v3129_v6 = vmul.f32 %v6691_v17, %v2991_v54  ;;  %v7489_v31 = vperm.slane %v6504_v52, 1  ;;  %v3487_v62 = vld [vmem:[#allocation7 + $0x2d8] sm:$0xff] }
 0x4c2   :  { %3972 = vmatmul.f32.gmra.mxu1 %v8941_v11  ;;  %v3064_v0 = vmul.f32 %v7012_v32, %v2926_v48  ;;  %v7466_v48 = vadd.f32 %v6701_v16, %v3125_v19  ;;  %v7496_v17 = vadd.f32 %v7389_v1, %v3010_v41  ;;  %4210 = vmatpush.msra.mxu0 %v3487_v62 }
 0x4c3   :  { %v2227_v4 = vpop.f32.mrf.mxu2  ;;  %v2340_v45 = vpop.f32.mrf.mxu3  ;;  %v2877_v51 = vadd.f32 %v9400_v26, %v2739_v46 }
 0x4c4   :  { %v2341_v11 = vadd.f32 %v2340_v45, %v2227_v4  ;;  %v7463_v43 = vadd.f32 %v7025_v25, %v3064_v0  ;;  %9417 = vst [vmem:[#allocation61_spill] sm:$0xff] %v7466_v48  ;;  %v8945_v19 = vmax.f32 %v7466_v48, 0.0  ;;  %v9419_v4 = vld [vmem:[#allocation88_spill] sm:$0xff] }
 0x4c5   :  { %v2876_v45 = vadd.f32 %v7352_v8, %v9419_v4  ;;  %9420 = vst [vmem:[#allocation100_spill] sm:$0xff] %v7496_v17  ;;  %v7505_v4 = vadd.f32 %v6701_v16, %v3129_v6  ;;  %v3015_v41 = vmul.f32 %v9406_v37, %v2877_v51 }
 0x4c6   :  { %9416 = vst [vmem:[#allocation60_spill] sm:$0xff] %v7463_v43  ;;  %v2792_v7 = vadd.f32 %v7457_v36, %v2341_v11  ;;  %v8942_v12 = vmax.f32 %v7463_v43, 0.0  ;;  %v7485_v11 = vadd.f32 %v9408_v33, %v3011_v18  ;;  %v9421_v18 = vld [vmem:[#allocation78_spill] sm:$0xff] }
 0x4c7   :  { %9424 = vst [vmem:[#allocation73_spill] sm:$0xff] %v7505_v4  ;;  %v7527_v6 = vadd.f32 %v9408_v33, %v3015_v41 }
 0x4c8   :  { %v2930_v0 = vadd.f32 %v7000_v50, %v2792_v7  ;;  %3549 = vmatmul.f32.gmra.mxu2 %v8944_v44  ;;  %3662 = vmatmul.f32.gmra.mxu3 %v8943_v29  ;;  %9418 = vst [vmem:[#allocation96_spill] sm:$0xff] %v7485_v11  ;;  %v9422_v7 = vld [vmem:[#allocation79_spill] sm:$0xff] }
 0x4c9   :  { %3817 = vmatmul.f32.gmra.mxu0 %v8942_v12  ;;  %v2079_v12 = vadd.f32 %v9422_v7, %v9421_v18  ;;  %v3014_v7 = vmul.f32 %v7370_v21, %v2876_v45  ;;  %9425 = vst [vmem:[#allocation98_spill] sm:$0xff] %v7527_v6  ;;  %v3453_v45 = vld [vmem:[#allocation7 + $0x1c8] sm:$0xff] }
 0x4ca   :  { %3975 = vmatmul.f32.gmra.mxu1 %v8945_v19  ;;  %v3068_v54 = vmul.f32 %v7012_v32, %v2930_v0  ;;  %v8947_v19 = vmax.f32 %v7485_v11, 0.0  ;;  %v7510_v0 = vpop.f32.mrf.mxu1  ;;  %4098 = vmatpush.msra.mxu3 %v3453_v45  ;;  %v3485_v45 = vld [vmem:[#allocation7 + $0x2c8] sm:$0xff] }
 0x4cb   :  { %v2230_v46 = vpop.f32.mrf.mxu2  ;;  %v2343_v29 = vpop.f32.mrf.mxu3  ;;  %v2743_v60 = vadd.f32 %v7489_v31, %v2079_v12  ;;  %v8954_v12 = vmax.f32 %v7505_v4, 0.0  ;;  %4211 = vmatpush.msra.mxu0 %v3485_v45 }
 0x4cc   :  { %v2344_v52 = vadd.f32 %v2343_v29, %v2230_v46  ;;  %v7502_v44 = vadd.f32 %v7025_v25, %v3068_v54  ;;  %v8948_v29 = vmax.f32 %v7496_v17, 0.0  ;;  %v3421_v46 = vld [vmem:[#allocation7 + $0xc8] sm:$0xff] }
 0x4cd   :  { %v2881_v51 = vadd.f32 %v9400_v26, %v2743_v60  ;;  %3985 = vmatpush.msra.mxu2 %v3421_v46 }
 0x4ce   :  { %9423 = vst [vmem:[#allocation72_spill] sm:$0xff] %v7502_v44  ;;  %v2796_v62 = vadd.f32 %v7457_v36, %v2344_v52  ;;  %v7513_v18 = vpop.f32.mrf.mxu0  ;;  %v8949_v54 = vmax.f32 %v7502_v44, 0.0  ;;  %v9426_v52 = vld [vmem:[#allocation62_spill] sm:$0xff] }
 0x4d0   :  { %v2934_v16 = vadd.f32 %v7000_v50, %v2796_v62  ;;  %3552 = vmatmul.f32.gmra.mxu2 %v8948_v29  ;;  %3665 = vmatmul.f32.gmra.mxu3 %v8947_v19  ;;  %v2880_v62 = vadd.f32 %v7352_v8, %v9426_v52  ;;  %v7535_v19 = vadd.f32 %v7389_v1, %v3014_v7  ;;  %v8956_v52 = vmax.f32 %v7527_v6, 0.0 }
 0x4d1   :  { %3820 = vmatmul.f32.gmra.mxu0 %v8949_v54  ;;  %v9428_v54 = vld [vmem:[#allocation80_spill] sm:$0xff] }
 0x4d2   :  { %3978 = vmatmul.f32.gmra.mxu1 %v8954_v12  ;;  %9427 = vst [vmem:[#allocation67_spill] sm:$0xff] %v7535_v19  ;;  %v3072_v29 = vmul.f32 %v7012_v32, %v2934_v16  ;;  %v2082_v41 = vadd.f32 %v9429_v58, %v9428_v54  ;;  %v3019_v12 = vmul.f32 %v9406_v37, %v2881_v51  ;;  %v8957_v46 = vmax.f32 %v7535_v19, 0.0 }
 0x4d3   :  { %v2233_v44 = vpop.f32.mrf.mxu2  ;;  %v2346_v11 = vpop.f32.mrf.mxu3  ;;  %v3018_v54 = vmul.f32 %v7370_v21, %v2880_v62  ;;  %v9432_v62 = vld [vmem:[#allocation114_spill] sm:$0xff] }
 0x4d4   :  { %v2347_v60 = vadd.f32 %v2346_v11, %v2233_v44  ;;  %v7541_v17 = vadd.f32 %v7025_v25, %v3072_v29  ;;  %v2747_v7 = vadd.f32 %v7489_v31, %v2082_v41  ;;  %v7552_v44 = vpop.f32.mrf.mxu1  ;;  %v7562_v29 = vadd.f32 %v9408_v33, %v3019_v12 }
 0x4d5   :  { %v2884_v41 = vadd.f32 %v7352_v8, %v9432_v62 }
 0x4d6   :  { %9430 = vst [vmem:[#allocation99_spill] sm:$0xff] %v7541_v17  ;;  %v2800_v4 = vadd.f32 %v7457_v36, %v2347_v60  ;;  %v7547_v16 = vpop.f32.mrf.mxu0  ;;  %v8958_v58 = vmax.f32 %v7541_v17, 0.0  ;;  %v2885_v51 = vadd.f32 %v9400_v26, %v2747_v7  ;;  %v7570_v60 = vadd.f32 %v7389_v1, %v3018_v54 }
 0x4d7   :  { %9431 = vst [vmem:[#allocation106_spill] sm:$0xff] %v7562_v29  ;;  %v8963_v62 = vmax.f32 %v7562_v29, 0.0 }
 0x4d8   :  { %v2938_v11 = vadd.f32 %v7000_v50, %v2800_v4  ;;  %3555 = vmatmul.f32.gmra.mxu2 %v8957_v46  ;;  %3668 = vmatmul.f32.gmra.mxu3 %v8956_v52  ;;  %v9433_v4 = vmax.f32 %v6710_v34, 0.0  ;;  %9434 = vst [vmem:[#allocation74_spill] sm:$0xff] %v7570_v60  ;;  %v9435_v46 = vld [vmem:[#allocation82_spill] sm:$0xff]  ;;  %v3023_v34 = vmul.f32 %v9406_v37, %v2885_v51  ;;  %v9439_v51 = vld [vmem:[#allocation115_spill] sm:$0xff] }
 0x4d9   :  { %3823 = vmatmul.f32.gmra.mxu0 %v8958_v58  ;;  %v9436_v58 = vld [vmem:[#allocation83_spill] sm:$0xff]  ;;  %v2888_v45 = vadd.f32 %v7352_v8, %v9439_v51  ;;  %v7611_v51 = vperm.slane %v6406_v49, 2 }
 0x4da   :  { %4337 = vmatmul.f32.vlgmr.msra.gmra.mxu1 %v9433_v4  ;;  %v3076_v52 = vmul.f32 %v7012_v32, %v2938_v11  ;;  %v2085_v17 = vadd.f32 %v9436_v58, %v9435_v46  ;;  %v8965_v11 = vmax.f32 %v7570_v60, 0.0  ;;  %v3022_v58 = vmul.f32 %v7370_v21, %v2884_v41 }
 0x4db   :  { %v2236_v12 = vpop.f32.mrf.mxu2  ;;  %v2349_v6 = vpop.f32.mrf.mxu3  ;;  %v3026_v49 = vmul.f32 %v7370_v21, %v2888_v45  ;;  %v9448_v45 = vld [vmem:[#allocation43_spill] sm:$0xff] }
 0x4dc   :  { %v2350_v19 = vadd.f32 %v2349_v6, %v2236_v12  ;;  %v7576_v7 = vadd.f32 %v7025_v25, %v3076_v52  ;;  %v2751_v4 = vadd.f32 %v7489_v31, %v2085_v17  ;;  %v3419_v17 = vld [vmem:[#allocation7 + $0xb8] sm:$0xff]  ;;  %v7600_v41 = vpop.f32.mrf.mxu1  ;;  %v9440_v12 = vld [vmem:[#allocation14_spill] sm:$0xff] }
 0x4dd   :  { %v3451_v52 = vld [vmem:[#allocation7 + $0x1b8] sm:$0xff]  ;;  %3986 = vmatpush.msra.mxu2 %v3419_v17 }
 0x4de   :  { %9437 = vst [vmem:[#allocation75_spill] sm:$0xff] %v7576_v7  ;;  %v2804_v54 = vadd.f32 %v7457_v36, %v2350_v19  ;;  %v7582_v48 = vpop.f32.mrf.mxu0  ;;  %v8964_v46 = vmax.f32 %v7576_v7, 0.0  ;;  %v7595_v36 = vadd.f32 %v9408_v33, %v3023_v34  ;;  %v2889_v19 = vadd.f32 %v9400_v26, %v2751_v4  ;;  %v9443_v34 = vld [vmem:[#allocation84_spill] sm:$0xff]  ;;  %4099 = vmatpush.msra.mxu3 %v3451_v52 }
 0x4e0   :  { %v2942_v6 = vadd.f32 %v7000_v50, %v2804_v54  ;;  %3558 = vmatmul.f32.gmra.mxu2 %v8965_v11  ;;  %3671 = vmatmul.f32.gmra.mxu3 %v8963_v62  ;;  %9438 = vst [vmem:[#allocation112_spill] sm:$0xff] %v7595_v36  ;;  %v9441_v54 = vmax.f32 %v9440_v12, 0.0  ;;  %v7605_v62 = vadd.f32 %v7389_v1, %v3022_v58  ;;  %v9444_v11 = vld [vmem:[#allocation85_spill] sm:$0xff]  ;;  %v8970_v12 = vmax.f32 %v7595_v36, 0.0 }
 0x4e1   :  { %3826 = vmatmul.f32.gmra.mxu0 %v8964_v46  ;;  %v2088_v7 = vadd.f32 %v9444_v11, %v9443_v34  ;;  %v3027_v58 = vmul.f32 %v9406_v37, %v2889_v19  ;;  %v9449_v34 = vmax.f32 %v9448_v45, 0.0 }
 0x4e2   :  { %4340 = vmatmul.f32.gmra.mxu1 %v9441_v54  ;;  %9442 = vst [vmem:[#allocation76_spill] sm:$0xff] %v7605_v62  ;;  %v3080_v46 = vmul.f32 %v7012_v32, %v2942_v6  ;;  %v8972_v11 = vmax.f32 %v7605_v62, 0.0 }
 0x4e3   :  { %v2239_v4 = vpop.f32.mrf.mxu2  ;;  %v2352_v29 = vpop.f32.mrf.mxu3  ;;  %v2755_v6 = vadd.f32 %v7489_v31, %v2088_v7  ;;  %v7633_v31 = vadd.f32 %v9408_v33, %v3027_v58  ;;  %v3483_v7 = vld [vmem:[#allocation7 + $0x2b8] sm:$0xff] }
 0x4e4   :  { %v2353_v60 = vadd.f32 %v2352_v29, %v2239_v4  ;;  %v7614_v43 = vadd.f32 %v7025_v25, %v3080_v46  ;;  %v9447_v46 = vld [vmem:[#allocation116_spill] sm:$0xff]  ;;  %v7641_v4 = vadd.f32 %v7389_v1, %v3026_v49  ;;  %4212 = vmatpush.msra.mxu0 %v3483_v7 }
 0x4e5   :  { %9446 = vst [vmem:[#allocation88_spill] sm:$0xff] %v7633_v31  ;;  %v2892_v19 = vadd.f32 %v7352_v8, %v9447_v46 }
 0x4e6   :  { %9445 = vst [vmem:[#allocation77_spill] sm:$0xff] %v7614_v43  ;;  %v2808_v17 = vadd.f32 %v7611_v51, %v2353_v60  ;;  %v7620_v54 = vpop.f32.mrf.mxu0  ;;  %v8971_v29 = vmax.f32 %v7614_v43, 0.0  ;;  %v2893_v60 = vadd.f32 %v9400_v26, %v2755_v6  ;;  %v8975_v6 = vmax.f32 %v7633_v31, 0.0 }
 0x4e7   :  { %9450 = vst [vmem:[#allocation78_spill] sm:$0xff] %v7641_v4  ;;  %v8974_v49 = vmax.f32 %v7641_v4, 0.0  ;;  %v3030_v7 = vmul.f32 %v7370_v21, %v2892_v19  ;;  %v9455_v19 = vld [vmem:[#allocation16_spill] sm:$0xff] }
 0x4e8   :  { %v2946_v52 = vadd.f32 %v7000_v50, %v2808_v17  ;;  %3561 = vmatmul.f32.gmra.mxu2 %v8972_v11  ;;  %3674 = vmatmul.f32.gmra.mxu3 %v8970_v12  ;;  %v7644_v11 = vpop.f32.mrf.mxu1  ;;  %v3031_v46 = vmul.f32 %v9406_v37, %v2893_v60  ;;  %v9454_v60 = vld [vmem:[#allocation42_spill] sm:$0xff] }
 0x4e9   :  { %3829 = vmatmul.f32.gmra.mxu0 %v8971_v29  ;;  %9451 = vst [vmem:[#allocation79_spill] sm:$0xff] %v7644_v11 }
 0x4ea   :  { %4343 = vmatmul.f32.gmra.mxu1 %v9449_v34  ;;  %v3084_v17 = vmul.f32 %v7012_v32, %v2946_v52  ;;  %v7665_v37 = vadd.f32 %v9408_v33, %v3031_v46 }
 0x4eb   :  { %v2242_v12 = vpop.f32.mrf.mxu2  ;;  %v2355_v29 = vpop.f32.mrf.mxu3 }
 0x4ec   :  { %v2356_v58 = vadd.f32 %v2355_v29, %v2242_v12  ;;  %v7647_v26 = vadd.f32 %v7025_v25, %v3084_v17  ;;  %9453 = vst [vmem:[#allocation80_spill] sm:$0xff] %v7665_v37  ;;  %v3417_v12 = vld [vmem:[#allocation7 + $0xa8] sm:$0xff]  ;;  %v2896_v17 = vadd.f32 %v7352_v8, %v9454_v60  ;;  %v8982_v46 = vmax.f32 %v7665_v37, 0.0 }
 0x4ed   :  { %v3449_v29 = vld [vmem:[#allocation7 + $0x1a8] sm:$0xff]  ;;  %3987 = vmatpush.msra.mxu2 %v3417_v12 }
 0x4ee   :  { %9452 = vst [vmem:[#allocation62_spill] sm:$0xff] %v7647_v26  ;;  %v2812_v45 = vadd.f32 %v7611_v51, %v2356_v58  ;;  %v7652_v34 = vpop.f32.mrf.mxu0  ;;  %v8977_v52 = vmax.f32 %v7647_v26, 0.0  ;;  %v9456_v58 = vmax.f32 %v9455_v19, 0.0  ;;  %4100 = vmatpush.msra.mxu3 %v3449_v29  ;;  %v3034_v12 = vmul.f32 %v7370_v21, %v2896_v17 }
 0x4f0   :  { %v2950_v43 = vadd.f32 %v7000_v50, %v2812_v45  ;;  %3564 = vmatmul.f32.gmra.mxu2 %v8974_v49  ;;  %3677 = vmatmul.f32.gmra.mxu3 %v8975_v6  ;;  %v7672_v45 = vadd.f32 %v7389_v1, %v3030_v7  ;;  %v7679_v31 = vpop.f32.mrf.mxu1  ;;  %v7699_v17 = vadd.f32 %v7389_v1, %v3034_v12 }
 0x4f1   :  { %3832 = vmatmul.f32.gmra.mxu0 %v8977_v52  ;;  %9459 = vst [vmem:[#allocation82_spill] sm:$0xff] %v7679_v31  ;;  %v3467_v31 = vld [vmem:[#allocation7 + $0x238] sm:$0xff] }
 0x4f2   :  { %4346 = vmatmul.f32.gmra.mxu1 %v9456_v58  ;;  %9457 = vst [vmem:[#allocation81_spill] sm:$0xff] %v7672_v45  ;;  %v3088_v49 = vmul.f32 %v7012_v32, %v2950_v43  ;;  %v8979_v7 = vmax.f32 %v7672_v45, 0.0 }
 0x4f3   :  { %v2245_v6 = vpop.f32.mrf.mxu2  ;;  %v2358_v26 = vpop.f32.mrf.mxu3  ;;  %9463 = vst [vmem:[#allocation83_spill] sm:$0xff] %v7699_v17 }
 0x4f4   :  { %v2359_v52 = vadd.f32 %v2358_v26, %v2245_v6  ;;  %v7676_v33 = vadd.f32 %v7025_v25, %v3088_v49  ;;  %v3481_v26 = vld [vmem:[#allocation7 + $0x2a8] sm:$0xff]  ;;  %v9460_v6 = vld [vmem:[#allocation117_spill] sm:$0xff] }
 0x4f5   :  { %v2900_v49 = vadd.f32 %v7352_v8, %v9460_v6  ;;  %4213 = vmatpush.msra.mxu0 %v3481_v26 }
 0x4f6   :  { %9458 = vst [vmem:[#allocation114_spill] sm:$0xff] %v7676_v33  ;;  %v2816_v60 = vadd.f32 %v7611_v51, %v2359_v52  ;;  %v7682_v19 = vpop.f32.mrf.mxu0  ;;  %v8983_v43 = vmax.f32 %v7676_v33, 0.0  ;;  %v9461_v52 = vld [vmem:[#allocation18_spill] sm:$0xff] }
 0x4f7   :  { %v9462_v58 = vmax.f32 %v9461_v52, 0.0  ;;  %v8987_v52 = vmax.f32 %v7699_v17, 0.0 }
 0x4f8   :  { %v2954_v29 = vadd.f32 %v7000_v50, %v2816_v60  ;;  %3567 = vmatmul.f32.gmra.mxu2 %v8979_v7  ;;  %3680 = vmatmul.f32.gmra.mxu3 %v8982_v46 }
 0x4f9   :  { %3835 = vmatmul.f32.gmra.mxu0 %v8983_v43  ;;  %v9465_v43 = vld [vmem:[#allocation101_spill] sm:$0xff] }
 0x4fa   :  { %4349 = vmatmul.f32.gmra.mxu1 %v9462_v58  ;;  %v3092_v60 = vmul.f32 %v7012_v32, %v2954_v29  ;;  %v8989_v33 = vmax.f32 %v9465_v43, 0.0  ;;  %v3038_v58 = vmul.f32 %v7370_v21, %v2900_v49  ;;  %v7712_v29 = vpop.f32.mrf.mxu1 }
 0x4fb   :  { %v2248_v7 = vpop.f32.mrf.mxu2  ;;  %v2361_v45 = vpop.f32.mrf.mxu3  ;;  %9466 = vst [vmem:[#allocation14_spill] sm:$0xff] %v7712_v29 }
 0x4fc   :  { %v2362_v37 = vadd.f32 %v2361_v45, %v2248_v7  ;;  %v7703_v46 = vadd.f32 %v7025_v25, %v3092_v60  ;;  %v9467_v45 = vld [vmem:[#allocation118_spill] sm:$0xff]  ;;  %v9468_v60 = vld [vmem:[#allocation20_spill] sm:$0xff]  ;;  %v7726_v36 = vadd.f32 %v7389_v1, %v3038_v58 }
 0x4fd   :  { %v2904_v7 = vadd.f32 %v7352_v8, %v9467_v45  ;;  %v9469_v49 = vmax.f32 %v9468_v60, 0.0  ;;  %v9472_v45 = vld [vmem:[#allocation102_spill] sm:$0xff] }
 0x4fe   :  { %9464 = vst [vmem:[#allocation115_spill] sm:$0xff] %v7703_v46  ;;  %v2820_v4 = vadd.f32 %v7611_v51, %v2362_v37  ;;  %v7707_v6 = vpop.f32.mrf.mxu0  ;;  %v8990_v12 = vmax.f32 %v7703_v46, 0.0  ;;  %v3415_v51 = vld [vmem:[#allocation7 + $0x98] sm:$0xff]  ;;  %v8995_v17 = vmax.f32 %v9472_v45, 0.0  ;;  %v8993_v58 = vmax.f32 %v7726_v36, 0.0 }
 0x4ff   :  { %v3447_v37 = vld [vmem:[#allocation7 + $0x198] sm:$0xff]  ;;  %9470 = vst [vmem:[#allocation84_spill] sm:$0xff] %v7726_v36  ;;  %3988 = vmatpush.msra.mxu2 %v3415_v51 }
 0x500   :  { %v2958_v26 = vadd.f32 %v7000_v50, %v2820_v4  ;;  %3570 = vmatmul.f32.gmra.mxu2 %v8987_v52  ;;  %3683 = vmatmul.f32.gmra.mxu3 %v8989_v33 }
 0x501   :  { %3838 = vmatmul.f32.gmra.mxu0 %v8990_v12  ;;  %4101 = vmatpush.msra.mxu3 %v3447_v37  ;;  %v7730_v12 = vperm.slane %v9333_v14, 2  ;;  %v3479_v14 = vld [vmem:[#allocation7 + $0x298] sm:$0xff] }
 0x502   :  { %4352 = vmatmul.f32.gmra.mxu1 %v9469_v49  ;;  %v3096_v4 = vmul.f32 %v7012_v32, %v2958_v26  ;;  %v3042_v26 = vmul.f32 %v7370_v21, %v2904_v7  ;;  %v9475_v7 = vld [vmem:[#allocation22_spill] sm:$0xff]  ;;  %4214 = vmatpush.msra.mxu0 %v3479_v14  ;;  %v9481_v14 = vld [vmem:[#allocation24_spill] sm:$0xff] }
 0x503   :  { %v2251_v52 = vpop.f32.mrf.mxu2  ;;  %v2364_v43 = vpop.f32.mrf.mxu3 }
 0x504   :  { %v2365_v33 = vadd.f32 %v2364_v43, %v2251_v52  ;;  %v7733_v46 = vadd.f32 %v7025_v25, %v3096_v4  ;;  %v7751_v52 = vpop.f32.mrf.mxu1  ;;  %v9476_v4 = vmax.f32 %v9475_v7, 0.0 }
 0x505   :  { %9474 = vst [vmem:[#allocation116_spill] sm:$0xff] %v7751_v52 }
 0x506   :  { %9471 = vst [vmem:[#allocation85_spill] sm:$0xff] %v7733_v46  ;;  %v2824_v60 = vadd.f32 %v7730_v12, %v2365_v33  ;;  %v8997_v49 = vmax.f32 %v7733_v46, 0.0  ;;  %v7741_v37 = vpop.f32.mrf.mxu0  ;;  %v9473_v33 = vld [vmem:[#allocation119_spill] sm:$0xff] }
 0x507   :  { %v2908_v43 = vadd.f32 %v7352_v8, %v9473_v33  ;;  %v9479_v46 = vld [vmem:[#allocation103_spill] sm:$0xff] }
 0x508   :  { %v2962_v51 = vadd.f32 %v7000_v50, %v2824_v60  ;;  %3573 = vmatmul.f32.gmra.mxu2 %v8993_v58  ;;  %3686 = vmatmul.f32.gmra.mxu3 %v8995_v17  ;;  %v7756_v60 = vadd.f32 %v7389_v1, %v3042_v26  ;;  %v9001_v62 = vmax.f32 %v9479_v46, 0.0 }
 0x509   :  { %3841 = vmatmul.f32.gmra.mxu0 %v8997_v49  ;;  %v3046_v26 = vmul.f32 %v7370_v21, %v2908_v43  ;;  %v9482_v43 = vmax.f32 %v9481_v14, 0.0 }
 0x50a   :  { %4355 = vmatmul.f32.gmra.mxu1 %v9476_v4  ;;  %9477 = vst [vmem:[#allocation43_spill] sm:$0xff] %v7756_v60  ;;  %v3100_v58 = vmul.f32 %v7012_v32, %v2962_v51  ;;  %v9000_v52 = vmax.f32 %v7756_v60, 0.0 }
 0x50b   :  { %v2254_v45 = vpop.f32.mrf.mxu2  ;;  %v2367_v17 = vpop.f32.mrf.mxu3 }
 0x50c   :  { %v2368_v36 = vadd.f32 %v2367_v17, %v2254_v45  ;;  %v7760_v49 = vadd.f32 %v7025_v25, %v3100_v58  ;;  %v3413_v17 = vld [vmem:[#allocation7 + $0x88] sm:$0xff] }
 0x50d   :  { %v3445_v45 = vld [vmem:[#allocation7 + $0x188] sm:$0xff]  ;;  %3989 = vmatpush.msra.mxu2 %v3413_v17 }
 0x50e   :  { %9478 = vst [vmem:[#allocation42_spill] sm:$0xff] %v7760_v49  ;;  %v2828_v33 = vadd.f32 %v7730_v12, %v2368_v36  ;;  %v9003_v7 = vmax.f32 %v7760_v49, 0.0  ;;  %v9480_v36 = vld [vmem:[#allocation120_spill] sm:$0xff]  ;;  %v7776_v51 = vpop.f32.mrf.mxu0  ;;  %4102 = vmatpush.msra.mxu3 %v3445_v45 }
 0x50f   :  { %v2912_v58 = vadd.f32 %v7352_v8, %v9480_v36  ;;  %v9486_v36 = vld [vmem:[#allocation104_spill] sm:$0xff] }
 0x510   :  { %v2966_v4 = vadd.f32 %v7000_v50, %v2828_v33  ;;  %3576 = vmatmul.f32.gmra.mxu2 %v9000_v52  ;;  %3689 = vmatmul.f32.gmra.mxu3 %v9001_v62  ;;  %v7781_v33 = vadd.f32 %v7389_v1, %v3046_v26  ;;  %v9008_v29 = vmax.f32 %v9486_v36, 0.0 }
 0x511   :  { %3844 = vmatmul.f32.gmra.mxu0 %v9003_v7  ;;  %v7784_v7 = vpop.f32.mrf.mxu1 }
 0x512   :  { %4358 = vmatmul.f32.gmra.mxu1 %v9482_v43  ;;  %9483 = vst [vmem:[#allocation16_spill] sm:$0xff] %v7781_v33  ;;  %v3104_v52 = vmul.f32 %v7012_v32, %v2966_v4  ;;  %v9006_v43 = vmax.f32 %v7781_v33, 0.0  ;;  %v3050_v4 = vmul.f32 %v7370_v21, %v2912_v58 }
 0x513   :  { %v2257_v62 = vpop.f32.mrf.mxu2  ;;  %v2370_v46 = vpop.f32.mrf.mxu3  ;;  %9484 = vst [vmem:[#allocation117_spill] sm:$0xff] %v7784_v7 }
 0x514   :  { %v2371_v49 = vadd.f32 %v2370_v46, %v2257_v62  ;;  %v7787_v60 = vadd.f32 %v7025_v25, %v3104_v52  ;;  %v3477_v62 = vld [vmem:[#allocation7 + $0x288] sm:$0xff]  ;;  %v9487_v46 = vld [vmem:[#allocation121_spill] sm:$0xff]  ;;  %v9488_v52 = vmax.f32 %v6867_v55, 0.0  ;;  %v7806_v45 = vadd.f32 %v7389_v1, %v3050_v4 }
 0x515   :  { %4215 = vmatpush.msra.mxu0 %v3477_v62 }
 0x516   :  { %9485 = vst [vmem:[#allocation18_spill] sm:$0xff] %v7787_v60  ;;  %v2832_v14 = vadd.f32 %v7730_v12, %v2371_v49  ;;  %v9009_v26 = vmax.f32 %v7787_v60, 0.0  ;;  %v2916_v49 = vadd.f32 %v7352_v8, %v9487_v46  ;;  %v7809_v36 = vpop.f32.mrf.mxu0  ;;  %v9491_v60 = vld [vmem:[#allocation105_spill] sm:$0xff]  ;;  %v9012_v4 = vmax.f32 %v7806_v45, 0.0 }
 0x517   :  { %9489 = vst [vmem:[#allocation118_spill] sm:$0xff] %v7806_v45  ;;  %v9013_v33 = vmax.f32 %v9491_v60, 0.0  ;;  %v3473_v45 = vld [vmem:[#allocation7 + $0x268] sm:$0xff] }
 0x518   :  { %v2970_v17 = vadd.f32 %v7000_v50, %v2832_v14  ;;  %3579 = vmatmul.f32.gmra.mxu2 %v9006_v43  ;;  %3692 = vmatmul.f32.gmra.mxu3 %v9008_v29 }
 0x519   :  { %3847 = vmatmul.f32.gmra.mxu0 %v9009_v26  ;;  %v7815_v46 = vpop.f32.mrf.mxu1 }
 0x51a   :  { %4361 = vmatmul.f32.gmra.mxu1 %v9488_v52  ;;  %v3108_v58 = vmul.f32 %v7012_v32, %v2970_v17  ;;  %9492 = vst [vmem:[#allocation119_spill] sm:$0xff] %v7815_v46  ;;  %v3054_v17 = vmul.f32 %v7370_v21, %v2916_v49  ;;  %v9494_v46 = vld [vmem:[#allocation27_spill] sm:$0xff] }
 0x51b   :  { %v2260_v14 = vpop.f32.mrf.mxu2  ;;  %v2373_v43 = vpop.f32.mrf.mxu3  ;;  %v9495_v7 = vmax.f32 %v9494_v46, 0.0 }
 0x51c   :  { %v2374_v29 = vadd.f32 %v2373_v43, %v2260_v14  ;;  %v7812_v26 = vadd.f32 %v7025_v25, %v3108_v58  ;;  %v3411_v43 = vld [vmem:[#allocation7 + $0x78] sm:$0xff]  ;;  %v7833_v49 = vadd.f32 %v7389_v1, %v3054_v17 }
 0x51d   :  { %v3475_v58 = vld [vmem:[#allocation7 + $0x278] sm:$0xff]  ;;  %3990 = vmatpush.msra.mxu2 %v3411_v43 }
 0x51e   :  { %9490 = vst [vmem:[#allocation20_spill] sm:$0xff] %v7812_v26  ;;  %v2836_v55 = vadd.f32 %v7730_v12, %v2374_v29  ;;  %v9014_v52 = vmax.f32 %v7812_v26, 0.0  ;;  %v3443_v12 = vld [vmem:[#allocation7 + $0x178] sm:$0xff]  ;;  %v9493_v29 = vld [vmem:[#allocation122_spill] sm:$0xff]  ;;  %4216 = vmatpush.msra.mxu0 %v3475_v58  ;;  %v7837_v26 = vperm.slane %v9349_v59, 2 }
 0x51f   :  { %v2920_v14 = vadd.f32 %v7352_v8, %v9493_v29  ;;  %9496 = vst [vmem:[#allocation22_spill] sm:$0xff] %v7833_v49  ;;  %4103 = vmatpush.msra.mxu3 %v3443_v12  ;;  %v9498_v29 = vld [vmem:[#allocation107_spill] sm:$0xff] }
 0x520   :  { %v2974_v62 = vadd.f32 %v7000_v50, %v2836_v55  ;;  %3582 = vmatmul.f32.gmra.mxu2 %v9012_v4  ;;  %3695 = vmatmul.f32.gmra.mxu3 %v9013_v33  ;;  %v9020_v46 = vmax.f32 %v9498_v29, 0.0  ;;  %v9505_v29 = vld [vmem:[#allocation108_spill] sm:$0xff] }
 0x521   :  { %3850 = vmatmul.f32.gmra.mxu0 %v9014_v52  ;;  %v3058_v58 = vmul.f32 %v7370_v21, %v2920_v14  ;;  %v7849_v12 = vpop.f32.mrf.mxu1 }
 0x522   :  { %4364 = vmatmul.f32.gmra.mxu1 %v9495_v7  ;;  %v3112_v55 = vmul.f32 %v7012_v32, %v2974_v62  ;;  %v7843_v7 = vpop.f32.mrf.mxu0  ;;  %v9019_v62 = vmax.f32 %v7833_v49, 0.0  ;;  %9499 = vst [vmem:[#allocation24_spill] sm:$0xff] %v7849_v12  ;;  %v3471_v49 = vld [vmem:[#allocation7 + $0x258] sm:$0xff]  ;;  %4217 = vmatpush.msra.mxu0 %v3473_v45 }
 0x523   :  { %v2263_v4 = vpop.f32.mrf.mxu2  ;;  %v2376_v33 = vpop.f32.mrf.mxu3  ;;  %v7863_v14 = vadd.f32 %v7389_v1, %v3058_v58 }
 0x524   :  { %v2377_v52 = vadd.f32 %v2376_v33, %v2263_v4  ;;  %v7840_v60 = vadd.f32 %v7025_v25, %v3112_v55  ;;  %v9500_v33 = vld [vmem:[#allocation66_spill] sm:$0xff]  ;;  %4218 = vmatpush.msra.mxu0 %v3471_v49  ;;  %v9506_v49 = vld [vmem:[#allocation12_spill] sm:$0xff] }
 0x525   :  { %v2924_v4 = vadd.f32 %v7352_v8, %v9500_v33  ;;  %9503 = vst [vmem:[#allocation121_spill] sm:$0xff] %v7863_v14  ;;  %v9024_v33 = vmax.f32 %v9505_v29, 0.0  ;;  %v9025_v58 = vmax.f32 %v7863_v14, 0.0  ;;  %v3409_v14 = vld [vmem:[#allocation7 + $0x68] sm:$0xff] }
 0x526   :  { %9497 = vst [vmem:[#allocation120_spill] sm:$0xff] %v7840_v60  ;;  %v2840_v17 = vadd.f32 %v7837_v26, %v2377_v52  ;;  %v9022_v43 = vmax.f32 %v7840_v60, 0.0  ;;  %v9501_v52 = vld [vmem:[#allocation29_spill] sm:$0xff]  ;;  %3991 = vmatpush.msra.mxu2 %v3409_v14  ;;  %v9512_v14 = vmax.f32 %v6949_v30, 0.0  ;;  %v3524_v30 = vld [vmem:[%s8663_s13] sm:$0x3] }
 0x527   :  { %v9502_v55 = vmax.f32 %v9501_v52, 0.0 }
 0x528   :  { %v2978_v59 = vadd.f32 %v7000_v50, %v2840_v17  ;;  %3585 = vmatmul.f32.gmra.mxu2 %v9019_v62  ;;  %3698 = vmatmul.f32.gmra.mxu3 %v9020_v46 }
 0x529   :  { %3853 = vmatmul.f32.gmra.mxu0 %v9022_v43  ;;  %v3469_v43 = vld [vmem:[#allocation7 + $0x248] sm:$0xff] }
 0x52a   :  { %4367 = vmatmul.f32.gmra.mxu1 %v9502_v55  ;;  %v3116_v17 = vmul.f32 %v7012_v32, %v2978_v59  ;;  %v3062_v59 = vmul.f32 %v7370_v21, %v2924_v4  ;;  %4219 = vmatpush.msra.mxu0 %v3469_v43  ;;  %v7874_v11 = vpop.f32.mrf.mxu0  ;;  %v9507_v43 = vmax.f32 %v6931_v56, 0.0  ;;  %v3441_v56 = vld [vmem:[#allocation7 + $0x168] sm:$0xff] }
 0x52b   :  { %v2266_v62 = vpop.f32.mrf.mxu2  ;;  %v2379_v12 = vpop.f32.mrf.mxu3  ;;  %4104 = vmatpush.msra.mxu3 %v3441_v56 }
 0x52c   :  { %v2380_v46 = vadd.f32 %v2379_v12, %v2266_v62  ;;  %v7867_v60 = vadd.f32 %v7025_v25, %v3116_v17  ;;  %v7885_v62 = vpop.f32.mrf.mxu1  ;;  %v7890_v12 = vadd.f32 %v7389_v1, %v3062_v59  ;;  %4220 = vmatpush.msra.mxu0 %v3467_v31 }
 0x52e   :  { %9504 = vst [vmem:[#allocation122_spill] sm:$0xff] %v7867_v60  ;;  %v2844_v52 = vadd.f32 %v7837_v26, %v2380_v46  ;;  %v9026_v55 = vmax.f32 %v7867_v60, 0.0  ;;  %v2928_v46 = vadd.f32 %v7352_v8, %v9506_v49  ;;  %v3463_v60 = vld [vmem:[#allocation7 + $0x218] sm:$0xff]  ;;  %v9031_v59 = vmax.f32 %v7890_v12, 0.0 }
 0x52f   :  { %9508 = vst [vmem:[#allocation27_spill] sm:$0xff] %v7890_v12  ;;  %v9510_v49 = vld [vmem:[#allocation109_spill] sm:$0xff] }
 0x530   :  { %v2982_v45 = vadd.f32 %v7000_v50, %v2844_v52  ;;  %3588 = vmatmul.f32.gmra.mxu2 %v9025_v58  ;;  %3701 = vmatmul.f32.gmra.mxu3 %v9024_v33  ;;  %v9030_v29 = vmax.f32 %v9510_v49, 0.0  ;;  %v3066_v31 = vmul.f32 %v7370_v21, %v2928_v46  ;;  %v9526_v12 = vld [vmem:[#allocation97_spill] sm:$0xff] }
 0x531   :  { %3856 = vmatmul.f32.gmra.mxu0 %v9026_v55  ;;  %v3465_v55 = vld [vmem:[#allocation7 + $0x228] sm:$0xff] }
 0x532   :  { %4370 = vmatmul.f32.gmra.mxu1 %v9507_v43  ;;  %v3120_v4 = vmul.f32 %v7012_v32, %v2982_v45  ;;  %4221 = vmatpush.msra.mxu0 %v3465_v55 }
 0x533   :  { %v2269_v17 = vpop.f32.mrf.mxu2  ;;  %v2382_v52 = vpop.f32.mrf.mxu3 }
 0x534   :  { %v2383_v33 = vadd.f32 %v2382_v52, %v2269_v17  ;;  %v7894_v58 = vadd.f32 %v7025_v25, %v3120_v4  ;;  %4222 = vmatpush.msra.mxu0 %v3463_v60  ;;  %v3461_v4 = vld [vmem:[#allocation7 + $0x208] sm:$0xff]  ;;  %v7910_v52 = vpop.f32.mrf.mxu0  ;;  %v7915_v60 = vadd.f32 %v7389_v1, %v3066_v31 }
 0x536   :  { %9509 = vst [vmem:[#allocation66_spill] sm:$0xff] %v7894_v58  ;;  %v2848_v43 = vadd.f32 %v7837_v26, %v2383_v33  ;;  %v9032_v45 = vmax.f32 %v7894_v58, 0.0  ;;  %v9511_v33 = vld [vmem:[#allocation13_spill] sm:$0xff]  ;;  %4223 = vmatpush.msra.mxu0 %v3461_v4 }
 0x537   :  { %v2932_v55 = vadd.f32 %v7352_v8, %v9511_v33  ;;  %9513 = vst [vmem:[#allocation29_spill] sm:$0xff] %v7915_v60  ;;  %v9515_v33 = vld [vmem:[#allocation110_spill] sm:$0xff] }
 0x538   :  { %v2986_v17 = vadd.f32 %v7000_v50, %v2848_v43  ;;  %3591 = vmatmul.f32.gmra.mxu2 %v9031_v59  ;;  %3704 = vmatmul.f32.gmra.mxu3 %v9030_v29  ;;  %v7918_v29 = vpop.f32.mrf.mxu1  ;;  %v9037_v58 = vmax.f32 %v9515_v33, 0.0 }
 0x539   :  { %3859 = vmatmul.f32.gmra.mxu0 %v9032_v45 }
 0x53a   :  { %4373 = vmatmul.f32.gmra.mxu1 %v9512_v14  ;;  %v3124_v46 = vmul.f32 %v7012_v32, %v2986_v17  ;;  %v9035_v14 = vmax.f32 %v7915_v60, 0.0  ;;  %v3070_v17 = vmul.f32 %v7370_v21, %v2932_v55 }
 0x53b   :  { %v2272_v56 = vpop.f32.mrf.mxu2  ;;  %v2385_v43 = vpop.f32.mrf.mxu3 }
 0x53c   :  { %v2386_v59 = vadd.f32 %v2385_v43, %v2272_v56  ;;  %v7921_v45 = vadd.f32 %v7025_v25, %v3124_v46  ;;  %v7936_v46 = vperm.slane %v3524_v30, 0  ;;  %v9517_v56 = vld [vmem:[#allocation32_spill] sm:$0xff]  ;;  %v7945_v55 = vadd.f32 %v7389_v1, %v3070_v17  ;;  %v7948_v33 = vpop.f32.mrf.mxu0 }
 0x53d   :  { %v9518_v43 = vmax.f32 %v9517_v56, 0.0 }
 0x53e   :  { %9514 = vst [vmem:[#allocation12_spill] sm:$0xff] %v7921_v45  ;;  %v2852_v31 = vadd.f32 %v7837_v26, %v2386_v59  ;;  %v9038_v4 = vmax.f32 %v7921_v45, 0.0  ;;  %v9516_v26 = vld [vmem:[#allocation95_spill] sm:$0xff] }
 0x53f   :  { %v2936_v59 = vadd.f32 %v7352_v8, %v9516_v26  ;;  %9519 = vst [vmem:[#allocation13_spill] sm:$0xff] %v7945_v55 }
 0x540   :  { %v2990_v49 = vadd.f32 %v7000_v50, %v2852_v31  ;;  %3594 = vmatmul.f32.gmra.mxu2 %v9035_v14  ;;  %3707 = vmatmul.f32.gmra.mxu3 %v9037_v58  ;;  %v7955_v26 = vpop.f32.mrf.mxu1 }
 0x541   :  { %3862 = vmatmul.f32.gmra.mxu0 %v9038_v4  ;;  %v9521_v4 = vld [vmem:[#allocation111_spill] sm:$0xff] }
 0x542   :  { %4376 = vmatmul.f32.gmra.mxu1 %v9518_v43  ;;  %v3128_v50 = vmul.f32 %v7012_v32, %v2990_v49  ;;  %v9044_v45 = vmax.f32 %v9521_v4, 0.0  ;;  %v9041_v43 = vmax.f32 %v7945_v55, 0.0  ;;  %v3074_v32 = vmul.f32 %v7370_v21, %v2936_v59 }
 0x543   :  { %v3547_v31 = vpop.f32.mrf.mxu2  ;;  %v3660_v14 = vpop.f32.mrf.mxu3 }
 0x544   :  { %v3548_v30 = vadd.f32 %v3547_v31, %v7936_v46  ;;  %v7952_v58 = vadd.f32 %v7025_v25, %v3128_v50  ;;  %v9522_v25 = vld [vmem:[#allocation15_spill] sm:$0xff]  ;;  %v9523_v50 = vld [vmem:[#allocation34_spill] sm:$0xff]  ;;  %v7971_v31 = vadd.f32 %v7389_v1, %v3074_v32  ;;  %v7975_v4 = vpop.f32.mrf.mxu0 }
 0x545   :  { %v2940_v49 = vadd.f32 %v7352_v8, %v9522_v25 }
 0x546   :  { %9520 = vst [vmem:[#allocation95_spill] sm:$0xff] %v7952_v58  ;;  %v3661_v56 = vadd.f32 %v3660_v14, %v3548_v30  ;;  %v9045_v17 = vmax.f32 %v7952_v58, 0.0  ;;  %v9524_v14 = vmax.f32 %v9523_v50, 0.0  ;;  %v9049_v58 = vmax.f32 %v7971_v31, 0.0 }
 0x547   :  { %v3078_v25 = vmul.f32 %v7370_v21, %v2940_v49 }
 0x548   :  { %3597 = vmatmul.f32.gmra.mxu2 %v9041_v43  ;;  %3710 = vmatmul.f32.gmra.mxu3 %v9044_v45  ;;  %v9525_v43 = vld [vmem:[#allocation86_spill] sm:$0xff]  ;;  %v3774_v45 = vadd.f32 %v7513_v18, %v3661_v56  ;;  %v7980_v50 = vpop.f32.mrf.mxu1  ;;  %v2944_v18 = vadd.f32 %v7352_v8, %v9526_v12 }
 0x549   :  { %3865 = vmatmul.f32.gmra.mxu0 %v9045_v17  ;;  %v9048_v60 = vmax.f32 %v9525_v43, 0.0  ;;  %v3405_v43 = vld [vmem:[#allocation7 + $0x48] sm:$0xff] }
 0x54a   :  { %4379 = vmatmul.f32.gmra.mxu1 %v9524_v14  ;;  %v3407_v14 = vld [vmem:[#allocation7 + $0x58] sm:$0xff]  ;;  %v3887_v56 = vadd.f32 %v7072_v53, %v3774_v45 }
 0x54b   :  { %v3550_v30 = vpop.f32.mrf.mxu2  ;;  %v3663_v59 = vpop.f32.mrf.mxu3  ;;  %3992 = vmatpush.msra.mxu2 %v3407_v14 }
 0x54c   :  { %v3551_v55 = vadd.f32 %v3550_v30, %v7936_v46  ;;  %v3439_v30 = vld [vmem:[#allocation7 + $0x158] sm:$0xff] }
 0x54d   :  { %4105 = vmatpush.msra.mxu3 %v3439_v30  ;;  %3993 = vmatpush.msra.mxu2 %v3405_v43  ;;  %v9530_v43 = vmax.f32 %v7065_v42, 0.0 }
 0x54e   :  { %v3664_v17 = vadd.f32 %v3663_v59, %v3551_v55  ;;  %v9527_v55 = vmax.f32 %v7039_v20, 0.0  ;;  %v3437_v20 = vld [vmem:[#allocation7 + $0x148] sm:$0xff] }
 0x54f   :  { %4106 = vmatpush.msra.mxu3 %v3437_v20 }
 0x550   :  { %v3777_v32 = vadd.f32 %v7547_v16, %v3664_v17  ;;  %3600 = vmatmul.f32.gmra.mxu2 %v9049_v58  ;;  %3713 = vmatmul.f32.gmra.mxu3 %v9048_v60  ;;  %v9528_v16 = vmax.f32 %v7042_v15, 0.0  ;;  %v7996_v17 = vadd.f32 %v7389_v1, %v3078_v25  ;;  %v3082_v15 = vmul.f32 %v7370_v21, %v2944_v18 }
 0x551   :  { %4224 = vmatmul.f32.vlgmr.msra.gmra.mxu0 %v9527_v55  ;;  %v8013_v55 = vpop.f32.mrf.mxu1 }
 0x552   :  { %v3890_v49 = vadd.f32 %v7098_v63, %v3777_v32  ;;  %4382 = vmatmul.f32.gmra.mxu1 %v9528_v16  ;;  %v9058_v53 = vmax.f32 %v7996_v17, 0.0  ;;  %v9529_v63 = vld [vmem:[#allocation87_spill] sm:$0xff]  ;;  %v8002_v32 = vpop.f32.mrf.mxu0 }
 0x553   :  { %v3553_v59 = vpop.f32.mrf.mxu2  ;;  %v3666_v60 = vpop.f32.mrf.mxu3  ;;  %v9055_v45 = vmax.f32 %v9529_v63, 0.0 }
 0x554   :  { %v4434_v58 = vmax.f32 %v3887_v56, %v3890_v49  ;;  %v3554_v12 = vadd.f32 %v3553_v59, %v7936_v46  ;;  %v9532_v56 = vmax.f32 %v7068_v35, 0.0  ;;  %v9534_v35 = vmax.f32 %v7092_v9, 0.0 }
 0x556   :  { %v3667_v14 = vadd.f32 %v3666_v60, %v3554_v12  ;;  %v9531_v60 = vld [vmem:[#allocation17_spill] sm:$0xff] }
 0x557   :  { %v2948_v30 = vadd.f32 %v7352_v8, %v9531_v60 }
 0x558   :  { %v3780_v25 = vadd.f32 %v7582_v48, %v3667_v14  ;;  %3603 = vmatmul.f32.gmra.mxu2 %v9058_v53  ;;  %3716 = vmatmul.f32.gmra.mxu3 %v9055_v45  ;;  %v8019_v48 = vadd.f32 %v7389_v1, %v3082_v15  ;;  %v9533_v14 = vld [vmem:[#allocation46_spill] sm:$0xff]  ;;  %v3433_v53 = vld [vmem:[#allocation7 + $0x128] sm:$0xff] }
 0x559   :  { %4227 = vmatmul.f32.gmra.mxu0 %v9530_v43  ;;  %v9051_v43 = vmax.f32 %v9533_v14, 0.0  ;;  %v3086_v60 = vmul.f32 %v7370_v21, %v2948_v30  ;;  %v9536_v30 = vmax.f32 %v7086_v40, 0.0  ;;  %v9539_v40 = vmax.f32 %v7118_v38, 0.0 }
 0x55a   :  { %v3893_v18 = vadd.f32 %v7129_v13, %v3780_v25  ;;  %4385 = vmatmul.f32.gmra.mxu1 %v9532_v56  ;;  %v9054_v20 = vmax.f32 %v8019_v48, 0.0  ;;  %v8034_v25 = vpop.f32.mrf.mxu0 }
 0x55b   :  { %v3556_v49 = vpop.f32.mrf.mxu2  ;;  %v3669_v16 = vpop.f32.mrf.mxu3 }
 0x55c   :  { %v4435_v59 = vmax.f32 %v4434_v58, %v3893_v18  ;;  %v3557_v12 = vadd.f32 %v3556_v49, %v7936_v46  ;;  %v9535_v58 = vld [vmem:[#allocation19_spill] sm:$0xff] }
 0x55d   :  { %v2952_v15 = vadd.f32 %v7352_v8, %v9535_v58  ;;  %v9538_v58 = vld [vmem:[#allocation49_spill] sm:$0xff] }
 0x55e   :  { %v3670_v42 = vadd.f32 %v3669_v16, %v3557_v12  ;;  %v8042_v16 = vpop.f32.mrf.mxu1 }
 0x560   :  { %v3783_v13 = vadd.f32 %v7620_v54, %v3670_v42  ;;  %3606 = vmatmul.f32.gmra.mxu2 %v9054_v20  ;;  %3719 = vmatmul.f32.gmra.mxu3 %v9051_v43  ;;  %v8040_v54 = vadd.f32 %v7389_v1, %v3086_v60  ;;  %v9052_v43 = vmax.f32 %v9538_v58, 0.0  ;;  %v9546_v20 = vld [vmem:[#allocation23_spill] sm:$0xff] }
 0x561   :  { %4230 = vmatmul.f32.gmra.mxu0 %v9534_v35  ;;  %v2960_v45 = vadd.f32 %v7352_v8, %v9546_v20  ;;  %v3401_v20 = vld [vmem:[#allocation7 + $0x28] sm:$0xff] }
 0x562   :  { %v3896_v18 = vadd.f32 %v7152_v27, %v3783_v13  ;;  %4388 = vmatmul.f32.gmra.mxu1 %v9536_v30  ;;  %9537 = vst [vmem:[#allocation32_spill] sm:$0xff] %v8040_v54  ;;  %v9053_v35 = vmax.f32 %v8040_v54, 0.0  ;;  %v3090_v27 = vmul.f32 %v7370_v21, %v2952_v15  ;;  %v9541_v13 = vmax.f32 %v7121_v10, 0.0  ;;  %v9572_v54 = vld [vmem:[#allocation68_spill] sm:$0xff] }
 0x563   :  { %v3559_v56 = vpop.f32.mrf.mxu2  ;;  %v3672_v49 = vpop.f32.mrf.mxu3 }
 0x564   :  { %v8044_v12 = vmax.f32 %v4435_v59, %v3896_v18  ;;  %v3560_v9 = vadd.f32 %v3559_v56, %v7936_v46  ;;  %v9540_v59 = vld [vmem:[#allocation21_spill] sm:$0xff]  ;;  %v8061_v18 = vadd.f32 %v7389_v1, %v3090_v27  ;;  %v8063_v56 = vpop.f32.mrf.mxu0 }
 0x565   :  { %v2956_v60 = vadd.f32 %v7352_v8, %v9540_v59 }
 0x566   :  { %v3673_v42 = vadd.f32 %v3672_v49, %v3560_v9  ;;  %9542 = vst [vmem:[#allocation15_spill] sm:$0xff] %v8061_v18  ;;  %v9543_v9 = vld [vmem:[#allocation89_spill] sm:$0xff]  ;;  %v9056_v59 = vmax.f32 %v8061_v18, 0.0 }
 0x567   :  { %v3094_v10 = vmul.f32 %v7370_v21, %v2956_v60 }
 0x568   :  { %3609 = vmatmul.f32.gmra.mxu2 %v9053_v35  ;;  %3722 = vmatmul.f32.gmra.mxu3 %v9052_v43  ;;  %v9057_v43 = vmax.f32 %v9543_v9, 0.0  ;;  %v8067_v35 = vpop.f32.mrf.mxu1  ;;  %v3786_v38 = vadd.f32 %v7652_v34, %v3673_v42 }
 0x569   :  { %4233 = vmatmul.f32.gmra.mxu0 %v9539_v40 }
 0x56a   :  { %4391 = vmatmul.f32.gmra.mxu1 %v9541_v13  ;;  %v9544_v13 = vld [vmem:[#allocation35_spill] sm:$0xff]  ;;  %v3899_v34 = vadd.f32 %v7176_v2, %v3786_v38 }
 0x56b   :  { %v3562_v30 = vpop.f32.mrf.mxu2  ;;  %v3675_v15 = vpop.f32.mrf.mxu3 }
 0x56c   :  { %v3563_v49 = vadd.f32 %v3562_v30, %v7936_v46  ;;  %v9545_v30 = vmax.f32 %v9544_v13, 0.0 }
 0x56e   :  { %v3676_v40 = vadd.f32 %v3675_v15, %v3563_v49  ;;  %v9547_v15 = vld [vmem:[#allocation38_spill] sm:$0xff]  ;;  %v3403_v49 = vld [vmem:[#allocation7 + $0x38] sm:$0xff] }
 0x56f   :  { %v9548_v60 = vmax.f32 %v9547_v15, 0.0  ;;  %3994 = vmatpush.msra.mxu2 %v3403_v49  ;;  %v3098_v15 = vmul.f32 %v7370_v21, %v2960_v45 }
 0x570   :  { %v3789_v27 = vadd.f32 %v7682_v19, %v3676_v40  ;;  %3612 = vmatmul.f32.gmra.mxu2 %v9056_v59  ;;  %3725 = vmatmul.f32.gmra.mxu3 %v9057_v43  ;;  %v8086_v19 = vadd.f32 %v7389_v1, %v3094_v10  ;;  %v3435_v40 = vld [vmem:[#allocation7 + $0x138] sm:$0xff]  ;;  %v9550_v10 = vld [vmem:[#allocation90_spill] sm:$0xff] }
 0x571   :  { %4236 = vmatmul.f32.gmra.mxu0 %v9545_v30  ;;  %4107 = vmatpush.msra.mxu3 %v3435_v40  ;;  %v8109_v40 = vadd.f32 %v7389_v1, %v3098_v15 }
 0x572   :  { %v3902_v42 = vadd.f32 %v7200_v47, %v3789_v27  ;;  %4394 = vmatmul.f32.gmra.mxu1 %v9548_v60  ;;  %9549 = vst [vmem:[#allocation34_spill] sm:$0xff] %v8086_v19  ;;  %3995 = vmatpush.msra.mxu2 %v3401_v20  ;;  %v8089_v47 = vpop.f32.mrf.mxu0  ;;  %v9060_v38 = vmax.f32 %v8086_v19, 0.0  ;;  %v9059_v27 = vmax.f32 %v9550_v10, 0.0  ;;  %v8094_v60 = vpop.f32.mrf.mxu1  ;;  %v4437_v20 = vrot.slane %v8044_v12, 4 }
 0x573   :  { %v3565_v59 = vpop.f32.mrf.mxu2  ;;  %v3678_v43 = vpop.f32.mrf.mxu3  ;;  %4108 = vmatpush.msra.mxu3 %v3433_v53  ;;  %v9551_v53 = vmax.f32 %v7172_v3, 0.0  ;;  %9555 = vst [vmem:[#allocation97_spill] sm:$0xff] %v8109_v40 }
 0x574   :  { %v4452_v13 = vmax.f32 %v3899_v34, %v3902_v42  ;;  %v3566_v30 = vadd.f32 %v3565_v59, %v7936_v46  ;;  %v9553_v42 = vld [vmem:[#allocation40_spill] sm:$0xff] }
 0x575   :  { %v9554_v45 = vmax.f32 %v9553_v42, 0.0 }
 0x576   :  { %v3679_v2 = vadd.f32 %v3678_v43, %v3566_v30  ;;  %v9552_v43 = vld [vmem:[#allocation25_spill] sm:$0xff] }
 0x577   :  { %v2964_v59 = vadd.f32 %v7352_v8, %v9552_v43 }
 0x578   :  { %v3792_v49 = vadd.f32 %v7707_v6, %v3679_v2  ;;  %3615 = vmatmul.f32.gmra.mxu2 %v9060_v38  ;;  %3728 = vmatmul.f32.gmra.mxu3 %v9059_v27  ;;  %v9556_v38 = vld [vmem:[#allocation92_spill] sm:$0xff] }
 0x579   :  { %4239 = vmatmul.f32.gmra.mxu0 %v9551_v53  ;;  %v9061_v53 = vmax.f32 %v8109_v40, 0.0  ;;  %v9063_v43 = vmax.f32 %v9556_v38, 0.0 }
 0x57a   :  { %v3905_v34 = vadd.f32 %v7231_v28, %v3792_v49  ;;  %4397 = vmatmul.f32.gmra.mxu1 %v9554_v45  ;;  %v3102_v28 = vmul.f32 %v7370_v21, %v2964_v59  ;;  %v4438_v49 = vmax.f32 %v8044_v12, %v4437_v20  ;;  %v8117_v42 = vpop.f32.mrf.mxu0  ;;  %v9560_v59 = vld [vmem:[#allocation69_spill] sm:$0xff] }
 0x57b   :  { %v3568_v6 = vpop.f32.mrf.mxu2  ;;  %v3681_v30 = vpop.f32.mrf.mxu3 }
 0x57c   :  { %v4453_v2 = vmax.f32 %v4452_v13, %v3905_v34  ;;  %v3569_v27 = vadd.f32 %v3568_v6, %v7936_v46  ;;  %v9557_v13 = vld [vmem:[#allocation41_spill] sm:$0xff]  ;;  %v9559_v34 = vld [vmem:[#allocation26_spill] sm:$0xff]  ;;  %v8128_v6 = vpop.f32.mrf.mxu1  ;;  %v4439_v38 = vrot.slane %v4438_v49, 2 }
 0x57d   :  { %v2968_v45 = vadd.f32 %v7352_v8, %v9559_v34 }
 0x57e   :  { %v3682_v3 = vadd.f32 %v3681_v30, %v3569_v27  ;;  %v9558_v27 = vmax.f32 %v9557_v13, 0.0  ;;  %v9561_v30 = vld [vmem:[#allocation36_spill] sm:$0xff] }
 0x57f   :  { %v9562_v20 = vmax.f32 %v9561_v30, 0.0 }
 0x580   :  { %v3795_v15 = vadd.f32 %v7741_v37, %v3682_v3  ;;  %3618 = vmatmul.f32.gmra.mxu2 %v9061_v53  ;;  %3731 = vmatmul.f32.gmra.mxu3 %v9063_v43  ;;  %v8134_v37 = vadd.f32 %v7389_v1, %v3102_v28  ;;  %v9565_v28 = vld [vmem:[#allocation28_spill] sm:$0xff] }
 0x581   :  { %4242 = vmatmul.f32.gmra.mxu0 %v9558_v27  ;;  %v9564_v27 = vld [vmem:[#allocation63_spill] sm:$0xff] }
 0x582   :  { %v3908_v12 = vadd.f32 %v9560_v59, %v3795_v15  ;;  %4400 = vmatmul.f32.gmra.mxu1 %v9562_v20  ;;  %9563 = vst [vmem:[#allocation87_spill] sm:$0xff] %v8134_v37  ;;  %v9068_v40 = vmax.f32 %v9564_v27, 0.0  ;;  %v9069_v19 = vmax.f32 %v8134_v37, 0.0  ;;  %v3106_v15 = vmul.f32 %v7370_v21, %v2968_v45 }
 0x583   :  { %v3571_v3 = vpop.f32.mrf.mxu2  ;;  %v3684_v53 = vpop.f32.mrf.mxu3  ;;  %v4440_v59 = vmax.f32 %v4438_v49, %v4439_v38 }
 0x584   :  { %v4454_v43 = vmax.f32 %v4453_v2, %v3908_v12  ;;  %v3572_v13 = vadd.f32 %v3571_v3, %v7936_v46  ;;  %v2972_v2 = vadd.f32 %v7352_v8, %v9565_v28  ;;  %v9566_v12 = vld [vmem:[#allocation37_spill] sm:$0xff]  ;;  %v8148_v3 = vpop.f32.mrf.mxu0  ;;  %v8153_v38 = vadd.f32 %v7389_v1, %v3106_v15  ;;  %v8155_v49 = vpop.f32.mrf.mxu1 }
 0x585   :  { %v9567_v20 = vmax.f32 %v9566_v12, 0.0  ;;  %v4441_v45 = vrot.slane %v4440_v59, 1 }
 0x586   :  { %v4455_v10 = vrot.slane %v4454_v43, 4  ;;  %v3685_v34 = vadd.f32 %v3684_v53, %v3572_v13  ;;  %v9568_v13 = vld [vmem:[#allocation64_spill] sm:$0xff] }
 0x587   :  { %v9569_v9 = vmax.f32 %v9568_v13, 0.0  ;;  %v4442_v15 = vmax.f32 %v4440_v59, %v4441_v45  ;;  %v9576_v59 = vld [vmem:[#allocation53_spill] sm:$0xff] }
 0x588   :  { %v4456_v30 = vmax.f32 %v4454_v43, %v4455_v10  ;;  %3621 = vmatmul.f32.gmra.mxu2 %v9069_v19  ;;  %3734 = vmatmul.f32.gmra.mxu3 %v9068_v40  ;;  %v9570_v19 = vld [vmem:[#allocation91_spill] sm:$0xff]  ;;  %v3798_v37 = vadd.f32 %v7776_v51, %v3685_v34  ;;  %v9573_v51 = vmax.f32 %v9572_v54, 0.0  ;;  %v9577_v45 = vld [vmem:[#allocation65_spill] sm:$0xff] }
 0x589   :  { %4245 = vmatmul.f32.gmra.mxu0 %v9567_v20  ;;  %v9075_v12 = vmax.f32 %v9570_v19, 0.0  ;;  %v3110_v20 = vmul.f32 %v7370_v21, %v2972_v2 }
 0x58a   :  { %v4457_v53 = vrot.slane %v4456_v30, 2  ;;  %4403 = vmatmul.f32.gmra.mxu1 %v9569_v9  ;;  %v9078_v9 = vmax.f32 %v8153_v38, 0.0 }
 0x58b   :  { %v3574_v10 = vpop.f32.mrf.mxu2  ;;  %v3687_v43 = vpop.f32.mrf.mxu3  ;;  %v8172_v34 = vadd.f32 %v7389_v1, %v3110_v20 }
 0x58c   :  { %v4458_v40 = vmax.f32 %v4456_v30, %v4457_v53  ;;  %v3575_v28 = vadd.f32 %v3574_v10, %v7936_v46  ;;  %v3399_v30 = vld [vmem:[#allocation7 + $0x18] sm:$0xff]  ;;  %v9571_v10 = vld [vmem:[#allocation94_spill] sm:$0xff] }
 0x58d   :  { %v3431_v53 = vld [vmem:[#allocation7 + $0x118] sm:$0xff]  ;;  %v2976_v2 = vadd.f32 %v7352_v8, %v9571_v10  ;;  %9574 = vst [vmem:[#allocation17_spill] sm:$0xff] %v8172_v34  ;;  %3996 = vmatpush.msra.mxu2 %v3399_v30  ;;  %v3429_v30 = vld [vmem:[#allocation7 + $0x108] sm:$0xff] }
 0x58e   :  { %v4459_v27 = vrot.slane %v4458_v40, 1  ;;  %v3688_v13 = vadd.f32 %v3687_v43, %v3575_v28  ;;  %v9578_v28 = vmax.f32 %v9577_v45, 0.0  ;;  %4109 = vmatpush.msra.mxu3 %v3431_v53  ;;  %v9582_v45 = vld [vmem:[#allocation30_spill] sm:$0xff] }
 0x58f   :  { %v3114_v53 = vmul.f32 %v7370_v21, %v2976_v2 }
 0x590   :  { %v4460_v18 = vmax.f32 %v4458_v40, %v4459_v27  ;;  %v3801_v58 = vadd.f32 %v7809_v36, %v3688_v13  ;;  %3624 = vmatmul.f32.gmra.mxu2 %v9078_v9  ;;  %3737 = vmatmul.f32.gmra.mxu3 %v9075_v12  ;;  %v9575_v40 = vld [vmem:[#allocation44_spill] sm:$0xff]  ;;  %v8181_v12 = vpop.f32.mrf.mxu0  ;;  %v9587_v9 = vld [vmem:[#allocation39_spill] sm:$0xff] }
 0x591   :  { %4248 = vmatmul.f32.gmra.mxu0 %v9573_v51  ;;  %v3911_v27 = vadd.f32 %v9575_v40, %v3798_v37  ;;  %v3397_v51 = vld [vmem:[#allocation7 + $0x8] sm:$0xff]  ;;  %4110 = vmatpush.msra.mxu3 %v3429_v30  ;;  %v8202_v2 = vadd.f32 %v7389_v1, %v3114_v53 }
 0x592   :  { %v8175_v36 = vsel %vm1399_vm0, %v4460_v18, %v4442_v15  ;;  %v3914_v43 = vadd.f32 %v9576_v59, %v3801_v58  ;;  %4406 = vmatmul.f32.gmra.mxu1 %v9578_v28  ;;  %3997 = vmatpush.msra.mxu2 %v3397_v51  ;;  %v8184_v18 = vpop.f32.mrf.mxu1  ;;  %v9076_v58 = vmax.f32 %v8172_v34, 0.0  ;;  %v9579_v15 = vld [vmem:[#allocation93_spill] sm:$0xff]  ;;  %v2980_v28 = vadd.f32 %v7352_v8, %v9582_v45 }
 0x593   :  { %v3577_v13 = vpop.f32.mrf.mxu2  ;;  %v3690_v10 = vpop.f32.mrf.mxu3  ;;  %v9077_v40 = vmax.f32 %v9579_v15, 0.0  ;;  %9586 = vst [vmem:[#allocation46_spill] sm:$0xff] %v8202_v2  ;;  %v9082_v45 = vmax.f32 %v9587_v9, 0.0 }
 0x594   :  { %v4470_v54 = vmax.f32 %v3911_v27, %v3914_v43  ;;  %v3578_v20 = vadd.f32 %v3577_v13, %v7936_v46  ;;  %v9580_v27 = vld [vmem:[#allocation47_spill] sm:$0xff]  ;;  %v9583_v13 = vld [vmem:[#allocation54_spill] sm:$0xff] }
 0x595   :  { %v9581_v43 = vmax.f32 %v9580_v27, 0.0 }
 0x596   :  { %v3691_v37 = vadd.f32 %v3690_v10, %v3578_v20  ;;  %v9584_v20 = vld [vmem:[#allocation50_spill] sm:$0xff] }
 0x597   :  { %v9585_v51 = vmax.f32 %v9584_v20, 0.0 }
 0x598   :  { %v3804_v59 = vadd.f32 %v7843_v7, %v3691_v37  ;;  %3627 = vmatmul.f32.gmra.mxu2 %v9076_v58  ;;  %3740 = vmatmul.f32.gmra.mxu3 %v9077_v40  ;;  %v8205_v40 = vpop.f32.mrf.mxu0 }
 0x599   :  { %4251 = vmatmul.f32.gmra.mxu0 %v9581_v43  ;;  %v9080_v43 = vmax.f32 %v8202_v2, 0.0 }
 0x59a   :  { %v3917_v10 = vadd.f32 %v9583_v13, %v3804_v59  ;;  %4409 = vmatmul.f32.gmra.mxu1 %v9585_v51  ;;  %v3118_v59 = vmul.f32 %v7370_v21, %v2980_v28  ;;  %v8210_v13 = vpop.f32.mrf.mxu1  ;;  %v9591_v51 = vld [vmem:[#allocation71_spill] sm:$0xff] }
 0x59b   :  { %v3580_v7 = vpop.f32.mrf.mxu2  ;;  %v3693_v30 = vpop.f32.mrf.mxu3 }
 0x59c   :  { %v4471_v37 = vmax.f32 %v4470_v54, %v3917_v10  ;;  %v3581_v58 = vadd.f32 %v3580_v7, %v7936_v46  ;;  %v9588_v54 = vld [vmem:[#allocation45_spill] sm:$0xff]  ;;  %v8225_v15 = vadd.f32 %v7389_v1, %v3118_v59  ;;  %v9596_v59 = vld [vmem:[#allocation52_spill] sm:$0xff] }
 0x59d   :  { %v9589_v53 = vmax.f32 %v9588_v54, 0.0 }
 0x59e   :  { %v3694_v27 = vadd.f32 %v3693_v30, %v3581_v58  ;;  %v9590_v58 = vld [vmem:[#allocation31_spill] sm:$0xff]  ;;  %v9592_v30 = vld [vmem:[#allocation48_spill] sm:$0xff]  ;;  %9594 = vst [vmem:[#allocation19_spill] sm:$0xff] %v8225_v15  ;;  %v9085_v54 = vmax.f32 %v8225_v15, 0.0 }
 0x59f   :  { %v2984_v10 = vadd.f32 %v7352_v8, %v9590_v58  ;;  %v9593_v28 = vmax.f32 %v9592_v30, 0.0 }
 0x5a0   :  { %v3807_v20 = vadd.f32 %v7874_v11, %v3694_v27  ;;  %3630 = vmatmul.f32.gmra.mxu2 %v9080_v43  ;;  %3743 = vmatmul.f32.gmra.mxu3 %v9082_v45  ;;  %v8231_v34 = vpop.f32.mrf.mxu0 }
 0x5a1   :  { %4254 = vmatmul.f32.gmra.mxu0 %v9589_v53  ;;  %v9595_v53 = vld [vmem:[#allocation57_spill] sm:$0xff]  ;;  %v3122_v58 = vmul.f32 %v7370_v21, %v2984_v10 }
 0x5a2   :  { %v3920_v7 = vadd.f32 %v9591_v51, %v3807_v20  ;;  %4412 = vmatmul.f32.gmra.mxu1 %v9593_v28  ;;  %v9086_v2 = vmax.f32 %v9595_v53, 0.0  ;;  %v9597_v20 = vmax.f32 %v9596_v59, 0.0  ;;  %v8241_v51 = vpop.f32.mrf.mxu1 }
 0x5a3   :  { %v3583_v11 = vpop.f32.mrf.mxu2  ;;  %v3696_v27 = vpop.f32.mrf.mxu3  ;;  %v8246_v10 = vadd.f32 %v7389_v1, %v3122_v58  ;;  %v9602_v58 = vld [vmem:[#allocation56_spill] sm:$0xff] }
 0x5a4   :  { %v4472_v43 = vmax.f32 %v4471_v37, %v3920_v7  ;;  %v3584_v9 = vadd.f32 %v3583_v11, %v7936_v46  ;;  %v9598_v37 = vld [vmem:[#allocation33_spill] sm:$0xff]  ;;  %v9599_v7 = vld [vmem:[#allocation51_spill] sm:$0xff] }
 0x5a5   :  { %v9600_v30 = vmax.f32 %v9599_v7, 0.0 }
 0x5a6   :  { %v3697_v45 = vadd.f32 %v3696_v27, %v3584_v9  ;;  %v2988_v9 = vadd.f32 %v7352_v8, %v9598_v37  ;;  %v4473_v27 = vrot.slane %v4472_v43, 4  ;;  %v3388_v8 = vmax.f32 %v8246_v10, 0.0 }
 0x5a8   :  { %3633 = vmatmul.f32.gmra.mxu2 %v9085_v54  ;;  %3746 = vmatmul.f32.gmra.mxu3 %v9086_v2  ;;  %v9601_v2 = vld [vmem:[#allocation58_spill] sm:$0xff]  ;;  %v3810_v59 = vadd.f32 %v7910_v52, %v3697_v45  ;;  %v3126_v37 = vmul.f32 %v7370_v21, %v2988_v9  ;;  %v4474_v15 = vmax.f32 %v4472_v43, %v4473_v27 }
 0x5a9   :  { %4257 = vmatmul.f32.gmra.mxu0 %v9597_v20  ;;  %v9089_v53 = vmax.f32 %v9601_v2, 0.0 }
 0x5aa   :  { %4415 = vmatmul.f32.gmra.mxu1 %v9600_v30  ;;  %v9603_v30 = vmax.f32 %v9602_v58, 0.0  ;;  %v3923_v52 = vadd.f32 %v7460_v24, %v3810_v59  ;;  %v4475_v27 = vrot.slane %v4474_v15, 2  ;;  %v9606_v24 = vld [vmem:[#allocation113_spill] sm:$0xff] }
 0x5ab   :  { %v3586_v28 = vpop.f32.mrf.mxu2  ;;  %v3699_v11 = vpop.f32.mrf.mxu3  ;;  %v9090_v59 = vmax.f32 %v9606_v24, 0.0 }
 0x5ac   :  { %v3587_v54 = vadd.f32 %v3586_v28, %v7936_v46  ;;  %v8260_v28 = vpop.f32.mrf.mxu0 }
 0x5ae   :  { %v3700_v20 = vadd.f32 %v3699_v11, %v3587_v54  ;;  %v9604_v54 = vld [vmem:[#allocation59_spill] sm:$0xff]  ;;  %v8269_v11 = vpop.f32.mrf.mxu1 }
 0x5af   :  { %v9605_v21 = vmax.f32 %v9604_v54, 0.0 }
 0x5b0   :  { %v3813_v7 = vadd.f32 %v7948_v33, %v3700_v20  ;;  %3636 = vmatmul.f32.gmra.mxu2 %v3388_v8  ;;  %3749 = vmatmul.f32.gmra.mxu3 %v9089_v53  ;;  %v8267_v33 = vadd.f32 %v7389_v1, %v3126_v37  ;;  %v9607_v1 = vld [vmem:[#allocation55_spill] sm:$0xff] }
 0x5b1   :  { %4260 = vmatmul.f32.gmra.mxu0 %v9603_v30  ;;  %v9608_v37 = vmax.f32 %v9607_v1, 0.0 }
 0x5b2   :  { %v3926_v45 = vadd.f32 %v7510_v0, %v3813_v7  ;;  %4418 = vmatmul.f32.gmra.mxu1 %v9605_v21  ;;  %v3392_v53 = vmax.f32 %v8267_v33, 0.0  ;;  %v4476_v0 = vmax.f32 %v4474_v15, %v4475_v27 }
 0x5b3   :  { %v3589_v43 = vpop.f32.mrf.mxu2  ;;  %v3702_v9 = vpop.f32.mrf.mxu3 }
 0x5b4   :  { %v4488_v20 = vmax.f32 %v3923_v52, %v3926_v45  ;;  %v3590_v58 = vadd.f32 %v3589_v43, %v7936_v46  ;;  %v9609_v45 = vld [vmem:[#allocation70_spill] sm:$0xff]  ;;  %v4477_v15 = vrot.slane %v4476_v0, 1 }
 0x5b5   :  { %v9610_v54 = vmax.f32 %v9609_v45, 0.0 }
 0x5b6   :  { %v3703_v30 = vadd.f32 %v3702_v9, %v3590_v58  ;;  %v8284_v9 = vpop.f32.mrf.mxu0  ;;  %v8287_v58 = vpop.f32.mrf.mxu1 }
 0x5b8   :  { %v3816_v7 = vadd.f32 %v7975_v4, %v3703_v30  ;;  %3639 = vmatmul.f32.gmra.mxu2 %v3392_v53  ;;  %3752 = vmatmul.f32.gmra.mxu3 %v9090_v59  ;;  %v4478_v59 = vmax.f32 %v4476_v0, %v4477_v15 }
 0x5b9   :  { %4263 = vmatmul.f32.gmra.mxu0 %v9608_v37  ;;  %v9611_v37 = vmax.f32 %v7406_v5, 0.0 }
 0x5ba   :  { %v3929_v52 = vadd.f32 %v7552_v44, %v3816_v7  ;;  %4421 = vmatmul.f32.gmra.mxu1 %v9610_v54  ;;  %v9612_v44 = vmax.f32 %v7402_v23, 0.0  ;;  %v9613_v7 = vmax.f32 %v7423_v39, 0.0  ;;  %v4595_v5 = vsel %vm1401_vm1, %v4478_v59, %v8175_v36 }
 0x5bb   :  { %v3592_v21 = vpop.f32.mrf.mxu2  ;;  %v3705_v43 = vpop.f32.mrf.mxu3  ;;  %v9615_v39 = vmax.f32 %v7451_v61, 0.0 }
 0x5bc   :  { %v4489_v4 = vmax.f32 %v4488_v20, %v3929_v52  ;;  %v3593_v27 = vadd.f32 %v3592_v21, %v7936_v46  ;;  %v9614_v20 = vmax.f32 %v7418_v22, 0.0  ;;  %v9617_v22 = vld [vmem:[#allocation60_spill] sm:$0xff] }
 0x5bd   :  { %v9618_v15 = vmax.f32 %v9617_v22, 0.0  ;;  %v9627_v22 = vld [vmem:[#allocation79_spill] sm:$0xff] }
 0x5be   :  { %v3706_v30 = vadd.f32 %v3705_v43, %v3593_v27  ;;  %v8304_v43 = vpop.f32.mrf.mxu1 }
 0x5c0   :  { %v3819_v1 = vadd.f32 %v8002_v32, %v3706_v30  ;;  %3998 = vmatmul.f32.vlgmr.msra.gmra.mxu2 %v9611_v37  ;;  %4111 = vmatmul.f32.vlgmr.msra.gmra.mxu3 %v9612_v44  ;;  %v8302_v32 = vpop.f32.mrf.mxu0 }
 0x5c1   :  { %4266 = vmatmul.f32.gmra.mxu0 %v9613_v7 }
 0x5c2   :  { %v3932_v45 = vadd.f32 %v7600_v41, %v3819_v1  ;;  %4424 = vmatmul.f32.gmra.mxu1 %v9614_v20  ;;  %v9616_v41 = vmax.f32 %v7443_v57, 0.0 }
 0x5c3   :  { %v3595_v52 = vpop.f32.mrf.mxu2  ;;  %v3708_v54 = vpop.f32.mrf.mxu3 }
 0x5c4   :  { %v4490_v21 = vmax.f32 %v4489_v4, %v3932_v45  ;;  %v3596_v0 = vadd.f32 %v3595_v52, %v7936_v46  ;;  %v9619_v4 = vld [vmem:[#allocation61_spill] sm:$0xff]  ;;  %v9621_v45 = vld [vmem:[#allocation100_spill] sm:$0xff] }
 0x5c5   :  { %v9620_v27 = vmax.f32 %v9619_v4, 0.0  ;;  %v9622_v20 = vmax.f32 %v9621_v45, 0.0  ;;  %v9623_v52 = vld [vmem:[#allocation96_spill] sm:$0xff]  ;;  %v9629_v4 = vld [vmem:[#allocation73_spill] sm:$0xff] }
 0x5c6   :  { %v3709_v23 = vadd.f32 %v3708_v54, %v3596_v0  ;;  %v4491_v36 = vrot.slane %v4490_v21, 4  ;;  %v9624_v54 = vmax.f32 %v9623_v52, 0.0  ;;  %v9625_v0 = vld [vmem:[#allocation72_spill] sm:$0xff] }
 0x5c8   :  { %4001 = vmatmul.f32.gmra.mxu2 %v9615_v39  ;;  %4114 = vmatmul.f32.gmra.mxu3 %v9616_v41  ;;  %v3822_v37 = vadd.f32 %v8034_v25, %v3709_v23  ;;  %v8316_v7 = vpop.f32.mrf.mxu0  ;;  %v4492_v61 = vmax.f32 %v4490_v21, %v4491_v36  ;;  %v9626_v39 = vmax.f32 %v9625_v0, 0.0  ;;  %v8325_v41 = vpop.f32.mrf.mxu1  ;;  %v9628_v25 = vld [vmem:[#allocation82_spill] sm:$0xff] }
 0x5c9   :  { %4269 = vmatmul.f32.gmra.mxu0 %v9618_v15 }
 0x5ca   :  { %4427 = vmatmul.f32.gmra.mxu1 %v9620_v27  ;;  %v3935_v15 = vadd.f32 %v9627_v22, %v3822_v37  ;;  %v9630_v27 = vmax.f32 %v9629_v4, 0.0  ;;  %v9637_v22 = vld [vmem:[#allocation14_spill] sm:$0xff] }
 0x5cb   :  { %v3598_v30 = vpop.f32.mrf.mxu2  ;;  %v3711_v1 = vpop.f32.mrf.mxu3 }
 0x5cc   :  { %v3599_v59 = vadd.f32 %v3598_v30, %v7936_v46  ;;  %v4493_v30 = vrot.slane %v4492_v61, 2 }
 0x5ce   :  { %v3712_v44 = vadd.f32 %v3711_v1, %v3599_v59 }
 0x5d0   :  { %v3825_v57 = vadd.f32 %v8063_v56, %v3712_v44  ;;  %4004 = vmatmul.f32.gmra.mxu2 %v9622_v20  ;;  %4117 = vmatmul.f32.gmra.mxu3 %v9624_v54  ;;  %v4494_v44 = vmax.f32 %v4492_v61, %v4493_v30  ;;  %v9631_v20 = vld [vmem:[#allocation67_spill] sm:$0xff]  ;;  %v9633_v54 = vld [vmem:[#allocation98_spill] sm:$0xff] }
 0x5d1   :  { %4272 = vmatmul.f32.gmra.mxu0 %v9626_v39  ;;  %v9632_v52 = vmax.f32 %v9631_v20, 0.0  ;;  %v9634_v37 = vmax.f32 %v9633_v54, 0.0  ;;  %v8339_v39 = vpop.f32.mrf.mxu0  ;;  %v9638_v30 = vld [vmem:[#allocation74_spill] sm:$0xff] }
 0x5d2   :  { %v3938_v23 = vadd.f32 %v9628_v25, %v3825_v57  ;;  %4430 = vmatmul.f32.gmra.mxu1 %v9630_v27  ;;  %v9635_v57 = vld [vmem:[#allocation99_spill] sm:$0xff]  ;;  %v4495_v4 = vrot.slane %v4494_v44, 1 }
 0x5d3   :  { %v3601_v21 = vpop.f32.mrf.mxu2  ;;  %v3714_v56 = vpop.f32.mrf.mxu3  ;;  %v9636_v0 = vmax.f32 %v9635_v57, 0.0 }
 0x5d4   :  { %v4506_v1 = vmax.f32 %v3935_v15, %v3938_v23  ;;  %v3602_v36 = vadd.f32 %v3601_v21, %v7936_v46  ;;  %v4496_v21 = vmax.f32 %v4494_v44, %v4495_v4  ;;  %v9647_v4 = vld [vmem:[#allocation112_spill] sm:$0xff] }
 0x5d6   :  { %v3715_v59 = vadd.f32 %v3714_v56, %v3602_v36  ;;  %v9639_v36 = vmax.f32 %v9638_v30, 0.0 }
 0x5d8   :  { %v3828_v45 = vadd.f32 %v8089_v47, %v3715_v59  ;;  %4007 = vmatmul.f32.gmra.mxu2 %v9632_v52  ;;  %4120 = vmatmul.f32.gmra.mxu3 %v9634_v37  ;;  %v9640_v59 = vld [vmem:[#allocation106_spill] sm:$0xff]  ;;  %v9642_v52 = vld [vmem:[#allocation75_spill] sm:$0xff] }
 0x5d9   :  { %4275 = vmatmul.f32.gmra.mxu0 %v9636_v0  ;;  %v9641_v20 = vmax.f32 %v9640_v59, 0.0  ;;  %v9643_v54 = vmax.f32 %v9642_v52, 0.0 }
 0x5da   :  { %v3941_v25 = vadd.f32 %v9637_v22, %v3828_v45  ;;  %v9644_v45 = vld [vmem:[#allocation116_spill] sm:$0xff] }
 0x5db   :  { %v3604_v15 = vpop.f32.mrf.mxu2  ;;  %v3717_v23 = vpop.f32.mrf.mxu3 }
 0x5dc   :  { %v4507_v27 = vmax.f32 %v4506_v1, %v3941_v25  ;;  %v3605_v61 = vadd.f32 %v3604_v15, %v7936_v46  ;;  %v8351_v1 = vpop.f32.mrf.mxu0  ;;  %v9645_v15 = vld [vmem:[#allocation76_spill] sm:$0xff] }
 0x5de   :  { %v3718_v47 = vadd.f32 %v3717_v23, %v3605_v61  ;;  %v9646_v23 = vmax.f32 %v9645_v15, 0.0  ;;  %v9648_v61 = vmax.f32 %v9647_v4, 0.0 }
 0x5e0   :  { %v3831_v56 = vadd.f32 %v8117_v42, %v3718_v47  ;;  %4010 = vmatmul.f32.gmra.mxu2 %v9639_v36  ;;  %4123 = vmatmul.f32.gmra.mxu3 %v9641_v20  ;;  %v4596_v42 = vsel %vm1403_vm2, %v4496_v21, %v4595_v5  ;;  %v9649_v47 = vld [vmem:[#allocation77_spill] sm:$0xff] }
 0x5e1   :  { %4278 = vmatmul.f32.gmra.mxu0 %v9643_v54  ;;  %v9650_v30 = vmax.f32 %v9649_v47, 0.0 }
 0x5e2   :  { %v3944_v37 = vadd.f32 %v9644_v45, %v3831_v56  ;;  %v9651_v45 = vld [vmem:[#allocation78_spill] sm:$0xff] }
 0x5e3   :  { %v3607_v57 = vpop.f32.mrf.mxu2  ;;  %v3720_v0 = vpop.f32.mrf.mxu3 }
 0x5e4   :  { %v4508_v22 = vmax.f32 %v4507_v27, %v3944_v37  ;;  %v3608_v44 = vadd.f32 %v3607_v57, %v7936_v46  ;;  %v8362_v27 = vpop.f32.mrf.mxu0  ;;  %v9652_v37 = vmax.f32 %v9651_v45, 0.0  ;;  %v9653_v57 = vld [vmem:[#allocation88_spill] sm:$0xff] }
 0x5e6   :  { %v3721_v25 = vadd.f32 %v3720_v0, %v3608_v44  ;;  %v4509_v59 = vrot.slane %v4508_v22, 4  ;;  %v9654_v0 = vmax.f32 %v9653_v57, 0.0  ;;  %v9655_v44 = vld [vmem:[#allocation62_spill] sm:$0xff] }
 0x5e7   :  { %v9656_v15 = vmax.f32 %v9655_v44, 0.0 }
 0x5e8   :  { %4013 = vmatmul.f32.gmra.mxu2 %v9646_v23  ;;  %4126 = vmatmul.f32.gmra.mxu3 %v9648_v61  ;;  %v3834_v52 = vadd.f32 %v8148_v3, %v3721_v25  ;;  %v4510_v21 = vmax.f32 %v4508_v22, %v4509_v59  ;;  %v9657_v23 = vld [vmem:[#allocation117_spill] sm:$0xff]  ;;  %v9658_v61 = vld [vmem:[#allocation119_spill] sm:$0xff] }
 0x5e9   :  { %4281 = vmatmul.f32.gmra.mxu0 %v9650_v30 }
 0x5ea   :  { %v3947_v4 = vadd.f32 %v9657_v23, %v3834_v52  ;;  %v4511_v3 = vrot.slane %v4510_v21, 2  ;;  %v9663_v52 = vld [vmem:[#allocation114_spill] sm:$0xff] }
 0x5eb   :  { %v3610_v56 = vpop.f32.mrf.mxu2  ;;  %v3723_v36 = vpop.f32.mrf.mxu3 }
 0x5ec   :  { %v3611_v20 = vadd.f32 %v3610_v56, %v7936_v46  ;;  %v4512_v59 = vmax.f32 %v4510_v21, %v4511_v3 }
 0x5ee   :  { %v3724_v5 = vadd.f32 %v3723_v36, %v3611_v20  ;;  %v8375_v36 = vpop.f32.mrf.mxu0 }
 0x5f0   :  { %v3837_v54 = vadd.f32 %v8181_v12, %v3724_v5  ;;  %4016 = vmatmul.f32.gmra.mxu2 %v9652_v37  ;;  %4129 = vmatmul.f32.gmra.mxu3 %v9654_v0  ;;  %v9659_v5 = vld [vmem:[#allocation81_spill] sm:$0xff]  ;;  %v9661_v37 = vld [vmem:[#allocation80_spill] sm:$0xff] }
 0x5f1   :  { %4284 = vmatmul.f32.gmra.mxu0 %v9656_v15  ;;  %v9660_v45 = vmax.f32 %v9659_v5, 0.0  ;;  %v9662_v57 = vmax.f32 %v9661_v37, 0.0  ;;  %v9665_v0 = vld [vmem:[#allocation24_spill] sm:$0xff]  ;;  %v9670_v5 = vld [vmem:[#allocation115_spill] sm:$0xff] }
 0x5f2   :  { %v3950_v47 = vadd.f32 %v9658_v61, %v3837_v54  ;;  %v9664_v54 = vmax.f32 %v9663_v52, 0.0 }
 0x5f3   :  { %v3613_v30 = vpop.f32.mrf.mxu2  ;;  %v3726_v56 = vpop.f32.mrf.mxu3 }
 0x5f4   :  { %v4524_v25 = vmax.f32 %v3947_v4, %v3950_v47  ;;  %v3614_v22 = vadd.f32 %v3613_v30, %v7936_v46  ;;  %v4513_v4 = vrot.slane %v4512_v59, 1 }
 0x5f6   :  { %v3727_v12 = vadd.f32 %v3726_v56, %v3614_v22  ;;  %v4514_v30 = vmax.f32 %v4512_v59, %v4513_v4  ;;  %v9666_v56 = vld [vmem:[#allocation83_spill] sm:$0xff]  ;;  %v9668_v22 = vld [vmem:[#allocation101_spill] sm:$0xff] }
 0x5f7   :  { %v9667_v3 = vmax.f32 %v9666_v56, 0.0  ;;  %v9676_v4 = vld [vmem:[#allocation85_spill] sm:$0xff] }
 0x5f8   :  { %v3840_v20 = vadd.f32 %v8205_v40, %v3727_v12  ;;  %4019 = vmatmul.f32.gmra.mxu2 %v9660_v45  ;;  %4132 = vmatmul.f32.gmra.mxu3 %v9662_v57  ;;  %v9669_v12 = vmax.f32 %v9668_v22, 0.0  ;;  %v9671_v45 = vmax.f32 %v9670_v5, 0.0 }
 0x5f9   :  { %4287 = vmatmul.f32.gmra.mxu0 %v9664_v54 }
 0x5fa   :  { %v3953_v44 = vadd.f32 %v9665_v0, %v3840_v20  ;;  %v8393_v20 = vpop.f32.mrf.mxu0  ;;  %v9672_v0 = vld [vmem:[#allocation84_spill] sm:$0xff] }
 0x5fb   :  { %v3616_v15 = vpop.f32.mrf.mxu2  ;;  %v3729_v23 = vpop.f32.mrf.mxu3 }
 0x5fc   :  { %v4525_v61 = vmax.f32 %v4524_v25, %v3953_v44  ;;  %v3617_v47 = vadd.f32 %v3616_v15, %v7936_v46  ;;  %v9673_v44 = vmax.f32 %v9672_v0, 0.0  ;;  %v9674_v15 = vld [vmem:[#allocation102_spill] sm:$0xff] }
 0x5fe   :  { %v3730_v21 = vadd.f32 %v3729_v23, %v3617_v47  ;;  %v9675_v23 = vmax.f32 %v9674_v15, 0.0  ;;  %v9677_v47 = vmax.f32 %v9676_v4, 0.0 }
 0x600   :  { %v3843_v40 = vadd.f32 %v8231_v34, %v3730_v21  ;;  %4022 = vmatmul.f32.gmra.mxu2 %v9667_v3  ;;  %4135 = vmatmul.f32.gmra.mxu3 %v9669_v12  ;;  %v4597_v34 = vsel %vm1405_vm3, %v4514_v30, %v4596_v42  ;;  %v9678_v3 = vld [vmem:[#allocation43_spill] sm:$0xff]  ;;  %v9682_v12 = vld [vmem:[#allocation42_spill] sm:$0xff] }
 0x601   :  { %4290 = vmatmul.f32.gmra.mxu0 %v9671_v45  ;;  %v9679_v22 = vmax.f32 %v9678_v3, 0.0  ;;  %v9680_v42 = vld [vmem:[#allocation103_spill] sm:$0xff]  ;;  %v9683_v5 = vmax.f32 %v9682_v12, 0.0 }
 0x602   :  { %v3956_v37 = vadd.f32 %v7885_v62, %v3843_v40  ;;  %v8404_v62 = vpop.f32.mrf.mxu0  ;;  %v9681_v30 = vmax.f32 %v9680_v42, 0.0 }
 0x603   :  { %v3619_v25 = vpop.f32.mrf.mxu2  ;;  %v3732_v57 = vpop.f32.mrf.mxu3 }
 0x604   :  { %v4526_v52 = vmax.f32 %v4525_v61, %v3956_v37  ;;  %v3620_v59 = vadd.f32 %v3619_v25, %v7936_v46 }
 0x606   :  { %v3733_v54 = vadd.f32 %v3732_v57, %v3620_v59  ;;  %v4527_v40 = vrot.slane %v4526_v52, 4 }
 0x608   :  { %4025 = vmatmul.f32.gmra.mxu2 %v9673_v44  ;;  %4138 = vmatmul.f32.gmra.mxu3 %v9675_v23  ;;  %v4528_v61 = vmax.f32 %v4526_v52, %v4527_v40  ;;  %v9684_v52 = vld [vmem:[#allocation16_spill] sm:$0xff] }
 0x609   :  { %4293 = vmatmul.f32.gmra.mxu0 %v9677_v47  ;;  %v9685_v15 = vmax.f32 %v9684_v52, 0.0  ;;  %v9686_v23 = vld [vmem:[#allocation104_spill] sm:$0xff]  ;;  %v9688_v47 = vld [vmem:[#allocation18_spill] sm:$0xff]  ;;  %v3846_v52 = vadd.f32 %v8260_v28, %v3733_v54 }
 0x60a   :  { %v4529_v25 = vrot.slane %v4528_v61, 2  ;;  %v8412_v57 = vpop.f32.mrf.mxu0  ;;  %v9687_v4 = vmax.f32 %v9686_v23, 0.0  ;;  %v9689_v40 = vmax.f32 %v9688_v47, 0.0  ;;  %v9690_v23 = vld [vmem:[#allocation118_spill] sm:$0xff]  ;;  %v9694_v47 = vld [vmem:[#allocation20_spill] sm:$0xff] }
 0x60b   :  { %v3622_v21 = vpop.f32.mrf.mxu2  ;;  %v3735_v56 = vpop.f32.mrf.mxu3 }
 0x60c   :  { %v3623_v59 = vadd.f32 %v3622_v21, %v7936_v46  ;;  %v4530_v0 = vmax.f32 %v4528_v61, %v4529_v25 }
 0x60e   :  { %v3736_v3 = vadd.f32 %v3735_v56, %v3623_v59  ;;  %v9692_v56 = vld [vmem:[#allocation105_spill] sm:$0xff] }
 0x60f   :  { %v9693_v59 = vmax.f32 %v9692_v56, 0.0 }
 0x610   :  { %4028 = vmatmul.f32.gmra.mxu2 %v9679_v22  ;;  %4141 = vmatmul.f32.gmra.mxu3 %v9681_v30  ;;  %v4531_v30 = vrot.slane %v4530_v0, 1  ;;  %v3849_v21 = vadd.f32 %v8284_v9, %v3736_v3 }
 0x611   :  { %4296 = vmatmul.f32.gmra.mxu0 %v9683_v5 }
 0x612   :  { %v4532_v25 = vmax.f32 %v4530_v0, %v4531_v30  ;;  %v3959_v0 = vadd.f32 %v7918_v29, %v3846_v52  ;;  %v9696_v30 = vld [vmem:[#allocation22_spill] sm:$0xff] }
 0x613   :  { %v3625_v45 = vpop.f32.mrf.mxu2  ;;  %v3738_v37 = vpop.f32.mrf.mxu3 }
 0x614   :  { %v3626_v44 = vadd.f32 %v3625_v45, %v7936_v46  ;;  %v8424_v45 = vpop.f32.mrf.mxu0 }
 0x616   :  { %v3739_v12 = vadd.f32 %v3738_v37, %v3626_v44  ;;  %v9695_v37 = vmax.f32 %v9694_v47, 0.0  ;;  %v3962_v44 = vadd.f32 %v7955_v26, %v3849_v21  ;;  %v9700_v26 = vld [vmem:[#allocation120_spill] sm:$0xff] }
 0x618   :  { %4031 = vmatmul.f32.gmra.mxu2 %v9685_v15  ;;  %4144 = vmatmul.f32.gmra.mxu3 %v9687_v4  ;;  %v3852_v15 = vadd.f32 %v8302_v32, %v3739_v12  ;;  %v9691_v4 = vmax.f32 %v9690_v23, 0.0  ;;  %v4598_v32 = vsel %vm1407_vm4, %v4532_v25, %v4597_v34  ;;  %v4542_v54 = vmax.f32 %v3959_v0, %v3962_v44  ;;  %v9702_v34 = vld [vmem:[#allocation121_spill] sm:$0xff] }
 0x619   :  { %4299 = vmatmul.f32.gmra.mxu0 %v9689_v40  ;;  %v9697_v12 = vmax.f32 %v9696_v30, 0.0  ;;  %v9703_v25 = vmax.f32 %v9702_v34, 0.0  ;;  %v9712_v30 = vld [vmem:[#allocation66_spill] sm:$0xff] }
 0x61a   :  { %v3965_v28 = vadd.f32 %v7980_v50, %v3852_v15 }
 0x61b   :  { %v3628_v22 = vpop.f32.mrf.mxu2  ;;  %v3741_v42 = vpop.f32.mrf.mxu3 }
 0x61c   :  { %v3629_v5 = vadd.f32 %v3628_v22, %v7936_v46  ;;  %v8446_v21 = vpop.f32.mrf.mxu0 }
 0x61e   :  { %v3742_v61 = vadd.f32 %v3741_v42, %v3629_v5  ;;  %v4543_v42 = vmax.f32 %v4542_v54, %v3965_v28  ;;  %v9698_v5 = vld [vmem:[#allocation107_spill] sm:$0xff] }
 0x61f   :  { %v9699_v23 = vmax.f32 %v9698_v5, 0.0  ;;  %v9708_v28 = vld [vmem:[#allocation27_spill] sm:$0xff] }
 0x620   :  { %4034 = vmatmul.f32.gmra.mxu2 %v9691_v4  ;;  %4147 = vmatmul.f32.gmra.mxu3 %v9693_v59  ;;  %v3855_v9 = vadd.f32 %v8316_v7, %v3742_v61  ;;  %v9701_v7 = vmax.f32 %v9700_v26, 0.0  ;;  %v9706_v4 = vld [vmem:[#allocation122_spill] sm:$0xff]  ;;  %v9709_v54 = vmax.f32 %v9708_v28, 0.0  ;;  %v9714_v28 = vld [vmem:[#allocation29_spill] sm:$0xff] }
 0x621   :  { %4302 = vmatmul.f32.gmra.mxu0 %v9695_v37  ;;  %v9707_v56 = vmax.f32 %v9706_v4, 0.0 }
 0x622   :  { %v3968_v22 = vadd.f32 %v8013_v55, %v3855_v9  ;;  %v9704_v55 = vld [vmem:[#allocation108_spill] sm:$0xff] }
 0x623   :  { %v3631_v40 = vpop.f32.mrf.mxu2  ;;  %v3744_v3 = vpop.f32.mrf.mxu3  ;;  %v9705_v15 = vmax.f32 %v9704_v55, 0.0 }
 0x624   :  { %v4544_v29 = vmax.f32 %v4543_v42, %v3968_v22  ;;  %v8454_v44 = vpop.f32.mrf.mxu0  ;;  %v9710_v22 = vld [vmem:[#allocation109_spill] sm:$0xff] }
 0x625   :  { %v9711_v42 = vmax.f32 %v9710_v22, 0.0 }
 0x626   :  { %v4545_v52 = vrot.slane %v4544_v29, 4 }
 0x628   :  { %4037 = vmatmul.f32.gmra.mxu2 %v9697_v12  ;;  %4150 = vmatmul.f32.gmra.mxu3 %v9699_v23  ;;  %v4546_v59 = vmax.f32 %v4544_v29, %v4545_v52  ;;  %v9713_v12 = vmax.f32 %v9712_v30, 0.0  ;;  %v3632_v23 = vadd.f32 %v3631_v40, %v7936_v46 }
 0x629   :  { %4305 = vmatmul.f32.gmra.mxu0 %v9701_v7 }
 0x62a   :  { %v4547_v9 = vrot.slane %v4546_v59, 2 }
 0x62b   :  { %v3634_v61 = vpop.f32.mrf.mxu2  ;;  %v3747_v50 = vpop.f32.mrf.mxu3 }
 0x62c   :  { %v3635_v0 = vadd.f32 %v3634_v61, %v7936_v46  ;;  %v4548_v5 = vmax.f32 %v4546_v59, %v4547_v9  ;;  %v9716_v59 = vld [vmem:[#allocation110_spill] sm:$0xff] }
 0x62d   :  { %v9717_v40 = vmax.f32 %v9716_v59, 0.0  ;;  %v9726_v59 = vmax.f32 %v7971_v31, 0.0 }
 0x62e   :  { %v3748_v52 = vadd.f32 %v3747_v50, %v3635_v0  ;;  %v4549_v61 = vrot.slane %v4548_v5, 1  ;;  %v4732_v50 = vld [vmem:[%s8663_s13] sm:$0x3]  ;;  %s4845_s13 = smov [#allocation8]  }
 0x62f   :  { %s4617_s26 = sshll.u32 %s4845_s13, 4  ;;  %s4618_s26 = int_to_ptr.vmem [resolvable:$true] %s4617_s26 }
 0x630   :  { %4040 = vmatmul.f32.gmra.mxu2 %v9703_v25  ;;  %4153 = vmatmul.f32.gmra.mxu3 %v9705_v15  ;;  %v3745_v25 = vadd.f32 %v3744_v3, %v3632_v23  ;;  %v8466_v15 = vpop.f32.mrf.mxu0  ;;  %v3861_v4 = vadd.f32 %v8351_v1, %v3748_v52  ;;  %v4550_v9 = vmax.f32 %v4548_v5, %v4549_v61 }
 0x631   :  { %4308 = vmatmul.f32.gmra.mxu0 %v9707_v56 }
 0x632   :  { %v4599_v23 = vsel %vm1409_vm5, %v4550_v9, %v4598_v32 }
 0x633   :  { %v3637_v47 = vpop.f32.mrf.mxu2  ;;  %v3750_v37 = vpop.f32.mrf.mxu3 }
 0x634   :  { %v3638_v26 = vadd.f32 %v3637_v47, %v7936_v46  ;;  %v8476_v47 = vperm.slane %v4732_v50, 1 }
 0x636   :  { %v3751_v55 = vadd.f32 %v3750_v37, %v3638_v26  ;;  %v3858_v37 = vadd.f32 %v8339_v39, %v3745_v25 }
 0x638   :  { %4043 = vmatmul.f32.gmra.mxu2 %v9709_v54  ;;  %4156 = vmatmul.f32.gmra.mxu3 %v9711_v42  ;;  %v9715_v54 = vmax.f32 %v9714_v28, 0.0  ;;  %v3864_v1 = vadd.f32 %v8362_v27, %v3751_v55  ;;  %v3974_v42 = vadd.f32 %v8067_v35, %v3861_v4  ;;  %v3971_v26 = vadd.f32 %v8042_v16, %v3858_v37  ;;  %v9720_v27 = vld [vmem:[#allocation13_spill] sm:$0xff]  ;;  %v8493_v35 = vpop.f32.mrf.mxu0 }
 0x639   :  { %4311 = vmatmul.f32.gmra.mxu0 %v9713_v12  ;;  %v9721_v5 = vmax.f32 %v9720_v27, 0.0 }
 0x63a   :  { %v4560_v52 = vmax.f32 %v3971_v26, %v3974_v42 }
 0x63b   :  { %v3640_v7 = vpop.f32.mrf.mxu2  ;;  %v3753_v29 = vpop.f32.mrf.mxu3 }
 0x63c   :  { %v3641_v34 = vadd.f32 %v3640_v7, %v7936_v46  ;;  %v9718_v46 = vld [vmem:[#allocation12_spill] sm:$0xff]  ;;  %v3977_v7 = vadd.f32 %v8094_v60, %v3864_v1 }
 0x63d   :  { %v9719_v3 = vmax.f32 %v9718_v46, 0.0 }
 0x63e   :  { %v3754_v56 = vadd.f32 %v3753_v29, %v3641_v34  ;;  %v9722_v34 = vld [vmem:[#allocation111_spill] sm:$0xff]  ;;  %v4561_v32 = vmax.f32 %v4560_v52, %v3977_v7 }
 0x63f   :  { %v9723_v61 = vmax.f32 %v9722_v34, 0.0 }
 0x640   :  { %4046 = vmatmul.f32.gmra.mxu2 %v9715_v54  ;;  %4159 = vmatmul.f32.gmra.mxu3 %v9717_v40  ;;  %v3867_v30 = vadd.f32 %v8375_v36, %v3754_v56  ;;  %v9724_v36 = vld [vmem:[#allocation95_spill] sm:$0xff]  ;;  %v9727_v40 = vld [vmem:[#allocation86_spill] sm:$0xff]  ;;  %v8507_v42 = vpop.f32.mrf.mxu0 }
 0x641   :  { %4314 = vmatmul.f32.gmra.mxu0 %v9719_v3  ;;  %v9725_v25 = vmax.f32 %v9724_v36, 0.0  ;;  %v9728_v50 = vmax.f32 %v9727_v40, 0.0 }
 0x642   :  { %v3980_v39 = vadd.f32 %v8128_v6, %v3867_v30  ;;  %v9729_v30 = vmax.f32 %v7996_v17, 0.0  ;;  %v9732_v17 = vmax.f32 %v9533_v14, 0.0 }
 0x643   :  { %v3999_v0 = vpop.f32.mrf.mxu2  ;;  %v4112_v22 = vpop.f32.mrf.mxu3 }
 0x644   :  { %v4000_v12 = vadd.f32 %v3999_v0, %v8476_v47  ;;  %v4562_v4 = vmax.f32 %v4561_v32, %v3980_v39 }
 0x646   :  { %v4113_v29 = vadd.f32 %v4112_v22, %v4000_v12  ;;  %v4563_v28 = vrot.slane %v4562_v4, 4  ;;  %v9730_v12 = vmax.f32 %v9529_v63, 0.0 }
 0x648   :  { %4049 = vmatmul.f32.gmra.mxu2 %v9721_v5  ;;  %4162 = vmatmul.f32.gmra.mxu3 %v9723_v61  ;;  %v4226_v56 = vadd.f32 %v8393_v20, %v4113_v29  ;;  %v4564_v9 = vmax.f32 %v4562_v4, %v4563_v28  ;;  %v8523_v34 = vpop.f32.mrf.mxu0  ;;  %v9733_v4 = vld [vmem:[#allocation32_spill] sm:$0xff] }
 0x649   :  { %4317 = vmatmul.f32.gmra.mxu0 %v9725_v25  ;;  %v9734_v14 = vmax.f32 %v9733_v4, 0.0 }
 0x64a   :  { %v4339_v46 = vadd.f32 %v8155_v49, %v4226_v56  ;;  %v8514_v49 = vpop.f32.mrf.mxu1 }
 0x64b   :  { %v4002_v55 = vpop.f32.mrf.mxu2  ;;  %v4115_v16 = vpop.f32.mrf.mxu3 }
 0x64c   :  { %v4003_v60 = vadd.f32 %v4002_v55, %v8476_v47 }
 0x64e   :  { %v4116_v6 = vadd.f32 %v4115_v16, %v4003_v60  ;;  %v9735_v60 = vld [vmem:[#allocation49_spill] sm:$0xff] }
 0x64f   :  { %v9736_v56 = vmax.f32 %v9735_v60, 0.0 }
 0x650   :  { %v4229_v54 = vadd.f32 %v8404_v62, %v4116_v6  ;;  %4052 = vmatmul.f32.gmra.mxu2 %v9726_v59  ;;  %4165 = vmatmul.f32.gmra.mxu3 %v9728_v50  ;;  %v4565_v62 = vrot.slane %v4564_v9, 2  ;;  %v8534_v28 = vpop.f32.mrf.mxu0 }
 0x652   :  { %v4342_v3 = vadd.f32 %v8184_v18, %v4229_v54  ;;  %v4566_v29 = vmax.f32 %v4564_v9, %v4565_v62  ;;  %v8526_v32 = vpop.f32.mrf.mxu1 }
 0x653   :  { %v4005_v37 = vpop.f32.mrf.mxu2  ;;  %v4118_v1 = vpop.f32.mrf.mxu3 }
 0x654   :  { %v4443_v0 = vmax.f32 %v4339_v46, %v4342_v3  ;;  %v4006_v20 = vadd.f32 %v4005_v37, %v8476_v47  ;;  %v4567_v63 = vrot.slane %v4566_v29, 1  ;;  %v9737_v46 = vld [vmem:[#allocation15_spill] sm:$0xff]  ;;  %v9739_v37 = vld [vmem:[#allocation89_spill] sm:$0xff] }
 0x655   :  { %v9738_v3 = vmax.f32 %v9737_v46, 0.0 }
 0x656   :  { %v4119_v22 = vadd.f32 %v4118_v1, %v4006_v20  ;;  %v4568_v61 = vmax.f32 %v4566_v29, %v4567_v63  ;;  %v9740_v1 = vmax.f32 %v9739_v37, 0.0 }
 0x658   :  { %v4232_v31 = vadd.f32 %v8412_v57, %v4119_v22  ;;  %4055 = vmatmul.f32.gmra.mxu2 %v9729_v30  ;;  %4168 = vmatmul.f32.gmra.mxu3 %v9730_v12  ;;  %v9731_v57 = vmax.f32 %v8019_v48, 0.0  ;;  %v8548_v30 = vpop.f32.mrf.mxu0 }
 0x65a   :  { %v4345_v18 = vadd.f32 %v8210_v13, %v4232_v31  ;;  %v8537_v59 = vpop.f32.mrf.mxu1 }
 0x65b   :  { %v4008_v26 = vpop.f32.mrf.mxu2  ;;  %v4121_v7 = vpop.f32.mrf.mxu3 }
 0x65c   :  { %v4444_v52 = vmax.f32 %v4443_v0, %v4345_v18  ;;  %v4009_v39 = vadd.f32 %v4008_v26, %v8476_v47  ;;  %v9741_v18 = vld [vmem:[#allocation34_spill] sm:$0xff] }
 0x65d   :  { %v9742_v26 = vmax.f32 %v9741_v18, 0.0  ;;  %v9753_v18 = vmax.f32 %v8153_v38, 0.0 }
 0x65e   :  { %v4122_v27 = vadd.f32 %v4121_v7, %v4009_v39  ;;  %v9743_v7 = vld [vmem:[#allocation90_spill] sm:$0xff] }
 0x65f   :  { %v9744_v29 = vmax.f32 %v9743_v7, 0.0 }
 0x660   :  { %v4235_v5 = vadd.f32 %v8424_v45, %v4122_v27  ;;  %4058 = vmatmul.f32.gmra.mxu2 %v9731_v57  ;;  %4171 = vmatmul.f32.gmra.mxu3 %v9732_v17  ;;  %v4600_v45 = vsel %vm1411_vm6, %v4568_v61, %v4599_v23  ;;  %v8559_v17 = vpop.f32.mrf.mxu0 }
 0x661   :  { %4610 = vst [vmem:[#allocation8] sm:$0xff] %v4600_v45 }
 0x662   :  { %v4348_v13 = vadd.f32 %v8241_v51, %v4235_v5  ;;  %v8550_v12 = vpop.f32.mrf.mxu1 }
 0x663   :  { %v4011_v36 = vpop.f32.mrf.mxu2  ;;  %v4124_v25 = vpop.f32.mrf.mxu3 }
 0x664   :  { %v4445_v55 = vmax.f32 %v4444_v52, %v4348_v13  ;;  %v4012_v16 = vadd.f32 %v4011_v36, %v8476_v47  ;;  %v9745_v13 = vld [vmem:[#allocation97_spill] sm:$0xff]  ;;  %v9747_v36 = vld [vmem:[#allocation92_spill] sm:$0xff] }
 0x665   :  { %v9746_v61 = vmax.f32 %v9745_v13, 0.0 }
 0x666   :  { %v4125_v48 = vadd.f32 %v4124_v25, %v4012_v16  ;;  %v4446_v39 = vrot.slane %v4445_v55, 4  ;;  %v9748_v25 = vmax.f32 %v9747_v36, 0.0 }
 0x668   :  { %4061 = vmatmul.f32.gmra.mxu2 %v9734_v14  ;;  %4174 = vmatmul.f32.gmra.mxu3 %v9736_v56  ;;  %v4238_v40 = vadd.f32 %v8446_v21, %v4125_v48  ;;  %v4447_v63 = vmax.f32 %v4445_v55, %v4446_v39 }
 0x66a   :  { %v4351_v9 = vadd.f32 %v8269_v11, %v4238_v40  ;;  %v8566_v16 = vpop.f32.mrf.mxu1  ;;  %v4448_v4 = vrot.slane %v4447_v63, 2  ;;  %v9751_v40 = vld [vmem:[#allocation63_spill] sm:$0xff] }
 0x66b   :  { %v4014_v6 = vpop.f32.mrf.mxu2  ;;  %v4127_v51 = vpop.f32.mrf.mxu3 }
 0x66c   :  { %v4015_v54 = vadd.f32 %v4014_v6, %v8476_v47  ;;  %v4449_v6 = vmax.f32 %v4447_v63, %v4448_v4  ;;  %v9759_v4 = vld [vmem:[#allocation46_spill] sm:$0xff] }
 0x66e   :  { %v4128_v50 = vadd.f32 %v4127_v51, %v4015_v54  ;;  %v9749_v51 = vld [vmem:[#allocation87_spill] sm:$0xff] }
 0x66f   :  { %v9750_v54 = vmax.f32 %v9749_v51, 0.0 }
 0x670   :  { %v4241_v23 = vadd.f32 %v8454_v44, %v4128_v50  ;;  %4064 = vmatmul.f32.gmra.mxu2 %v9738_v3  ;;  %4177 = vmatmul.f32.gmra.mxu3 %v9740_v1  ;;  %v9752_v50 = vmax.f32 %v9751_v40, 0.0  ;;  %v4450_v1 = vrot.slane %v4449_v6, 1 }
 0x672   :  { %v4354_v0 = vadd.f32 %v8287_v58, %v4241_v23  ;;  %v4264_v23 = vpop.f32.mrf.mxu0  ;;  %v8574_v37 = vpop.f32.mrf.mxu1 }
 0x673   :  { %v4017_v20 = vpop.f32.mrf.mxu2  ;;  %v4130_v22 = vpop.f32.mrf.mxu3 }
 0x674   :  { %v4461_v62 = vmax.f32 %v4351_v9, %v4354_v0  ;;  %v4018_v31 = vadd.f32 %v4017_v20, %v8476_v47 }
 0x676   :  { %v4131_v21 = vadd.f32 %v4130_v22, %v4018_v31  ;;  %v4451_v31 = vmax.f32 %v4449_v6, %v4450_v1 }
 0x678   :  { %v4244_v44 = vadd.f32 %v8466_v15, %v4131_v21  ;;  %4067 = vmatmul.f32.gmra.mxu2 %v9742_v26  ;;  %4180 = vmatmul.f32.gmra.mxu3 %v9744_v29  ;;  %v9754_v26 = vmax.f32 %v9570_v19, 0.0  ;;  %v9757_v19 = vld [vmem:[#allocation93_spill] sm:$0xff] }
 0x67a   :  { %v4357_v11 = vadd.f32 %v8304_v43, %v4244_v44 }
 0x67b   :  { %v4020_v58 = vpop.f32.mrf.mxu2  ;;  %v4133_v52 = vpop.f32.mrf.mxu3 }
 0x67c   :  { %v4462_v27 = vmax.f32 %v4461_v62, %v4357_v11  ;;  %v4021_v5 = vadd.f32 %v4020_v58, %v8476_v47 }
 0x67e   :  { %v4134_v57 = vadd.f32 %v4133_v52, %v4021_v5  ;;  %v4380_v5 = vpop.f32.mrf.mxu1 }
 0x680   :  { %v4247_v15 = vadd.f32 %v8493_v35, %v4134_v57  ;;  %4070 = vmatmul.f32.gmra.mxu2 %v9746_v61  ;;  %4183 = vmatmul.f32.gmra.mxu3 %v9748_v25  ;;  %v9755_v57 = vld [vmem:[#allocation17_spill] sm:$0xff] }
 0x681   :  { %v9756_v63 = vmax.f32 %v9755_v57, 0.0 }
 0x682   :  { %v4360_v43 = vadd.f32 %v8325_v41, %v4247_v15  ;;  %v9758_v15 = vmax.f32 %v9757_v19, 0.0 }
 0x683   :  { %v4023_v45 = vpop.f32.mrf.mxu2  ;;  %v4136_v48 = vpop.f32.mrf.mxu3 }
 0x684   :  { %v4463_v14 = vmax.f32 %v4462_v27, %v4360_v43  ;;  %v4024_v60 = vadd.f32 %v4023_v45, %v8476_v47 }
 0x686   :  { %v4464_v56 = vrot.slane %v4463_v14, 4  ;;  %v4137_v55 = vadd.f32 %v4136_v48, %v4024_v60  ;;  %v4383_v45 = vpop.f32.mrf.mxu1 }
 0x688   :  { %v4465_v35 = vmax.f32 %v4463_v14, %v4464_v56  ;;  %4073 = vmatmul.f32.gmra.mxu2 %v9750_v54  ;;  %4186 = vmatmul.f32.gmra.mxu3 %v9752_v50  ;;  %v4250_v22 = vadd.f32 %v8507_v42, %v4137_v55  ;;  %v4267_v42 = vpop.f32.mrf.mxu0  ;;  %v9761_v14 = vld [vmem:[#allocation39_spill] sm:$0xff] }
 0x689   :  { %v9762_v60 = vmax.f32 %v9761_v14, 0.0 }
 0x68a   :  { %v4466_v46 = vrot.slane %v4465_v35, 2  ;;  %v4363_v29 = vadd.f32 %v8514_v49, %v4250_v22 }
 0x68b   :  { %v4026_v3 = vpop.f32.mrf.mxu2  ;;  %v4139_v41 = vpop.f32.mrf.mxu3 }
 0x68c   :  { %v4467_v9 = vmax.f32 %v4465_v35, %v4466_v46  ;;  %v4027_v0 = vadd.f32 %v4026_v3, %v8476_v47  ;;  %v9763_v46 = vld [vmem:[#allocation19_spill] sm:$0xff] }
 0x68d   :  { %v9764_v3 = vmax.f32 %v9763_v46, 0.0 }
 0x68e   :  { %v4468_v20 = vrot.slane %v4467_v9, 1  ;;  %v4140_v62 = vadd.f32 %v4139_v41, %v4027_v0  ;;  %v4386_v1 = vpop.f32.mrf.mxu1 }
 0x690   :  { %v4469_v21 = vmax.f32 %v4467_v9, %v4468_v20  ;;  %v4253_v44 = vadd.f32 %v8523_v34, %v4140_v62  ;;  %4076 = vmatmul.f32.gmra.mxu2 %v9753_v18  ;;  %4189 = vmatmul.f32.gmra.mxu3 %v9754_v26  ;;  %v4270_v25 = vpop.f32.mrf.mxu0  ;;  %v9767_v26 = vmax.f32 %v9601_v2, 0.0  ;;  %v9768_v2 = vmax.f32 %v9606_v24, 0.0 }
 0x692   :  { %v4601_v7 = vsel %vm1399_vm0, %v4469_v21, %v4451_v31  ;;  %v4366_v11 = vadd.f32 %v8526_v32, %v4253_v44 }
 0x693   :  { %v4029_v58 = vpop.f32.mrf.mxu2  ;;  %v4142_v52 = vpop.f32.mrf.mxu3 }
 0x694   :  { %v4479_v39 = vmax.f32 %v4363_v29, %v4366_v11  ;;  %v4030_v27 = vadd.f32 %v4029_v58, %v8476_v47 }
 0x696   :  { %v4143_v34 = vadd.f32 %v4142_v52, %v4030_v27 }
 0x698   :  { %v4256_v38 = vadd.f32 %v8534_v28, %v4143_v34  ;;  %4079 = vmatmul.f32.gmra.mxu2 %v9756_v63  ;;  %4192 = vmatmul.f32.gmra.mxu3 %v9758_v15  ;;  %v9760_v28 = vmax.f32 %v9759_v4, 0.0  ;;  %v4273_v40 = vpop.f32.mrf.mxu0 }
 0x69a   :  { %v4369_v49 = vadd.f32 %v8537_v59, %v4256_v38 }
 0x69b   :  { %v4032_v13 = vpop.f32.mrf.mxu2  ;;  %v4145_v32 = vpop.f32.mrf.mxu3 }
 0x69c   :  { %v4480_v61 = vmax.f32 %v4479_v39, %v4369_v49  ;;  %v4033_v36 = vadd.f32 %v4032_v13, %v8476_v47 }
 0x69e   :  { %v4146_v43 = vadd.f32 %v4145_v32, %v4033_v36 }
 0x6a0   :  { %v4259_v48 = vadd.f32 %v8548_v30, %v4146_v43  ;;  %4082 = vmatmul.f32.gmra.mxu2 %v9760_v28  ;;  %4195 = vmatmul.f32.gmra.mxu3 %v9762_v60  ;;  %v9765_v30 = vld [vmem:[#allocation57_spill] sm:$0xff]  ;;  %v4276_v29 = vpop.f32.mrf.mxu0 }
 0x6a1   :  { %v9766_v41 = vmax.f32 %v9765_v30, 0.0 }
 0x6a2   :  { %v4372_v56 = vadd.f32 %v8550_v12, %v4259_v48 }
 0x6a3   :  { %v4035_v55 = vpop.f32.mrf.mxu2  ;;  %v4148_v59 = vpop.f32.mrf.mxu3 }
 0x6a4   :  { %v4481_v6 = vmax.f32 %v4480_v61, %v4372_v56  ;;  %v4036_v35 = vadd.f32 %v4035_v55, %v8476_v47 }
 0x6a6   :  { %v4482_v51 = vrot.slane %v4481_v6, 4  ;;  %v4149_v54 = vadd.f32 %v4148_v59, %v4036_v35 }
 0x6a8   :  { %v4483_v50 = vmax.f32 %v4481_v6, %v4482_v51  ;;  %4085 = vmatmul.f32.gmra.mxu2 %v9764_v3  ;;  %4198 = vmatmul.f32.gmra.mxu3 %v9766_v41  ;;  %v4262_v31 = vadd.f32 %v8559_v17, %v4149_v54  ;;  %v4389_v17 = vpop.f32.mrf.mxu1 }
 0x6aa   :  { %v4484_v9 = vrot.slane %v4483_v50, 2  ;;  %v4375_v58 = vadd.f32 %v8566_v16, %v4262_v31  ;;  %v4279_v16 = vpop.f32.mrf.mxu0 }
 0x6ab   :  { %v4038_v0 = vpop.f32.mrf.mxu2  ;;  %v4151_v20 = vpop.f32.mrf.mxu3 }
 0x6ac   :  { %v4485_v12 = vmax.f32 %v4483_v50, %v4484_v9  ;;  %v4039_v22 = vadd.f32 %v4038_v0, %v8476_v47 }
 0x6ae   :  { %v4486_v62 = vrot.slane %v4485_v12, 1  ;;  %v4152_v21 = vadd.f32 %v4151_v20, %v4039_v22 }
 0x6b0   :  { %v4487_v44 = vmax.f32 %v4485_v12, %v4486_v62  ;;  %v4265_v18 = vadd.f32 %v4264_v23, %v4152_v21  ;;  %4088 = vmatmul.f32.gmra.mxu2 %v3388_v8  ;;  %4201 = vmatmul.f32.gmra.mxu3 %v9767_v26  ;;  %v4392_v19 = vpop.f32.mrf.mxu1 }
 0x6b2   :  { %v8612_v11 = vsel %vm1401_vm1, %v4487_v44, %v4601_v7  ;;  %v4378_v52 = vadd.f32 %v8574_v37, %v4265_v18 }
 0x6b3   :  { %v4041_v39 = vpop.f32.mrf.mxu2  ;;  %v4154_v27 = vpop.f32.mrf.mxu3 }
 0x6b4   :  { %v4497_v34 = vmax.f32 %v4375_v58, %v4378_v52  ;;  %v4042_v23 = vadd.f32 %v4041_v39, %v8476_v47 }
 0x6b6   :  { %v4155_v38 = vadd.f32 %v4154_v27, %v4042_v23 }
 0x6b8   :  { %v4268_v10 = vadd.f32 %v4267_v42, %v4155_v38  ;;  %4091 = vmatmul.f32.gmra.mxu2 %v3392_v53  ;;  %4204 = vmatmul.f32.gmra.mxu3 %v9768_v2  ;;  %v4282_v53 = vpop.f32.mrf.mxu0  ;;  %v4395_v24 = vpop.f32.mrf.mxu1 }
 0x6ba   :  { %v4381_v8 = vadd.f32 %v4380_v5, %v4268_v10 }
 0x6bb   :  { %v4044_v7 = vpop.f32.mrf.mxu2  ;;  %v4157_v57 = vpop.f32.mrf.mxu3 }
 0x6bc   :  { %v4498_v63 = vmax.f32 %v4497_v34, %v4381_v8  ;;  %v4045_v37 = vadd.f32 %v4044_v7, %v8476_v47 }
 0x6be   :  { %v4158_v15 = vadd.f32 %v4157_v57, %v4045_v37 }
 0x6c0   :  { %v4271_v49 = vadd.f32 %v4270_v25, %v4158_v15  ;;  %v4285_v60 = vpop.f32.mrf.mxu0  ;;  %v4398_v25 = vpop.f32.mrf.mxu1 }
 0x6c2   :  { %v4384_v13 = vadd.f32 %v4383_v45, %v4271_v49 }
 0x6c3   :  { %v4047_v32 = vpop.f32.mrf.mxu2  ;;  %v4160_v61 = vpop.f32.mrf.mxu3 }
 0x6c4   :  { %v4499_v42 = vmax.f32 %v4498_v63, %v4384_v13  ;;  %v4048_v33 = vadd.f32 %v4047_v32, %v8476_v47 }
 0x6c6   :  { %v4161_v36 = vadd.f32 %v4160_v61, %v4048_v33  ;;  %v4500_v48 = vrot.slane %v4499_v42, 4 }
 0x6c8   :  { %v4274_v28 = vadd.f32 %v4273_v40, %v4161_v36  ;;  %v4501_v56 = vmax.f32 %v4499_v42, %v4500_v48  ;;  %v4288_v41 = vpop.f32.mrf.mxu0  ;;  %v4401_v20 = vpop.f32.mrf.mxu1 }
 0x6ca   :  { %v4387_v45 = vadd.f32 %v4386_v1, %v4274_v28  ;;  %v4502_v51 = vrot.slane %v4501_v56, 2 }
 0x6cb   :  { %v4050_v43 = vpop.f32.mrf.mxu2  ;;  %v4163_v5 = vpop.f32.mrf.mxu3 }
 0x6cc   :  { %v4051_v4 = vadd.f32 %v4050_v43, %v8476_v47  ;;  %v4503_v3 = vmax.f32 %v4501_v56, %v4502_v51 }
 0x6ce   :  { %v4164_v14 = vadd.f32 %v4163_v5, %v4051_v4  ;;  %v4504_v12 = vrot.slane %v4503_v3, 1 }
 0x6d0   :  { %v4277_v55 = vadd.f32 %v4276_v29, %v4164_v14  ;;  %v4505_v31 = vmax.f32 %v4503_v3, %v4504_v12  ;;  %v4291_v29 = vpop.f32.mrf.mxu0  ;;  %v4404_v27 = vpop.f32.mrf.mxu1 }
 0x6d2   :  { %v4390_v59 = vadd.f32 %v4389_v17, %v4277_v55  ;;  %v4603_v39 = vsel %vm1403_vm2, %v4505_v31, %v8612_v11 }
 0x6d3   :  { %v4053_v6 = vpop.f32.mrf.mxu2  ;;  %v4166_v35 = vpop.f32.mrf.mxu3 }
 0x6d4   :  { %v4515_v54 = vmax.f32 %v4387_v45, %v4390_v59  ;;  %v4054_v50 = vadd.f32 %v4053_v6, %v8476_v47 }
 0x6d6   :  { %v4167_v46 = vadd.f32 %v4166_v35, %v4054_v50 }
 0x6d8   :  { %v4280_v30 = vadd.f32 %v4279_v16, %v4167_v46  ;;  %v4294_v2 = vpop.f32.mrf.mxu0  ;;  %v4407_v57 = vpop.f32.mrf.mxu1 }
 0x6da   :  { %v4393_v9 = vadd.f32 %v4392_v19, %v4280_v30 }
 0x6db   :  { %v4056_v0 = vpop.f32.mrf.mxu2  ;;  %v4169_v40 = vpop.f32.mrf.mxu3 }
 0x6dc   :  { %v4516_v22 = vmax.f32 %v4515_v54, %v4393_v9  ;;  %v4057_v62 = vadd.f32 %v4056_v0, %v8476_v47 }
 0x6de   :  { %v4170_v1 = vadd.f32 %v4169_v40, %v4057_v62 }
 0x6e0   :  { %v4283_v21 = vadd.f32 %v4282_v53, %v4170_v1  ;;  %v4297_v42 = vpop.f32.mrf.mxu0  ;;  %v4410_v36 = vpop.f32.mrf.mxu1 }
 0x6e2   :  { %v4396_v44 = vadd.f32 %v4395_v24, %v4283_v21 }
 0x6e3   :  { %v4059_v18 = vpop.f32.mrf.mxu2  ;;  %v4172_v26 = vpop.f32.mrf.mxu3 }
 0x6e4   :  { %v4517_v58 = vmax.f32 %v4516_v22, %v4396_v44  ;;  %v4060_v52 = vadd.f32 %v4059_v18, %v8476_v47 }
 0x6e6   :  { %v4173_v17 = vadd.f32 %v4172_v26, %v4060_v52  ;;  %v4518_v38 = vrot.slane %v4517_v58, 4 }
 0x6e8   :  { %v4286_v8 = vadd.f32 %v4285_v60, %v4173_v17  ;;  %v4519_v16 = vmax.f32 %v4517_v58, %v4518_v38  ;;  %v4300_v55 = vpop.f32.mrf.mxu0  ;;  %v4413_v59 = vpop.f32.mrf.mxu1 }
 0x6ea   :  { %v4399_v37 = vadd.f32 %v4398_v25, %v4286_v8  ;;  %v4520_v13 = vrot.slane %v4519_v16, 2 }
 0x6eb   :  { %v4062_v34 = vpop.f32.mrf.mxu2  ;;  %v4175_v23 = vpop.f32.mrf.mxu3 }
 0x6ec   :  { %v4063_v10 = vadd.f32 %v4062_v34, %v8476_v47  ;;  %v4521_v33 = vmax.f32 %v4519_v16, %v4520_v13 }
 0x6ee   :  { %v4176_v7 = vadd.f32 %v4175_v23, %v4063_v10  ;;  %v4522_v48 = vrot.slane %v4521_v33, 1 }
 0x6f0   :  { %v4289_v63 = vadd.f32 %v4288_v41, %v4176_v7  ;;  %v4523_v60 = vmax.f32 %v4521_v33, %v4522_v48  ;;  %v4303_v46 = vpop.f32.mrf.mxu0  ;;  %v4416_v30 = vpop.f32.mrf.mxu1 }
 0x6f2   :  { %v4402_v19 = vadd.f32 %v4401_v20, %v4289_v63  ;;  %v4604_v35 = vsel %vm1405_vm3, %v4523_v60, %v4603_v39 }
 0x6f3   :  { %v4065_v15 = vpop.f32.mrf.mxu2  ;;  %v4178_v49 = vpop.f32.mrf.mxu3 }
 0x6f4   :  { %v4533_v32 = vmax.f32 %v4399_v37, %v4402_v19  ;;  %v4066_v11 = vadd.f32 %v4065_v15, %v8476_v47 }
 0x6f6   :  { %v4179_v61 = vadd.f32 %v4178_v49, %v4066_v11 }
 0x6f8   :  { %v4292_v53 = vadd.f32 %v4291_v29, %v4179_v61  ;;  %v4306_v20 = vpop.f32.mrf.mxu0  ;;  %v4419_v12 = vpop.f32.mrf.mxu1 }
 0x6fa   :  { %v4405_v24 = vadd.f32 %v4404_v27, %v4292_v53 }
 0x6fb   :  { %v4068_v43 = vpop.f32.mrf.mxu2  ;;  %v4181_v5 = vpop.f32.mrf.mxu3 }
 0x6fc   :  { %v4534_v4 = vmax.f32 %v4533_v32, %v4405_v24  ;;  %v4069_v28 = vadd.f32 %v4068_v43, %v8476_v47 }
 0x6fe   :  { %v4182_v14 = vadd.f32 %v4181_v5, %v4069_v28 }
 0x700   :  { %v4295_v56 = vadd.f32 %v4294_v2, %v4182_v14  ;;  %v4309_v21 = vpop.f32.mrf.mxu0  ;;  %v4422_v26 = vpop.f32.mrf.mxu1 }
 0x702   :  { %v4408_v6 = vadd.f32 %v4407_v57, %v4295_v56 }
 0x703   :  { %v4071_v25 = vpop.f32.mrf.mxu2  ;;  %v4184_v45 = vpop.f32.mrf.mxu3 }
 0x704   :  { %v4535_v51 = vmax.f32 %v4534_v4, %v4408_v6  ;;  %v4072_v29 = vadd.f32 %v4071_v25, %v8476_v47 }
 0x706   :  { %v4536_v3 = vrot.slane %v4535_v51, 4  ;;  %v4185_v23 = vadd.f32 %v4184_v45, %v4072_v29 }
 0x708   :  { %v4537_v41 = vmax.f32 %v4535_v51, %v4536_v3  ;;  %v4312_v8 = vpop.f32.mrf.mxu0  ;;  %v4298_v7 = vadd.f32 %v4297_v42, %v4185_v23  ;;  %v4425_v37 = vpop.f32.mrf.mxu1 }
 0x70a   :  { %v4538_v40 = vrot.slane %v4537_v41, 2  ;;  %v4411_v49 = vadd.f32 %v4410_v36, %v4298_v7 }
 0x70b   :  { %v4074_v54 = vpop.f32.mrf.mxu2  ;;  %v4187_v50 = vpop.f32.mrf.mxu3 }
 0x70c   :  { %v4539_v22 = vmax.f32 %v4537_v41, %v4538_v40  ;;  %v4075_v18 = vadd.f32 %v4074_v54, %v8476_v47 }
 0x70e   :  { %v4540_v31 = vrot.slane %v4539_v22, 1  ;;  %v4188_v17 = vadd.f32 %v4187_v50, %v4075_v18 }
 0x710   :  { %v4541_v44 = vmax.f32 %v4539_v22, %v4540_v31  ;;  %v4301_v10 = vadd.f32 %v4300_v55, %v4188_v17  ;;  %v4315_v48 = vpop.f32.mrf.mxu0  ;;  %v4428_v60 = vpop.f32.mrf.mxu1 }
 0x712   :  { %v8637_v27 = vsel %vm1407_vm4, %v4541_v44, %v4604_v35  ;;  %v4414_v19 = vadd.f32 %v4413_v59, %v4301_v10 }
 0x713   :  { %v4077_v9 = vpop.f32.mrf.mxu2  ;;  %v4190_v0 = vpop.f32.mrf.mxu3 }
 0x714   :  { %v4078_v58 = vadd.f32 %v4077_v9, %v8476_v47  ;;  %v4551_v11 = vmax.f32 %v4411_v49, %v4414_v19 }
 0x716   :  { %v4191_v38 = vadd.f32 %v4190_v0, %v4078_v58 }
 0x718   :  { %v4304_v57 = vadd.f32 %v4303_v46, %v4191_v38  ;;  %v4318_v3 = vpop.f32.mrf.mxu0  ;;  %v4431_v9 = vpop.f32.mrf.mxu1 }
 0x71a   :  { %v4417_v13 = vadd.f32 %v4416_v30, %v4304_v57 }
 0x71b   :  { %v4080_v62 = vpop.f32.mrf.mxu2  ;;  %v4193_v1 = vpop.f32.mrf.mxu3 }
 0x71c   :  { %v4081_v34 = vadd.f32 %v4080_v62, %v8476_v47  ;;  %v4552_v53 = vmax.f32 %v4551_v11, %v4417_v13 }
 0x71e   :  { %v4194_v2 = vadd.f32 %v4193_v1, %v4081_v34 }
 0x720   :  { %v4307_v15 = vadd.f32 %v4306_v20, %v4194_v2 }
 0x722   :  { %v4420_v61 = vadd.f32 %v4419_v12, %v4307_v15 }
 0x723   :  { %v4083_v52 = vpop.f32.mrf.mxu2  ;;  %v4196_v39 = vpop.f32.mrf.mxu3 }
 0x724   :  { %v4084_v33 = vadd.f32 %v4083_v52, %v8476_v47  ;;  %v4553_v4 = vmax.f32 %v4552_v53, %v4420_v61 }
 0x726   :  { %v4197_v28 = vadd.f32 %v4196_v39, %v4084_v33  ;;  %v4554_v36 = vrot.slane %v4553_v4, 4 }
 0x728   :  { %v4310_v55 = vadd.f32 %v4309_v21, %v4197_v28  ;;  %v4555_v35 = vmax.f32 %v4553_v4, %v4554_v36 }
 0x72a   :  { %v4423_v54 = vadd.f32 %v4422_v26, %v4310_v55  ;;  %v4556_v0 = vrot.slane %v4555_v35, 2 }
 0x72b   :  { %v4086_v16 = vpop.f32.mrf.mxu2  ;;  %v4199_v63 = vpop.f32.mrf.mxu3 }
 0x72c   :  { %v4087_v32 = vadd.f32 %v4086_v16, %v8476_v47  ;;  %v4557_v22 = vmax.f32 %v4555_v35, %v4556_v0 }
 0x72e   :  { %v4200_v5 = vadd.f32 %v4199_v63, %v4087_v32  ;;  %v4558_v31 = vrot.slane %v4557_v22, 1 }
 0x730   :  { %v4313_v56 = vadd.f32 %v4312_v8, %v4200_v5 }
 0x732   :  { %v4426_v59 = vadd.f32 %v4425_v37, %v4313_v56 }
 0x733   :  { %v4089_v24 = vpop.f32.mrf.mxu2  ;;  %v4202_v43 = vpop.f32.mrf.mxu3 }
 0x734   :  { %v4090_v42 = vadd.f32 %v4089_v24, %v8476_v47  ;;  %v4569_v30 = vmax.f32 %v4423_v54, %v4426_v59 }
 0x736   :  { %v4203_v14 = vadd.f32 %v4202_v43, %v4090_v42 }
 0x738   :  { %v4316_v25 = vadd.f32 %v4315_v48, %v4203_v14 }
 0x73a   :  { %v4429_v50 = vadd.f32 %v4428_v60, %v4316_v25 }
 0x73b   :  { %v4092_v45 = vpop.f32.mrf.mxu2  ;;  %v4205_v51 = vpop.f32.mrf.mxu3 }
 0x73c   :  { %v4093_v6 = vadd.f32 %v4092_v45, %v8476_v47  ;;  %v4570_v40 = vmax.f32 %v4569_v30, %v4429_v50  ;;  %v4559_v47 = vmax.f32 %v4557_v22, %v4558_v31 }
 0x73e   :  { %v4206_v46 = vadd.f32 %v4205_v51, %v4093_v6  ;;  %v4606_v29 = vsel %vm1409_vm5, %v4559_v47, %v8637_v27 }
 0x740   :  { %v4319_v41 = vadd.f32 %v4318_v3, %v4206_v46 }
 0x742   :  { %v4432_v20 = vadd.f32 %v4431_v9, %v4319_v41 }
 0x744   :  { %v4571_v12 = vmax.f32 %v4570_v40, %v4432_v20 }
 0x746   :  { %v4572_v62 = vrot.slane %v4571_v12, 4 }
 0x748   :  { %v4573_v1 = vmax.f32 %v4571_v12, %v4572_v62 }
 0x74a   :  { %v4574_v21 = vrot.slane %v4573_v1, 2 }
 0x74c   :  { %v4575_v44 = vmax.f32 %v4573_v1, %v4574_v21 }
 0x74e   :  { %v4576_v18 = vrot.slane %v4575_v44, 1 }
 0x750   :  { %v4577_v26 = vmax.f32 %v4575_v44, %v4576_v18 }
 0x752   :  { %v4607_v58 = vsel %vm1411_vm6, %v4577_v26, %v4606_v29 }
 0x753   :  { %4611 = vst [vmem:[#allocation8 + $0x8] sm:$0xff] %v4607_v58 }
 0x754   :  { %4622 = dma.vmem_to_hbm [thread:$0]  %s4618_s26, 256, %s4620_s28, [#allocation4]  }
 0x755   :  { %4833 = dma.done.wait [#allocation4], 256  }
 0x756   :  { %4834 = vsyncadd [#allocation4], 4294967040 }
 0x757   :  { %4627 = vsyncpa [#allocation3], 1 }
 0x758   :  { %4628 = vsyncpa [#allocation6], 1 }
 0x759   :  { %4629 = vsyncpa [#allocation4], 1 }

</bundles_post_ra>
